<compile_context>
chip_gen: v5e
topology: v5e:2x2
jax: 0.10.0
libtpu: 0.0.40
codegen_flags: <defaults>
</compile_context>

<pallas_src>
import math
import numpy as np
import jax
import jax.numpy as jnp
from jax import lax
from jax.experimental import pallas as pl
from jax.experimental.pallas import tpu as pltpu

# -------------------- constants (mirror of the globals in Code/models/CFD.py) ----------------
RE = 0.15
DT = 0.5
DX = DY = DZ = 1.0
UB = -1.0
SIGMA = 0.05                 # the torch file references an undeclared global `sigma`; fixed here
NZ, NY, NX = 8, 16, 16       # shrunk from (64, 512, 512) for the demo
NLEVEL = int(math.log(min(NX, NY, NZ), 2)) + 1
RATIO_X = NX // NZ
RATIO_Y = NY // NZ
ITERATION = 2

# 48 MiB scoped VMEM is comfortably below v5e/v6e (128 MiB) and v7x (64 MiB) physical VMEM.
# TODO(synk): at the real (64, 512, 512) size the fused momentum kernel's per-plane working
# set is ~20 MiB single-buffered; Y-tiling (or a manual-DMA window) would be needed there.
VMEM_LIMIT_BYTES = 48 * 1024 * 1024


# Deterministic finite-difference stencils.  The torch __init__ installs all-zero placeholder
# weights (real ones are loaded elsewhere); here we install the canonical central-difference /
# 7-point-Laplacian stencils so that `diag` is non-zero.
def _lap():
    w = np.zeros((3, 3, 3), np.float32)
    w[1, 1, 1] = -6.0
    for d in ((0, 1, 1), (2, 1, 1), (1, 0, 1), (1, 2, 1), (1, 1, 0), (1, 1, 2)):
        w[d] = 1.0
    return w


W_DIFF = _lap()                                                   # self.diff
W_A = _lap()                                                      # self.A
W_XADV = np.zeros((3, 3, 3), np.float32); W_XADV[1, 1, 0] = -0.5 / DX; W_XADV[1, 1, 2] = 0.5 / DX
W_YADV = np.zeros((3, 3, 3), np.float32); W_YADV[1, 0, 1] = -0.5 / DY; W_YADV[1, 2, 1] = 0.5 / DY
W_ZADV = np.zeros((3, 3, 3), np.float32); W_ZADV[0, 1, 1] = -0.5 / DZ; W_ZADV[2, 1, 1] = 0.5 / DZ
W_RES = np.full((2, 2, 2), 0.125, np.float32)                     # self.res (2x2x2, stride 2)
DIAG = float(W_A[1, 1, 1])


def _taps(w):
    """Compile-time (kz, ky, kx, coeff) list, zero taps dropped."""
    w = np.asarray(w, np.float32)
    return tuple((kz, ky, kx, float(w[kz, ky, kx]))
                 for kz in range(3) for ky in range(3) for kx in range(3)
                 if float(w[kz, ky, kx]) != 0.0)


TAPS_X = _taps(W_XADV)
TAPS_Y = _taps(W_YADV)
TAPS_Z = _taps(W_ZADV)
TAPS_D = _taps(W_DIFF)
TAPS_A = _taps(W_A)


# ----------------------------- in-kernel stencil helpers -------------------------------------
def _stencil(planes, taps, Y, X):
    """'valid' 3x3x3 conv at one z-plane.  planes = (z-1, z, z+1) padded planes (Y+2, X+2)."""
    acc = None
    for kz, ky, kx, c in taps:
        t = c * planes[kz][ky:ky + Y, kx:kx + X]
        acc = t if acc is None else acc + t
    if acc is None:
        acc = jnp.zeros((Y, X), jnp.float32)
    return acc


def _interior(plane, Y, X):
    return plane[1:Y + 1, 1:X + 1]


# -------------------------- generic z-plane fused Pallas kernel ------------------------------
def run_plane_kernel(compute, padded_inputs, plain_inputs, n_out, out_shape):
    """Run `compute` once per output z-plane.

    padded_inputs: list of (Z+2, Y+2, X+2) arrays.  Each padded plane is read from HBM
                   exactly once; a (3, Y+2, X+2) VMEM ring buffer per field supplies the
                   (z-1, z, z+1) window to the stencil (sequential grid over Z+2 planes).
    plain_inputs:  list of (Z, Y, X) arrays; the kernel sees the matching (Y, X) plane.
    compute(padded_planes, plain_planes) -> list of n_out (Y, X) float32 planes.
    """
    Z, Y, X = out_shape
    n_pad, n_plain = len(padded_inputs), len(plain_inputs)
    out_shapes = tuple(jax.ShapeDtypeStruct((Z, Y, X), jnp.float32) for _ in range(n_out))
    out_specs_full = tuple(pl.BlockSpec((1, Y, X), lambda z: (z, 0, 0)) for _ in range(n_out))

    # ---- purely elementwise path (no halo): independent planes, megacore-parallel ----------
    if n_pad == 0:
        in_specs = [pl.BlockSpec((1, a.shape[1], a.shape[2]), lambda z: (z, 0, 0))
                    for a in plain_inputs]

        def ew_kernel(*refs):
            in_refs, out_refs = refs[:n_plain], refs[n_plain:]
            outs = compute([], [r[0] for r in in_refs])
            for o_ref, val in zip(out_refs, outs):
                o_ref[0] = val

        outs = pl.pallas_call(
            ew_kernel,
            grid=(Z,),
            in_specs=in_specs,
            out_specs=out_specs_full,
            out_shape=out_shapes,
            compiler_params=pltpu.CompilerParams(
                dimension_semantics=("parallel",),
                vmem_limit_bytes=VMEM_LIMIT_BYTES),
        )(*plain_inputs)
        return list(outs)

    # ---- rolling-window stencil path: each padded plane DMA'd once ------------------------
    in_specs = []
    for a in padded_inputs:
        _, Yp, Xp = a.shape
        in_specs.append(pl.BlockSpec((1, Yp, Xp), lambda z: (z, 0, 0)))
    for a in plain_inputs:
        _, Ya, Xa = a.shape
        in_specs.append(pl.BlockSpec((1, Ya, Xa),
                                     lambda z: (jnp.maximum(z - 2, 0), 0, 0)))
    out_specs = tuple(pl.BlockSpec((1, Y, X), lambda z: (jnp.maximum(z - 2, 0), 0, 0))
                      for _ in range(n_out))
    scratch_shapes = [pltpu.VMEM((3, a.shape[1], a.shape[2]), jnp.float32)
                      for a in padded_inputs]
    n_in = n_pad + n_plain

    def kernel(*refs):
        in_refs = refs[:n_in]
        out_refs = refs[n_in:n_in + n_out]
        rings = refs[n_in + n_out:]
        z = pl.program_id(0)
        slot = lax.rem(z, 3)

        # Load the newly arrived padded plane of each field once and push it into the ring.
        new_planes = [in_refs[i][0] for i in range(n_pad)]
        for i in range(n_pad):
            rings[i][slot] = new_planes[i]

        @pl.when(z >= 2)
        def _():
            s0 = lax.rem(z + 1, 3)           # == (z - 2) % 3  -> padded plane z-2  (kz = 0)
            s1 = lax.rem(z + 2, 3)           # == (z - 1) % 3  -> padded plane z-1  (kz = 1)
            padded = [(rings[i][s0], rings[i][s1], new_planes[i]) for i in range(n_pad)]
            plain = [in_refs[n_pad + j][0] for j in range(n_plain)]
            outs = compute(padded, plain)
            for o_ref, val in zip(out_refs, outs):
                o_ref[0] = val

    outs = pl.pallas_call(
        kernel,
        grid=(Z + 2,),
        in_specs=in_specs,
        out_specs=out_specs,
        out_shape=out_shapes,
        scratch_shapes=scratch_shapes,
        compiler_params=pltpu.CompilerParams(
            dimension_semantics=("arbitrary",),   # z-carried ring dependency -> sequential
            vmem_limit_bytes=VMEM_LIMIT_BYTES),
    )(*padded_inputs, *plain_inputs)
    return list(outs)


# ------------------------------- fused kernel bodies ------------------------------------------
def make_scale_compute(dt):
    """solid_body: divide by (1 + dt*sigma)."""
    s = 1.0 / (1.0 + dt * SIGMA)

    def compute(padded, plain):
        return [p * s for p in plain]
    return compute


def make_k_compute(Y, X, dt):
    """PG_vector turbulent viscosity k_u/k_v/k_w (adv/diff stencils recomputed in-kernel)."""
    s = 1.0 / (1.0 + dt * SIGMA)
    inv3 = (1.0 / 3.0) * DX ** (-3)
    # NOTE: denominator uses dx**(-3) for all three gradient terms, exactly as in the torch
    # source (only coincidentally isotropic because dx == dy == dz == 1).
    den_c = DX ** (-3) / 3.0
    scales = (0.1 * DX, 0.1 * DY, 0.1 * DZ)

    def compute(padded, plain):
        adv_u, adv_v, adv_w = padded
        (k1_p,) = plain
        u = _interior(adv_u[1], Y, X)
        v = _interior(adv_v[1], Y, X)
        w = _interior(adv_w[1], Y, X)
        speed = jnp.abs(u) * DX + jnp.abs(v) * DY + jnp.abs(w) * DZ
        outs = []
        for advp, scale in zip((adv_u, adv_v, adv_w), scales):
            adx = _stencil(advp, TAPS_X, Y, X)
            ady = _stencil(advp, TAPS_Y, Y, X)
            adz = _stencil(advp, TAPS_Z, Y, X)
            ad2 = _stencil(advp, TAPS_D, Y, X)
            num = scale * jnp.abs(inv3 * speed * ad2)
            den = 0.001 + (jnp.abs(adx) + jnp.abs(ady) + jnp.abs(adz)) * den_c
            outs.append(jnp.minimum(num / den, k1_p) * s)
        return outs
    return compute


def make_momentum_compute(Y, X, dt, half, base_from_adv):
    """Fused: adv/diff stencils + pressure gradient + PG mixing + momentum update + solid body.

    half = 0.5 -> predictor (b_u/b_v/b_w);  half = 1.0 -> corrector (new values_u/v/w).
    padded = [adv_u, adv_v, adv_w, k_uu, k_vv, k_ww, pp].
    base_from_adv=True  -> base velocity = interior of the padded advective field (predictor,
                           saves 3 full-field HBM reads); False -> plain = [base_u, base_v, base_w].
    """
    s = 1.0 / (1.0 + dt * SIGMA)

    def compute(padded, plain):
        adv_u, adv_v, adv_w, kp_u, kp_v, kp_w, pp = padded
        uadv = _interior(adv_u[1], Y, X)
        vadv = _interior(adv_v[1], Y, X)
        wadv = _interior(adv_w[1], Y, X)
        if base_from_adv:
            base_u, base_v, base_w = uadv, vadv, wadv
        else:
            base_u, base_v, base_w = plain
        gx = _stencil(pp, TAPS_X, Y, X) * dt          # Grapx_p (dt folded in)
        gy = _stencil(pp, TAPS_Y, Y, X) * dt
        gz = _stencil(pp, TAPS_Z, Y, X) * dt
        outs = []
        for advp, kp, g, base, own in ((adv_u, kp_u, gx, base_u, uadv),
                                       (adv_v, kp_v, gy, base_v, vadv),
                                       (adv_w, kp_w, gz, base_w, wadv)):
            adx = _stencil(advp, TAPS_X, Y, X)
            ady = _stencil(advp, TAPS_Y, Y, X)
            adz = _stencil(advp, TAPS_Z, Y, X)
            ad2 = _stencil(advp, TAPS_D, Y, X)
            k_c = _interior(kp[1], Y, X)
            prod = tuple(advp[i] * kp[i] for i in range(3))   # uu*k_uu formed in-kernel
            duk = _stencil(prod, TAPS_D, Y, X)                # diff(uu * k_uu)
            dk = _stencil(kp, TAPS_D, Y, X)                   # diff(k_uu)
            k_comp = 0.5 * (k_c * ad2 + duk - own * dk)       # k_x / k_y / k_z
            upd = base + half * (RE * k_comp * dt
                                 - uadv * adx * dt - vadv * ady * dt - wadv * adz * dt) - g
            outs.append(s * upd)                              # fused solid_body
        return outs
    return compute


def make_div_compute(Y, X, dt):
    """b = -(xadv(uu) + yadv(vv) + zadv(ww)) / dt."""
    def compute(padded, plain):
        uu, vv, ww = padded
        ax = _stencil(uu, TAPS_X, Y, X)
        ay = _stencil(vv, TAPS_Y, Y, X)
        az = _stencil(ww, TAPS_Z, Y, X)
        return [-(ax + ay + az) / dt]
    return compute


def make_residual_compute(Y, X):
    """r = A(pp) - b."""
    def compute(padded, plain):
        (pp,) = padded
        (b,) = plain
        return [_stencil(pp, TAPS_A, Y, X) - b]
    return compute


def make_smoother_compute(Y, X):
    """p_new = p - A(pp)/diag + b/diag."""
    def compute(padded, plain):
        (pp,) = padded
        p, b = plain
        return [p - _stencil(pp, TAPS_A, Y, X) / DIAG + b / DIAG]
    return compute


def make_final_compute(Y, X, dt):
    """u -= xadv(pp)*dt (etc.) followed by the final solid body, fused."""
    s = 1.0 / (1.0 + dt * SIGMA)

    def compute(padded, plain):
        (pp,) = padded
        u, v, w = plain
        gx = _stencil(pp, TAPS_X, Y, X) * dt
        gy = _stencil(pp, TAPS_Y, Y, X) * dt
        gz = _stencil(pp, TAPS_Z, Y, X) * dt
        return [s * (u - gx), s * (v - gy), s * (w - gz)]
    return compute


# --------------------------- plain-JAX glue (boundary conditions, MG transfer) ----------------
# TODO(synk): boundary-condition halo scatters could be synthesized in-kernel with pl.when on
# boundary tiles to avoid the padded-copy HBM pass; kept as glue for correctness/simplicity.
def bc_u(u, uu):
    uu = uu.at[1:-1, 1:-1, 1:-1].set(u)
    uu = uu.at[:, :, 0].set(UB)
    uu = uu.at[:, :, -1].set(UB)
    uu = uu.at[:, 0, :].set(uu[:, 1, :])
    uu = uu.at[:, -1, :].set(uu[:, -2, :])
    uu = uu.at[0, :, :].set(uu[1, :, :] * 0)
    uu = uu.at[-1, :, :].set(uu[-2, :, :])
    return uu


def bc_v(v, vv):
    vv = vv.at[1:-1, 1:-1, 1:-1].set(v)
    vv = vv.at[:, :, 0].set(vv[:, :, 1] * 0)
    vv = vv.at[:, :, -1].set(vv[:, :, -2] * 0)
    vv = vv.at[:, 0, :].set(0.0)
    vv = vv.at[:, -1, :].set(0.0)
    vv = vv.at[0, :, :].set(vv[1, :, :] * 0)
    vv = vv.at[-1, :, :].set(vv[-2, :, :])
    return vv


def bc_w(w, ww):
    ww = ww.at[1:-1, 1:-1, 1:-1].set(w)
    ww = ww.at[:, :, 0].set(ww[:, :, 1] * 0)
    ww = ww.at[:, :, -1].set(ww[:, :, -2] * 0)
    ww = ww.at[:, 0, :].set(ww[:, 1, :] * 0)
    ww = ww.at[:, -1, :].set(ww[:, -2, :] * 0)
    ww = ww.at[0, :, :].set(0.0)
    ww = ww.at[-1, :, :].set(0.0)
    return ww


def bc_p(p, pp):
    pp = pp.at[1:-1, 1:-1, 1:-1].set(p)
    pp = pp.at[:, :, 0].set(pp[:, :, 1])
    pp = pp.at[:, :, -1].set(pp[:, :, -2] * 0)
    pp = pp.at[:, 0, :].set(pp[:, 1, :])
    pp = pp.at[:, -1, :].set(pp[:, -2, :])
    pp = pp.at[0, :, :].set(pp[1, :, :])
    pp = pp.at[-1, :, :].set(pp[-2, :, :])
    return pp


def restrict(r):  # self.res: 2x2x2 conv, stride 2, bias 0
    out = jnp.zeros((r.shape[0] // 2, r.shape[1] // 2, r.shape[2] // 2), r.dtype)
    for dz in range(2):
        for dy in range(2):
            for dx in range(2):
                out = out + float(W_RES[dz, dy, dx]) * r[dz::2, dy::2, dx::2]
    return out


def prolong(w):  # self.prol: nearest upsample x2
    return jnp.repeat(jnp.repeat(jnp.repeat(w, 2, axis=0), 2, axis=1), 2, axis=2)


def a_stencil_jax(padded):
    """'valid' A-stencil, plain JAX -- used only on the small coarse multigrid levels."""
    D, H, W = padded.shape[0] - 2, padded.shape[1] - 2, padded.shape[2] - 2
    acc = jnp.zeros((D, H, W), padded.dtype)
    for kz, ky, kx, c in TAPS_A:
        acc = acc + c * padded[kz:kz + D, ky:ky + H, kx:kx + W]
    return acc


# ------------------------------------ multigrid F-cycle ---------------------------------------
def f_cycle_mg(values_uu, values_vv, values_ww, values_p, values_pp, iteration, dt):
    Z, Y, X = values_p.shape
    shape = (Z, Y, X)
    b = run_plane_kernel(make_div_compute(Y, X, dt),
                         [values_uu, values_vv, values_ww], [], 1, shape)[0]
    w = jnp.zeros_like(values_p)
    r = jnp.zeros_like(values_p)
    for _ in range(iteration):
        w = jnp.zeros((2, 2 * RATIO_Y, 2 * RATIO_X), jnp.float32)
        r = run_plane_kernel(make_residual_compute(Y, X),
                             [bc_p(values_p, values_pp)], [b], 1, shape)[0]
        r_s = [r]
        rr = r
        for _i in range(1, NLEVEL - 1):
            rr = restrict(rr)                         # TODO(synk): finest restrict could be Pallas
            r_s.append(rr)
        for i in reversed(range(1, NLEVEL - 1)):       # coarse V-cycle, plain JAX (tiny arrays)
            a_w = a_stencil_jax(jnp.pad(w, 1))        # boundary_condition_cw == zero pad
            w = w - a_w / DIAG + r_s[i] / DIAG
            w = prolong(w)
        p_mw = values_p - w
        values_p = run_plane_kernel(make_smoother_compute(Y, X),
                                    [bc_p(p_mw, values_pp)], [p_mw, b], 1, shape)[0]
    return values_p, w, r


# ------------------------------------- forward ------------------------------------------------
def ai4urban_forward(values_u, values_uu, values_v, values_vv, values_w, values_ww,
                     values_p, values_pp, b_uu, b_vv, b_ww, k1, dt, iteration,
                     k_uu, k_vv, k_ww):
    Z, Y, X = values_u.shape
    shape = (Z, Y, X)

    # LIBM solid body drag (tiled elementwise Pallas pass).
    values_u, values_v, values_w = run_plane_kernel(
        make_scale_compute(dt), [], [values_u, values_v, values_w], 3, shape)

    values_uu = bc_u(values_u, values_uu)
    values_vv = bc_v(values_v, values_vv)
    values_ww = bc_w(values_w, values_ww)
    values_pp = bc_p(values_p, values_pp)

    # ---- momentum predictor -------------------------------------------------------------
    k_u, k_v, k_w = run_plane_kernel(
        make_k_compute(Y, X, dt), [values_uu, values_vv, values_ww], [k1], 3, shape)
    # TODO(synk): the zero-pad of k (boundary_condition_k) is a plain-XLA full-field copy; it
    # could be fused into the k kernel by emitting a padded output with in-kernel zero borders.
    k_uu = jnp.pad(k_u, 1)
    k_vv = jnp.pad(k_v, 1)
    k_ww = jnp.pad(k_w, 1)
    b_u, b_v, b_w = run_plane_kernel(
        make_momentum_compute(Y, X, dt, 0.5, base_from_adv=True),
        [values_uu, values_vv, values_ww, k_uu, k_vv, k_ww, values_pp],
        [], 3, shape)

    b_uu = bc_u(b_u, b_uu)
    b_vv = bc_v(b_v, b_vv)
    b_ww = bc_w(b_w, b_ww)

    # ---- momentum corrector -------------------------------------------------------------
    k_u, k_v, k_w = run_plane_kernel(
        make_k_compute(Y, X, dt), [b_uu, b_vv, b_ww], [k1], 3, shape)
    k_uu = jnp.pad(k_u, 1)
    k_vv = jnp.pad(k_v, 1)
    k_ww = jnp.pad(k_w, 1)
    values_u, values_v, values_w = run_plane_kernel(
        make_momentum_compute(Y, X, dt, 1.0, base_from_adv=False),
        [b_uu, b_vv, b_ww, k_uu, k_vv, k_ww, values_pp],
        [values_u, values_v, values_w], 3, shape)

    values_uu = bc_u(values_u, values_uu)
    values_vv = bc_v(values_v, values_vv)
    values_ww = bc_w(values_w, values_ww)

    # ---- pressure multigrid F-cycle -------------------------------------------------------
    values_p, w_mg, r_mg = f_cycle_mg(values_uu, values_vv, values_ww,
                                      values_p, values_pp, iteration, dt)

    # ---- pressure-gradient correction + final solid body (one fused pass) -----------------
    values_pp = bc_p(values_p, values_pp)
    values_u, values_v, values_w = run_plane_kernel(
        make_final_compute(Y, X, dt), [values_pp],
        [values_u, values_v, values_w], 3, shape)

    return values_u, values_v, values_w, values_p, w_mg, r_mg


fwd = jax.jit(ai4urban_forward, static_argnums=(12, 13))


if __name__ == "__main__":
    key = jax.random.PRNGKey(0)
    ku, kv, kw, kp = jax.random.split(key, 4)
    shape = (NZ, NY, NX)
    pad_shape = (NZ + 2, NY + 2, NX + 2)

    values_u = 0.1 * jax.random.normal(ku, shape, jnp.float32)
    values_v = 0.1 * jax.random.normal(kv, shape, jnp.float32)
    values_w = 0.1 * jax.random.normal(kw, shape, jnp.float32)
    values_p = 0.1 * jax.random.normal(kp, shape, jnp.float32)
    zeros_pad = jnp.zeros(pad_shape, jnp.float32)
    k1 = 2.0 * jnp.ones(shape, jnp.float32)

    out = fwd(values_u, zeros_pad, values_v, zeros_pad, values_w, zeros_pad,
              values_p, zeros_pad, zeros_pad, zeros_pad, zeros_pad, k1,
              DT, ITERATION, zeros_pad, zeros_pad, zeros_pad)
    out = jax.block_until_ready(out)

    assert out[0].shape == shape and out[3].shape == shape
    assert all(bool(jnp.all(jnp.isfinite(o))) for o in out)
    print("KERNEL_OK")
</pallas_src>

<mosaic_0001>
module attributes {stable_mosaic.version = 11 : i64} {
  func.func @ew_kernel(%arg0: i32, %arg1: memref<1x16x16xf32, #tpu.memory_space<vmem>>, %arg2: memref<1x16x16xf32, #tpu.memory_space<vmem>>, %arg3: memref<1x16x16xf32, #tpu.memory_space<vmem>>, %arg4: memref<1x16x16xf32, #tpu.memory_space<vmem>>, %arg5: memref<1x16x16xf32, #tpu.memory_space<vmem>>, %arg6: memref<1x16x16xf32, #tpu.memory_space<vmem>>) attributes {dimension_semantics = [#tpu.dimension_semantics<parallel>], iteration_bounds = array<i64: 8>, scalar_prefetch = 0 : i64, scratch_operands = 0 : i64, tpu.core_type = #tpu.core_type<tc>, window_params = [{transform_indices = @transform_0, window_bounds = array<i64: 1, 16, 16>}, {transform_indices = @transform_1, window_bounds = array<i64: 1, 16, 16>}, {transform_indices = @transform_2, window_bounds = array<i64: 1, 16, 16>}, {transform_indices = @transform_3, window_bounds = array<i64: 1, 16, 16>}, {transform_indices = @transform_4, window_bounds = array<i64: 1, 16, 16>}, {transform_indices = @transform_5, window_bounds = array<i64: 1, 16, 16>}]} {
    %c0 = arith.constant 0 : index
    %c0_0 = arith.constant 0 : index
    %c0_1 = arith.constant 0 : index
    %0 = vector.load %arg1[%c0, %c0_0, %c0_1] : memref<1x16x16xf32, #tpu.memory_space<vmem>>, vector<1x16x16xf32>
    %1 = vector.shape_cast %0 : vector<1x16x16xf32> to vector<16x16xf32>
    %c0_2 = arith.constant 0 : index
    %c0_3 = arith.constant 0 : index
    %c0_4 = arith.constant 0 : index
    %2 = vector.load %arg2[%c0_2, %c0_3, %c0_4] : memref<1x16x16xf32, #tpu.memory_space<vmem>>, vector<1x16x16xf32>
    %3 = vector.shape_cast %2 : vector<1x16x16xf32> to vector<16x16xf32>
    %c0_5 = arith.constant 0 : index
    %c0_6 = arith.constant 0 : index
    %c0_7 = arith.constant 0 : index
    %4 = vector.load %arg3[%c0_5, %c0_6, %c0_7] : memref<1x16x16xf32, #tpu.memory_space<vmem>>, vector<1x16x16xf32>
    %5 = vector.shape_cast %4 : vector<1x16x16xf32> to vector<16x16xf32>
    %cst = arith.constant 0.975609779 : f32
    %6 = vector.broadcast %cst : f32 to vector<16x16xf32>
    %7 = arith.mulf %1, %6 : vector<16x16xf32>
    %cst_8 = arith.constant 0.975609779 : f32
    %8 = vector.broadcast %cst_8 : f32 to vector<16x16xf32>
    %9 = arith.mulf %3, %8 : vector<16x16xf32>
    %cst_9 = arith.constant 0.975609779 : f32
    %10 = vector.broadcast %cst_9 : f32 to vector<16x16xf32>
    %11 = arith.mulf %5, %10 : vector<16x16xf32>
    %c0_10 = arith.constant 0 : index
    %c0_11 = arith.constant 0 : index
    %c0_12 = arith.constant 0 : index
    %12 = vector.load %arg4[%c0_10, %c0_11, %c0_12] : memref<1x16x16xf32, #tpu.memory_space<vmem>>, vector<1x16x16xf32>
    %13 = vector.shape_cast %12 : vector<1x16x16xf32> to vector<16x16xf32>
    %14 = vector.shape_cast %7 : vector<16x16xf32> to vector<1x16x16xf32>
    tpu.vector_store %arg4[%c0_10, %c0_11, %c0_12], %14 {strides = array<i32>} : memref<1x16x16xf32, #tpu.memory_space<vmem>>, vector<1x16x16xf32>,
    %c0_13 = arith.constant 0 : index
    %c0_14 = arith.constant 0 : index
    %c0_15 = arith.constant 0 : index
    %15 = vector.load %arg5[%c0_13, %c0_14, %c0_15] : memref<1x16x16xf32, #tpu.memory_space<vmem>>, vector<1x16x16xf32>
    %16 = vector.shape_cast %15 : vector<1x16x16xf32> to vector<16x16xf32>
    %17 = vector.shape_cast %9 : vector<16x16xf32> to vector<1x16x16xf32>
    tpu.vector_store %arg5[%c0_13, %c0_14, %c0_15], %17 {strides = array<i32>} : memref<1x16x16xf32, #tpu.memory_space<vmem>>, vector<1x16x16xf32>,
    %c0_16 = arith.constant 0 : index
    %c0_17 = arith.constant 0 : index
    %c0_18 = arith.constant 0 : index
    %18 = vector.load %arg6[%c0_16, %c0_17, %c0_18] : memref<1x16x16xf32, #tpu.memory_space<vmem>>, vector<1x16x16xf32>
    %19 = vector.shape_cast %18 : vector<1x16x16xf32> to vector<16x16xf32>
    %20 = vector.shape_cast %11 : vector<16x16xf32> to vector<1x16x16xf32>
    tpu.vector_store %arg6[%c0_16, %c0_17, %c0_18], %20 {strides = array<i32>} : memref<1x16x16xf32, #tpu.memory_space<vmem>>, vector<1x16x16xf32>,
    return
  }
  func.func @transform_0(%arg0: i32) -> (i32, i32, i32) {
    %c0_i32 = arith.constant 0 : i32
    %c0_i32_0 = arith.constant 0 : i32
    %c0_i32_1 = arith.constant 0 : i32
    return %arg0, %c0_i32, %c0_i32_0 : i32, i32, i32
  }
  func.func @transform_1(%arg0: i32) -> (i32, i32, i32) {
    %c0_i32 = arith.constant 0 : i32
    %c0_i32_0 = arith.constant 0 : i32
    %c0_i32_1 = arith.constant 0 : i32
    return %arg0, %c0_i32, %c0_i32_0 : i32, i32, i32
  }
  func.func @transform_2(%arg0: i32) -> (i32, i32, i32) {
    %c0_i32 = arith.constant 0 : i32
    %c0_i32_0 = arith.constant 0 : i32
    %c0_i32_1 = arith.constant 0 : i32
    return %arg0, %c0_i32, %c0_i32_0 : i32, i32, i32
  }
  func.func @transform_3(%arg0: i32) -> (i32, i32, i32) {
    %c0_i32 = arith.constant 0 : i32
    %c0_i32_0 = arith.constant 0 : i32
    %c0_i32_1 = arith.constant 0 : i32
    return %arg0, %c0_i32, %c0_i32_0 : i32, i32, i32
  }
  func.func @transform_4(%arg0: i32) -> (i32, i32, i32) {
    %c0_i32 = arith.constant 0 : i32
    %c0_i32_0 = arith.constant 0 : i32
    %c0_i32_1 = arith.constant 0 : i32
    return %arg0, %c0_i32, %c0_i32_0 : i32, i32, i32
  }
  func.func @transform_5(%arg0: i32) -> (i32, i32, i32) {
    %c0_i32 = arith.constant 0 : i32
    %c0_i32_0 = arith.constant 0 : i32
    %c0_i32_1 = arith.constant 0 : i32
    return %arg0, %c0_i32, %c0_i32_0 : i32, i32, i32
  }
}

module attributes {stable_mosaic.version = 11 : i64} {
  func.func @kernel(%arg0: i32, %arg1: memref<1x18x18xf32, #tpu.memory_space<vmem>>, %arg2: memref<1x18x18xf32, #tpu.memory_space<vmem>>, %arg3: memref<1x18x18xf32, #tpu.memory_space<vmem>>, %arg4: memref<1x16x16xf32, #tpu.memory_space<vmem>>, %arg5: memref<3x18x18xf32, #tpu.memory_space<vmem>>, %arg6: memref<3x18x18xf32, #tpu.memory_space<vmem>>, %arg7: memref<3x18x18xf32, #tpu.memory_space<vmem>>) attributes {dimension_semantics = [#tpu.dimension_semantics<arbitrary>], iteration_bounds = array<i64: 10>, scalar_prefetch = 0 : i64, scratch_operands = 3 : i64, tpu.core_type = #tpu.core_type<tc>, window_params = [{transform_indices = @transform_0, window_bounds = array<i64: 1, 18, 18>}, {transform_indices = @transform_1, window_bounds = array<i64: 1, 18, 18>}, {transform_indices = @transform_2, window_bounds = array<i64: 1, 18, 18>}, {transform_indices = @transform_3, window_bounds = array<i64: 1, 16, 16>}]} {
    %c3_i32 = arith.constant 3 : i32
    %0 = arith.remsi %arg0, %c3_i32 : i32
    %c0 = arith.constant 0 : index
    %c0_0 = arith.constant 0 : index
    %c0_1 = arith.constant 0 : index
    %1 = vector.load %arg1[%c0, %c0_0, %c0_1] : memref<1x18x18xf32, #tpu.memory_space<vmem>>, vector<1x18x18xf32>
    %2 = vector.shape_cast %1 : vector<1x18x18xf32> to vector<18x18xf32>
    %c0_2 = arith.constant 0 : index
    %c0_3 = arith.constant 0 : index
    %c0_4 = arith.constant 0 : index
    %3 = vector.load %arg2[%c0_2, %c0_3, %c0_4] : memref<1x18x18xf32, #tpu.memory_space<vmem>>, vector<1x18x18xf32>
    %4 = vector.shape_cast %3 : vector<1x18x18xf32> to vector<18x18xf32>
    %c0_5 = arith.constant 0 : index
    %c0_6 = arith.constant 0 : index
    %c0_7 = arith.constant 0 : index
    %5 = vector.load %arg3[%c0_5, %c0_6, %c0_7] : memref<1x18x18xf32, #tpu.memory_space<vmem>>, vector<1x18x18xf32>
    %6 = vector.shape_cast %5 : vector<1x18x18xf32> to vector<18x18xf32>
    %7 = arith.index_cast %0 : i32 to index
    %c0_8 = arith.constant 0 : index
    %c0_9 = arith.constant 0 : index
    %8 = vector.load %arg5[%7, %c0_8, %c0_9] : memref<3x18x18xf32, #tpu.memory_space<vmem>>, vector<1x18x18xf32>
    %9 = vector.shape_cast %8 : vector<1x18x18xf32> to vector<18x18xf32>
    %10 = vector.shape_cast %2 : vector<18x18xf32> to vector<1x18x18xf32>
    tpu.vector_store %arg5[%7, %c0_8, %c0_9], %10 {strides = array<i32>} : memref<3x18x18xf32, #tpu.memory_space<vmem>>, vector<1x18x18xf32>,
    %11 = arith.index_cast %0 : i32 to index
    %c0_10 = arith.constant 0 : index
    %c0_11 = arith.constant 0 : index
    %12 = vector.load %arg6[%11, %c0_10, %c0_11] : memref<3x18x18xf32, #tpu.memory_space<vmem>>, vector<1x18x18xf32>
    %13 = vector.shape_cast %12 : vector<1x18x18xf32> to vector<18x18xf32>
    %14 = vector.shape_cast %4 : vector<18x18xf32> to vector<1x18x18xf32>
    tpu.vector_store %arg6[%11, %c0_10, %c0_11], %14 {strides = array<i32>} : memref<3x18x18xf32, #tpu.memory_space<vmem>>, vector<1x18x18xf32>,
    %15 = arith.index_cast %0 : i32 to index
    %c0_12 = arith.constant 0 : index
    %c0_13 = arith.constant 0 : index
    %16 = vector.load %arg7[%15, %c0_12, %c0_13] : memref<3x18x18xf32, #tpu.memory_space<vmem>>, vector<1x18x18xf32>
    %17 = vector.shape_cast %16 : vector<1x18x18xf32> to vector<18x18xf32>
    %18 = vector.shape_cast %6 : vector<18x18xf32> to vector<1x18x18xf32>
    tpu.vector_store %arg7[%15, %c0_12, %c0_13], %18 {strides = array<i32>} : memref<3x18x18xf32, #tpu.memory_space<vmem>>, vector<1x18x18xf32>,
    %c2_i32 = arith.constant 2 : i32
    %19 = arith.cmpi sge, %arg0, %c2_i32 : i32
    %20 = arith.extui %19 : i1 to i32
    %c0_i32 = arith.constant 0 : i32
    %21 = arith.cmpi ne, %20, %c0_i32 : i32
    scf.if %21 {
      %c1_i32 = arith.constant 1 : i32
      %22 = arith.addi %arg0, %c1_i32 : i32
      %c3_i32_14 = arith.constant 3 : i32
      %23 = arith.remsi %22, %c3_i32_14 : i32
      %c2_i32_15 = arith.constant 2 : i32
      %24 = arith.addi %arg0, %c2_i32_15 : i32
      %c3_i32_16 = arith.constant 3 : i32
      %25 = arith.remsi %24, %c3_i32_16 : i32
      %26 = arith.index_cast %25 : i32 to index
      %c0_17 = arith.constant 0 : index
      %c0_18 = arith.constant 0 : index
      %27 = vector.load %arg5[%26, %c0_17, %c0_18] : memref<3x18x18xf32, #tpu.memory_space<vmem>>, vector<1x18x18xf32>
      %28 = vector.shape_cast %27 : vector<1x18x18xf32> to vector<18x18xf32>
      %29 = arith.index_cast %25 : i32 to index
      %c0_19 = arith.constant 0 : index
      %c0_20 = arith.constant 0 : index
      %30 = vector.load %arg6[%29, %c0_19, %c0_20] : memref<3x18x18xf32, #tpu.memory_space<vmem>>, vector<1x18x18xf32>
      %31 = vector.shape_cast %30 : vector<1x18x18xf32> to vector<18x18xf32>
      %32 = arith.index_cast %23 : i32 to index
      %c0_21 = arith.constant 0 : index
      %c0_22 = arith.constant 0 : index
      %33 = vector.load %arg7[%32, %c0_21, %c0_22] : memref<3x18x18xf32, #tpu.memory_space<vmem>>, vector<1x18x18xf32>
      %34 = vector.shape_cast %33 : vector<1x18x18xf32> to vector<18x18xf32>
      %35 = vector.extract_strided_slice %28 {offsets = [1, 0], sizes = [16, 16], strides = [1, 1]} : vector<18x18xf32> to vector<16x16xf32>
      %cst = arith.constant -5.000000e-01 : f32
      %36 = vector.broadcast %cst : f32 to vector<16x16xf32>
      %37 = arith.mulf %36, %35 : vector<16x16xf32>
      %38 = vector.extract_strided_slice %28 {offsets = [1, 2], sizes = [16, 16], strides = [1, 1]} : vector<18x18xf32> to vector<16x16xf32>
      %cst_23 = arith.constant 5.000000e-01 : f32
      %39 = vector.broadcast %cst_23 : f32 to vector<16x16xf32>
      %40 = arith.mulf %39, %38 : vector<16x16xf32>
      %41 = arith.addf %37, %40 : vector<16x16xf32>
      %42 = vector.extract_strided_slice %31 {offsets = [0, 1], sizes = [16, 16], strides = [1, 1]} : vector<18x18xf32> to vector<16x16xf32>
      %cst_24 = arith.constant -5.000000e-01 : f32
      %43 = vector.broadcast %cst_24 : f32 to vector<16x16xf32>
      %44 = arith.mulf %43, %42 : vector<16x16xf32>
      %45 = vector.extract_strided_slice %31 {offsets = [2, 1], sizes = [16, 16], strides = [1, 1]} : vector<18x18xf32> to vector<16x16xf32>
      %cst_25 = arith.constant 5.000000e-01 : f32
      %46 = vector.broadcast %cst_25 : f32 to vector<16x16xf32>
      %47 = arith.mulf %46, %45 : vector<16x16xf32>
      %48 = arith.addf %44, %47 : vector<16x16xf32>
      %49 = vector.extract_strided_slice %34 {offsets = [1, 1], sizes = [16, 16], strides = [1, 1]} : vector<18x18xf32> to vector<16x16xf32>
      %cst_26 = arith.constant -5.000000e-01 : f32
      %50 = vector.broadcast %cst_26 : f32 to vector<16x16xf32>
      %51 = arith.mulf %50, %49 : vector<16x16xf32>
      %52 = vector.extract_strided_slice %6 {offsets = [1, 1], sizes = [16, 16], strides = [1, 1]} : vector<18x18xf32> to vector<16x16xf32>
      %cst_27 = arith.constant 5.000000e-01 : f32
      %53 = vector.broadcast %cst_27 : f32 to vector<16x16xf32>
      %54 = arith.mulf %53, %52 : vector<16x16xf32>
      %55 = arith.addf %51, %54 : vector<16x16xf32>
      %56 = arith.addf %41, %48 : vector<16x16xf32>
      %57 = arith.addf %56, %55 : vector<16x16xf32>
      %cst_28 = arith.constant 0.000000e+00 : f32
      %58 = vector.broadcast %cst_28 : f32 to vector<16x16xf32>
      %59 = arith.subf %58, %57 : vector<16x16xf32>
      %cst_29 = arith.constant 5.000000e-01 : f32
      %60 = vector.broadcast %cst_29 : f32 to vector<16x16xf32>
      %61 = arith.divf %59, %60 : vector<16x16xf32>
      %c0_30 = arith.constant 0 : index
      %c0_31 = arith.constant 0 : index
      %c0_32 = arith.constant 0 : index
      %62 = vector.load %arg4[%c0_30, %c0_31, %c0_32] : memref<1x16x16xf32, #tpu.memory_space<vmem>>, vector<1x16x16xf32>
      %63 = vector.shape_cast %62 : vector<1x16x16xf32> to vector<16x16xf32>
      %64 = vector.shape_cast %61 : vector<16x16xf32> to vector<1x16x16xf32>
      tpu.vector_store %arg4[%c0_30, %c0_31, %c0_32], %64 {strides = array<i32>} : memref<1x16x16xf32, #tpu.memory_space<vmem>>, vector<1x16x16xf32>,
    } else {
    }
    return
  }
  func.func @transform_0(%arg0: i32) -> (i32, i32, i32) {
    %c0_i32 = arith.constant 0 : i32
    %c0_i32_0 = arith.constant 0 : i32
    %c0_i32_1 = arith.constant 0 : i32
    return %arg0, %c0_i32, %c0_i32_0 : i32, i32, i32
  }
  func.func @transform_1(%arg0: i32) -> (i32, i32, i32) {
    %c0_i32 = arith.constant 0 : i32
    %c0_i32_0 = arith.constant 0 : i32
    %c0_i32_1 = arith.constant 0 : i32
    return %arg0, %c0_i32, %c0_i32_0 : i32, i32, i32
  }
  func.func @transform_2(%arg0: i32) -> (i32, i32, i32) {
    %c0_i32 = arith.constant 0 : i32
    %c0_i32_0 = arith.constant 0 : i32
    %c0_i32_1 = arith.constant 0 : i32
    return %arg0, %c0_i32, %c0_i32_0 : i32, i32, i32
  }
  func.func @transform_3(%arg0: i32) -> (i32, i32, i32) {
    %c2_i32 = arith.constant 2 : i32
    %0 = arith.subi %arg0, %c2_i32 : i32
    %c0_i32 = arith.constant 0 : i32
    %1 = arith.maxsi %0, %c0_i32 : i32
    %c0_i32_0 = arith.constant 0 : i32
    %c0_i32_1 = arith.constant 0 : i32
    %c0_i32_2 = arith.constant 0 : i32
    return %1, %c0_i32_0, %c0_i32_1 : i32, i32, i32
  }
}

module attributes {stable_mosaic.version = 11 : i64} {
  func.func @kernel(%arg0: i32, %arg1: memref<1x18x18xf32, #tpu.memory_space<vmem>>, %arg2: memref<1x18x18xf32, #tpu.memory_space<vmem>>, %arg3: memref<1x18x18xf32, #tpu.memory_space<vmem>>, %arg4: memref<1x18x18xf32, #tpu.memory_space<vmem>>, %arg5: memref<1x18x18xf32, #tpu.memory_space<vmem>>, %arg6: memref<1x18x18xf32, #tpu.memory_space<vmem>>, %arg7: memref<1x18x18xf32, #tpu.memory_space<vmem>>, %arg8: memref<1x16x16xf32, #tpu.memory_space<vmem>>, %arg9: memref<1x16x16xf32, #tpu.memory_space<vmem>>, %arg10: memref<1x16x16xf32, #tpu.memory_space<vmem>>, %arg11: memref<1x16x16xf32, #tpu.memory_space<vmem>>, %arg12: memref<1x16x16xf32, #tpu.memory_space<vmem>>, %arg13: memref<1x16x16xf32, #tpu.memory_space<vmem>>, %arg14: memref<3x18x18xf32, #tpu.memory_space<vmem>>, %arg15: memref<3x18x18xf32, #tpu.memory_space<vmem>>, %arg16: memref<3x18x18xf32, #tpu.memory_space<vmem>>, %arg17: memref<3x18x18xf32, #tpu.memory_space<vmem>>, %arg18: memref<3x18x18xf32, #tpu.memory_space<vmem>>, %arg19: memref<3x18x18xf32, #tpu.memory_space<vmem>>, %arg20: memref<3x18x18xf32, #tpu.memory_space<vmem>>) attributes {dimension_semantics = [#tpu.dimension_semantics<arbitrary>], iteration_bounds = array<i64: 10>, scalar_prefetch = 0 : i64, scratch_operands = 7 : i64, tpu.core_type = #tpu.core_type<tc>, window_params = [{transform_indices = @transform_0, window_bounds = array<i64: 1, 18, 18>}, {transform_indices = @transform_1, window_bounds = array<i64: 1, 18, 18>}, {transform_indices = @transform_2, window_bounds = array<i64: 1, 18, 18>}, {transform_indices = @transform_3, window_bounds = array<i64: 1, 18, 18>}, {transform_indices = @transform_4, window_bounds = array<i64: 1, 18, 18>}, {transform_indices = @transform_5, window_bounds = array<i64: 1, 18, 18>}, {transform_indices = @transform_6, window_bounds = array<i64: 1, 18, 18>}, {transform_indices = @transform_7, window_bounds = array<i64: 1, 16, 16>}, {transform_indices = @transform_8, window_bounds = array<i64: 1, 16, 16>}, {transform_indices = @transform_9, window_bounds = array<i64: 1, 16, 16>}, {transform_indices = @transform_10, window_bounds = array<i64: 1, 16, 16>}, {transform_indices = @transform_11, window_bounds = array<i64: 1, 16, 16>}, {transform_indices = @transform_12, window_bounds = array<i64: 1, 16, 16>}]} {
    %c3_i32 = arith.constant 3 : i32
    %0 = arith.remsi %arg0, %c3_i32 : i32
    %c0 = arith.constant 0 : index
    %c0_0 = arith.constant 0 : index
    %c0_1 = arith.constant 0 : index
    %1 = vector.load %arg1[%c0, %c0_0, %c0_1] : memref<1x18x18xf32, #tpu.memory_space<vmem>>, vector<1x18x18xf32>
    %2 = vector.shape_cast %1 : vector<1x18x18xf32> to vector<18x18xf32>
    %c0_2 = arith.constant 0 : index
    %c0_3 = arith.constant 0 : index
    %c0_4 = arith.constant 0 : index
    %3 = vector.load %arg2[%c0_2, %c0_3, %c0_4] : memref<1x18x18xf32, #tpu.memory_space<vmem>>, vector<1x18x18xf32>
    %4 = vector.shape_cast %3 : vector<1x18x18xf32> to vector<18x18xf32>
    %c0_5 = arith.constant 0 : index
    %c0_6 = arith.constant 0 : index
    %c0_7 = arith.constant 0 : index
    %5 = vector.load %arg3[%c0_5, %c0_6, %c0_7] : memref<1x18x18xf32, #tpu.memory_space<vmem>>, vector<1x18x18xf32>
    %6 = vector.shape_cast %5 : vector<1x18x18xf32> to vector<18x18xf32>
    %c0_8 = arith.constant 0 : index
    %c0_9 = arith.constant 0 : index
    %c0_10 = arith.constant 0 : index
    %7 = vector.load %arg4[%c0_8, %c0_9, %c0_10] : memref<1x18x18xf32, #tpu.memory_space<vmem>>, vector<1x18x18xf32>
    %8 = vector.shape_cast %7 : vector<1x18x18xf32> to vector<18x18xf32>
    %c0_11 = arith.constant 0 : index
    %c0_12 = arith.constant 0 : index
    %c0_13 = arith.constant 0 : index
    %9 = vector.load %arg5[%c0_11, %c0_12, %c0_13] : memref<1x18x18xf32, #tpu.memory_space<vmem>>, vector<1x18x18xf32>
    %10 = vector.shape_cast %9 : vector<1x18x18xf32> to vector<18x18xf32>
    %c0_14 = arith.constant 0 : index
    %c0_15 = arith.constant 0 : index
    %c0_16 = arith.constant 0 : index
    %11 = vector.load %arg6[%c0_14, %c0_15, %c0_16] : memref<1x18x18xf32, #tpu.memory_space<vmem>>, vector<1x18x18xf32>
    %12 = vector.shape_cast %11 : vector<1x18x18xf32> to vector<18x18xf32>
    %c0_17 = arith.constant 0 : index
    %c0_18 = arith.constant 0 : index
    %c0_19 = arith.constant 0 : index
    %13 = vector.load %arg7[%c0_17, %c0_18, %c0_19] : memref<1x18x18xf32, #tpu.memory_space<vmem>>, vector<1x18x18xf32>
    %14 = vector.shape_cast %13 : vector<1x18x18xf32> to vector<18x18xf32>
    %15 = arith.index_cast %0 : i32 to index
    %c0_20 = arith.constant 0 : index
    %c0_21 = arith.constant 0 : index
    %16 = vector.load %arg14[%15, %c0_20, %c0_21] : memref<3x18x18xf32, #tpu.memory_space<vmem>>, vector<1x18x18xf32>
    %17 = vector.shape_cast %16 : vector<1x18x18xf32> to vector<18x18xf32>
    %18 = vector.shape_cast %2 : vector<18x18xf32> to vector<1x18x18xf32>
    tpu.vector_store %arg14[%15, %c0_20, %c0_21], %18 {strides = array<i32>} : memref<3x18x18xf32, #tpu.memory_space<vmem>>, vector<1x18x18xf32>,
    %19 = arith.index_cast %0 : i32 to index
    %c0_22 = arith.constant 0 : index
    %c0_23 = arith.constant 0 : index
    %20 = vector.load %arg15[%19, %c0_22, %c0_23] : memref<3x18x18xf32, #tpu.memory_space<vmem>>, vector<1x18x18xf32>
    %21 = vector.shape_cast %20 : vector<1x18x18xf32> to vector<18x18xf32>
    %22 = vector.shape_cast %4 : vector<18x18xf32> to vector<1x18x18xf32>
    tpu.vector_store %arg15[%19, %c0_22, %c0_23], %22 {strides = array<i32>} : memref<3x18x18xf32, #tpu.memory_space<vmem>>, vector<1x18x18xf32>,
    %23 = arith.index_cast %0 : i32 to index
    %c0_24 = arith.constant 0 : index
    %c0_25 = arith.constant 0 : index
    %24 = vector.load %arg16[%23, %c0_24, %c0_25] : memref<3x18x18xf32, #tpu.memory_space<vmem>>, vector<1x18x18xf32>
    %25 = vector.shape_cast %24 : vector<1x18x18xf32> to vector<18x18xf32>
    %26 = vector.shape_cast %6 : vector<18x18xf32> to vector<1x18x18xf32>
    tpu.vector_store %arg16[%23, %c0_24, %c0_25], %26 {strides = array<i32>} : memref<3x18x18xf32, #tpu.memory_space<vmem>>, vector<1x18x18xf32>,
    %27 = arith.index_cast %0 : i32 to index
    %c0_26 = arith.constant 0 : index
    %c0_27 = arith.constant 0 : index
    %28 = vector.load %arg17[%27, %c0_26, %c0_27] : memref<3x18x18xf32, #tpu.memory_space<vmem>>, vector<1x18x18xf32>
    %29 = vector.shape_cast %28 : vector<1x18x18xf32> to vector<18x18xf32>
    %30 = vector.shape_cast %8 : vector<18x18xf32> to vector<1x18x18xf32>
    tpu.vector_store %arg17[%27, %c0_26, %c0_27], %30 {strides = array<i32>} : memref<3x18x18xf32, #tpu.memory_space<vmem>>, vector<1x18x18xf32>,
    %31 = arith.index_cast %0 : i32 to index
    %c0_28 = arith.constant 0 : index
    %c0_29 = arith.constant 0 : index
    %32 = vector.load %arg18[%31, %c0_28, %c0_29] : memref<3x18x18xf32, #tpu.memory_space<vmem>>, vector<1x18x18xf32>
    %33 = vector.shape_cast %32 : vector<1x18x18xf32> to vector<18x18xf32>
    %34 = vector.shape_cast %10 : vector<18x18xf32> to vector<1x18x18xf32>
    tpu.vector_store %arg18[%31, %c0_28, %c0_29], %34 {strides = array<i32>} : memref<3x18x18xf32, #tpu.memory_space<vmem>>, vector<1x18x18xf32>,
    %35 = arith.index_cast %0 : i32 to index
    %c0_30 = arith.constant 0 : index
    %c0_31 = arith.constant 0 : index
    %36 = vector.load %arg19[%35, %c0_30, %c0_31] : memref<3x18x18xf32, #tpu.memory_space<vmem>>, vector<1x18x18xf32>
    %37 = vector.shape_cast %36 : vector<1x18x18xf32> to vector<18x18xf32>
    %38 = vector.shape_cast %12 : vector<18x18xf32> to vector<1x18x18xf32>
    tpu.vector_store %arg19[%35, %c0_30, %c0_31], %38 {strides = array<i32>} : memref<3x18x18xf32, #tpu.memory_space<vmem>>, vector<1x18x18xf32>,
    %39 = arith.index_cast %0 : i32 to index
    %c0_32 = arith.constant 0 : index
    %c0_33 = arith.constant 0 : index
    %40 = vector.load %arg20[%39, %c0_32, %c0_33] : memref<3x18x18xf32, #tpu.memory_space<vmem>>, vector<1x18x18xf32>
    %41 = vector.shape_cast %40 : vector<1x18x18xf32> to vector<18x18xf32>
    %42 = vector.shape_cast %14 : vector<18x18xf32> to vector<1x18x18xf32>
    tpu.vector_store %arg20[%39, %c0_32, %c0_33], %42 {strides = array<i32>} : memref<3x18x18xf32, #tpu.memory_space<vmem>>, vector<1x18x18xf32>,
    %c2_i32 = arith.constant 2 : i32
    %43 = arith.cmpi sge, %arg0, %c2_i32 : i32
    %44 = arith.extui %43 : i1 to i32
    %c0_i32 = arith.constant 0 : i32
    %45 = arith.cmpi ne, %44, %c0_i32 : i32
    scf.if %45 {
      %c1_i32 = arith.constant 1 : i32
      %46 = arith.addi %arg0, %c1_i32 : i32
      %c3_i32_34 = arith.constant 3 : i32
      %47 = arith.remsi %46, %c3_i32_34 : i32
      %c2_i32_35 = arith.constant 2 : i32
      %48 = arith.addi %arg0, %c2_i32_35 : i32
      %c3_i32_36 = arith.constant 3 : i32
      %49 = arith.remsi %48, %c3_i32_36 : i32
      %50 = arith.index_cast %47 : i32 to index
      %c0_37 = arith.constant 0 : index
      %c0_38 = arith.constant 0 : index
      %51 = vector.load %arg14[%50, %c0_37, %c0_38] : memref<3x18x18xf32, #tpu.memory_space<vmem>>, vector<1x18x18xf32>
      %52 = vector.shape_cast %51 : vector<1x18x18xf32> to vector<18x18xf32>
      %53 = arith.index_cast %49 : i32 to index
      %c0_39 = arith.constant 0 : index
      %c0_40 = arith.constant 0 : index
      %54 = vector.load %arg14[%53, %c0_39, %c0_40] : memref<3x18x18xf32, #tpu.memory_space<vmem>>, vector<1x18x18xf32>
      %55 = vector.shape_cast %54 : vector<1x18x18xf32> to vector<18x18xf32>
      %56 = arith.index_cast %47 : i32 to index
      %c0_41 = arith.constant 0 : index
      %c0_42 = arith.constant 0 : index
      %57 = vector.load %arg15[%56, %c0_41, %c0_42] : memref<3x18x18xf32, #tpu.memory_space<vmem>>, vector<1x18x18xf32>
      %58 = vector.shape_cast %57 : vector<1x18x18xf32> to vector<18x18xf32>
      %59 = arith.index_cast %49 : i32 to index
      %c0_43 = arith.constant 0 : index
      %c0_44 = arith.constant 0 : index
      %60 = vector.load %arg15[%59, %c0_43, %c0_44] : memref<3x18x18xf32, #tpu.memory_space<vmem>>, vector<1x18x18xf32>
      %61 = vector.shape_cast %60 : vector<1x18x18xf32> to vector<18x18xf32>
      %62 = arith.index_cast %47 : i32 to index
      %c0_45 = arith.constant 0 : index
      %c0_46 = arith.constant 0 : index
      %63 = vector.load %arg16[%62, %c0_45, %c0_46] : memref<3x18x18xf32, #tpu.memory_space<vmem>>, vector<1x18x18xf32>
      %64 = vector.shape_cast %63 : vector<1x18x18xf32> to vector<18x18xf32>
      %65 = arith.index_cast %49 : i32 to index
      %c0_47 = arith.constant 0 : index
      %c0_48 = arith.constant 0 : index
      %66 = vector.load %arg16[%65, %c0_47, %c0_48] : memref<3x18x18xf32, #tpu.memory_space<vmem>>, vector<1x18x18xf32>
      %67 = vector.shape_cast %66 : vector<1x18x18xf32> to vector<18x18xf32>
      %68 = arith.index_cast %47 : i32 to index
      %c0_49 = arith.constant 0 : index
      %c0_50 = arith.constant 0 : index
      %69 = vector.load %arg17[%68, %c0_49, %c0_50] : memref<3x18x18xf32, #tpu.memory_space<vmem>>, vector<1x18x18xf32>
      %70 = vector.shape_cast %69 : vector<1x18x18xf32> to vector<18x18xf32>
      %71 = arith.index_cast %49 : i32 to index
      %c0_51 = arith.constant 0 : index
      %c0_52 = arith.constant 0 : index
      %72 = vector.load %arg17[%71, %c0_51, %c0_52] : memref<3x18x18xf32, #tpu.memory_space<vmem>>, vector<1x18x18xf32>
      %73 = vector.shape_cast %72 : vector<1x18x18xf32> to vector<18x18xf32>
      %74 = arith.index_cast %47 : i32 to index
      %c0_53 = arith.constant 0 : index
      %c0_54 = arith.constant 0 : index
      %75 = vector.load %arg18[%74, %c0_53, %c0_54] : memref<3x18x18xf32, #tpu.memory_space<vmem>>, vector<1x18x18xf32>
      %76 = vector.shape_cast %75 : vector<1x18x18xf32> to vector<18x18xf32>
      %77 = arith.index_cast %49 : i32 to index
      %c0_55 = arith.constant 0 : index
      %c0_56 = arith.constant 0 : index
      %78 = vector.load %arg18[%77, %c0_55, %c0_56] : memref<3x18x18xf32, #tpu.memory_space<vmem>>, vector<1x18x18xf32>
      %79 = vector.shape_cast %78 : vector<1x18x18xf32> to vector<18x18xf32>
      %80 = arith.index_cast %47 : i32 to index
      %c0_57 = arith.constant 0 : index
      %c0_58 = arith.constant 0 : index
      %81 = vector.load %arg19[%80, %c0_57, %c0_58] : memref<3x18x18xf32, #tpu.memory_space<vmem>>, vector<1x18x18xf32>
      %82 = vector.shape_cast %81 : vector<1x18x18xf32> to vector<18x18xf32>
      %83 = arith.index_cast %49 : i32 to index
      %c0_59 = arith.constant 0 : index
      %c0_60 = arith.constant 0 : index
      %84 = vector.load %arg19[%83, %c0_59, %c0_60] : memref<3x18x18xf32, #tpu.memory_space<vmem>>, vector<1x18x18xf32>
      %85 = vector.shape_cast %84 : vector<1x18x18xf32> to vector<18x18xf32>
      %86 = arith.index_cast %47 : i32 to index
      %c0_61 = arith.constant 0 : index
      %c0_62 = arith.constant 0 : index
      %87 = vector.load %arg20[%86, %c0_61, %c0_62] : memref<3x18x18xf32, #tpu.memory_space<vmem>>, vector<1x18x18xf32>
      %88 = vector.shape_cast %87 : vector<1x18x18xf32> to vector<18x18xf32>
      %89 = arith.index_cast %49 : i32 to index
      %c0_63 = arith.constant 0 : index
      %c0_64 = arith.constant 0 : index
      %90 = vector.load %arg20[%89, %c0_63, %c0_64] : memref<3x18x18xf32, #tpu.memory_space<vmem>>, vector<1x18x18xf32>
      %91 = vector.shape_cast %90 : vector<1x18x18xf32> to vector<18x18xf32>
      %c0_65 = arith.constant 0 : index
      %c0_66 = arith.constant 0 : index
      %c0_67 = arith.constant 0 : index
      %92 = vector.load %arg8[%c0_65, %c0_66, %c0_67] : memref<1x16x16xf32, #tpu.memory_space<vmem>>, vector<1x16x16xf32>
      %93 = vector.shape_cast %92 : vector<1x16x16xf32> to vector<16x16xf32>
      %c0_68 = arith.constant 0 : index
      %c0_69 = arith.constant 0 : index
      %c0_70 = arith.constant 0 : index
      %94 = vector.load %arg9[%c0_68, %c0_69, %c0_70] : memref<1x16x16xf32, #tpu.memory_space<vmem>>, vector<1x16x16xf32>
      %95 = vector.shape_cast %94 : vector<1x16x16xf32> to vector<16x16xf32>
      %c0_71 = arith.constant 0 : index
      %c0_72 = arith.constant 0 : index
      %c0_73 = arith.constant 0 : index
      %96 = vector.load %arg10[%c0_71, %c0_72, %c0_73] : memref<1x16x16xf32, #tpu.memory_space<vmem>>, vector<1x16x16xf32>
      %97 = vector.shape_cast %96 : vector<1x16x16xf32> to vector<16x16xf32>
      %98 = vector.extract_strided_slice %55 {offsets = [1, 1], sizes = [16, 16], strides = [1, 1]} : vector<18x18xf32> to vector<16x16xf32>
      %99 = vector.extract_strided_slice %61 {offsets = [1, 1], sizes = [16, 16], strides = [1, 1]} : vector<18x18xf32> to vector<16x16xf32>
      %100 = vector.extract_strided_slice %67 {offsets = [1, 1], sizes = [16, 16], strides = [1, 1]} : vector<18x18xf32> to vector<16x16xf32>
      %101 = vector.extract_strided_slice %91 {offsets = [1, 0], sizes = [16, 16], strides = [1, 1]} : vector<18x18xf32> to vector<16x16xf32>
      %cst = arith.constant -5.000000e-01 : f32
      %102 = vector.broadcast %cst : f32 to vector<16x16xf32>
      %103 = arith.mulf %102, %101 : vector<16x16xf32>
      %104 = vector.extract_strided_slice %91 {offsets = [1, 2], sizes = [16, 16], strides = [1, 1]} : vector<18x18xf32> to vector<16x16xf32>
      %cst_74 = arith.constant 5.000000e-01 : f32
      %105 = vector.broadcast %cst_74 : f32 to vector<16x16xf32>
      %106 = arith.mulf %105, %104 : vector<16x16xf32>
      %107 = arith.addf %103, %106 : vector<16x16xf32>
      %cst_75 = arith.constant 5.000000e-01 : f32
      %108 = vector.broadcast %cst_75 : f32 to vector<16x16xf32>
      %109 = arith.mulf %107, %108 : vector<16x16xf32>
      %110 = vector.extract_strided_slice %91 {offsets = [0, 1], sizes = [16, 16], strides = [1, 1]} : vector<18x18xf32> to vector<16x16xf32>
      %cst_76 = arith.constant -5.000000e-01 : f32
      %111 = vector.broadcast %cst_76 : f32 to vector<16x16xf32>
      %112 = arith.mulf %111, %110 : vector<16x16xf32>
      %113 = vector.extract_strided_slice %91 {offsets = [2, 1], sizes = [16, 16], strides = [1, 1]} : vector<18x18xf32> to vector<16x16xf32>
      %cst_77 = arith.constant 5.000000e-01 : f32
      %114 = vector.broadcast %cst_77 : f32 to vector<16x16xf32>
      %115 = arith.mulf %114, %113 : vector<16x16xf32>
      %116 = arith.addf %112, %115 : vector<16x16xf32>
      %cst_78 = arith.constant 5.000000e-01 : f32
      %117 = vector.broadcast %cst_78 : f32 to vector<16x16xf32>
      %118 = arith.mulf %116, %117 : vector<16x16xf32>
      %119 = vector.extract_strided_slice %88 {offsets = [1, 1], sizes = [16, 16], strides = [1, 1]} : vector<18x18xf32> to vector<16x16xf32>
      %cst_79 = arith.constant -5.000000e-01 : f32
      %120 = vector.broadcast %cst_79 : f32 to vector<16x16xf32>
      %121 = arith.mulf %120, %119 : vector<16x16xf32>
      %122 = vector.extract_strided_slice %14 {offsets = [1, 1], sizes = [16, 16], strides = [1, 1]} : vector<18x18xf32> to vector<16x16xf32>
      %cst_80 = arith.constant 5.000000e-01 : f32
      %123 = vector.broadcast %cst_80 : f32 to vector<16x16xf32>
      %124 = arith.mulf %123, %122 : vector<16x16xf32>
      %125 = arith.addf %121, %124 : vector<16x16xf32>
      %cst_81 = arith.constant 5.000000e-01 : f32
      %126 = vector.broadcast %cst_81 : f32 to vector<16x16xf32>
      %127 = arith.mulf %125, %126 : vector<16x16xf32>
      %128 = vector.extract_strided_slice %55 {offsets = [1, 0], sizes = [16, 16], strides = [1, 1]} : vector<18x18xf32> to vector<16x16xf32>
      %cst_82 = arith.constant -5.000000e-01 : f32
      %129 = vector.broadcast %cst_82 : f32 to vector<16x16xf32>
      %130 = arith.mulf %129, %128 : vector<16x16xf32>
      %131 = vector.extract_strided_slice %55 {offsets = [1, 2], sizes = [16, 16], strides = [1, 1]} : vector<18x18xf32> to vector<16x16xf32>
      %cst_83 = arith.constant 5.000000e-01 : f32
      %132 = vector.broadcast %cst_83 : f32 to vector<16x16xf32>
      %133 = arith.mulf %132, %131 : vector<16x16xf32>
      %134 = arith.addf %130, %133 : vector<16x16xf32>
      %135 = vector.extract_strided_slice %55 {offsets = [0, 1], sizes = [16, 16], strides = [1, 1]} : vector<18x18xf32> to vector<16x16xf32>
      %cst_84 = arith.constant -5.000000e-01 : f32
      %136 = vector.broadcast %cst_84 : f32 to vector<16x16xf32>
      %137 = arith.mulf %136, %135 : vector<16x16xf32>
      %138 = vector.extract_strided_slice %55 {offsets = [2, 1], sizes = [16, 16], strides = [1, 1]} : vector<18x18xf32> to vector<16x16xf32>
      %cst_85 = arith.constant 5.000000e-01 : f32
      %139 = vector.broadcast %cst_85 : f32 to vector<16x16xf32>
      %140 = arith.mulf %139, %138 : vector<16x16xf32>
      %141 = arith.addf %137, %140 : vector<16x16xf32>
      %142 = vector.extract_strided_slice %52 {offsets = [1, 1], sizes = [16, 16], strides = [1, 1]} : vector<18x18xf32> to vector<16x16xf32>
      %cst_86 = arith.constant -5.000000e-01 : f32
      %143 = vector.broadcast %cst_86 : f32 to vector<16x16xf32>
      %144 = arith.mulf %143, %142 : vector<16x16xf32>
      %145 = vector.extract_strided_slice %2 {offsets = [1, 1], sizes = [16, 16], strides = [1, 1]} : vector<18x18xf32> to vector<16x16xf32>
      %cst_87 = arith.constant 5.000000e-01 : f32
      %146 = vector.broadcast %cst_87 : f32 to vector<16x16xf32>
      %147 = arith.mulf %146, %145 : vector<16x16xf32>
      %148 = arith.addf %144, %147 : vector<16x16xf32>
      %149 = vector.extract_strided_slice %52 {offsets = [1, 1], sizes = [16, 16], strides = [1, 1]} : vector<18x18xf32> to vector<16x16xf32>
      %cst_88 = arith.constant 1.000000e+00 : f32
      %150 = vector.broadcast %cst_88 : f32 to vector<16x16xf32>
      %151 = arith.mulf %150, %149 : vector<16x16xf32>
      %152 = vector.extract_strided_slice %55 {offsets = [0, 1], sizes = [16, 16], strides = [1, 1]} : vector<18x18xf32> to vector<16x16xf32>
      %cst_89 = arith.constant 1.000000e+00 : f32
      %153 = vector.broadcast %cst_89 : f32 to vector<16x16xf32>
      %154 = arith.mulf %153, %152 : vector<16x16xf32>
      %155 = arith.addf %151, %154 : vector<16x16xf32>
      %156 = vector.extract_strided_slice %55 {offsets = [1, 0], sizes = [16, 16], strides = [1, 1]} : vector<18x18xf32> to vector<16x16xf32>
      %cst_90 = arith.constant 1.000000e+00 : f32
      %157 = vector.broadcast %cst_90 : f32 to vector<16x16xf32>
      %158 = arith.mulf %157, %156 : vector<16x16xf32>
      %159 = arith.addf %155, %158 : vector<16x16xf32>
      %160 = vector.extract_strided_slice %55 {offsets = [1, 1], sizes = [16, 16], strides = [1, 1]} : vector<18x18xf32> to vector<16x16xf32>
      %cst_91 = arith.constant -6.000000e+00 : f32
      %161 = vector.broadcast %cst_91 : f32 to vector<16x16xf32>
      %162 = arith.mulf %161, %160 : vector<16x16xf32>
      %163 = arith.addf %159, %162 : vector<16x16xf32>
      %164 = vector.extract_strided_slice %55 {offsets = [1, 2], sizes = [16, 16], strides = [1, 1]} : vector<18x18xf32> to vector<16x16xf32>
      %cst_92 = arith.constant 1.000000e+00 : f32
      %165 = vector.broadcast %cst_92 : f32 to vector<16x16xf32>
      %166 = arith.mulf %165, %164 : vector<16x16xf32>
      %167 = arith.addf %163, %166 : vector<16x16xf32>
      %168 = vector.extract_strided_slice %55 {offsets = [2, 1], sizes = [16, 16], strides = [1, 1]} : vector<18x18xf32> to vector<16x16xf32>
      %cst_93 = arith.constant 1.000000e+00 : f32
      %169 = vector.broadcast %cst_93 : f32 to vector<16x16xf32>
      %170 = arith.mulf %169, %168 : vector<16x16xf32>
      %171 = arith.addf %167, %170 : vector<16x16xf32>
      %172 = vector.extract_strided_slice %2 {offsets = [1, 1], sizes = [16, 16], strides = [1, 1]} : vector<18x18xf32> to vector<16x16xf32>
      %cst_94 = arith.constant 1.000000e+00 : f32
      %173 = vector.broadcast %cst_94 : f32 to vector<16x16xf32>
      %174 = arith.mulf %173, %172 : vector<16x16xf32>
      %175 = arith.addf %171, %174 : vector<16x16xf32>
      %176 = vector.extract_strided_slice %73 {offsets = [1, 1], sizes = [16, 16], strides = [1, 1]} : vector<18x18xf32> to vector<16x16xf32>
      %177 = arith.mulf %52, %70 : vector<18x18xf32>
      %178 = arith.mulf %55, %73 : vector<18x18xf32>
      %179 = arith.mulf %2, %8 : vector<18x18xf32>
      %180 = vector.extract_strided_slice %177 {offsets = [1, 1], sizes = [16, 16], strides = [1, 1]} : vector<18x18xf32> to vector<16x16xf32>
      %cst_95 = arith.constant 1.000000e+00 : f32
      %181 = vector.broadcast %cst_95 : f32 to vector<16x16xf32>
      %182 = arith.mulf %181, %180 : vector<16x16xf32>
      %183 = vector.extract_strided_slice %178 {offsets = [0, 1], sizes = [16, 16], strides = [1, 1]} : vector<18x18xf32> to vector<16x16xf32>
      %cst_96 = arith.constant 1.000000e+00 : f32
      %184 = vector.broadcast %cst_96 : f32 to vector<16x16xf32>
      %185 = arith.mulf %184, %183 : vector<16x16xf32>
      %186 = arith.addf %182, %185 : vector<16x16xf32>
      %187 = vector.extract_strided_slice %178 {offsets = [1, 0], sizes = [16, 16], strides = [1, 1]} : vector<18x18xf32> to vector<16x16xf32>
      %cst_97 = arith.constant 1.000000e+00 : f32
      %188 = vector.broadcast %cst_97 : f32 to vector<16x16xf32>
      %189 = arith.mulf %188, %187 : vector<16x16xf32>
      %190 = arith.addf %186, %189 : vector<16x16xf32>
      %191 = vector.extract_strided_slice %178 {offsets = [1, 1], sizes = [16, 16], strides = [1, 1]} : vector<18x18xf32> to vector<16x16xf32>
      %cst_98 = arith.constant -6.000000e+00 : f32
      %192 = vector.broadcast %cst_98 : f32 to vector<16x16xf32>
      %193 = arith.mulf %192, %191 : vector<16x16xf32>
      %194 = arith.addf %190, %193 : vector<16x16xf32>
      %195 = vector.extract_strided_slice %178 {offsets = [1, 2], sizes = [16, 16], strides = [1, 1]} : vector<18x18xf32> to vector<16x16xf32>
      %cst_99 = arith.constant 1.000000e+00 : f32
      %196 = vector.broadcast %cst_99 : f32 to vector<16x16xf32>
      %197 = arith.mulf %196, %195 : vector<16x16xf32>
      %198 = arith.addf %194, %197 : vector<16x16xf32>
      %199 = vector.extract_strided_slice %178 {offsets = [2, 1], sizes = [16, 16], strides = [1, 1]} : vector<18x18xf32> to vector<16x16xf32>
      %cst_100 = arith.constant 1.000000e+00 : f32
      %200 = vector.broadcast %cst_100 : f32 to vector<16x16xf32>
      %201 = arith.mulf %200, %199 : vector<16x16xf32>
      %202 = arith.addf %198, %201 : vector<16x16xf32>
      %203 = vector.extract_strided_slice %179 {offsets = [1, 1], sizes = [16, 16], strides = [1, 1]} : vector<18x18xf32> to vector<16x16xf32>
      %cst_101 = arith.constant 1.000000e+00 : f32
      %204 = vector.broadcast %cst_101 : f32 to vector<16x16xf32>
      %205 = arith.mulf %204, %203 : vector<16x16xf32>
      %206 = arith.addf %202, %205 : vector<16x16xf32>
      %207 = vector.extract_strided_slice %70 {offsets = [1, 1], sizes = [16, 16], strides = [1, 1]} : vector<18x18xf32> to vector<16x16xf32>
      %cst_102 = arith.constant 1.000000e+00 : f32
      %208 = vector.broadcast %cst_102 : f32 to vector<16x16xf32>
      %209 = arith.mulf %208, %207 : vector<16x16xf32>
      %210 = vector.extract_strided_slice %73 {offsets = [0, 1], sizes = [16, 16], strides = [1, 1]} : vector<18x18xf32> to vector<16x16xf32>
      %cst_103 = arith.constant 1.000000e+00 : f32
      %211 = vector.broadcast %cst_103 : f32 to vector<16x16xf32>
      %212 = arith.mulf %211, %210 : vector<16x16xf32>
      %213 = arith.addf %209, %212 : vector<16x16xf32>
      %214 = vector.extract_strided_slice %73 {offsets = [1, 0], sizes = [16, 16], strides = [1, 1]} : vector<18x18xf32> to vector<16x16xf32>
      %cst_104 = arith.constant 1.000000e+00 : f32
      %215 = vector.broadcast %cst_104 : f32 to vector<16x16xf32>
      %216 = arith.mulf %215, %214 : vector<16x16xf32>
      %217 = arith.addf %213, %216 : vector<16x16xf32>
      %218 = vector.extract_strided_slice %73 {offsets = [1, 1], sizes = [16, 16], strides = [1, 1]} : vector<18x18xf32> to vector<16x16xf32>
      %cst_105 = arith.constant -6.000000e+00 : f32
      %219 = vector.broadcast %cst_105 : f32 to vector<16x16xf32>
      %220 = arith.mulf %219, %218 : vector<16x16xf32>
      %221 = arith.addf %217, %220 : vector<16x16xf32>
      %222 = vector.extract_strided_slice %73 {offsets = [1, 2], sizes = [16, 16], strides = [1, 1]} : vector<18x18xf32> to vector<16x16xf32>
      %cst_106 = arith.constant 1.000000e+00 : f32
      %223 = vector.broadcast %cst_106 : f32 to vector<16x16xf32>
      %224 = arith.mulf %223, %222 : vector<16x16xf32>
      %225 = arith.addf %221, %224 : vector<16x16xf32>
      %226 = vector.extract_strided_slice %73 {offsets = [2, 1], sizes = [16, 16], strides = [1, 1]} : vector<18x18xf32> to vector<16x16xf32>
      %cst_107 = arith.constant 1.000000e+00 : f32
      %227 = vector.broadcast %cst_107 : f32 to vector<16x16xf32>
      %228 = arith.mulf %227, %226 : vector<16x16xf32>
      %229 = arith.addf %225, %228 : vector<16x16xf32>
      %230 = vector.extract_strided_slice %8 {offsets = [1, 1], sizes = [16, 16], strides = [1, 1]} : vector<18x18xf32> to vector<16x16xf32>
      %cst_108 = arith.constant 1.000000e+00 : f32
      %231 = vector.broadcast %cst_108 : f32 to vector<16x16xf32>
      %232 = arith.mulf %231, %230 : vector<16x16xf32>
      %233 = arith.addf %229, %232 : vector<16x16xf32>
      %234 = arith.mulf %176, %175 : vector<16x16xf32>
      %235 = arith.addf %234, %206 : vector<16x16xf32>
      %236 = arith.mulf %98, %233 : vector<16x16xf32>
      %237 = arith.subf %235, %236 : vector<16x16xf32>
      %cst_109 = arith.constant 5.000000e-01 : f32
      %238 = vector.broadcast %cst_109 : f32 to vector<16x16xf32>
      %239 = arith.mulf %238, %237 : vector<16x16xf32>
      %cst_110 = arith.constant 1.500000e-01 : f32
      %240 = vector.broadcast %cst_110 : f32 to vector<16x16xf32>
      %241 = arith.mulf %240, %239 : vector<16x16xf32>
      %cst_111 = arith.constant 5.000000e-01 : f32
      %242 = vector.broadcast %cst_111 : f32 to vector<16x16xf32>
      %243 = arith.mulf %241, %242 : vector<16x16xf32>
      %244 = arith.mulf %98, %134 : vector<16x16xf32>
      %cst_112 = arith.constant 5.000000e-01 : f32
      %245 = vector.broadcast %cst_112 : f32 to vector<16x16xf32>
      %246 = arith.mulf %244, %245 : vector<16x16xf32>
      %247 = arith.subf %243, %246 : vector<16x16xf32>
      %248 = arith.mulf %99, %141 : vector<16x16xf32>
      %cst_113 = arith.constant 5.000000e-01 : f32
      %249 = vector.broadcast %cst_113 : f32 to vector<16x16xf32>
      %250 = arith.mulf %248, %249 : vector<16x16xf32>
      %251 = arith.subf %247, %250 : vector<16x16xf32>
      %252 = arith.mulf %100, %148 : vector<16x16xf32>
      %cst_114 = arith.constant 5.000000e-01 : f32
      %253 = vector.broadcast %cst_114 : f32 to vector<16x16xf32>
      %254 = arith.mulf %252, %253 : vector<16x16xf32>
      %255 = arith.subf %251, %254 : vector<16x16xf32>
      %cst_115 = arith.constant 1.000000e+00 : f32
      %256 = vector.broadcast %cst_115 : f32 to vector<16x16xf32>
      %257 = arith.mulf %256, %255 : vector<16x16xf32>
      %258 = arith.addf %93, %257 : vector<16x16xf32>
      %259 = arith.subf %258, %109 : vector<16x16xf32>
      %cst_116 = arith.constant 0.975609779 : f32
      %260 = vector.broadcast %cst_116 : f32 to vector<16x16xf32>
      %261 = arith.mulf %260, %259 : vector<16x16xf32>
      %262 = vector.extract_strided_slice %61 {offsets = [1, 0], sizes = [16, 16], strides = [1, 1]} : vector<18x18xf32> to vector<16x16xf32>
      %cst_117 = arith.constant -5.000000e-01 : f32
      %263 = vector.broadcast %cst_117 : f32 to vector<16x16xf32>
      %264 = arith.mulf %263, %262 : vector<16x16xf32>
      %265 = vector.extract_strided_slice %61 {offsets = [1, 2], sizes = [16, 16], strides = [1, 1]} : vector<18x18xf32> to vector<16x16xf32>
      %cst_118 = arith.constant 5.000000e-01 : f32
      %266 = vector.broadcast %cst_118 : f32 to vector<16x16xf32>
      %267 = arith.mulf %266, %265 : vector<16x16xf32>
      %268 = arith.addf %264, %267 : vector<16x16xf32>
      %269 = vector.extract_strided_slice %61 {offsets = [0, 1], sizes = [16, 16], strides = [1, 1]} : vector<18x18xf32> to vector<16x16xf32>
      %cst_119 = arith.constant -5.000000e-01 : f32
      %270 = vector.broadcast %cst_119 : f32 to vector<16x16xf32>
      %271 = arith.mulf %270, %269 : vector<16x16xf32>
      %272 = vector.extract_strided_slice %61 {offsets = [2, 1], sizes = [16, 16], strides = [1, 1]} : vector<18x18xf32> to vector<16x16xf32>
      %cst_120 = arith.constant 5.000000e-01 : f32
      %273 = vector.broadcast %cst_120 : f32 to vector<16x16xf32>
      %274 = arith.mulf %273, %272 : vector<16x16xf32>
      %275 = arith.addf %271, %274 : vector<16x16xf32>
      %276 = vector.extract_strided_slice %58 {offsets = [1, 1], sizes = [16, 16], strides = [1, 1]} : vector<18x18xf32> to vector<16x16xf32>
      %cst_121 = arith.constant -5.000000e-01 : f32
      %277 = vector.broadcast %cst_121 : f32 to vector<16x16xf32>
      %278 = arith.mulf %277, %276 : vector<16x16xf32>
      %279 = vector.extract_strided_slice %4 {offsets = [1, 1], sizes = [16, 16], strides = [1, 1]} : vector<18x18xf32> to vector<16x16xf32>
      %cst_122 = arith.constant 5.000000e-01 : f32
      %280 = vector.broadcast %cst_122 : f32 to vector<16x16xf32>
      %281 = arith.mulf %280, %279 : vector<16x16xf32>
      %282 = arith.addf %278, %281 : vector<16x16xf32>
      %283 = vector.extract_strided_slice %58 {offsets = [1, 1], sizes = [16, 16], strides = [1, 1]} : vector<18x18xf32> to vector<16x16xf32>
      %cst_123 = arith.constant 1.000000e+00 : f32
      %284 = vector.broadcast %cst_123 : f32 to vector<16x16xf32>
      %285 = arith.mulf %284, %283 : vector<16x16xf32>
      %286 = vector.extract_strided_slice %61 {offsets = [0, 1], sizes = [16, 16], strides = [1, 1]} : vector<18x18xf32> to vector<16x16xf32>
      %cst_124 = arith.constant 1.000000e+00 : f32
      %287 = vector.broadcast %cst_124 : f32 to vector<16x16xf32>
      %288 = arith.mulf %287, %286 : vector<16x16xf32>
      %289 = arith.addf %285, %288 : vector<16x16xf32>
      %290 = vector.extract_strided_slice %61 {offsets = [1, 0], sizes = [16, 16], strides = [1, 1]} : vector<18x18xf32> to vector<16x16xf32>
      %cst_125 = arith.constant 1.000000e+00 : f32
      %291 = vector.broadcast %cst_125 : f32 to vector<16x16xf32>
      %292 = arith.mulf %291, %290 : vector<16x16xf32>
      %293 = arith.addf %289, %292 : vector<16x16xf32>
      %294 = vector.extract_strided_slice %61 {offsets = [1, 1], sizes = [16, 16], strides = [1, 1]} : vector<18x18xf32> to vector<16x16xf32>
      %cst_126 = arith.constant -6.000000e+00 : f32
      %295 = vector.broadcast %cst_126 : f32 to vector<16x16xf32>
      %296 = arith.mulf %295, %294 : vector<16x16xf32>
      %297 = arith.addf %293, %296 : vector<16x16xf32>
      %298 = vector.extract_strided_slice %61 {offsets = [1, 2], sizes = [16, 16], strides = [1, 1]} : vector<18x18xf32> to vector<16x16xf32>
      %cst_127 = arith.constant 1.000000e+00 : f32
      %299 = vector.broadcast %cst_127 : f32 to vector<16x16xf32>
      %300 = arith.mulf %299, %298 : vector<16x16xf32>
      %301 = arith.addf %297, %300 : vector<16x16xf32>
      %302 = vector.extract_strided_slice %61 {offsets = [2, 1], sizes = [16, 16], strides = [1, 1]} : vector<18x18xf32> to vector<16x16xf32>
      %cst_128 = arith.constant 1.000000e+00 : f32
      %303 = vector.broadcast %cst_128 : f32 to vector<16x16xf32>
      %304 = arith.mulf %303, %302 : vector<16x16xf32>
      %305 = arith.addf %301, %304 : vector<16x16xf32>
      %306 = vector.extract_strided_slice %4 {offsets = [1, 1], sizes = [16, 16], strides = [1, 1]} : vector<18x18xf32> to vector<16x16xf32>
      %cst_129 = arith.constant 1.000000e+00 : f32
      %307 = vector.broadcast %cst_129 : f32 to vector<16x16xf32>
      %308 = arith.mulf %307, %306 : vector<16x16xf32>
      %309 = arith.addf %305, %308 : vector<16x16xf32>
      %310 = vector.extract_strided_slice %79 {offsets = [1, 1], sizes = [16, 16], strides = [1, 1]} : vector<18x18xf32> to vector<16x16xf32>
      %311 = arith.mulf %58, %76 : vector<18x18xf32>
      %312 = arith.mulf %61, %79 : vector<18x18xf32>
      %313 = arith.mulf %4, %10 : vector<18x18xf32>
      %314 = vector.extract_strided_slice %311 {offsets = [1, 1], sizes = [16, 16], strides = [1, 1]} : vector<18x18xf32> to vector<16x16xf32>
      %cst_130 = arith.constant 1.000000e+00 : f32
      %315 = vector.broadcast %cst_130 : f32 to vector<16x16xf32>
      %316 = arith.mulf %315, %314 : vector<16x16xf32>
      %317 = vector.extract_strided_slice %312 {offsets = [0, 1], sizes = [16, 16], strides = [1, 1]} : vector<18x18xf32> to vector<16x16xf32>
      %cst_131 = arith.constant 1.000000e+00 : f32
      %318 = vector.broadcast %cst_131 : f32 to vector<16x16xf32>
      %319 = arith.mulf %318, %317 : vector<16x16xf32>
      %320 = arith.addf %316, %319 : vector<16x16xf32>
      %321 = vector.extract_strided_slice %312 {offsets = [1, 0], sizes = [16, 16], strides = [1, 1]} : vector<18x18xf32> to vector<16x16xf32>
      %cst_132 = arith.constant 1.000000e+00 : f32
      %322 = vector.broadcast %cst_132 : f32 to vector<16x16xf32>
      %323 = arith.mulf %322, %321 : vector<16x16xf32>
      %324 = arith.addf %320, %323 : vector<16x16xf32>
      %325 = vector.extract_strided_slice %312 {offsets = [1, 1], sizes = [16, 16], strides = [1, 1]} : vector<18x18xf32> to vector<16x16xf32>
      %cst_133 = arith.constant -6.000000e+00 : f32
      %326 = vector.broadcast %cst_133 : f32 to vector<16x16xf32>
      %327 = arith.mulf %326, %325 : vector<16x16xf32>
      %328 = arith.addf %324, %327 : vector<16x16xf32>
      %329 = vector.extract_strided_slice %312 {offsets = [1, 2], sizes = [16, 16], strides = [1, 1]} : vector<18x18xf32> to vector<16x16xf32>
      %cst_134 = arith.constant 1.000000e+00 : f32
      %330 = vector.broadcast %cst_134 : f32 to vector<16x16xf32>
      %331 = arith.mulf %330, %329 : vector<16x16xf32>
      %332 = arith.addf %328, %331 : vector<16x16xf32>
      %333 = vector.extract_strided_slice %312 {offsets = [2, 1], sizes = [16, 16], strides = [1, 1]} : vector<18x18xf32> to vector<16x16xf32>
      %cst_135 = arith.constant 1.000000e+00 : f32
      %334 = vector.broadcast %cst_135 : f32 to vector<16x16xf32>
      %335 = arith.mulf %334, %333 : vector<16x16xf32>
      %336 = arith.addf %332, %335 : vector<16x16xf32>
      %337 = vector.extract_strided_slice %313 {offsets = [1, 1], sizes = [16, 16], strides = [1, 1]} : vector<18x18xf32> to vector<16x16xf32>
      %cst_136 = arith.constant 1.000000e+00 : f32
      %338 = vector.broadcast %cst_136 : f32 to vector<16x16xf32>
      %339 = arith.mulf %338, %337 : vector<16x16xf32>
      %340 = arith.addf %336, %339 : vector<16x16xf32>
      %341 = vector.extract_strided_slice %76 {offsets = [1, 1], sizes = [16, 16], strides = [1, 1]} : vector<18x18xf32> to vector<16x16xf32>
      %cst_137 = arith.constant 1.000000e+00 : f32
      %342 = vector.broadcast %cst_137 : f32 to vector<16x16xf32>
      %343 = arith.mulf %342, %341 : vector<16x16xf32>
      %344 = vector.extract_strided_slice %79 {offsets = [0, 1], sizes = [16, 16], strides = [1, 1]} : vector<18x18xf32> to vector<16x16xf32>
      %cst_138 = arith.constant 1.000000e+00 : f32
      %345 = vector.broadcast %cst_138 : f32 to vector<16x16xf32>
      %346 = arith.mulf %345, %344 : vector<16x16xf32>
      %347 = arith.addf %343, %346 : vector<16x16xf32>
      %348 = vector.extract_strided_slice %79 {offsets = [1, 0], sizes = [16, 16], strides = [1, 1]} : vector<18x18xf32> to vector<16x16xf32>
      %cst_139 = arith.constant 1.000000e+00 : f32
      %349 = vector.broadcast %cst_139 : f32 to vector<16x16xf32>
      %350 = arith.mulf %349, %348 : vector<16x16xf32>
      %351 = arith.addf %347, %350 : vector<16x16xf32>
      %352 = vector.extract_strided_slice %79 {offsets = [1, 1], sizes = [16, 16], strides = [1, 1]} : vector<18x18xf32> to vector<16x16xf32>
      %cst_140 = arith.constant -6.000000e+00 : f32
      %353 = vector.broadcast %cst_140 : f32 to vector<16x16xf32>
      %354 = arith.mulf %353, %352 : vector<16x16xf32>
      %355 = arith.addf %351, %354 : vector<16x16xf32>
      %356 = vector.extract_strided_slice %79 {offsets = [1, 2], sizes = [16, 16], strides = [1, 1]} : vector<18x18xf32> to vector<16x16xf32>
      %cst_141 = arith.constant 1.000000e+00 : f32
      %357 = vector.broadcast %cst_141 : f32 to vector<16x16xf32>
      %358 = arith.mulf %357, %356 : vector<16x16xf32>
      %359 = arith.addf %355, %358 : vector<16x16xf32>
      %360 = vector.extract_strided_slice %79 {offsets = [2, 1], sizes = [16, 16], strides = [1, 1]} : vector<18x18xf32> to vector<16x16xf32>
      %cst_142 = arith.constant 1.000000e+00 : f32
      %361 = vector.broadcast %cst_142 : f32 to vector<16x16xf32>
      %362 = arith.mulf %361, %360 : vector<16x16xf32>
      %363 = arith.addf %359, %362 : vector<16x16xf32>
      %364 = vector.extract_strided_slice %10 {offsets = [1, 1], sizes = [16, 16], strides = [1, 1]} : vector<18x18xf32> to vector<16x16xf32>
      %cst_143 = arith.constant 1.000000e+00 : f32
      %365 = vector.broadcast %cst_143 : f32 to vector<16x16xf32>
      %366 = arith.mulf %365, %364 : vector<16x16xf32>
      %367 = arith.addf %363, %366 : vector<16x16xf32>
      %368 = arith.mulf %310, %309 : vector<16x16xf32>
      %369 = arith.addf %368, %340 : vector<16x16xf32>
      %370 = arith.mulf %99, %367 : vector<16x16xf32>
      %371 = arith.subf %369, %370 : vector<16x16xf32>
      %cst_144 = arith.constant 5.000000e-01 : f32
      %372 = vector.broadcast %cst_144 : f32 to vector<16x16xf32>
      %373 = arith.mulf %372, %371 : vector<16x16xf32>
      %cst_145 = arith.constant 1.500000e-01 : f32
      %374 = vector.broadcast %cst_145 : f32 to vector<16x16xf32>
      %375 = arith.mulf %374, %373 : vector<16x16xf32>
      %cst_146 = arith.constant 5.000000e-01 : f32
      %376 = vector.broadcast %cst_146 : f32 to vector<16x16xf32>
      %377 = arith.mulf %375, %376 : vector<16x16xf32>
      %378 = arith.mulf %98, %268 : vector<16x16xf32>
      %cst_147 = arith.constant 5.000000e-01 : f32
      %379 = vector.broadcast %cst_147 : f32 to vector<16x16xf32>
      %380 = arith.mulf %378, %379 : vector<16x16xf32>
      %381 = arith.subf %377, %380 : vector<16x16xf32>
      %382 = arith.mulf %99, %275 : vector<16x16xf32>
      %cst_148 = arith.constant 5.000000e-01 : f32
      %383 = vector.broadcast %cst_148 : f32 to vector<16x16xf32>
      %384 = arith.mulf %382, %383 : vector<16x16xf32>
      %385 = arith.subf %381, %384 : vector<16x16xf32>
      %386 = arith.mulf %100, %282 : vector<16x16xf32>
      %cst_149 = arith.constant 5.000000e-01 : f32
      %387 = vector.broadcast %cst_149 : f32 to vector<16x16xf32>
      %388 = arith.mulf %386, %387 : vector<16x16xf32>
      %389 = arith.subf %385, %388 : vector<16x16xf32>
      %cst_150 = arith.constant 1.000000e+00 : f32
      %390 = vector.broadcast %cst_150 : f32 to vector<16x16xf32>
      %391 = arith.mulf %390, %389 : vector<16x16xf32>
      %392 = arith.addf %95, %391 : vector<16x16xf32>
      %393 = arith.subf %392, %118 : vector<16x16xf32>
      %cst_151 = arith.constant 0.975609779 : f32
      %394 = vector.broadcast %cst_151 : f32 to vector<16x16xf32>
      %395 = arith.mulf %394, %393 : vector<16x16xf32>
      %396 = vector.extract_strided_slice %67 {offsets = [1, 0], sizes = [16, 16], strides = [1, 1]} : vector<18x18xf32> to vector<16x16xf32>
      %cst_152 = arith.constant -5.000000e-01 : f32
      %397 = vector.broadcast %cst_152 : f32 to vector<16x16xf32>
      %398 = arith.mulf %397, %396 : vector<16x16xf32>
      %399 = vector.extract_strided_slice %67 {offsets = [1, 2], sizes = [16, 16], strides = [1, 1]} : vector<18x18xf32> to vector<16x16xf32>
      %cst_153 = arith.constant 5.000000e-01 : f32
      %400 = vector.broadcast %cst_153 : f32 to vector<16x16xf32>
      %401 = arith.mulf %400, %399 : vector<16x16xf32>
      %402 = arith.addf %398, %401 : vector<16x16xf32>
      %403 = vector.extract_strided_slice %67 {offsets = [0, 1], sizes = [16, 16], strides = [1, 1]} : vector<18x18xf32> to vector<16x16xf32>
      %cst_154 = arith.constant -5.000000e-01 : f32
      %404 = vector.broadcast %cst_154 : f32 to vector<16x16xf32>
      %405 = arith.mulf %404, %403 : vector<16x16xf32>
      %406 = vector.extract_strided_slice %67 {offsets = [2, 1], sizes = [16, 16], strides = [1, 1]} : vector<18x18xf32> to vector<16x16xf32>
      %cst_155 = arith.constant 5.000000e-01 : f32
      %407 = vector.broadcast %cst_155 : f32 to vector<16x16xf32>
      %408 = arith.mulf %407, %406 : vector<16x16xf32>
      %409 = arith.addf %405, %408 : vector<16x16xf32>
      %410 = vector.extract_strided_slice %64 {offsets = [1, 1], sizes = [16, 16], strides = [1, 1]} : vector<18x18xf32> to vector<16x16xf32>
      %cst_156 = arith.constant -5.000000e-01 : f32
      %411 = vector.broadcast %cst_156 : f32 to vector<16x16xf32>
      %412 = arith.mulf %411, %410 : vector<16x16xf32>
      %413 = vector.extract_strided_slice %6 {offsets = [1, 1], sizes = [16, 16], strides = [1, 1]} : vector<18x18xf32> to vector<16x16xf32>
      %cst_157 = arith.constant 5.000000e-01 : f32
      %414 = vector.broadcast %cst_157 : f32 to vector<16x16xf32>
      %415 = arith.mulf %414, %413 : vector<16x16xf32>
      %416 = arith.addf %412, %415 : vector<16x16xf32>
      %417 = vector.extract_strided_slice %64 {offsets = [1, 1], sizes = [16, 16], strides = [1, 1]} : vector<18x18xf32> to vector<16x16xf32>
      %cst_158 = arith.constant 1.000000e+00 : f32
      %418 = vector.broadcast %cst_158 : f32 to vector<16x16xf32>
      %419 = arith.mulf %418, %417 : vector<16x16xf32>
      %420 = vector.extract_strided_slice %67 {offsets = [0, 1], sizes = [16, 16], strides = [1, 1]} : vector<18x18xf32> to vector<16x16xf32>
      %cst_159 = arith.constant 1.000000e+00 : f32
      %421 = vector.broadcast %cst_159 : f32 to vector<16x16xf32>
      %422 = arith.mulf %421, %420 : vector<16x16xf32>
      %423 = arith.addf %419, %422 : vector<16x16xf32>
      %424 = vector.extract_strided_slice %67 {offsets = [1, 0], sizes = [16, 16], strides = [1, 1]} : vector<18x18xf32> to vector<16x16xf32>
      %cst_160 = arith.constant 1.000000e+00 : f32
      %425 = vector.broadcast %cst_160 : f32 to vector<16x16xf32>
      %426 = arith.mulf %425, %424 : vector<16x16xf32>
      %427 = arith.addf %423, %426 : vector<16x16xf32>
      %428 = vector.extract_strided_slice %67 {offsets = [1, 1], sizes = [16, 16], strides = [1, 1]} : vector<18x18xf32> to vector<16x16xf32>
      %cst_161 = arith.constant -6.000000e+00 : f32
      %429 = vector.broadcast %cst_161 : f32 to vector<16x16xf32>
      %430 = arith.mulf %429, %428 : vector<16x16xf32>
      %431 = arith.addf %427, %430 : vector<16x16xf32>
      %432 = vector.extract_strided_slice %67 {offsets = [1, 2], sizes = [16, 16], strides = [1, 1]} : vector<18x18xf32> to vector<16x16xf32>
      %cst_162 = arith.constant 1.000000e+00 : f32
      %433 = vector.broadcast %cst_162 : f32 to vector<16x16xf32>
      %434 = arith.mulf %433, %432 : vector<16x16xf32>
      %435 = arith.addf %431, %434 : vector<16x16xf32>
      %436 = vector.extract_strided_slice %67 {offsets = [2, 1], sizes = [16, 16], strides = [1, 1]} : vector<18x18xf32> to vector<16x16xf32>
      %cst_163 = arith.constant 1.000000e+00 : f32
      %437 = vector.broadcast %cst_163 : f32 to vector<16x16xf32>
      %438 = arith.mulf %437, %436 : vector<16x16xf32>
      %439 = arith.addf %435, %438 : vector<16x16xf32>
      %440 = vector.extract_strided_slice %6 {offsets = [1, 1], sizes = [16, 16], strides = [1, 1]} : vector<18x18xf32> to vector<16x16xf32>
      %cst_164 = arith.constant 1.000000e+00 : f32
      %441 = vector.broadcast %cst_164 : f32 to vector<16x16xf32>
      %442 = arith.mulf %441, %440 : vector<16x16xf32>
      %443 = arith.addf %439, %442 : vector<16x16xf32>
      %444 = vector.extract_strided_slice %85 {offsets = [1, 1], sizes = [16, 16], strides = [1, 1]} : vector<18x18xf32> to vector<16x16xf32>
      %445 = arith.mulf %64, %82 : vector<18x18xf32>
      %446 = arith.mulf %67, %85 : vector<18x18xf32>
      %447 = arith.mulf %6, %12 : vector<18x18xf32>
      %448 = vector.extract_strided_slice %445 {offsets = [1, 1], sizes = [16, 16], strides = [1, 1]} : vector<18x18xf32> to vector<16x16xf32>
      %cst_165 = arith.constant 1.000000e+00 : f32
      %449 = vector.broadcast %cst_165 : f32 to vector<16x16xf32>
      %450 = arith.mulf %449, %448 : vector<16x16xf32>
      %451 = vector.extract_strided_slice %446 {offsets = [0, 1], sizes = [16, 16], strides = [1, 1]} : vector<18x18xf32> to vector<16x16xf32>
      %cst_166 = arith.constant 1.000000e+00 : f32
      %452 = vector.broadcast %cst_166 : f32 to vector<16x16xf32>
      %453 = arith.mulf %452, %451 : vector<16x16xf32>
      %454 = arith.addf %450, %453 : vector<16x16xf32>
      %455 = vector.extract_strided_slice %446 {offsets = [1, 0], sizes = [16, 16], strides = [1, 1]} : vector<18x18xf32> to vector<16x16xf32>
      %cst_167 = arith.constant 1.000000e+00 : f32
      %456 = vector.broadcast %cst_167 : f32 to vector<16x16xf32>
      %457 = arith.mulf %456, %455 : vector<16x16xf32>
      %458 = arith.addf %454, %457 : vector<16x16xf32>
      %459 = vector.extract_strided_slice %446 {offsets = [1, 1], sizes = [16, 16], strides = [1, 1]} : vector<18x18xf32> to vector<16x16xf32>
      %cst_168 = arith.constant -6.000000e+00 : f32
      %460 = vector.broadcast %cst_168 : f32 to vector<16x16xf32>
      %461 = arith.mulf %460, %459 : vector<16x16xf32>
      %462 = arith.addf %458, %461 : vector<16x16xf32>
      %463 = vector.extract_strided_slice %446 {offsets = [1, 2], sizes = [16, 16], strides = [1, 1]} : vector<18x18xf32> to vector<16x16xf32>
      %cst_169 = arith.constant 1.000000e+00 : f32
      %464 = vector.broadcast %cst_169 : f32 to vector<16x16xf32>
      %465 = arith.mulf %464, %463 : vector<16x16xf32>
      %466 = arith.addf %462, %465 : vector<16x16xf32>
      %467 = vector.extract_strided_slice %446 {offsets = [2, 1], sizes = [16, 16], strides = [1, 1]} : vector<18x18xf32> to vector<16x16xf32>
      %cst_170 = arith.constant 1.000000e+00 : f32
      %468 = vector.broadcast %cst_170 : f32 to vector<16x16xf32>
      %469 = arith.mulf %468, %467 : vector<16x16xf32>
      %470 = arith.addf %466, %469 : vector<16x16xf32>
      %471 = vector.extract_strided_slice %447 {offsets = [1, 1], sizes = [16, 16], strides = [1, 1]} : vector<18x18xf32> to vector<16x16xf32>
      %cst_171 = arith.constant 1.000000e+00 : f32
      %472 = vector.broadcast %cst_171 : f32 to vector<16x16xf32>
      %473 = arith.mulf %472, %471 : vector<16x16xf32>
      %474 = arith.addf %470, %473 : vector<16x16xf32>
      %475 = vector.extract_strided_slice %82 {offsets = [1, 1], sizes = [16, 16], strides = [1, 1]} : vector<18x18xf32> to vector<16x16xf32>
      %cst_172 = arith.constant 1.000000e+00 : f32
      %476 = vector.broadcast %cst_172 : f32 to vector<16x16xf32>
      %477 = arith.mulf %476, %475 : vector<16x16xf32>
      %478 = vector.extract_strided_slice %85 {offsets = [0, 1], sizes = [16, 16], strides = [1, 1]} : vector<18x18xf32> to vector<16x16xf32>
      %cst_173 = arith.constant 1.000000e+00 : f32
      %479 = vector.broadcast %cst_173 : f32 to vector<16x16xf32>
      %480 = arith.mulf %479, %478 : vector<16x16xf32>
      %481 = arith.addf %477, %480 : vector<16x16xf32>
      %482 = vector.extract_strided_slice %85 {offsets = [1, 0], sizes = [16, 16], strides = [1, 1]} : vector<18x18xf32> to vector<16x16xf32>
      %cst_174 = arith.constant 1.000000e+00 : f32
      %483 = vector.broadcast %cst_174 : f32 to vector<16x16xf32>
      %484 = arith.mulf %483, %482 : vector<16x16xf32>
      %485 = arith.addf %481, %484 : vector<16x16xf32>
      %486 = vector.extract_strided_slice %85 {offsets = [1, 1], sizes = [16, 16], strides = [1, 1]} : vector<18x18xf32> to vector<16x16xf32>
      %cst_175 = arith.constant -6.000000e+00 : f32
      %487 = vector.broadcast %cst_175 : f32 to vector<16x16xf32>
      %488 = arith.mulf %487, %486 : vector<16x16xf32>
      %489 = arith.addf %485, %488 : vector<16x16xf32>
      %490 = vector.extract_strided_slice %85 {offsets = [1, 2], sizes = [16, 16], strides = [1, 1]} : vector<18x18xf32> to vector<16x16xf32>
      %cst_176 = arith.constant 1.000000e+00 : f32
      %491 = vector.broadcast %cst_176 : f32 to vector<16x16xf32>
      %492 = arith.mulf %491, %490 : vector<16x16xf32>
      %493 = arith.addf %489, %492 : vector<16x16xf32>
      %494 = vector.extract_strided_slice %85 {offsets = [2, 1], sizes = [16, 16], strides = [1, 1]} : vector<18x18xf32> to vector<16x16xf32>
      %cst_177 = arith.constant 1.000000e+00 : f32
      %495 = vector.broadcast %cst_177 : f32 to vector<16x16xf32>
      %496 = arith.mulf %495, %494 : vector<16x16xf32>
      %497 = arith.addf %493, %496 : vector<16x16xf32>
      %498 = vector.extract_strided_slice %12 {offsets = [1, 1], sizes = [16, 16], strides = [1, 1]} : vector<18x18xf32> to vector<16x16xf32>
      %cst_178 = arith.constant 1.000000e+00 : f32
      %499 = vector.broadcast %cst_178 : f32 to vector<16x16xf32>
      %500 = arith.mulf %499, %498 : vector<16x16xf32>
      %501 = arith.addf %497, %500 : vector<16x16xf32>
      %502 = arith.mulf %444, %443 : vector<16x16xf32>
      %503 = arith.addf %502, %474 : vector<16x16xf32>
      %504 = arith.mulf %100, %501 : vector<16x16xf32>
      %505 = arith.subf %503, %504 : vector<16x16xf32>
      %cst_179 = arith.constant 5.000000e-01 : f32
      %506 = vector.broadcast %cst_179 : f32 to vector<16x16xf32>
      %507 = arith.mulf %506, %505 : vector<16x16xf32>
      %cst_180 = arith.constant 1.500000e-01 : f32
      %508 = vector.broadcast %cst_180 : f32 to vector<16x16xf32>
      %509 = arith.mulf %508, %507 : vector<16x16xf32>
      %cst_181 = arith.constant 5.000000e-01 : f32
      %510 = vector.broadcast %cst_181 : f32 to vector<16x16xf32>
      %511 = arith.mulf %509, %510 : vector<16x16xf32>
      %512 = arith.mulf %98, %402 : vector<16x16xf32>
      %cst_182 = arith.constant 5.000000e-01 : f32
      %513 = vector.broadcast %cst_182 : f32 to vector<16x16xf32>
      %514 = arith.mulf %512, %513 : vector<16x16xf32>
      %515 = arith.subf %511, %514 : vector<16x16xf32>
      %516 = arith.mulf %99, %409 : vector<16x16xf32>
      %cst_183 = arith.constant 5.000000e-01 : f32
      %517 = vector.broadcast %cst_183 : f32 to vector<16x16xf32>
      %518 = arith.mulf %516, %517 : vector<16x16xf32>
      %519 = arith.subf %515, %518 : vector<16x16xf32>
      %520 = arith.mulf %100, %416 : vector<16x16xf32>
      %cst_184 = arith.constant 5.000000e-01 : f32
      %521 = vector.broadcast %cst_184 : f32 to vector<16x16xf32>
      %522 = arith.mulf %520, %521 : vector<16x16xf32>
      %523 = arith.subf %519, %522 : vector<16x16xf32>
      %cst_185 = arith.constant 1.000000e+00 : f32
      %524 = vector.broadcast %cst_185 : f32 to vector<16x16xf32>
      %525 = arith.mulf %524, %523 : vector<16x16xf32>
      %526 = arith.addf %97, %525 : vector<16x16xf32>
      %527 = arith.subf %526, %127 : vector<16x16xf32>
      %cst_186 = arith.constant 0.975609779 : f32
      %528 = vector.broadcast %cst_186 : f32 to vector<16x16xf32>
      %529 = arith.mulf %528, %527 : vector<16x16xf32>
      %c0_187 = arith.constant 0 : index
      %c0_188 = arith.constant 0 : index
      %c0_189 = arith.constant 0 : index
      %530 = vector.load %arg11[%c0_187, %c0_188, %c0_189] : memref<1x16x16xf32, #tpu.memory_space<vmem>>, vector<1x16x16xf32>
      %531 = vector.shape_cast %530 : vector<1x16x16xf32> to vector<16x16xf32>
      %532 = vector.shape_cast %261 : vector<16x16xf32> to vector<1x16x16xf32>
      tpu.vector_store %arg11[%c0_187, %c0_188, %c0_189], %532 {strides = array<i32>} : memref<1x16x16xf32, #tpu.memory_space<vmem>>, vector<1x16x16xf32>,
      %c0_190 = arith.constant 0 : index
      %c0_191 = arith.constant 0 : index
      %c0_192 = arith.constant 0 : index
      %533 = vector.load %arg12[%c0_190, %c0_191, %c0_192] : memref<1x16x16xf32, #tpu.memory_space<vmem>>, vector<1x16x16xf32>
      %534 = vector.shape_cast %533 : vector<1x16x16xf32> to vector<16x16xf32>
      %535 = vector.shape_cast %395 : vector<16x16xf32> to vector<1x16x16xf32>
      tpu.vector_store %arg12[%c0_190, %c0_191, %c0_192], %535 {strides = array<i32>} : memref<1x16x16xf32, #tpu.memory_space<vmem>>, vector<1x16x16xf32>,
      %c0_193 = arith.constant 0 : index
      %c0_194 = arith.constant 0 : index
      %c0_195 = arith.constant 0 : index
      %536 = vector.load %arg13[%c0_193, %c0_194, %c0_195] : memref<1x16x16xf32, #tpu.memory_space<vmem>>, vector<1x16x16xf32>
      %537 = vector.shape_cast %536 : vector<1x16x16xf32> to vector<16x16xf32>
      %538 = vector.shape_cast %529 : vector<16x16xf32> to vector<1x16x16xf32>
      tpu.vector_store %arg13[%c0_193, %c0_194, %c0_195], %538 {strides = array<i32>} : memref<1x16x16xf32, #tpu.memory_space<vmem>>, vector<1x16x16xf32>,
    } else {
    }
    return
  }
  func.func @transform_0(%arg0: i32) -> (i32, i32, i32) {
    %c0_i32 = arith.constant 0 : i32
    %c0_i32_0 = arith.constant 0 : i32
    %c0_i32_1 = arith.constant 0 : i32
    return %arg0, %c0_i32, %c0_i32_0 : i32, i32, i32
  }
  func.func @transform_1(%arg0: i32) -> (i32, i32, i32) {
    %c0_i32 = arith.constant 0 : i32
    %c0_i32_0 = arith.constant 0 : i32
    %c0_i32_1 = arith.constant 0 : i32
    return %arg0, %c0_i32, %c0_i32_0 : i32, i32, i32
  }
  func.func @transform_2(%arg0: i32) -> (i32, i32, i32) {
    %c0_i32 = arith.constant 0 : i32
    %c0_i32_0 = arith.constant 0 : i32
    %c0_i32_1 = arith.constant 0 : i32
    return %arg0, %c0_i32, %c0_i32_0 : i32, i32, i32
  }
  func.func @transform_3(%arg0: i32) -> (i32, i32, i32) {
    %c0_i32 = arith.constant 0 : i32
    %c0_i32_0 = arith.constant 0 : i32
    %c0_i32_1 = arith.constant 0 : i32
    return %arg0, %c0_i32, %c0_i32_0 : i32, i32, i32
  }
  func.func @transform_4(%arg0: i32) -> (i32, i32, i32) {
    %c0_i32 = arith.constant 0 : i32
    %c0_i32_0 = arith.constant 0 : i32
    %c0_i32_1 = arith.constant 0 : i32
    return %arg0, %c0_i32, %c0_i32_0 : i32, i32, i32
  }
  func.func @transform_5(%arg0: i32) -> (i32, i32, i32) {
    %c0_i32 = arith.constant 0 : i32
    %c0_i32_0 = arith.constant 0 : i32
    %c0_i32_1 = arith.constant 0 : i32
    return %arg0, %c0_i32, %c0_i32_0 : i32, i32, i32
  }
  func.func @transform_6(%arg0: i32) -> (i32, i32, i32) {
    %c0_i32 = arith.constant 0 : i32
    %c0_i32_0 = arith.constant 0 : i32
    %c0_i32_1 = arith.constant 0 : i32
    return %arg0, %c0_i32, %c0_i32_0 : i32, i32, i32
  }
  func.func @transform_7(%arg0: i32) -> (i32, i32, i32) {
    %c2_i32 = arith.constant 2 : i32
    %0 = arith.subi %arg0, %c2_i32 : i32
    %c0_i32 = arith.constant 0 : i32
    %1 = arith.maxsi %0, %c0_i32 : i32
    %c0_i32_0 = arith.constant 0 : i32
    %c0_i32_1 = arith.constant 0 : i32
    %c0_i32_2 = arith.constant 0 : i32
    return %1, %c0_i32_0, %c0_i32_1 : i32, i32, i32
  }
  func.func @transform_8(%arg0: i32) -> (i32, i32, i32) {
    %c2_i32 = arith.constant 2 : i32
    %0 = arith.subi %arg0, %c2_i32 : i32
    %c0_i32 = arith.constant 0 : i32
    %1 = arith.maxsi %0, %c0_i32 : i32
    %c0_i32_0 = arith.constant 0 : i32
    %c0_i32_1 = arith.constant 0 : i32
    %c0_i32_2 = arith.constant 0 : i32
    return %1, %c0_i32_0, %c0_i32_1 : i32, i32, i32
  }
  func.func @transform_9(%arg0: i32) -> (i32, i32, i32) {
    %c2_i32 = arith.constant 2 : i32
    %0 = arith.subi %arg0, %c2_i32 : i32
    %c0_i32 = arith.constant 0 : i32
    %1 = arith.maxsi %0, %c0_i32 : i32
    %c0_i32_0 = arith.constant 0 : i32
    %c0_i32_1 = arith.constant 0 : i32
    %c0_i32_2 = arith.constant 0 : i32
    return %1, %c0_i32_0, %c0_i32_1 : i32, i32, i32
  }
  func.func @transform_10(%arg0: i32) -> (i32, i32, i32) {
    %c2_i32 = arith.constant 2 : i32
    %0 = arith.subi %arg0, %c2_i32 : i32
    %c0_i32 = arith.constant 0 : i32
    %1 = arith.maxsi %0, %c0_i32 : i32
    %c0_i32_0 = arith.constant 0 : i32
    %c0_i32_1 = arith.constant 0 : i32
    %c0_i32_2 = arith.constant 0 : i32
    return %1, %c0_i32_0, %c0_i32_1 : i32, i32, i32
  }
  func.func @transform_11(%arg0: i32) -> (i32, i32, i32) {
    %c2_i32 = arith.constant 2 : i32
    %0 = arith.subi %arg0, %c2_i32 : i32
    %c0_i32 = arith.constant 0 : i32
    %1 = arith.maxsi %0, %c0_i32 : i32
    %c0_i32_0 = arith.constant 0 : i32
    %c0_i32_1 = arith.constant 0 : i32
    %c0_i32_2 = arith.constant 0 : i32
    return %1, %c0_i32_0, %c0_i32_1 : i32, i32, i32
  }
  func.func @transform_12(%arg0: i32) -> (i32, i32, i32) {
    %c2_i32 = arith.constant 2 : i32
    %0 = arith.subi %arg0, %c2_i32 : i32
    %c0_i32 = arith.constant 0 : i32
    %1 = arith.maxsi %0, %c0_i32 : i32
    %c0_i32_0 = arith.constant 0 : i32
    %c0_i32_1 = arith.constant 0 : i32
    %c0_i32_2 = arith.constant 0 : i32
    return %1, %c0_i32_0, %c0_i32_1 : i32, i32, i32
  }
}

module attributes {stable_mosaic.version = 11 : i64} {
  func.func @kernel(%arg0: i32, %arg1: memref<1x18x18xf32, #tpu.memory_space<vmem>>, %arg2: memref<1x18x18xf32, #tpu.memory_space<vmem>>, %arg3: memref<1x18x18xf32, #tpu.memory_space<vmem>>, %arg4: memref<1x16x16xf32, #tpu.memory_space<vmem>>, %arg5: memref<1x16x16xf32, #tpu.memory_space<vmem>>, %arg6: memref<1x16x16xf32, #tpu.memory_space<vmem>>, %arg7: memref<1x16x16xf32, #tpu.memory_space<vmem>>, %arg8: memref<3x18x18xf32, #tpu.memory_space<vmem>>, %arg9: memref<3x18x18xf32, #tpu.memory_space<vmem>>, %arg10: memref<3x18x18xf32, #tpu.memory_space<vmem>>) attributes {dimension_semantics = [#tpu.dimension_semantics<arbitrary>], iteration_bounds = array<i64: 10>, scalar_prefetch = 0 : i64, scratch_operands = 3 : i64, tpu.core_type = #tpu.core_type<tc>, window_params = [{transform_indices = @transform_0, window_bounds = array<i64: 1, 18, 18>}, {transform_indices = @transform_1, window_bounds = array<i64: 1, 18, 18>}, {transform_indices = @transform_2, window_bounds = array<i64: 1, 18, 18>}, {transform_indices = @transform_3, window_bounds = array<i64: 1, 16, 16>}, {transform_indices = @transform_4, window_bounds = array<i64: 1, 16, 16>}, {transform_indices = @transform_5, window_bounds = array<i64: 1, 16, 16>}, {transform_indices = @transform_6, window_bounds = array<i64: 1, 16, 16>}]} {
    %c3_i32 = arith.constant 3 : i32
    %0 = arith.remsi %arg0, %c3_i32 : i32
    %c0 = arith.constant 0 : index
    %c0_0 = arith.constant 0 : index
    %c0_1 = arith.constant 0 : index
    %1 = vector.load %arg1[%c0, %c0_0, %c0_1] : memref<1x18x18xf32, #tpu.memory_space<vmem>>, vector<1x18x18xf32>
    %2 = vector.shape_cast %1 : vector<1x18x18xf32> to vector<18x18xf32>
    %c0_2 = arith.constant 0 : index
    %c0_3 = arith.constant 0 : index
    %c0_4 = arith.constant 0 : index
    %3 = vector.load %arg2[%c0_2, %c0_3, %c0_4] : memref<1x18x18xf32, #tpu.memory_space<vmem>>, vector<1x18x18xf32>
    %4 = vector.shape_cast %3 : vector<1x18x18xf32> to vector<18x18xf32>
    %c0_5 = arith.constant 0 : index
    %c0_6 = arith.constant 0 : index
    %c0_7 = arith.constant 0 : index
    %5 = vector.load %arg3[%c0_5, %c0_6, %c0_7] : memref<1x18x18xf32, #tpu.memory_space<vmem>>, vector<1x18x18xf32>
    %6 = vector.shape_cast %5 : vector<1x18x18xf32> to vector<18x18xf32>
    %7 = arith.index_cast %0 : i32 to index
    %c0_8 = arith.constant 0 : index
    %c0_9 = arith.constant 0 : index
    %8 = vector.load %arg8[%7, %c0_8, %c0_9] : memref<3x18x18xf32, #tpu.memory_space<vmem>>, vector<1x18x18xf32>
    %9 = vector.shape_cast %8 : vector<1x18x18xf32> to vector<18x18xf32>
    %10 = vector.shape_cast %2 : vector<18x18xf32> to vector<1x18x18xf32>
    tpu.vector_store %arg8[%7, %c0_8, %c0_9], %10 {strides = array<i32>} : memref<3x18x18xf32, #tpu.memory_space<vmem>>, vector<1x18x18xf32>,
    %11 = arith.index_cast %0 : i32 to index
    %c0_10 = arith.constant 0 : index
    %c0_11 = arith.constant 0 : index
    %12 = vector.load %arg9[%11, %c0_10, %c0_11] : memref<3x18x18xf32, #tpu.memory_space<vmem>>, vector<1x18x18xf32>
    %13 = vector.shape_cast %12 : vector<1x18x18xf32> to vector<18x18xf32>
    %14 = vector.shape_cast %4 : vector<18x18xf32> to vector<1x18x18xf32>
    tpu.vector_store %arg9[%11, %c0_10, %c0_11], %14 {strides = array<i32>} : memref<3x18x18xf32, #tpu.memory_space<vmem>>, vector<1x18x18xf32>,
    %15 = arith.index_cast %0 : i32 to index
    %c0_12 = arith.constant 0 : index
    %c0_13 = arith.constant 0 : index
    %16 = vector.load %arg10[%15, %c0_12, %c0_13] : memref<3x18x18xf32, #tpu.memory_space<vmem>>, vector<1x18x18xf32>
    %17 = vector.shape_cast %16 : vector<1x18x18xf32> to vector<18x18xf32>
    %18 = vector.shape_cast %6 : vector<18x18xf32> to vector<1x18x18xf32>
    tpu.vector_store %arg10[%15, %c0_12, %c0_13], %18 {strides = array<i32>} : memref<3x18x18xf32, #tpu.memory_space<vmem>>, vector<1x18x18xf32>,
    %c2_i32 = arith.constant 2 : i32
    %19 = arith.cmpi sge, %arg0, %c2_i32 : i32
    %20 = arith.extui %19 : i1 to i32
    %c0_i32 = arith.constant 0 : i32
    %21 = arith.cmpi ne, %20, %c0_i32 : i32
    scf.if %21 {
      %c1_i32 = arith.constant 1 : i32
      %22 = arith.addi %arg0, %c1_i32 : i32
      %c3_i32_14 = arith.constant 3 : i32
      %23 = arith.remsi %22, %c3_i32_14 : i32
      %c2_i32_15 = arith.constant 2 : i32
      %24 = arith.addi %arg0, %c2_i32_15 : i32
      %c3_i32_16 = arith.constant 3 : i32
      %25 = arith.remsi %24, %c3_i32_16 : i32
      %26 = arith.index_cast %23 : i32 to index
      %c0_17 = arith.constant 0 : index
      %c0_18 = arith.constant 0 : index
      %27 = vector.load %arg8[%26, %c0_17, %c0_18] : memref<3x18x18xf32, #tpu.memory_space<vmem>>, vector<1x18x18xf32>
      %28 = vector.shape_cast %27 : vector<1x18x18xf32> to vector<18x18xf32>
      %29 = arith.index_cast %25 : i32 to index
      %c0_19 = arith.constant 0 : index
      %c0_20 = arith.constant 0 : index
      %30 = vector.load %arg8[%29, %c0_19, %c0_20] : memref<3x18x18xf32, #tpu.memory_space<vmem>>, vector<1x18x18xf32>
      %31 = vector.shape_cast %30 : vector<1x18x18xf32> to vector<18x18xf32>
      %32 = arith.index_cast %23 : i32 to index
      %c0_21 = arith.constant 0 : index
      %c0_22 = arith.constant 0 : index
      %33 = vector.load %arg9[%32, %c0_21, %c0_22] : memref<3x18x18xf32, #tpu.memory_space<vmem>>, vector<1x18x18xf32>
      %34 = vector.shape_cast %33 : vector<1x18x18xf32> to vector<18x18xf32>
      %35 = arith.index_cast %25 : i32 to index
      %c0_23 = arith.constant 0 : index
      %c0_24 = arith.constant 0 : index
      %36 = vector.load %arg9[%35, %c0_23, %c0_24] : memref<3x18x18xf32, #tpu.memory_space<vmem>>, vector<1x18x18xf32>
      %37 = vector.shape_cast %36 : vector<1x18x18xf32> to vector<18x18xf32>
      %38 = arith.index_cast %23 : i32 to index
      %c0_25 = arith.constant 0 : index
      %c0_26 = arith.constant 0 : index
      %39 = vector.load %arg10[%38, %c0_25, %c0_26] : memref<3x18x18xf32, #tpu.memory_space<vmem>>, vector<1x18x18xf32>
      %40 = vector.shape_cast %39 : vector<1x18x18xf32> to vector<18x18xf32>
      %41 = arith.index_cast %25 : i32 to index
      %c0_27 = arith.constant 0 : index
      %c0_28 = arith.constant 0 : index
      %42 = vector.load %arg10[%41, %c0_27, %c0_28] : memref<3x18x18xf32, #tpu.memory_space<vmem>>, vector<1x18x18xf32>
      %43 = vector.shape_cast %42 : vector<1x18x18xf32> to vector<18x18xf32>
      %c0_29 = arith.constant 0 : index
      %c0_30 = arith.constant 0 : index
      %c0_31 = arith.constant 0 : index
      %44 = vector.load %arg4[%c0_29, %c0_30, %c0_31] : memref<1x16x16xf32, #tpu.memory_space<vmem>>, vector<1x16x16xf32>
      %45 = vector.shape_cast %44 : vector<1x16x16xf32> to vector<16x16xf32>
      %46 = vector.extract_strided_slice %31 {offsets = [1, 1], sizes = [16, 16], strides = [1, 1]} : vector<18x18xf32> to vector<16x16xf32>
      %47 = vector.extract_strided_slice %37 {offsets = [1, 1], sizes = [16, 16], strides = [1, 1]} : vector<18x18xf32> to vector<16x16xf32>
      %48 = vector.extract_strided_slice %43 {offsets = [1, 1], sizes = [16, 16], strides = [1, 1]} : vector<18x18xf32> to vector<16x16xf32>
      %49 = math.absf %46 : vector<16x16xf32>
      %cst = arith.constant 1.000000e+00 : f32
      %50 = vector.broadcast %cst : f32 to vector<16x16xf32>
      %51 = arith.mulf %49, %50 : vector<16x16xf32>
      %52 = math.absf %47 : vector<16x16xf32>
      %cst_32 = arith.constant 1.000000e+00 : f32
      %53 = vector.broadcast %cst_32 : f32 to vector<16x16xf32>
      %54 = arith.mulf %52, %53 : vector<16x16xf32>
      %55 = arith.addf %51, %54 : vector<16x16xf32>
      %56 = math.absf %48 : vector<16x16xf32>
      %cst_33 = arith.constant 1.000000e+00 : f32
      %57 = vector.broadcast %cst_33 : f32 to vector<16x16xf32>
      %58 = arith.mulf %56, %57 : vector<16x16xf32>
      %59 = arith.addf %55, %58 : vector<16x16xf32>
      %60 = vector.extract_strided_slice %31 {offsets = [1, 0], sizes = [16, 16], strides = [1, 1]} : vector<18x18xf32> to vector<16x16xf32>
      %cst_34 = arith.constant -5.000000e-01 : f32
      %61 = vector.broadcast %cst_34 : f32 to vector<16x16xf32>
      %62 = arith.mulf %61, %60 : vector<16x16xf32>
      %63 = vector.extract_strided_slice %31 {offsets = [1, 2], sizes = [16, 16], strides = [1, 1]} : vector<18x18xf32> to vector<16x16xf32>
      %cst_35 = arith.constant 5.000000e-01 : f32
      %64 = vector.broadcast %cst_35 : f32 to vector<16x16xf32>
      %65 = arith.mulf %64, %63 : vector<16x16xf32>
      %66 = arith.addf %62, %65 : vector<16x16xf32>
      %67 = vector.extract_strided_slice %31 {offsets = [0, 1], sizes = [16, 16], strides = [1, 1]} : vector<18x18xf32> to vector<16x16xf32>
      %cst_36 = arith.constant -5.000000e-01 : f32
      %68 = vector.broadcast %cst_36 : f32 to vector<16x16xf32>
      %69 = arith.mulf %68, %67 : vector<16x16xf32>
      %70 = vector.extract_strided_slice %31 {offsets = [2, 1], sizes = [16, 16], strides = [1, 1]} : vector<18x18xf32> to vector<16x16xf32>
      %cst_37 = arith.constant 5.000000e-01 : f32
      %71 = vector.broadcast %cst_37 : f32 to vector<16x16xf32>
      %72 = arith.mulf %71, %70 : vector<16x16xf32>
      %73 = arith.addf %69, %72 : vector<16x16xf32>
      %74 = vector.extract_strided_slice %28 {offsets = [1, 1], sizes = [16, 16], strides = [1, 1]} : vector<18x18xf32> to vector<16x16xf32>
      %cst_38 = arith.constant -5.000000e-01 : f32
      %75 = vector.broadcast %cst_38 : f32 to vector<16x16xf32>
      %76 = arith.mulf %75, %74 : vector<16x16xf32>
      %77 = vector.extract_strided_slice %2 {offsets = [1, 1], sizes = [16, 16], strides = [1, 1]} : vector<18x18xf32> to vector<16x16xf32>
      %cst_39 = arith.constant 5.000000e-01 : f32
      %78 = vector.broadcast %cst_39 : f32 to vector<16x16xf32>
      %79 = arith.mulf %78, %77 : vector<16x16xf32>
      %80 = arith.addf %76, %79 : vector<16x16xf32>
      %81 = vector.extract_strided_slice %28 {offsets = [1, 1], sizes = [16, 16], strides = [1, 1]} : vector<18x18xf32> to vector<16x16xf32>
      %cst_40 = arith.constant 1.000000e+00 : f32
      %82 = vector.broadcast %cst_40 : f32 to vector<16x16xf32>
      %83 = arith.mulf %82, %81 : vector<16x16xf32>
      %84 = vector.extract_strided_slice %31 {offsets = [0, 1], sizes = [16, 16], strides = [1, 1]} : vector<18x18xf32> to vector<16x16xf32>
      %cst_41 = arith.constant 1.000000e+00 : f32
      %85 = vector.broadcast %cst_41 : f32 to vector<16x16xf32>
      %86 = arith.mulf %85, %84 : vector<16x16xf32>
      %87 = arith.addf %83, %86 : vector<16x16xf32>
      %88 = vector.extract_strided_slice %31 {offsets = [1, 0], sizes = [16, 16], strides = [1, 1]} : vector<18x18xf32> to vector<16x16xf32>
      %cst_42 = arith.constant 1.000000e+00 : f32
      %89 = vector.broadcast %cst_42 : f32 to vector<16x16xf32>
      %90 = arith.mulf %89, %88 : vector<16x16xf32>
      %91 = arith.addf %87, %90 : vector<16x16xf32>
      %92 = vector.extract_strided_slice %31 {offsets = [1, 1], sizes = [16, 16], strides = [1, 1]} : vector<18x18xf32> to vector<16x16xf32>
      %cst_43 = arith.constant -6.000000e+00 : f32
      %93 = vector.broadcast %cst_43 : f32 to vector<16x16xf32>
      %94 = arith.mulf %93, %92 : vector<16x16xf32>
      %95 = arith.addf %91, %94 : vector<16x16xf32>
      %96 = vector.extract_strided_slice %31 {offsets = [1, 2], sizes = [16, 16], strides = [1, 1]} : vector<18x18xf32> to vector<16x16xf32>
      %cst_44 = arith.constant 1.000000e+00 : f32
      %97 = vector.broadcast %cst_44 : f32 to vector<16x16xf32>
      %98 = arith.mulf %97, %96 : vector<16x16xf32>
      %99 = arith.addf %95, %98 : vector<16x16xf32>
      %100 = vector.extract_strided_slice %31 {offsets = [2, 1], sizes = [16, 16], strides = [1, 1]} : vector<18x18xf32> to vector<16x16xf32>
      %cst_45 = arith.constant 1.000000e+00 : f32
      %101 = vector.broadcast %cst_45 : f32 to vector<16x16xf32>
      %102 = arith.mulf %101, %100 : vector<16x16xf32>
      %103 = arith.addf %99, %102 : vector<16x16xf32>
      %104 = vector.extract_strided_slice %2 {offsets = [1, 1], sizes = [16, 16], strides = [1, 1]} : vector<18x18xf32> to vector<16x16xf32>
      %cst_46 = arith.constant 1.000000e+00 : f32
      %105 = vector.broadcast %cst_46 : f32 to vector<16x16xf32>
      %106 = arith.mulf %105, %104 : vector<16x16xf32>
      %107 = arith.addf %103, %106 : vector<16x16xf32>
      %cst_47 = arith.constant 0.333333343 : f32
      %108 = vector.broadcast %cst_47 : f32 to vector<16x16xf32>
      %109 = arith.mulf %108, %59 : vector<16x16xf32>
      %110 = arith.mulf %109, %107 : vector<16x16xf32>
      %111 = math.absf %110 : vector<16x16xf32>
      %cst_48 = arith.constant 1.000000e-01 : f32
      %112 = vector.broadcast %cst_48 : f32 to vector<16x16xf32>
      %113 = arith.mulf %112, %111 : vector<16x16xf32>
      %114 = math.absf %66 : vector<16x16xf32>
      %115 = math.absf %73 : vector<16x16xf32>
      %116 = arith.addf %114, %115 : vector<16x16xf32>
      %117 = math.absf %80 : vector<16x16xf32>
      %118 = arith.addf %116, %117 : vector<16x16xf32>
      %cst_49 = arith.constant 0.333333343 : f32
      %119 = vector.broadcast %cst_49 : f32 to vector<16x16xf32>
      %120 = arith.mulf %118, %119 : vector<16x16xf32>
      %cst_50 = arith.constant 1.000000e-03 : f32
      %121 = vector.broadcast %cst_50 : f32 to vector<16x16xf32>
      %122 = arith.addf %121, %120 : vector<16x16xf32>
      %123 = arith.divf %113, %122 : vector<16x16xf32>
      %124 = arith.minimumf %123, %45 : vector<16x16xf32>
      %cst_51 = arith.constant 0.975609779 : f32
      %125 = vector.broadcast %cst_51 : f32 to vector<16x16xf32>
      %126 = arith.mulf %124, %125 : vector<16x16xf32>
      %127 = vector.extract_strided_slice %37 {offsets = [1, 0], sizes = [16, 16], strides = [1, 1]} : vector<18x18xf32> to vector<16x16xf32>
      %cst_52 = arith.constant -5.000000e-01 : f32
      %128 = vector.broadcast %cst_52 : f32 to vector<16x16xf32>
      %129 = arith.mulf %128, %127 : vector<16x16xf32>
      %130 = vector.extract_strided_slice %37 {offsets = [1, 2], sizes = [16, 16], strides = [1, 1]} : vector<18x18xf32> to vector<16x16xf32>
      %cst_53 = arith.constant 5.000000e-01 : f32
      %131 = vector.broadcast %cst_53 : f32 to vector<16x16xf32>
      %132 = arith.mulf %131, %130 : vector<16x16xf32>
      %133 = arith.addf %129, %132 : vector<16x16xf32>
      %134 = vector.extract_strided_slice %37 {offsets = [0, 1], sizes = [16, 16], strides = [1, 1]} : vector<18x18xf32> to vector<16x16xf32>
      %cst_54 = arith.constant -5.000000e-01 : f32
      %135 = vector.broadcast %cst_54 : f32 to vector<16x16xf32>
      %136 = arith.mulf %135, %134 : vector<16x16xf32>
      %137 = vector.extract_strided_slice %37 {offsets = [2, 1], sizes = [16, 16], strides = [1, 1]} : vector<18x18xf32> to vector<16x16xf32>
      %cst_55 = arith.constant 5.000000e-01 : f32
      %138 = vector.broadcast %cst_55 : f32 to vector<16x16xf32>
      %139 = arith.mulf %138, %137 : vector<16x16xf32>
      %140 = arith.addf %136, %139 : vector<16x16xf32>
      %141 = vector.extract_strided_slice %34 {offsets = [1, 1], sizes = [16, 16], strides = [1, 1]} : vector<18x18xf32> to vector<16x16xf32>
      %cst_56 = arith.constant -5.000000e-01 : f32
      %142 = vector.broadcast %cst_56 : f32 to vector<16x16xf32>
      %143 = arith.mulf %142, %141 : vector<16x16xf32>
      %144 = vector.extract_strided_slice %4 {offsets = [1, 1], sizes = [16, 16], strides = [1, 1]} : vector<18x18xf32> to vector<16x16xf32>
      %cst_57 = arith.constant 5.000000e-01 : f32
      %145 = vector.broadcast %cst_57 : f32 to vector<16x16xf32>
      %146 = arith.mulf %145, %144 : vector<16x16xf32>
      %147 = arith.addf %143, %146 : vector<16x16xf32>
      %148 = vector.extract_strided_slice %34 {offsets = [1, 1], sizes = [16, 16], strides = [1, 1]} : vector<18x18xf32> to vector<16x16xf32>
      %cst_58 = arith.constant 1.000000e+00 : f32
      %149 = vector.broadcast %cst_58 : f32 to vector<16x16xf32>
      %150 = arith.mulf %149, %148 : vector<16x16xf32>
      %151 = vector.extract_strided_slice %37 {offsets = [0, 1], sizes = [16, 16], strides = [1, 1]} : vector<18x18xf32> to vector<16x16xf32>
      %cst_59 = arith.constant 1.000000e+00 : f32
      %152 = vector.broadcast %cst_59 : f32 to vector<16x16xf32>
      %153 = arith.mulf %152, %151 : vector<16x16xf32>
      %154 = arith.addf %150, %153 : vector<16x16xf32>
      %155 = vector.extract_strided_slice %37 {offsets = [1, 0], sizes = [16, 16], strides = [1, 1]} : vector<18x18xf32> to vector<16x16xf32>
      %cst_60 = arith.constant 1.000000e+00 : f32
      %156 = vector.broadcast %cst_60 : f32 to vector<16x16xf32>
      %157 = arith.mulf %156, %155 : vector<16x16xf32>
      %158 = arith.addf %154, %157 : vector<16x16xf32>
      %159 = vector.extract_strided_slice %37 {offsets = [1, 1], sizes = [16, 16], strides = [1, 1]} : vector<18x18xf32> to vector<16x16xf32>
      %cst_61 = arith.constant -6.000000e+00 : f32
      %160 = vector.broadcast %cst_61 : f32 to vector<16x16xf32>
      %161 = arith.mulf %160, %159 : vector<16x16xf32>
      %162 = arith.addf %158, %161 : vector<16x16xf32>
      %163 = vector.extract_strided_slice %37 {offsets = [1, 2], sizes = [16, 16], strides = [1, 1]} : vector<18x18xf32> to vector<16x16xf32>
      %cst_62 = arith.constant 1.000000e+00 : f32
      %164 = vector.broadcast %cst_62 : f32 to vector<16x16xf32>
      %165 = arith.mulf %164, %163 : vector<16x16xf32>
      %166 = arith.addf %162, %165 : vector<16x16xf32>
      %167 = vector.extract_strided_slice %37 {offsets = [2, 1], sizes = [16, 16], strides = [1, 1]} : vector<18x18xf32> to vector<16x16xf32>
      %cst_63 = arith.constant 1.000000e+00 : f32
      %168 = vector.broadcast %cst_63 : f32 to vector<16x16xf32>
      %169 = arith.mulf %168, %167 : vector<16x16xf32>
      %170 = arith.addf %166, %169 : vector<16x16xf32>
      %171 = vector.extract_strided_slice %4 {offsets = [1, 1], sizes = [16, 16], strides = [1, 1]} : vector<18x18xf32> to vector<16x16xf32>
      %cst_64 = arith.constant 1.000000e+00 : f32
      %172 = vector.broadcast %cst_64 : f32 to vector<16x16xf32>
      %173 = arith.mulf %172, %171 : vector<16x16xf32>
      %174 = arith.addf %170, %173 : vector<16x16xf32>
      %cst_65 = arith.constant 0.333333343 : f32
      %175 = vector.broadcast %cst_65 : f32 to vector<16x16xf32>
      %176 = arith.mulf %175, %59 : vector<16x16xf32>
      %177 = arith.mulf %176, %174 : vector<16x16xf32>
      %178 = math.absf %177 : vector<16x16xf32>
      %cst_66 = arith.constant 1.000000e-01 : f32
      %179 = vector.broadcast %cst_66 : f32 to vector<16x16xf32>
      %180 = arith.mulf %179, %178 : vector<16x16xf32>
      %181 = math.absf %133 : vector<16x16xf32>
      %182 = math.absf %140 : vector<16x16xf32>
      %183 = arith.addf %181, %182 : vector<16x16xf32>
      %184 = math.absf %147 : vector<16x16xf32>
      %185 = arith.addf %183, %184 : vector<16x16xf32>
      %cst_67 = arith.constant 0.333333343 : f32
      %186 = vector.broadcast %cst_67 : f32 to vector<16x16xf32>
      %187 = arith.mulf %185, %186 : vector<16x16xf32>
      %cst_68 = arith.constant 1.000000e-03 : f32
      %188 = vector.broadcast %cst_68 : f32 to vector<16x16xf32>
      %189 = arith.addf %188, %187 : vector<16x16xf32>
      %190 = arith.divf %180, %189 : vector<16x16xf32>
      %191 = arith.minimumf %190, %45 : vector<16x16xf32>
      %cst_69 = arith.constant 0.975609779 : f32
      %192 = vector.broadcast %cst_69 : f32 to vector<16x16xf32>
      %193 = arith.mulf %191, %192 : vector<16x16xf32>
      %194 = vector.extract_strided_slice %43 {offsets = [1, 0], sizes = [16, 16], strides = [1, 1]} : vector<18x18xf32> to vector<16x16xf32>
      %cst_70 = arith.constant -5.000000e-01 : f32
      %195 = vector.broadcast %cst_70 : f32 to vector<16x16xf32>
      %196 = arith.mulf %195, %194 : vector<16x16xf32>
      %197 = vector.extract_strided_slice %43 {offsets = [1, 2], sizes = [16, 16], strides = [1, 1]} : vector<18x18xf32> to vector<16x16xf32>
      %cst_71 = arith.constant 5.000000e-01 : f32
      %198 = vector.broadcast %cst_71 : f32 to vector<16x16xf32>
      %199 = arith.mulf %198, %197 : vector<16x16xf32>
      %200 = arith.addf %196, %199 : vector<16x16xf32>
      %201 = vector.extract_strided_slice %43 {offsets = [0, 1], sizes = [16, 16], strides = [1, 1]} : vector<18x18xf32> to vector<16x16xf32>
      %cst_72 = arith.constant -5.000000e-01 : f32
      %202 = vector.broadcast %cst_72 : f32 to vector<16x16xf32>
      %203 = arith.mulf %202, %201 : vector<16x16xf32>
      %204 = vector.extract_strided_slice %43 {offsets = [2, 1], sizes = [16, 16], strides = [1, 1]} : vector<18x18xf32> to vector<16x16xf32>
      %cst_73 = arith.constant 5.000000e-01 : f32
      %205 = vector.broadcast %cst_73 : f32 to vector<16x16xf32>
      %206 = arith.mulf %205, %204 : vector<16x16xf32>
      %207 = arith.addf %203, %206 : vector<16x16xf32>
      %208 = vector.extract_strided_slice %40 {offsets = [1, 1], sizes = [16, 16], strides = [1, 1]} : vector<18x18xf32> to vector<16x16xf32>
      %cst_74 = arith.constant -5.000000e-01 : f32
      %209 = vector.broadcast %cst_74 : f32 to vector<16x16xf32>
      %210 = arith.mulf %209, %208 : vector<16x16xf32>
      %211 = vector.extract_strided_slice %6 {offsets = [1, 1], sizes = [16, 16], strides = [1, 1]} : vector<18x18xf32> to vector<16x16xf32>
      %cst_75 = arith.constant 5.000000e-01 : f32
      %212 = vector.broadcast %cst_75 : f32 to vector<16x16xf32>
      %213 = arith.mulf %212, %211 : vector<16x16xf32>
      %214 = arith.addf %210, %213 : vector<16x16xf32>
      %215 = vector.extract_strided_slice %40 {offsets = [1, 1], sizes = [16, 16], strides = [1, 1]} : vector<18x18xf32> to vector<16x16xf32>
      %cst_76 = arith.constant 1.000000e+00 : f32
      %216 = vector.broadcast %cst_76 : f32 to vector<16x16xf32>
      %217 = arith.mulf %216, %215 : vector<16x16xf32>
      %218 = vector.extract_strided_slice %43 {offsets = [0, 1], sizes = [16, 16], strides = [1, 1]} : vector<18x18xf32> to vector<16x16xf32>
      %cst_77 = arith.constant 1.000000e+00 : f32
      %219 = vector.broadcast %cst_77 : f32 to vector<16x16xf32>
      %220 = arith.mulf %219, %218 : vector<16x16xf32>
      %221 = arith.addf %217, %220 : vector<16x16xf32>
      %222 = vector.extract_strided_slice %43 {offsets = [1, 0], sizes = [16, 16], strides = [1, 1]} : vector<18x18xf32> to vector<16x16xf32>
      %cst_78 = arith.constant 1.000000e+00 : f32
      %223 = vector.broadcast %cst_78 : f32 to vector<16x16xf32>
      %224 = arith.mulf %223, %222 : vector<16x16xf32>
      %225 = arith.addf %221, %224 : vector<16x16xf32>
      %226 = vector.extract_strided_slice %43 {offsets = [1, 1], sizes = [16, 16], strides = [1, 1]} : vector<18x18xf32> to vector<16x16xf32>
      %cst_79 = arith.constant -6.000000e+00 : f32
      %227 = vector.broadcast %cst_79 : f32 to vector<16x16xf32>
      %228 = arith.mulf %227, %226 : vector<16x16xf32>
      %229 = arith.addf %225, %228 : vector<16x16xf32>
      %230 = vector.extract_strided_slice %43 {offsets = [1, 2], sizes = [16, 16], strides = [1, 1]} : vector<18x18xf32> to vector<16x16xf32>
      %cst_80 = arith.constant 1.000000e+00 : f32
      %231 = vector.broadcast %cst_80 : f32 to vector<16x16xf32>
      %232 = arith.mulf %231, %230 : vector<16x16xf32>
      %233 = arith.addf %229, %232 : vector<16x16xf32>
      %234 = vector.extract_strided_slice %43 {offsets = [2, 1], sizes = [16, 16], strides = [1, 1]} : vector<18x18xf32> to vector<16x16xf32>
      %cst_81 = arith.constant 1.000000e+00 : f32
      %235 = vector.broadcast %cst_81 : f32 to vector<16x16xf32>
      %236 = arith.mulf %235, %234 : vector<16x16xf32>
      %237 = arith.addf %233, %236 : vector<16x16xf32>
      %238 = vector.extract_strided_slice %6 {offsets = [1, 1], sizes = [16, 16], strides = [1, 1]} : vector<18x18xf32> to vector<16x16xf32>
      %cst_82 = arith.constant 1.000000e+00 : f32
      %239 = vector.broadcast %cst_82 : f32 to vector<16x16xf32>
      %240 = arith.mulf %239, %238 : vector<16x16xf32>
      %241 = arith.addf %237, %240 : vector<16x16xf32>
      %cst_83 = arith.constant 0.333333343 : f32
      %242 = vector.broadcast %cst_83 : f32 to vector<16x16xf32>
      %243 = arith.mulf %242, %59 : vector<16x16xf32>
      %244 = arith.mulf %243, %241 : vector<16x16xf32>
      %245 = math.absf %244 : vector<16x16xf32>
      %cst_84 = arith.constant 1.000000e-01 : f32
      %246 = vector.broadcast %cst_84 : f32 to vector<16x16xf32>
      %247 = arith.mulf %246, %245 : vector<16x16xf32>
      %248 = math.absf %200 : vector<16x16xf32>
      %249 = math.absf %207 : vector<16x16xf32>
      %250 = arith.addf %248, %249 : vector<16x16xf32>
      %251 = math.absf %214 : vector<16x16xf32>
      %252 = arith.addf %250, %251 : vector<16x16xf32>
      %cst_85 = arith.constant 0.333333343 : f32
      %253 = vector.broadcast %cst_85 : f32 to vector<16x16xf32>
      %254 = arith.mulf %252, %253 : vector<16x16xf32>
      %cst_86 = arith.constant 1.000000e-03 : f32
      %255 = vector.broadcast %cst_86 : f32 to vector<16x16xf32>
      %256 = arith.addf %255, %254 : vector<16x16xf32>
      %257 = arith.divf %247, %256 : vector<16x16xf32>
      %258 = arith.minimumf %257, %45 : vector<16x16xf32>
      %cst_87 = arith.constant 0.975609779 : f32
      %259 = vector.broadcast %cst_87 : f32 to vector<16x16xf32>
      %260 = arith.mulf %258, %259 : vector<16x16xf32>
      %c0_88 = arith.constant 0 : index
      %c0_89 = arith.constant 0 : index
      %c0_90 = arith.constant 0 : index
      %261 = vector.load %arg5[%c0_88, %c0_89, %c0_90] : memref<1x16x16xf32, #tpu.memory_space<vmem>>, vector<1x16x16xf32>
      %262 = vector.shape_cast %261 : vector<1x16x16xf32> to vector<16x16xf32>
      %263 = vector.shape_cast %126 : vector<16x16xf32> to vector<1x16x16xf32>
      tpu.vector_store %arg5[%c0_88, %c0_89, %c0_90], %263 {strides = array<i32>} : memref<1x16x16xf32, #tpu.memory_space<vmem>>, vector<1x16x16xf32>,
      %c0_91 = arith.constant 0 : index
      %c0_92 = arith.constant 0 : index
      %c0_93 = arith.constant 0 : index
      %264 = vector.load %arg6[%c0_91, %c0_92, %c0_93] : memref<1x16x16xf32, #tpu.memory_space<vmem>>, vector<1x16x16xf32>
      %265 = vector.shape_cast %264 : vector<1x16x16xf32> to vector<16x16xf32>
      %266 = vector.shape_cast %193 : vector<16x16xf32> to vector<1x16x16xf32>
      tpu.vector_store %arg6[%c0_91, %c0_92, %c0_93], %266 {strides = array<i32>} : memref<1x16x16xf32, #tpu.memory_space<vmem>>, vector<1x16x16xf32>,
      %c0_94 = arith.constant 0 : index
      %c0_95 = arith.constant 0 : index
      %c0_96 = arith.constant 0 : index
      %267 = vector.load %arg7[%c0_94, %c0_95, %c0_96] : memref<1x16x16xf32, #tpu.memory_space<vmem>>, vector<1x16x16xf32>
      %268 = vector.shape_cast %267 : vector<1x16x16xf32> to vector<16x16xf32>
      %269 = vector.shape_cast %260 : vector<16x16xf32> to vector<1x16x16xf32>
      tpu.vector_store %arg7[%c0_94, %c0_95, %c0_96], %269 {strides = array<i32>} : memref<1x16x16xf32, #tpu.memory_space<vmem>>, vector<1x16x16xf32>,
    } else {
    }
    return
  }
  func.func @transform_0(%arg0: i32) -> (i32, i32, i32) {
    %c0_i32 = arith.constant 0 : i32
    %c0_i32_0 = arith.constant 0 : i32
    %c0_i32_1 = arith.constant 0 : i32
    return %arg0, %c0_i32, %c0_i32_0 : i32, i32, i32
  }
  func.func @transform_1(%arg0: i32) -> (i32, i32, i32) {
    %c0_i32 = arith.constant 0 : i32
    %c0_i32_0 = arith.constant 0 : i32
    %c0_i32_1 = arith.constant 0 : i32
    return %arg0, %c0_i32, %c0_i32_0 : i32, i32, i32
  }
  func.func @transform_2(%arg0: i32) -> (i32, i32, i32) {
    %c0_i32 = arith.constant 0 : i32
    %c0_i32_0 = arith.constant 0 : i32
    %c0_i32_1 = arith.constant 0 : i32
    return %arg0, %c0_i32, %c0_i32_0 : i32, i32, i32
  }
  func.func @transform_3(%arg0: i32) -> (i32, i32, i32) {
    %c2_i32 = arith.constant 2 : i32
    %0 = arith.subi %arg0, %c2_i32 : i32
    %c0_i32 = arith.constant 0 : i32
    %1 = arith.maxsi %0, %c0_i32 : i32
    %c0_i32_0 = arith.constant 0 : i32
    %c0_i32_1 = arith.constant 0 : i32
    %c0_i32_2 = arith.constant 0 : i32
    return %1, %c0_i32_0, %c0_i32_1 : i32, i32, i32
  }
  func.func @transform_4(%arg0: i32) -> (i32, i32, i32) {
    %c2_i32 = arith.constant 2 : i32
    %0 = arith.subi %arg0, %c2_i32 : i32
    %c0_i32 = arith.constant 0 : i32
    %1 = arith.maxsi %0, %c0_i32 : i32
    %c0_i32_0 = arith.constant 0 : i32
    %c0_i32_1 = arith.constant 0 : i32
    %c0_i32_2 = arith.constant 0 : i32
    return %1, %c0_i32_0, %c0_i32_1 : i32, i32, i32
  }
  func.func @transform_5(%arg0: i32) -> (i32, i32, i32) {
    %c2_i32 = arith.constant 2 : i32
    %0 = arith.subi %arg0, %c2_i32 : i32
    %c0_i32 = arith.constant 0 : i32
    %1 = arith.maxsi %0, %c0_i32 : i32
    %c0_i32_0 = arith.constant 0 : i32
    %c0_i32_1 = arith.constant 0 : i32
    %c0_i32_2 = arith.constant 0 : i32
    return %1, %c0_i32_0, %c0_i32_1 : i32, i32, i32
  }
  func.func @transform_6(%arg0: i32) -> (i32, i32, i32) {
    %c2_i32 = arith.constant 2 : i32
    %0 = arith.subi %arg0, %c2_i32 : i32
    %c0_i32 = arith.constant 0 : i32
    %1 = arith.maxsi %0, %c0_i32 : i32
    %c0_i32_0 = arith.constant 0 : i32
    %c0_i32_1 = arith.constant 0 : i32
    %c0_i32_2 = arith.constant 0 : i32
    return %1, %c0_i32_0, %c0_i32_1 : i32, i32, i32
  }
}

module attributes {stable_mosaic.version = 11 : i64} {
  func.func @kernel(%arg0: i32, %arg1: memref<1x18x18xf32, #tpu.memory_space<vmem>>, %arg2: memref<1x18x18xf32, #tpu.memory_space<vmem>>, %arg3: memref<1x18x18xf32, #tpu.memory_space<vmem>>, %arg4: memref<1x18x18xf32, #tpu.memory_space<vmem>>, %arg5: memref<1x18x18xf32, #tpu.memory_space<vmem>>, %arg6: memref<1x18x18xf32, #tpu.memory_space<vmem>>, %arg7: memref<1x18x18xf32, #tpu.memory_space<vmem>>, %arg8: memref<1x16x16xf32, #tpu.memory_space<vmem>>, %arg9: memref<1x16x16xf32, #tpu.memory_space<vmem>>, %arg10: memref<1x16x16xf32, #tpu.memory_space<vmem>>, %arg11: memref<3x18x18xf32, #tpu.memory_space<vmem>>, %arg12: memref<3x18x18xf32, #tpu.memory_space<vmem>>, %arg13: memref<3x18x18xf32, #tpu.memory_space<vmem>>, %arg14: memref<3x18x18xf32, #tpu.memory_space<vmem>>, %arg15: memref<3x18x18xf32, #tpu.memory_space<vmem>>, %arg16: memref<3x18x18xf32, #tpu.memory_space<vmem>>, %arg17: memref<3x18x18xf32, #tpu.memory_space<vmem>>) attributes {dimension_semantics = [#tpu.dimension_semantics<arbitrary>], iteration_bounds = array<i64: 10>, scalar_prefetch = 0 : i64, scratch_operands = 7 : i64, tpu.core_type = #tpu.core_type<tc>, window_params = [{transform_indices = @transform_0, window_bounds = array<i64: 1, 18, 18>}, {transform_indices = @transform_1, window_bounds = array<i64: 1, 18, 18>}, {transform_indices = @transform_2, window_bounds = array<i64: 1, 18, 18>}, {transform_indices = @transform_3, window_bounds = array<i64: 1, 18, 18>}, {transform_indices = @transform_4, window_bounds = array<i64: 1, 18, 18>}, {transform_indices = @transform_5, window_bounds = array<i64: 1, 18, 18>}, {transform_indices = @transform_6, window_bounds = array<i64: 1, 18, 18>}, {transform_indices = @transform_7, window_bounds = array<i64: 1, 16, 16>}, {transform_indices = @transform_8, window_bounds = array<i64: 1, 16, 16>}, {transform_indices = @transform_9, window_bounds = array<i64: 1, 16, 16>}]} {
    %c3_i32 = arith.constant 3 : i32
    %0 = arith.remsi %arg0, %c3_i32 : i32
    %c0 = arith.constant 0 : index
    %c0_0 = arith.constant 0 : index
    %c0_1 = arith.constant 0 : index
    %1 = vector.load %arg1[%c0, %c0_0, %c0_1] : memref<1x18x18xf32, #tpu.memory_space<vmem>>, vector<1x18x18xf32>
    %2 = vector.shape_cast %1 : vector<1x18x18xf32> to vector<18x18xf32>
    %c0_2 = arith.constant 0 : index
    %c0_3 = arith.constant 0 : index
    %c0_4 = arith.constant 0 : index
    %3 = vector.load %arg2[%c0_2, %c0_3, %c0_4] : memref<1x18x18xf32, #tpu.memory_space<vmem>>, vector<1x18x18xf32>
    %4 = vector.shape_cast %3 : vector<1x18x18xf32> to vector<18x18xf32>
    %c0_5 = arith.constant 0 : index
    %c0_6 = arith.constant 0 : index
    %c0_7 = arith.constant 0 : index
    %5 = vector.load %arg3[%c0_5, %c0_6, %c0_7] : memref<1x18x18xf32, #tpu.memory_space<vmem>>, vector<1x18x18xf32>
    %6 = vector.shape_cast %5 : vector<1x18x18xf32> to vector<18x18xf32>
    %c0_8 = arith.constant 0 : index
    %c0_9 = arith.constant 0 : index
    %c0_10 = arith.constant 0 : index
    %7 = vector.load %arg4[%c0_8, %c0_9, %c0_10] : memref<1x18x18xf32, #tpu.memory_space<vmem>>, vector<1x18x18xf32>
    %8 = vector.shape_cast %7 : vector<1x18x18xf32> to vector<18x18xf32>
    %c0_11 = arith.constant 0 : index
    %c0_12 = arith.constant 0 : index
    %c0_13 = arith.constant 0 : index
    %9 = vector.load %arg5[%c0_11, %c0_12, %c0_13] : memref<1x18x18xf32, #tpu.memory_space<vmem>>, vector<1x18x18xf32>
    %10 = vector.shape_cast %9 : vector<1x18x18xf32> to vector<18x18xf32>
    %c0_14 = arith.constant 0 : index
    %c0_15 = arith.constant 0 : index
    %c0_16 = arith.constant 0 : index
    %11 = vector.load %arg6[%c0_14, %c0_15, %c0_16] : memref<1x18x18xf32, #tpu.memory_space<vmem>>, vector<1x18x18xf32>
    %12 = vector.shape_cast %11 : vector<1x18x18xf32> to vector<18x18xf32>
    %c0_17 = arith.constant 0 : index
    %c0_18 = arith.constant 0 : index
    %c0_19 = arith.constant 0 : index
    %13 = vector.load %arg7[%c0_17, %c0_18, %c0_19] : memref<1x18x18xf32, #tpu.memory_space<vmem>>, vector<1x18x18xf32>
    %14 = vector.shape_cast %13 : vector<1x18x18xf32> to vector<18x18xf32>
    %15 = arith.index_cast %0 : i32 to index
    %c0_20 = arith.constant 0 : index
    %c0_21 = arith.constant 0 : index
    %16 = vector.load %arg11[%15, %c0_20, %c0_21] : memref<3x18x18xf32, #tpu.memory_space<vmem>>, vector<1x18x18xf32>
    %17 = vector.shape_cast %16 : vector<1x18x18xf32> to vector<18x18xf32>
    %18 = vector.shape_cast %2 : vector<18x18xf32> to vector<1x18x18xf32>
    tpu.vector_store %arg11[%15, %c0_20, %c0_21], %18 {strides = array<i32>} : memref<3x18x18xf32, #tpu.memory_space<vmem>>, vector<1x18x18xf32>,
    %19 = arith.index_cast %0 : i32 to index
    %c0_22 = arith.constant 0 : index
    %c0_23 = arith.constant 0 : index
    %20 = vector.load %arg12[%19, %c0_22, %c0_23] : memref<3x18x18xf32, #tpu.memory_space<vmem>>, vector<1x18x18xf32>
    %21 = vector.shape_cast %20 : vector<1x18x18xf32> to vector<18x18xf32>
    %22 = vector.shape_cast %4 : vector<18x18xf32> to vector<1x18x18xf32>
    tpu.vector_store %arg12[%19, %c0_22, %c0_23], %22 {strides = array<i32>} : memref<3x18x18xf32, #tpu.memory_space<vmem>>, vector<1x18x18xf32>,
    %23 = arith.index_cast %0 : i32 to index
    %c0_24 = arith.constant 0 : index
    %c0_25 = arith.constant 0 : index
    %24 = vector.load %arg13[%23, %c0_24, %c0_25] : memref<3x18x18xf32, #tpu.memory_space<vmem>>, vector<1x18x18xf32>
    %25 = vector.shape_cast %24 : vector<1x18x18xf32> to vector<18x18xf32>
    %26 = vector.shape_cast %6 : vector<18x18xf32> to vector<1x18x18xf32>
    tpu.vector_store %arg13[%23, %c0_24, %c0_25], %26 {strides = array<i32>} : memref<3x18x18xf32, #tpu.memory_space<vmem>>, vector<1x18x18xf32>,
    %27 = arith.index_cast %0 : i32 to index
    %c0_26 = arith.constant 0 : index
    %c0_27 = arith.constant 0 : index
    %28 = vector.load %arg14[%27, %c0_26, %c0_27] : memref<3x18x18xf32, #tpu.memory_space<vmem>>, vector<1x18x18xf32>
    %29 = vector.shape_cast %28 : vector<1x18x18xf32> to vector<18x18xf32>
    %30 = vector.shape_cast %8 : vector<18x18xf32> to vector<1x18x18xf32>
    tpu.vector_store %arg14[%27, %c0_26, %c0_27], %30 {strides = array<i32>} : memref<3x18x18xf32, #tpu.memory_space<vmem>>, vector<1x18x18xf32>,
    %31 = arith.index_cast %0 : i32 to index
    %c0_28 = arith.constant 0 : index
    %c0_29 = arith.constant 0 : index
    %32 = vector.load %arg15[%31, %c0_28, %c0_29] : memref<3x18x18xf32, #tpu.memory_space<vmem>>, vector<1x18x18xf32>
    %33 = vector.shape_cast %32 : vector<1x18x18xf32> to vector<18x18xf32>
    %34 = vector.shape_cast %10 : vector<18x18xf32> to vector<1x18x18xf32>
    tpu.vector_store %arg15[%31, %c0_28, %c0_29], %34 {strides = array<i32>} : memref<3x18x18xf32, #tpu.memory_space<vmem>>, vector<1x18x18xf32>,
    %35 = arith.index_cast %0 : i32 to index
    %c0_30 = arith.constant 0 : index
    %c0_31 = arith.constant 0 : index
    %36 = vector.load %arg16[%35, %c0_30, %c0_31] : memref<3x18x18xf32, #tpu.memory_space<vmem>>, vector<1x18x18xf32>
    %37 = vector.shape_cast %36 : vector<1x18x18xf32> to vector<18x18xf32>
    %38 = vector.shape_cast %12 : vector<18x18xf32> to vector<1x18x18xf32>
    tpu.vector_store %arg16[%35, %c0_30, %c0_31], %38 {strides = array<i32>} : memref<3x18x18xf32, #tpu.memory_space<vmem>>, vector<1x18x18xf32>,
    %39 = arith.index_cast %0 : i32 to index
    %c0_32 = arith.constant 0 : index
    %c0_33 = arith.constant 0 : index
    %40 = vector.load %arg17[%39, %c0_32, %c0_33] : memref<3x18x18xf32, #tpu.memory_space<vmem>>, vector<1x18x18xf32>
    %41 = vector.shape_cast %40 : vector<1x18x18xf32> to vector<18x18xf32>
    %42 = vector.shape_cast %14 : vector<18x18xf32> to vector<1x18x18xf32>
    tpu.vector_store %arg17[%39, %c0_32, %c0_33], %42 {strides = array<i32>} : memref<3x18x18xf32, #tpu.memory_space<vmem>>, vector<1x18x18xf32>,
    %c2_i32 = arith.constant 2 : i32
    %43 = arith.cmpi sge, %arg0, %c2_i32 : i32
    %44 = arith.extui %43 : i1 to i32
    %c0_i32 = arith.constant 0 : i32
    %45 = arith.cmpi ne, %44, %c0_i32 : i32
    scf.if %45 {
      %c1_i32 = arith.constant 1 : i32
      %46 = arith.addi %arg0, %c1_i32 : i32
      %c3_i32_34 = arith.constant 3 : i32
      %47 = arith.remsi %46, %c3_i32_34 : i32
      %c2_i32_35 = arith.constant 2 : i32
      %48 = arith.addi %arg0, %c2_i32_35 : i32
      %c3_i32_36 = arith.constant 3 : i32
      %49 = arith.remsi %48, %c3_i32_36 : i32
      %50 = arith.index_cast %47 : i32 to index
      %c0_37 = arith.constant 0 : index
      %c0_38 = arith.constant 0 : index
      %51 = vector.load %arg11[%50, %c0_37, %c0_38] : memref<3x18x18xf32, #tpu.memory_space<vmem>>, vector<1x18x18xf32>
      %52 = vector.shape_cast %51 : vector<1x18x18xf32> to vector<18x18xf32>
      %53 = arith.index_cast %49 : i32 to index
      %c0_39 = arith.constant 0 : index
      %c0_40 = arith.constant 0 : index
      %54 = vector.load %arg11[%53, %c0_39, %c0_40] : memref<3x18x18xf32, #tpu.memory_space<vmem>>, vector<1x18x18xf32>
      %55 = vector.shape_cast %54 : vector<1x18x18xf32> to vector<18x18xf32>
      %56 = arith.index_cast %47 : i32 to index
      %c0_41 = arith.constant 0 : index
      %c0_42 = arith.constant 0 : index
      %57 = vector.load %arg12[%56, %c0_41, %c0_42] : memref<3x18x18xf32, #tpu.memory_space<vmem>>, vector<1x18x18xf32>
      %58 = vector.shape_cast %57 : vector<1x18x18xf32> to vector<18x18xf32>
      %59 = arith.index_cast %49 : i32 to index
      %c0_43 = arith.constant 0 : index
      %c0_44 = arith.constant 0 : index
      %60 = vector.load %arg12[%59, %c0_43, %c0_44] : memref<3x18x18xf32, #tpu.memory_space<vmem>>, vector<1x18x18xf32>
      %61 = vector.shape_cast %60 : vector<1x18x18xf32> to vector<18x18xf32>
      %62 = arith.index_cast %47 : i32 to index
      %c0_45 = arith.constant 0 : index
      %c0_46 = arith.constant 0 : index
      %63 = vector.load %arg13[%62, %c0_45, %c0_46] : memref<3x18x18xf32, #tpu.memory_space<vmem>>, vector<1x18x18xf32>
      %64 = vector.shape_cast %63 : vector<1x18x18xf32> to vector<18x18xf32>
      %65 = arith.index_cast %49 : i32 to index
      %c0_47 = arith.constant 0 : index
      %c0_48 = arith.constant 0 : index
      %66 = vector.load %arg13[%65, %c0_47, %c0_48] : memref<3x18x18xf32, #tpu.memory_space<vmem>>, vector<1x18x18xf32>
      %67 = vector.shape_cast %66 : vector<1x18x18xf32> to vector<18x18xf32>
      %68 = arith.index_cast %47 : i32 to index
      %c0_49 = arith.constant 0 : index
      %c0_50 = arith.constant 0 : index
      %69 = vector.load %arg14[%68, %c0_49, %c0_50] : memref<3x18x18xf32, #tpu.memory_space<vmem>>, vector<1x18x18xf32>
      %70 = vector.shape_cast %69 : vector<1x18x18xf32> to vector<18x18xf32>
      %71 = arith.index_cast %49 : i32 to index
      %c0_51 = arith.constant 0 : index
      %c0_52 = arith.constant 0 : index
      %72 = vector.load %arg14[%71, %c0_51, %c0_52] : memref<3x18x18xf32, #tpu.memory_space<vmem>>, vector<1x18x18xf32>
      %73 = vector.shape_cast %72 : vector<1x18x18xf32> to vector<18x18xf32>
      %74 = arith.index_cast %47 : i32 to index
      %c0_53 = arith.constant 0 : index
      %c0_54 = arith.constant 0 : index
      %75 = vector.load %arg15[%74, %c0_53, %c0_54] : memref<3x18x18xf32, #tpu.memory_space<vmem>>, vector<1x18x18xf32>
      %76 = vector.shape_cast %75 : vector<1x18x18xf32> to vector<18x18xf32>
      %77 = arith.index_cast %49 : i32 to index
      %c0_55 = arith.constant 0 : index
      %c0_56 = arith.constant 0 : index
      %78 = vector.load %arg15[%77, %c0_55, %c0_56] : memref<3x18x18xf32, #tpu.memory_space<vmem>>, vector<1x18x18xf32>
      %79 = vector.shape_cast %78 : vector<1x18x18xf32> to vector<18x18xf32>
      %80 = arith.index_cast %47 : i32 to index
      %c0_57 = arith.constant 0 : index
      %c0_58 = arith.constant 0 : index
      %81 = vector.load %arg16[%80, %c0_57, %c0_58] : memref<3x18x18xf32, #tpu.memory_space<vmem>>, vector<1x18x18xf32>
      %82 = vector.shape_cast %81 : vector<1x18x18xf32> to vector<18x18xf32>
      %83 = arith.index_cast %49 : i32 to index
      %c0_59 = arith.constant 0 : index
      %c0_60 = arith.constant 0 : index
      %84 = vector.load %arg16[%83, %c0_59, %c0_60] : memref<3x18x18xf32, #tpu.memory_space<vmem>>, vector<1x18x18xf32>
      %85 = vector.shape_cast %84 : vector<1x18x18xf32> to vector<18x18xf32>
      %86 = arith.index_cast %47 : i32 to index
      %c0_61 = arith.constant 0 : index
      %c0_62 = arith.constant 0 : index
      %87 = vector.load %arg17[%86, %c0_61, %c0_62] : memref<3x18x18xf32, #tpu.memory_space<vmem>>, vector<1x18x18xf32>
      %88 = vector.shape_cast %87 : vector<1x18x18xf32> to vector<18x18xf32>
      %89 = arith.index_cast %49 : i32 to index
      %c0_63 = arith.constant 0 : index
      %c0_64 = arith.constant 0 : index
      %90 = vector.load %arg17[%89, %c0_63, %c0_64] : memref<3x18x18xf32, #tpu.memory_space<vmem>>, vector<1x18x18xf32>
      %91 = vector.shape_cast %90 : vector<1x18x18xf32> to vector<18x18xf32>
      %92 = vector.extract_strided_slice %55 {offsets = [1, 1], sizes = [16, 16], strides = [1, 1]} : vector<18x18xf32> to vector<16x16xf32>
      %93 = vector.extract_strided_slice %61 {offsets = [1, 1], sizes = [16, 16], strides = [1, 1]} : vector<18x18xf32> to vector<16x16xf32>
      %94 = vector.extract_strided_slice %67 {offsets = [1, 1], sizes = [16, 16], strides = [1, 1]} : vector<18x18xf32> to vector<16x16xf32>
      %95 = vector.extract_strided_slice %91 {offsets = [1, 0], sizes = [16, 16], strides = [1, 1]} : vector<18x18xf32> to vector<16x16xf32>
      %cst = arith.constant -5.000000e-01 : f32
      %96 = vector.broadcast %cst : f32 to vector<16x16xf32>
      %97 = arith.mulf %96, %95 : vector<16x16xf32>
      %98 = vector.extract_strided_slice %91 {offsets = [1, 2], sizes = [16, 16], strides = [1, 1]} : vector<18x18xf32> to vector<16x16xf32>
      %cst_65 = arith.constant 5.000000e-01 : f32
      %99 = vector.broadcast %cst_65 : f32 to vector<16x16xf32>
      %100 = arith.mulf %99, %98 : vector<16x16xf32>
      %101 = arith.addf %97, %100 : vector<16x16xf32>
      %cst_66 = arith.constant 5.000000e-01 : f32
      %102 = vector.broadcast %cst_66 : f32 to vector<16x16xf32>
      %103 = arith.mulf %101, %102 : vector<16x16xf32>
      %104 = vector.extract_strided_slice %91 {offsets = [0, 1], sizes = [16, 16], strides = [1, 1]} : vector<18x18xf32> to vector<16x16xf32>
      %cst_67 = arith.constant -5.000000e-01 : f32
      %105 = vector.broadcast %cst_67 : f32 to vector<16x16xf32>
      %106 = arith.mulf %105, %104 : vector<16x16xf32>
      %107 = vector.extract_strided_slice %91 {offsets = [2, 1], sizes = [16, 16], strides = [1, 1]} : vector<18x18xf32> to vector<16x16xf32>
      %cst_68 = arith.constant 5.000000e-01 : f32
      %108 = vector.broadcast %cst_68 : f32 to vector<16x16xf32>
      %109 = arith.mulf %108, %107 : vector<16x16xf32>
      %110 = arith.addf %106, %109 : vector<16x16xf32>
      %cst_69 = arith.constant 5.000000e-01 : f32
      %111 = vector.broadcast %cst_69 : f32 to vector<16x16xf32>
      %112 = arith.mulf %110, %111 : vector<16x16xf32>
      %113 = vector.extract_strided_slice %88 {offsets = [1, 1], sizes = [16, 16], strides = [1, 1]} : vector<18x18xf32> to vector<16x16xf32>
      %cst_70 = arith.constant -5.000000e-01 : f32
      %114 = vector.broadcast %cst_70 : f32 to vector<16x16xf32>
      %115 = arith.mulf %114, %113 : vector<16x16xf32>
      %116 = vector.extract_strided_slice %14 {offsets = [1, 1], sizes = [16, 16], strides = [1, 1]} : vector<18x18xf32> to vector<16x16xf32>
      %cst_71 = arith.constant 5.000000e-01 : f32
      %117 = vector.broadcast %cst_71 : f32 to vector<16x16xf32>
      %118 = arith.mulf %117, %116 : vector<16x16xf32>
      %119 = arith.addf %115, %118 : vector<16x16xf32>
      %cst_72 = arith.constant 5.000000e-01 : f32
      %120 = vector.broadcast %cst_72 : f32 to vector<16x16xf32>
      %121 = arith.mulf %119, %120 : vector<16x16xf32>
      %122 = vector.extract_strided_slice %55 {offsets = [1, 0], sizes = [16, 16], strides = [1, 1]} : vector<18x18xf32> to vector<16x16xf32>
      %cst_73 = arith.constant -5.000000e-01 : f32
      %123 = vector.broadcast %cst_73 : f32 to vector<16x16xf32>
      %124 = arith.mulf %123, %122 : vector<16x16xf32>
      %125 = vector.extract_strided_slice %55 {offsets = [1, 2], sizes = [16, 16], strides = [1, 1]} : vector<18x18xf32> to vector<16x16xf32>
      %cst_74 = arith.constant 5.000000e-01 : f32
      %126 = vector.broadcast %cst_74 : f32 to vector<16x16xf32>
      %127 = arith.mulf %126, %125 : vector<16x16xf32>
      %128 = arith.addf %124, %127 : vector<16x16xf32>
      %129 = vector.extract_strided_slice %55 {offsets = [0, 1], sizes = [16, 16], strides = [1, 1]} : vector<18x18xf32> to vector<16x16xf32>
      %cst_75 = arith.constant -5.000000e-01 : f32
      %130 = vector.broadcast %cst_75 : f32 to vector<16x16xf32>
      %131 = arith.mulf %130, %129 : vector<16x16xf32>
      %132 = vector.extract_strided_slice %55 {offsets = [2, 1], sizes = [16, 16], strides = [1, 1]} : vector<18x18xf32> to vector<16x16xf32>
      %cst_76 = arith.constant 5.000000e-01 : f32
      %133 = vector.broadcast %cst_76 : f32 to vector<16x16xf32>
      %134 = arith.mulf %133, %132 : vector<16x16xf32>
      %135 = arith.addf %131, %134 : vector<16x16xf32>
      %136 = vector.extract_strided_slice %52 {offsets = [1, 1], sizes = [16, 16], strides = [1, 1]} : vector<18x18xf32> to vector<16x16xf32>
      %cst_77 = arith.constant -5.000000e-01 : f32
      %137 = vector.broadcast %cst_77 : f32 to vector<16x16xf32>
      %138 = arith.mulf %137, %136 : vector<16x16xf32>
      %139 = vector.extract_strided_slice %2 {offsets = [1, 1], sizes = [16, 16], strides = [1, 1]} : vector<18x18xf32> to vector<16x16xf32>
      %cst_78 = arith.constant 5.000000e-01 : f32
      %140 = vector.broadcast %cst_78 : f32 to vector<16x16xf32>
      %141 = arith.mulf %140, %139 : vector<16x16xf32>
      %142 = arith.addf %138, %141 : vector<16x16xf32>
      %143 = vector.extract_strided_slice %52 {offsets = [1, 1], sizes = [16, 16], strides = [1, 1]} : vector<18x18xf32> to vector<16x16xf32>
      %cst_79 = arith.constant 1.000000e+00 : f32
      %144 = vector.broadcast %cst_79 : f32 to vector<16x16xf32>
      %145 = arith.mulf %144, %143 : vector<16x16xf32>
      %146 = vector.extract_strided_slice %55 {offsets = [0, 1], sizes = [16, 16], strides = [1, 1]} : vector<18x18xf32> to vector<16x16xf32>
      %cst_80 = arith.constant 1.000000e+00 : f32
      %147 = vector.broadcast %cst_80 : f32 to vector<16x16xf32>
      %148 = arith.mulf %147, %146 : vector<16x16xf32>
      %149 = arith.addf %145, %148 : vector<16x16xf32>
      %150 = vector.extract_strided_slice %55 {offsets = [1, 0], sizes = [16, 16], strides = [1, 1]} : vector<18x18xf32> to vector<16x16xf32>
      %cst_81 = arith.constant 1.000000e+00 : f32
      %151 = vector.broadcast %cst_81 : f32 to vector<16x16xf32>
      %152 = arith.mulf %151, %150 : vector<16x16xf32>
      %153 = arith.addf %149, %152 : vector<16x16xf32>
      %154 = vector.extract_strided_slice %55 {offsets = [1, 1], sizes = [16, 16], strides = [1, 1]} : vector<18x18xf32> to vector<16x16xf32>
      %cst_82 = arith.constant -6.000000e+00 : f32
      %155 = vector.broadcast %cst_82 : f32 to vector<16x16xf32>
      %156 = arith.mulf %155, %154 : vector<16x16xf32>
      %157 = arith.addf %153, %156 : vector<16x16xf32>
      %158 = vector.extract_strided_slice %55 {offsets = [1, 2], sizes = [16, 16], strides = [1, 1]} : vector<18x18xf32> to vector<16x16xf32>
      %cst_83 = arith.constant 1.000000e+00 : f32
      %159 = vector.broadcast %cst_83 : f32 to vector<16x16xf32>
      %160 = arith.mulf %159, %158 : vector<16x16xf32>
      %161 = arith.addf %157, %160 : vector<16x16xf32>
      %162 = vector.extract_strided_slice %55 {offsets = [2, 1], sizes = [16, 16], strides = [1, 1]} : vector<18x18xf32> to vector<16x16xf32>
      %cst_84 = arith.constant 1.000000e+00 : f32
      %163 = vector.broadcast %cst_84 : f32 to vector<16x16xf32>
      %164 = arith.mulf %163, %162 : vector<16x16xf32>
      %165 = arith.addf %161, %164 : vector<16x16xf32>
      %166 = vector.extract_strided_slice %2 {offsets = [1, 1], sizes = [16, 16], strides = [1, 1]} : vector<18x18xf32> to vector<16x16xf32>
      %cst_85 = arith.constant 1.000000e+00 : f32
      %167 = vector.broadcast %cst_85 : f32 to vector<16x16xf32>
      %168 = arith.mulf %167, %166 : vector<16x16xf32>
      %169 = arith.addf %165, %168 : vector<16x16xf32>
      %170 = vector.extract_strided_slice %73 {offsets = [1, 1], sizes = [16, 16], strides = [1, 1]} : vector<18x18xf32> to vector<16x16xf32>
      %171 = arith.mulf %52, %70 : vector<18x18xf32>
      %172 = arith.mulf %55, %73 : vector<18x18xf32>
      %173 = arith.mulf %2, %8 : vector<18x18xf32>
      %174 = vector.extract_strided_slice %171 {offsets = [1, 1], sizes = [16, 16], strides = [1, 1]} : vector<18x18xf32> to vector<16x16xf32>
      %cst_86 = arith.constant 1.000000e+00 : f32
      %175 = vector.broadcast %cst_86 : f32 to vector<16x16xf32>
      %176 = arith.mulf %175, %174 : vector<16x16xf32>
      %177 = vector.extract_strided_slice %172 {offsets = [0, 1], sizes = [16, 16], strides = [1, 1]} : vector<18x18xf32> to vector<16x16xf32>
      %cst_87 = arith.constant 1.000000e+00 : f32
      %178 = vector.broadcast %cst_87 : f32 to vector<16x16xf32>
      %179 = arith.mulf %178, %177 : vector<16x16xf32>
      %180 = arith.addf %176, %179 : vector<16x16xf32>
      %181 = vector.extract_strided_slice %172 {offsets = [1, 0], sizes = [16, 16], strides = [1, 1]} : vector<18x18xf32> to vector<16x16xf32>
      %cst_88 = arith.constant 1.000000e+00 : f32
      %182 = vector.broadcast %cst_88 : f32 to vector<16x16xf32>
      %183 = arith.mulf %182, %181 : vector<16x16xf32>
      %184 = arith.addf %180, %183 : vector<16x16xf32>
      %185 = vector.extract_strided_slice %172 {offsets = [1, 1], sizes = [16, 16], strides = [1, 1]} : vector<18x18xf32> to vector<16x16xf32>
      %cst_89 = arith.constant -6.000000e+00 : f32
      %186 = vector.broadcast %cst_89 : f32 to vector<16x16xf32>
      %187 = arith.mulf %186, %185 : vector<16x16xf32>
      %188 = arith.addf %184, %187 : vector<16x16xf32>
      %189 = vector.extract_strided_slice %172 {offsets = [1, 2], sizes = [16, 16], strides = [1, 1]} : vector<18x18xf32> to vector<16x16xf32>
      %cst_90 = arith.constant 1.000000e+00 : f32
      %190 = vector.broadcast %cst_90 : f32 to vector<16x16xf32>
      %191 = arith.mulf %190, %189 : vector<16x16xf32>
      %192 = arith.addf %188, %191 : vector<16x16xf32>
      %193 = vector.extract_strided_slice %172 {offsets = [2, 1], sizes = [16, 16], strides = [1, 1]} : vector<18x18xf32> to vector<16x16xf32>
      %cst_91 = arith.constant 1.000000e+00 : f32
      %194 = vector.broadcast %cst_91 : f32 to vector<16x16xf32>
      %195 = arith.mulf %194, %193 : vector<16x16xf32>
      %196 = arith.addf %192, %195 : vector<16x16xf32>
      %197 = vector.extract_strided_slice %173 {offsets = [1, 1], sizes = [16, 16], strides = [1, 1]} : vector<18x18xf32> to vector<16x16xf32>
      %cst_92 = arith.constant 1.000000e+00 : f32
      %198 = vector.broadcast %cst_92 : f32 to vector<16x16xf32>
      %199 = arith.mulf %198, %197 : vector<16x16xf32>
      %200 = arith.addf %196, %199 : vector<16x16xf32>
      %201 = vector.extract_strided_slice %70 {offsets = [1, 1], sizes = [16, 16], strides = [1, 1]} : vector<18x18xf32> to vector<16x16xf32>
      %cst_93 = arith.constant 1.000000e+00 : f32
      %202 = vector.broadcast %cst_93 : f32 to vector<16x16xf32>
      %203 = arith.mulf %202, %201 : vector<16x16xf32>
      %204 = vector.extract_strided_slice %73 {offsets = [0, 1], sizes = [16, 16], strides = [1, 1]} : vector<18x18xf32> to vector<16x16xf32>
      %cst_94 = arith.constant 1.000000e+00 : f32
      %205 = vector.broadcast %cst_94 : f32 to vector<16x16xf32>
      %206 = arith.mulf %205, %204 : vector<16x16xf32>
      %207 = arith.addf %203, %206 : vector<16x16xf32>
      %208 = vector.extract_strided_slice %73 {offsets = [1, 0], sizes = [16, 16], strides = [1, 1]} : vector<18x18xf32> to vector<16x16xf32>
      %cst_95 = arith.constant 1.000000e+00 : f32
      %209 = vector.broadcast %cst_95 : f32 to vector<16x16xf32>
      %210 = arith.mulf %209, %208 : vector<16x16xf32>
      %211 = arith.addf %207, %210 : vector<16x16xf32>
      %212 = vector.extract_strided_slice %73 {offsets = [1, 1], sizes = [16, 16], strides = [1, 1]} : vector<18x18xf32> to vector<16x16xf32>
      %cst_96 = arith.constant -6.000000e+00 : f32
      %213 = vector.broadcast %cst_96 : f32 to vector<16x16xf32>
      %214 = arith.mulf %213, %212 : vector<16x16xf32>
      %215 = arith.addf %211, %214 : vector<16x16xf32>
      %216 = vector.extract_strided_slice %73 {offsets = [1, 2], sizes = [16, 16], strides = [1, 1]} : vector<18x18xf32> to vector<16x16xf32>
      %cst_97 = arith.constant 1.000000e+00 : f32
      %217 = vector.broadcast %cst_97 : f32 to vector<16x16xf32>
      %218 = arith.mulf %217, %216 : vector<16x16xf32>
      %219 = arith.addf %215, %218 : vector<16x16xf32>
      %220 = vector.extract_strided_slice %73 {offsets = [2, 1], sizes = [16, 16], strides = [1, 1]} : vector<18x18xf32> to vector<16x16xf32>
      %cst_98 = arith.constant 1.000000e+00 : f32
      %221 = vector.broadcast %cst_98 : f32 to vector<16x16xf32>
      %222 = arith.mulf %221, %220 : vector<16x16xf32>
      %223 = arith.addf %219, %222 : vector<16x16xf32>
      %224 = vector.extract_strided_slice %8 {offsets = [1, 1], sizes = [16, 16], strides = [1, 1]} : vector<18x18xf32> to vector<16x16xf32>
      %cst_99 = arith.constant 1.000000e+00 : f32
      %225 = vector.broadcast %cst_99 : f32 to vector<16x16xf32>
      %226 = arith.mulf %225, %224 : vector<16x16xf32>
      %227 = arith.addf %223, %226 : vector<16x16xf32>
      %228 = arith.mulf %170, %169 : vector<16x16xf32>
      %229 = arith.addf %228, %200 : vector<16x16xf32>
      %230 = arith.mulf %92, %227 : vector<16x16xf32>
      %231 = arith.subf %229, %230 : vector<16x16xf32>
      %cst_100 = arith.constant 5.000000e-01 : f32
      %232 = vector.broadcast %cst_100 : f32 to vector<16x16xf32>
      %233 = arith.mulf %232, %231 : vector<16x16xf32>
      %cst_101 = arith.constant 1.500000e-01 : f32
      %234 = vector.broadcast %cst_101 : f32 to vector<16x16xf32>
      %235 = arith.mulf %234, %233 : vector<16x16xf32>
      %cst_102 = arith.constant 5.000000e-01 : f32
      %236 = vector.broadcast %cst_102 : f32 to vector<16x16xf32>
      %237 = arith.mulf %235, %236 : vector<16x16xf32>
      %238 = arith.mulf %92, %128 : vector<16x16xf32>
      %cst_103 = arith.constant 5.000000e-01 : f32
      %239 = vector.broadcast %cst_103 : f32 to vector<16x16xf32>
      %240 = arith.mulf %238, %239 : vector<16x16xf32>
      %241 = arith.subf %237, %240 : vector<16x16xf32>
      %242 = arith.mulf %93, %135 : vector<16x16xf32>
      %cst_104 = arith.constant 5.000000e-01 : f32
      %243 = vector.broadcast %cst_104 : f32 to vector<16x16xf32>
      %244 = arith.mulf %242, %243 : vector<16x16xf32>
      %245 = arith.subf %241, %244 : vector<16x16xf32>
      %246 = arith.mulf %94, %142 : vector<16x16xf32>
      %cst_105 = arith.constant 5.000000e-01 : f32
      %247 = vector.broadcast %cst_105 : f32 to vector<16x16xf32>
      %248 = arith.mulf %246, %247 : vector<16x16xf32>
      %249 = arith.subf %245, %248 : vector<16x16xf32>
      %cst_106 = arith.constant 5.000000e-01 : f32
      %250 = vector.broadcast %cst_106 : f32 to vector<16x16xf32>
      %251 = arith.mulf %250, %249 : vector<16x16xf32>
      %252 = arith.addf %92, %251 : vector<16x16xf32>
      %253 = arith.subf %252, %103 : vector<16x16xf32>
      %cst_107 = arith.constant 0.975609779 : f32
      %254 = vector.broadcast %cst_107 : f32 to vector<16x16xf32>
      %255 = arith.mulf %254, %253 : vector<16x16xf32>
      %256 = vector.extract_strided_slice %61 {offsets = [1, 0], sizes = [16, 16], strides = [1, 1]} : vector<18x18xf32> to vector<16x16xf32>
      %cst_108 = arith.constant -5.000000e-01 : f32
      %257 = vector.broadcast %cst_108 : f32 to vector<16x16xf32>
      %258 = arith.mulf %257, %256 : vector<16x16xf32>
      %259 = vector.extract_strided_slice %61 {offsets = [1, 2], sizes = [16, 16], strides = [1, 1]} : vector<18x18xf32> to vector<16x16xf32>
      %cst_109 = arith.constant 5.000000e-01 : f32
      %260 = vector.broadcast %cst_109 : f32 to vector<16x16xf32>
      %261 = arith.mulf %260, %259 : vector<16x16xf32>
      %262 = arith.addf %258, %261 : vector<16x16xf32>
      %263 = vector.extract_strided_slice %61 {offsets = [0, 1], sizes = [16, 16], strides = [1, 1]} : vector<18x18xf32> to vector<16x16xf32>
      %cst_110 = arith.constant -5.000000e-01 : f32
      %264 = vector.broadcast %cst_110 : f32 to vector<16x16xf32>
      %265 = arith.mulf %264, %263 : vector<16x16xf32>
      %266 = vector.extract_strided_slice %61 {offsets = [2, 1], sizes = [16, 16], strides = [1, 1]} : vector<18x18xf32> to vector<16x16xf32>
      %cst_111 = arith.constant 5.000000e-01 : f32
      %267 = vector.broadcast %cst_111 : f32 to vector<16x16xf32>
      %268 = arith.mulf %267, %266 : vector<16x16xf32>
      %269 = arith.addf %265, %268 : vector<16x16xf32>
      %270 = vector.extract_strided_slice %58 {offsets = [1, 1], sizes = [16, 16], strides = [1, 1]} : vector<18x18xf32> to vector<16x16xf32>
      %cst_112 = arith.constant -5.000000e-01 : f32
      %271 = vector.broadcast %cst_112 : f32 to vector<16x16xf32>
      %272 = arith.mulf %271, %270 : vector<16x16xf32>
      %273 = vector.extract_strided_slice %4 {offsets = [1, 1], sizes = [16, 16], strides = [1, 1]} : vector<18x18xf32> to vector<16x16xf32>
      %cst_113 = arith.constant 5.000000e-01 : f32
      %274 = vector.broadcast %cst_113 : f32 to vector<16x16xf32>
      %275 = arith.mulf %274, %273 : vector<16x16xf32>
      %276 = arith.addf %272, %275 : vector<16x16xf32>
      %277 = vector.extract_strided_slice %58 {offsets = [1, 1], sizes = [16, 16], strides = [1, 1]} : vector<18x18xf32> to vector<16x16xf32>
      %cst_114 = arith.constant 1.000000e+00 : f32
      %278 = vector.broadcast %cst_114 : f32 to vector<16x16xf32>
      %279 = arith.mulf %278, %277 : vector<16x16xf32>
      %280 = vector.extract_strided_slice %61 {offsets = [0, 1], sizes = [16, 16], strides = [1, 1]} : vector<18x18xf32> to vector<16x16xf32>
      %cst_115 = arith.constant 1.000000e+00 : f32
      %281 = vector.broadcast %cst_115 : f32 to vector<16x16xf32>
      %282 = arith.mulf %281, %280 : vector<16x16xf32>
      %283 = arith.addf %279, %282 : vector<16x16xf32>
      %284 = vector.extract_strided_slice %61 {offsets = [1, 0], sizes = [16, 16], strides = [1, 1]} : vector<18x18xf32> to vector<16x16xf32>
      %cst_116 = arith.constant 1.000000e+00 : f32
      %285 = vector.broadcast %cst_116 : f32 to vector<16x16xf32>
      %286 = arith.mulf %285, %284 : vector<16x16xf32>
      %287 = arith.addf %283, %286 : vector<16x16xf32>
      %288 = vector.extract_strided_slice %61 {offsets = [1, 1], sizes = [16, 16], strides = [1, 1]} : vector<18x18xf32> to vector<16x16xf32>
      %cst_117 = arith.constant -6.000000e+00 : f32
      %289 = vector.broadcast %cst_117 : f32 to vector<16x16xf32>
      %290 = arith.mulf %289, %288 : vector<16x16xf32>
      %291 = arith.addf %287, %290 : vector<16x16xf32>
      %292 = vector.extract_strided_slice %61 {offsets = [1, 2], sizes = [16, 16], strides = [1, 1]} : vector<18x18xf32> to vector<16x16xf32>
      %cst_118 = arith.constant 1.000000e+00 : f32
      %293 = vector.broadcast %cst_118 : f32 to vector<16x16xf32>
      %294 = arith.mulf %293, %292 : vector<16x16xf32>
      %295 = arith.addf %291, %294 : vector<16x16xf32>
      %296 = vector.extract_strided_slice %61 {offsets = [2, 1], sizes = [16, 16], strides = [1, 1]} : vector<18x18xf32> to vector<16x16xf32>
      %cst_119 = arith.constant 1.000000e+00 : f32
      %297 = vector.broadcast %cst_119 : f32 to vector<16x16xf32>
      %298 = arith.mulf %297, %296 : vector<16x16xf32>
      %299 = arith.addf %295, %298 : vector<16x16xf32>
      %300 = vector.extract_strided_slice %4 {offsets = [1, 1], sizes = [16, 16], strides = [1, 1]} : vector<18x18xf32> to vector<16x16xf32>
      %cst_120 = arith.constant 1.000000e+00 : f32
      %301 = vector.broadcast %cst_120 : f32 to vector<16x16xf32>
      %302 = arith.mulf %301, %300 : vector<16x16xf32>
      %303 = arith.addf %299, %302 : vector<16x16xf32>
      %304 = vector.extract_strided_slice %79 {offsets = [1, 1], sizes = [16, 16], strides = [1, 1]} : vector<18x18xf32> to vector<16x16xf32>
      %305 = arith.mulf %58, %76 : vector<18x18xf32>
      %306 = arith.mulf %61, %79 : vector<18x18xf32>
      %307 = arith.mulf %4, %10 : vector<18x18xf32>
      %308 = vector.extract_strided_slice %305 {offsets = [1, 1], sizes = [16, 16], strides = [1, 1]} : vector<18x18xf32> to vector<16x16xf32>
      %cst_121 = arith.constant 1.000000e+00 : f32
      %309 = vector.broadcast %cst_121 : f32 to vector<16x16xf32>
      %310 = arith.mulf %309, %308 : vector<16x16xf32>
      %311 = vector.extract_strided_slice %306 {offsets = [0, 1], sizes = [16, 16], strides = [1, 1]} : vector<18x18xf32> to vector<16x16xf32>
      %cst_122 = arith.constant 1.000000e+00 : f32
      %312 = vector.broadcast %cst_122 : f32 to vector<16x16xf32>
      %313 = arith.mulf %312, %311 : vector<16x16xf32>
      %314 = arith.addf %310, %313 : vector<16x16xf32>
      %315 = vector.extract_strided_slice %306 {offsets = [1, 0], sizes = [16, 16], strides = [1, 1]} : vector<18x18xf32> to vector<16x16xf32>
      %cst_123 = arith.constant 1.000000e+00 : f32
      %316 = vector.broadcast %cst_123 : f32 to vector<16x16xf32>
      %317 = arith.mulf %316, %315 : vector<16x16xf32>
      %318 = arith.addf %314, %317 : vector<16x16xf32>
      %319 = vector.extract_strided_slice %306 {offsets = [1, 1], sizes = [16, 16], strides = [1, 1]} : vector<18x18xf32> to vector<16x16xf32>
      %cst_124 = arith.constant -6.000000e+00 : f32
      %320 = vector.broadcast %cst_124 : f32 to vector<16x16xf32>
      %321 = arith.mulf %320, %319 : vector<16x16xf32>
      %322 = arith.addf %318, %321 : vector<16x16xf32>
      %323 = vector.extract_strided_slice %306 {offsets = [1, 2], sizes = [16, 16], strides = [1, 1]} : vector<18x18xf32> to vector<16x16xf32>
      %cst_125 = arith.constant 1.000000e+00 : f32
      %324 = vector.broadcast %cst_125 : f32 to vector<16x16xf32>
      %325 = arith.mulf %324, %323 : vector<16x16xf32>
      %326 = arith.addf %322, %325 : vector<16x16xf32>
      %327 = vector.extract_strided_slice %306 {offsets = [2, 1], sizes = [16, 16], strides = [1, 1]} : vector<18x18xf32> to vector<16x16xf32>
      %cst_126 = arith.constant 1.000000e+00 : f32
      %328 = vector.broadcast %cst_126 : f32 to vector<16x16xf32>
      %329 = arith.mulf %328, %327 : vector<16x16xf32>
      %330 = arith.addf %326, %329 : vector<16x16xf32>
      %331 = vector.extract_strided_slice %307 {offsets = [1, 1], sizes = [16, 16], strides = [1, 1]} : vector<18x18xf32> to vector<16x16xf32>
      %cst_127 = arith.constant 1.000000e+00 : f32
      %332 = vector.broadcast %cst_127 : f32 to vector<16x16xf32>
      %333 = arith.mulf %332, %331 : vector<16x16xf32>
      %334 = arith.addf %330, %333 : vector<16x16xf32>
      %335 = vector.extract_strided_slice %76 {offsets = [1, 1], sizes = [16, 16], strides = [1, 1]} : vector<18x18xf32> to vector<16x16xf32>
      %cst_128 = arith.constant 1.000000e+00 : f32
      %336 = vector.broadcast %cst_128 : f32 to vector<16x16xf32>
      %337 = arith.mulf %336, %335 : vector<16x16xf32>
      %338 = vector.extract_strided_slice %79 {offsets = [0, 1], sizes = [16, 16], strides = [1, 1]} : vector<18x18xf32> to vector<16x16xf32>
      %cst_129 = arith.constant 1.000000e+00 : f32
      %339 = vector.broadcast %cst_129 : f32 to vector<16x16xf32>
      %340 = arith.mulf %339, %338 : vector<16x16xf32>
      %341 = arith.addf %337, %340 : vector<16x16xf32>
      %342 = vector.extract_strided_slice %79 {offsets = [1, 0], sizes = [16, 16], strides = [1, 1]} : vector<18x18xf32> to vector<16x16xf32>
      %cst_130 = arith.constant 1.000000e+00 : f32
      %343 = vector.broadcast %cst_130 : f32 to vector<16x16xf32>
      %344 = arith.mulf %343, %342 : vector<16x16xf32>
      %345 = arith.addf %341, %344 : vector<16x16xf32>
      %346 = vector.extract_strided_slice %79 {offsets = [1, 1], sizes = [16, 16], strides = [1, 1]} : vector<18x18xf32> to vector<16x16xf32>
      %cst_131 = arith.constant -6.000000e+00 : f32
      %347 = vector.broadcast %cst_131 : f32 to vector<16x16xf32>
      %348 = arith.mulf %347, %346 : vector<16x16xf32>
      %349 = arith.addf %345, %348 : vector<16x16xf32>
      %350 = vector.extract_strided_slice %79 {offsets = [1, 2], sizes = [16, 16], strides = [1, 1]} : vector<18x18xf32> to vector<16x16xf32>
      %cst_132 = arith.constant 1.000000e+00 : f32
      %351 = vector.broadcast %cst_132 : f32 to vector<16x16xf32>
      %352 = arith.mulf %351, %350 : vector<16x16xf32>
      %353 = arith.addf %349, %352 : vector<16x16xf32>
      %354 = vector.extract_strided_slice %79 {offsets = [2, 1], sizes = [16, 16], strides = [1, 1]} : vector<18x18xf32> to vector<16x16xf32>
      %cst_133 = arith.constant 1.000000e+00 : f32
      %355 = vector.broadcast %cst_133 : f32 to vector<16x16xf32>
      %356 = arith.mulf %355, %354 : vector<16x16xf32>
      %357 = arith.addf %353, %356 : vector<16x16xf32>
      %358 = vector.extract_strided_slice %10 {offsets = [1, 1], sizes = [16, 16], strides = [1, 1]} : vector<18x18xf32> to vector<16x16xf32>
      %cst_134 = arith.constant 1.000000e+00 : f32
      %359 = vector.broadcast %cst_134 : f32 to vector<16x16xf32>
      %360 = arith.mulf %359, %358 : vector<16x16xf32>
      %361 = arith.addf %357, %360 : vector<16x16xf32>
      %362 = arith.mulf %304, %303 : vector<16x16xf32>
      %363 = arith.addf %362, %334 : vector<16x16xf32>
      %364 = arith.mulf %93, %361 : vector<16x16xf32>
      %365 = arith.subf %363, %364 : vector<16x16xf32>
      %cst_135 = arith.constant 5.000000e-01 : f32
      %366 = vector.broadcast %cst_135 : f32 to vector<16x16xf32>
      %367 = arith.mulf %366, %365 : vector<16x16xf32>
      %cst_136 = arith.constant 1.500000e-01 : f32
      %368 = vector.broadcast %cst_136 : f32 to vector<16x16xf32>
      %369 = arith.mulf %368, %367 : vector<16x16xf32>
      %cst_137 = arith.constant 5.000000e-01 : f32
      %370 = vector.broadcast %cst_137 : f32 to vector<16x16xf32>
      %371 = arith.mulf %369, %370 : vector<16x16xf32>
      %372 = arith.mulf %92, %262 : vector<16x16xf32>
      %cst_138 = arith.constant 5.000000e-01 : f32
      %373 = vector.broadcast %cst_138 : f32 to vector<16x16xf32>
      %374 = arith.mulf %372, %373 : vector<16x16xf32>
      %375 = arith.subf %371, %374 : vector<16x16xf32>
      %376 = arith.mulf %93, %269 : vector<16x16xf32>
      %cst_139 = arith.constant 5.000000e-01 : f32
      %377 = vector.broadcast %cst_139 : f32 to vector<16x16xf32>
      %378 = arith.mulf %376, %377 : vector<16x16xf32>
      %379 = arith.subf %375, %378 : vector<16x16xf32>
      %380 = arith.mulf %94, %276 : vector<16x16xf32>
      %cst_140 = arith.constant 5.000000e-01 : f32
      %381 = vector.broadcast %cst_140 : f32 to vector<16x16xf32>
      %382 = arith.mulf %380, %381 : vector<16x16xf32>
      %383 = arith.subf %379, %382 : vector<16x16xf32>
      %cst_141 = arith.constant 5.000000e-01 : f32
      %384 = vector.broadcast %cst_141 : f32 to vector<16x16xf32>
      %385 = arith.mulf %384, %383 : vector<16x16xf32>
      %386 = arith.addf %93, %385 : vector<16x16xf32>
      %387 = arith.subf %386, %112 : vector<16x16xf32>
      %cst_142 = arith.constant 0.975609779 : f32
      %388 = vector.broadcast %cst_142 : f32 to vector<16x16xf32>
      %389 = arith.mulf %388, %387 : vector<16x16xf32>
      %390 = vector.extract_strided_slice %67 {offsets = [1, 0], sizes = [16, 16], strides = [1, 1]} : vector<18x18xf32> to vector<16x16xf32>
      %cst_143 = arith.constant -5.000000e-01 : f32
      %391 = vector.broadcast %cst_143 : f32 to vector<16x16xf32>
      %392 = arith.mulf %391, %390 : vector<16x16xf32>
      %393 = vector.extract_strided_slice %67 {offsets = [1, 2], sizes = [16, 16], strides = [1, 1]} : vector<18x18xf32> to vector<16x16xf32>
      %cst_144 = arith.constant 5.000000e-01 : f32
      %394 = vector.broadcast %cst_144 : f32 to vector<16x16xf32>
      %395 = arith.mulf %394, %393 : vector<16x16xf32>
      %396 = arith.addf %392, %395 : vector<16x16xf32>
      %397 = vector.extract_strided_slice %67 {offsets = [0, 1], sizes = [16, 16], strides = [1, 1]} : vector<18x18xf32> to vector<16x16xf32>
      %cst_145 = arith.constant -5.000000e-01 : f32
      %398 = vector.broadcast %cst_145 : f32 to vector<16x16xf32>
      %399 = arith.mulf %398, %397 : vector<16x16xf32>
      %400 = vector.extract_strided_slice %67 {offsets = [2, 1], sizes = [16, 16], strides = [1, 1]} : vector<18x18xf32> to vector<16x16xf32>
      %cst_146 = arith.constant 5.000000e-01 : f32
      %401 = vector.broadcast %cst_146 : f32 to vector<16x16xf32>
      %402 = arith.mulf %401, %400 : vector<16x16xf32>
      %403 = arith.addf %399, %402 : vector<16x16xf32>
      %404 = vector.extract_strided_slice %64 {offsets = [1, 1], sizes = [16, 16], strides = [1, 1]} : vector<18x18xf32> to vector<16x16xf32>
      %cst_147 = arith.constant -5.000000e-01 : f32
      %405 = vector.broadcast %cst_147 : f32 to vector<16x16xf32>
      %406 = arith.mulf %405, %404 : vector<16x16xf32>
      %407 = vector.extract_strided_slice %6 {offsets = [1, 1], sizes = [16, 16], strides = [1, 1]} : vector<18x18xf32> to vector<16x16xf32>
      %cst_148 = arith.constant 5.000000e-01 : f32
      %408 = vector.broadcast %cst_148 : f32 to vector<16x16xf32>
      %409 = arith.mulf %408, %407 : vector<16x16xf32>
      %410 = arith.addf %406, %409 : vector<16x16xf32>
      %411 = vector.extract_strided_slice %64 {offsets = [1, 1], sizes = [16, 16], strides = [1, 1]} : vector<18x18xf32> to vector<16x16xf32>
      %cst_149 = arith.constant 1.000000e+00 : f32
      %412 = vector.broadcast %cst_149 : f32 to vector<16x16xf32>
      %413 = arith.mulf %412, %411 : vector<16x16xf32>
      %414 = vector.extract_strided_slice %67 {offsets = [0, 1], sizes = [16, 16], strides = [1, 1]} : vector<18x18xf32> to vector<16x16xf32>
      %cst_150 = arith.constant 1.000000e+00 : f32
      %415 = vector.broadcast %cst_150 : f32 to vector<16x16xf32>
      %416 = arith.mulf %415, %414 : vector<16x16xf32>
      %417 = arith.addf %413, %416 : vector<16x16xf32>
      %418 = vector.extract_strided_slice %67 {offsets = [1, 0], sizes = [16, 16], strides = [1, 1]} : vector<18x18xf32> to vector<16x16xf32>
      %cst_151 = arith.constant 1.000000e+00 : f32
      %419 = vector.broadcast %cst_151 : f32 to vector<16x16xf32>
      %420 = arith.mulf %419, %418 : vector<16x16xf32>
      %421 = arith.addf %417, %420 : vector<16x16xf32>
      %422 = vector.extract_strided_slice %67 {offsets = [1, 1], sizes = [16, 16], strides = [1, 1]} : vector<18x18xf32> to vector<16x16xf32>
      %cst_152 = arith.constant -6.000000e+00 : f32
      %423 = vector.broadcast %cst_152 : f32 to vector<16x16xf32>
      %424 = arith.mulf %423, %422 : vector<16x16xf32>
      %425 = arith.addf %421, %424 : vector<16x16xf32>
      %426 = vector.extract_strided_slice %67 {offsets = [1, 2], sizes = [16, 16], strides = [1, 1]} : vector<18x18xf32> to vector<16x16xf32>
      %cst_153 = arith.constant 1.000000e+00 : f32
      %427 = vector.broadcast %cst_153 : f32 to vector<16x16xf32>
      %428 = arith.mulf %427, %426 : vector<16x16xf32>
      %429 = arith.addf %425, %428 : vector<16x16xf32>
      %430 = vector.extract_strided_slice %67 {offsets = [2, 1], sizes = [16, 16], strides = [1, 1]} : vector<18x18xf32> to vector<16x16xf32>
      %cst_154 = arith.constant 1.000000e+00 : f32
      %431 = vector.broadcast %cst_154 : f32 to vector<16x16xf32>
      %432 = arith.mulf %431, %430 : vector<16x16xf32>
      %433 = arith.addf %429, %432 : vector<16x16xf32>
      %434 = vector.extract_strided_slice %6 {offsets = [1, 1], sizes = [16, 16], strides = [1, 1]} : vector<18x18xf32> to vector<16x16xf32>
      %cst_155 = arith.constant 1.000000e+00 : f32
      %435 = vector.broadcast %cst_155 : f32 to vector<16x16xf32>
      %436 = arith.mulf %435, %434 : vector<16x16xf32>
      %437 = arith.addf %433, %436 : vector<16x16xf32>
      %438 = vector.extract_strided_slice %85 {offsets = [1, 1], sizes = [16, 16], strides = [1, 1]} : vector<18x18xf32> to vector<16x16xf32>
      %439 = arith.mulf %64, %82 : vector<18x18xf32>
      %440 = arith.mulf %67, %85 : vector<18x18xf32>
      %441 = arith.mulf %6, %12 : vector<18x18xf32>
      %442 = vector.extract_strided_slice %439 {offsets = [1, 1], sizes = [16, 16], strides = [1, 1]} : vector<18x18xf32> to vector<16x16xf32>
      %cst_156 = arith.constant 1.000000e+00 : f32
      %443 = vector.broadcast %cst_156 : f32 to vector<16x16xf32>
      %444 = arith.mulf %443, %442 : vector<16x16xf32>
      %445 = vector.extract_strided_slice %440 {offsets = [0, 1], sizes = [16, 16], strides = [1, 1]} : vector<18x18xf32> to vector<16x16xf32>
      %cst_157 = arith.constant 1.000000e+00 : f32
      %446 = vector.broadcast %cst_157 : f32 to vector<16x16xf32>
      %447 = arith.mulf %446, %445 : vector<16x16xf32>
      %448 = arith.addf %444, %447 : vector<16x16xf32>
      %449 = vector.extract_strided_slice %440 {offsets = [1, 0], sizes = [16, 16], strides = [1, 1]} : vector<18x18xf32> to vector<16x16xf32>
      %cst_158 = arith.constant 1.000000e+00 : f32
      %450 = vector.broadcast %cst_158 : f32 to vector<16x16xf32>
      %451 = arith.mulf %450, %449 : vector<16x16xf32>
      %452 = arith.addf %448, %451 : vector<16x16xf32>
      %453 = vector.extract_strided_slice %440 {offsets = [1, 1], sizes = [16, 16], strides = [1, 1]} : vector<18x18xf32> to vector<16x16xf32>
      %cst_159 = arith.constant -6.000000e+00 : f32
      %454 = vector.broadcast %cst_159 : f32 to vector<16x16xf32>
      %455 = arith.mulf %454, %453 : vector<16x16xf32>
      %456 = arith.addf %452, %455 : vector<16x16xf32>
      %457 = vector.extract_strided_slice %440 {offsets = [1, 2], sizes = [16, 16], strides = [1, 1]} : vector<18x18xf32> to vector<16x16xf32>
      %cst_160 = arith.constant 1.000000e+00 : f32
      %458 = vector.broadcast %cst_160 : f32 to vector<16x16xf32>
      %459 = arith.mulf %458, %457 : vector<16x16xf32>
      %460 = arith.addf %456, %459 : vector<16x16xf32>
      %461 = vector.extract_strided_slice %440 {offsets = [2, 1], sizes = [16, 16], strides = [1, 1]} : vector<18x18xf32> to vector<16x16xf32>
      %cst_161 = arith.constant 1.000000e+00 : f32
      %462 = vector.broadcast %cst_161 : f32 to vector<16x16xf32>
      %463 = arith.mulf %462, %461 : vector<16x16xf32>
      %464 = arith.addf %460, %463 : vector<16x16xf32>
      %465 = vector.extract_strided_slice %441 {offsets = [1, 1], sizes = [16, 16], strides = [1, 1]} : vector<18x18xf32> to vector<16x16xf32>
      %cst_162 = arith.constant 1.000000e+00 : f32
      %466 = vector.broadcast %cst_162 : f32 to vector<16x16xf32>
      %467 = arith.mulf %466, %465 : vector<16x16xf32>
      %468 = arith.addf %464, %467 : vector<16x16xf32>
      %469 = vector.extract_strided_slice %82 {offsets = [1, 1], sizes = [16, 16], strides = [1, 1]} : vector<18x18xf32> to vector<16x16xf32>
      %cst_163 = arith.constant 1.000000e+00 : f32
      %470 = vector.broadcast %cst_163 : f32 to vector<16x16xf32>
      %471 = arith.mulf %470, %469 : vector<16x16xf32>
      %472 = vector.extract_strided_slice %85 {offsets = [0, 1], sizes = [16, 16], strides = [1, 1]} : vector<18x18xf32> to vector<16x16xf32>
      %cst_164 = arith.constant 1.000000e+00 : f32
      %473 = vector.broadcast %cst_164 : f32 to vector<16x16xf32>
      %474 = arith.mulf %473, %472 : vector<16x16xf32>
      %475 = arith.addf %471, %474 : vector<16x16xf32>
      %476 = vector.extract_strided_slice %85 {offsets = [1, 0], sizes = [16, 16], strides = [1, 1]} : vector<18x18xf32> to vector<16x16xf32>
      %cst_165 = arith.constant 1.000000e+00 : f32
      %477 = vector.broadcast %cst_165 : f32 to vector<16x16xf32>
      %478 = arith.mulf %477, %476 : vector<16x16xf32>
      %479 = arith.addf %475, %478 : vector<16x16xf32>
      %480 = vector.extract_strided_slice %85 {offsets = [1, 1], sizes = [16, 16], strides = [1, 1]} : vector<18x18xf32> to vector<16x16xf32>
      %cst_166 = arith.constant -6.000000e+00 : f32
      %481 = vector.broadcast %cst_166 : f32 to vector<16x16xf32>
      %482 = arith.mulf %481, %480 : vector<16x16xf32>
      %483 = arith.addf %479, %482 : vector<16x16xf32>
      %484 = vector.extract_strided_slice %85 {offsets = [1, 2], sizes = [16, 16], strides = [1, 1]} : vector<18x18xf32> to vector<16x16xf32>
      %cst_167 = arith.constant 1.000000e+00 : f32
      %485 = vector.broadcast %cst_167 : f32 to vector<16x16xf32>
      %486 = arith.mulf %485, %484 : vector<16x16xf32>
      %487 = arith.addf %483, %486 : vector<16x16xf32>
      %488 = vector.extract_strided_slice %85 {offsets = [2, 1], sizes = [16, 16], strides = [1, 1]} : vector<18x18xf32> to vector<16x16xf32>
      %cst_168 = arith.constant 1.000000e+00 : f32
      %489 = vector.broadcast %cst_168 : f32 to vector<16x16xf32>
      %490 = arith.mulf %489, %488 : vector<16x16xf32>
      %491 = arith.addf %487, %490 : vector<16x16xf32>
      %492 = vector.extract_strided_slice %12 {offsets = [1, 1], sizes = [16, 16], strides = [1, 1]} : vector<18x18xf32> to vector<16x16xf32>
      %cst_169 = arith.constant 1.000000e+00 : f32
      %493 = vector.broadcast %cst_169 : f32 to vector<16x16xf32>
      %494 = arith.mulf %493, %492 : vector<16x16xf32>
      %495 = arith.addf %491, %494 : vector<16x16xf32>
      %496 = arith.mulf %438, %437 : vector<16x16xf32>
      %497 = arith.addf %496, %468 : vector<16x16xf32>
      %498 = arith.mulf %94, %495 : vector<16x16xf32>
      %499 = arith.subf %497, %498 : vector<16x16xf32>
      %cst_170 = arith.constant 5.000000e-01 : f32
      %500 = vector.broadcast %cst_170 : f32 to vector<16x16xf32>
      %501 = arith.mulf %500, %499 : vector<16x16xf32>
      %cst_171 = arith.constant 1.500000e-01 : f32
      %502 = vector.broadcast %cst_171 : f32 to vector<16x16xf32>
      %503 = arith.mulf %502, %501 : vector<16x16xf32>
      %cst_172 = arith.constant 5.000000e-01 : f32
      %504 = vector.broadcast %cst_172 : f32 to vector<16x16xf32>
      %505 = arith.mulf %503, %504 : vector<16x16xf32>
      %506 = arith.mulf %92, %396 : vector<16x16xf32>
      %cst_173 = arith.constant 5.000000e-01 : f32
      %507 = vector.broadcast %cst_173 : f32 to vector<16x16xf32>
      %508 = arith.mulf %506, %507 : vector<16x16xf32>
      %509 = arith.subf %505, %508 : vector<16x16xf32>
      %510 = arith.mulf %93, %403 : vector<16x16xf32>
      %cst_174 = arith.constant 5.000000e-01 : f32
      %511 = vector.broadcast %cst_174 : f32 to vector<16x16xf32>
      %512 = arith.mulf %510, %511 : vector<16x16xf32>
      %513 = arith.subf %509, %512 : vector<16x16xf32>
      %514 = arith.mulf %94, %410 : vector<16x16xf32>
      %cst_175 = arith.constant 5.000000e-01 : f32
      %515 = vector.broadcast %cst_175 : f32 to vector<16x16xf32>
      %516 = arith.mulf %514, %515 : vector<16x16xf32>
      %517 = arith.subf %513, %516 : vector<16x16xf32>
      %cst_176 = arith.constant 5.000000e-01 : f32
      %518 = vector.broadcast %cst_176 : f32 to vector<16x16xf32>
      %519 = arith.mulf %518, %517 : vector<16x16xf32>
      %520 = arith.addf %94, %519 : vector<16x16xf32>
      %521 = arith.subf %520, %121 : vector<16x16xf32>
      %cst_177 = arith.constant 0.975609779 : f32
      %522 = vector.broadcast %cst_177 : f32 to vector<16x16xf32>
      %523 = arith.mulf %522, %521 : vector<16x16xf32>
      %c0_178 = arith.constant 0 : index
      %c0_179 = arith.constant 0 : index
      %c0_180 = arith.constant 0 : index
      %524 = vector.load %arg8[%c0_178, %c0_179, %c0_180] : memref<1x16x16xf32, #tpu.memory_space<vmem>>, vector<1x16x16xf32>
      %525 = vector.shape_cast %524 : vector<1x16x16xf32> to vector<16x16xf32>
      %526 = vector.shape_cast %255 : vector<16x16xf32> to vector<1x16x16xf32>
      tpu.vector_store %arg8[%c0_178, %c0_179, %c0_180], %526 {strides = array<i32>} : memref<1x16x16xf32, #tpu.memory_space<vmem>>, vector<1x16x16xf32>,
      %c0_181 = arith.constant 0 : index
      %c0_182 = arith.constant 0 : index
      %c0_183 = arith.constant 0 : index
      %527 = vector.load %arg9[%c0_181, %c0_182, %c0_183] : memref<1x16x16xf32, #tpu.memory_space<vmem>>, vector<1x16x16xf32>
      %528 = vector.shape_cast %527 : vector<1x16x16xf32> to vector<16x16xf32>
      %529 = vector.shape_cast %389 : vector<16x16xf32> to vector<1x16x16xf32>
      tpu.vector_store %arg9[%c0_181, %c0_182, %c0_183], %529 {strides = array<i32>} : memref<1x16x16xf32, #tpu.memory_space<vmem>>, vector<1x16x16xf32>,
      %c0_184 = arith.constant 0 : index
      %c0_185 = arith.constant 0 : index
      %c0_186 = arith.constant 0 : index
      %530 = vector.load %arg10[%c0_184, %c0_185, %c0_186] : memref<1x16x16xf32, #tpu.memory_space<vmem>>, vector<1x16x16xf32>
      %531 = vector.shape_cast %530 : vector<1x16x16xf32> to vector<16x16xf32>
      %532 = vector.shape_cast %523 : vector<16x16xf32> to vector<1x16x16xf32>
      tpu.vector_store %arg10[%c0_184, %c0_185, %c0_186], %532 {strides = array<i32>} : memref<1x16x16xf32, #tpu.memory_space<vmem>>, vector<1x16x16xf32>,
    } else {
    }
    return
  }
  func.func @transform_0(%arg0: i32) -> (i32, i32, i32) {
    %c0_i32 = arith.constant 0 : i32
    %c0_i32_0 = arith.constant 0 : i32
    %c0_i32_1 = arith.constant 0 : i32
    return %arg0, %c0_i32, %c0_i32_0 : i32, i32, i32
  }
  func.func @transform_1(%arg0: i32) -> (i32, i32, i32) {
    %c0_i32 = arith.constant 0 : i32
    %c0_i32_0 = arith.constant 0 : i32
    %c0_i32_1 = arith.constant 0 : i32
    return %arg0, %c0_i32, %c0_i32_0 : i32, i32, i32
  }
  func.func @transform_2(%arg0: i32) -> (i32, i32, i32) {
    %c0_i32 = arith.constant 0 : i32
    %c0_i32_0 = arith.constant 0 : i32
    %c0_i32_1 = arith.constant 0 : i32
    return %arg0, %c0_i32, %c0_i32_0 : i32, i32, i32
  }
  func.func @transform_3(%arg0: i32) -> (i32, i32, i32) {
    %c0_i32 = arith.constant 0 : i32
    %c0_i32_0 = arith.constant 0 : i32
    %c0_i32_1 = arith.constant 0 : i32
    return %arg0, %c0_i32, %c0_i32_0 : i32, i32, i32
  }
  func.func @transform_4(%arg0: i32) -> (i32, i32, i32) {
    %c0_i32 = arith.constant 0 : i32
    %c0_i32_0 = arith.constant 0 : i32
    %c0_i32_1 = arith.constant 0 : i32
    return %arg0, %c0_i32, %c0_i32_0 : i32, i32, i32
  }
  func.func @transform_5(%arg0: i32) -> (i32, i32, i32) {
    %c0_i32 = arith.constant 0 : i32
    %c0_i32_0 = arith.constant 0 : i32
    %c0_i32_1 = arith.constant 0 : i32
    return %arg0, %c0_i32, %c0_i32_0 : i32, i32, i32
  }
  func.func @transform_6(%arg0: i32) -> (i32, i32, i32) {
    %c0_i32 = arith.constant 0 : i32
    %c0_i32_0 = arith.constant 0 : i32
    %c0_i32_1 = arith.constant 0 : i32
    return %arg0, %c0_i32, %c0_i32_0 : i32, i32, i32
  }
  func.func @transform_7(%arg0: i32) -> (i32, i32, i32) {
    %c2_i32 = arith.constant 2 : i32
    %0 = arith.subi %arg0, %c2_i32 : i32
    %c0_i32 = arith.constant 0 : i32
    %1 = arith.maxsi %0, %c0_i32 : i32
    %c0_i32_0 = arith.constant 0 : i32
    %c0_i32_1 = arith.constant 0 : i32
    %c0_i32_2 = arith.constant 0 : i32
    return %1, %c0_i32_0, %c0_i32_1 : i32, i32, i32
  }
  func.func @transform_8(%arg0: i32) -> (i32, i32, i32) {
    %c2_i32 = arith.constant 2 : i32
    %0 = arith.subi %arg0, %c2_i32 : i32
    %c0_i32 = arith.constant 0 : i32
    %1 = arith.maxsi %0, %c0_i32 : i32
    %c0_i32_0 = arith.constant 0 : i32
    %c0_i32_1 = arith.constant 0 : i32
    %c0_i32_2 = arith.constant 0 : i32
    return %1, %c0_i32_0, %c0_i32_1 : i32, i32, i32
  }
  func.func @transform_9(%arg0: i32) -> (i32, i32, i32) {
    %c2_i32 = arith.constant 2 : i32
    %0 = arith.subi %arg0, %c2_i32 : i32
    %c0_i32 = arith.constant 0 : i32
    %1 = arith.maxsi %0, %c0_i32 : i32
    %c0_i32_0 = arith.constant 0 : i32
    %c0_i32_1 = arith.constant 0 : i32
    %c0_i32_2 = arith.constant 0 : i32
    return %1, %c0_i32_0, %c0_i32_1 : i32, i32, i32
  }
}

module attributes {stable_mosaic.version = 11 : i64} {
  func.func @kernel(%arg0: i32, %arg1: memref<1x18x18xf32, #tpu.memory_space<vmem>>, %arg2: memref<1x16x16xf32, #tpu.memory_space<vmem>>, %arg3: memref<1x16x16xf32, #tpu.memory_space<vmem>>, %arg4: memref<3x18x18xf32, #tpu.memory_space<vmem>>) attributes {dimension_semantics = [#tpu.dimension_semantics<arbitrary>], iteration_bounds = array<i64: 10>, scalar_prefetch = 0 : i64, scratch_operands = 1 : i64, tpu.core_type = #tpu.core_type<tc>, window_params = [{transform_indices = @transform_0, window_bounds = array<i64: 1, 18, 18>}, {transform_indices = @transform_1, window_bounds = array<i64: 1, 16, 16>}, {transform_indices = @transform_2, window_bounds = array<i64: 1, 16, 16>}]} {
    %c3_i32 = arith.constant 3 : i32
    %0 = arith.remsi %arg0, %c3_i32 : i32
    %c0 = arith.constant 0 : index
    %c0_0 = arith.constant 0 : index
    %c0_1 = arith.constant 0 : index
    %1 = vector.load %arg1[%c0, %c0_0, %c0_1] : memref<1x18x18xf32, #tpu.memory_space<vmem>>, vector<1x18x18xf32>
    %2 = vector.shape_cast %1 : vector<1x18x18xf32> to vector<18x18xf32>
    %3 = arith.index_cast %0 : i32 to index
    %c0_2 = arith.constant 0 : index
    %c0_3 = arith.constant 0 : index
    %4 = vector.load %arg4[%3, %c0_2, %c0_3] : memref<3x18x18xf32, #tpu.memory_space<vmem>>, vector<1x18x18xf32>
    %5 = vector.shape_cast %4 : vector<1x18x18xf32> to vector<18x18xf32>
    %6 = vector.shape_cast %2 : vector<18x18xf32> to vector<1x18x18xf32>
    tpu.vector_store %arg4[%3, %c0_2, %c0_3], %6 {strides = array<i32>} : memref<3x18x18xf32, #tpu.memory_space<vmem>>, vector<1x18x18xf32>,
    %c2_i32 = arith.constant 2 : i32
    %7 = arith.cmpi sge, %arg0, %c2_i32 : i32
    %8 = arith.extui %7 : i1 to i32
    %c0_i32 = arith.constant 0 : i32
    %9 = arith.cmpi ne, %8, %c0_i32 : i32
    scf.if %9 {
      %c1_i32 = arith.constant 1 : i32
      %10 = arith.addi %arg0, %c1_i32 : i32
      %c3_i32_4 = arith.constant 3 : i32
      %11 = arith.remsi %10, %c3_i32_4 : i32
      %c2_i32_5 = arith.constant 2 : i32
      %12 = arith.addi %arg0, %c2_i32_5 : i32
      %c3_i32_6 = arith.constant 3 : i32
      %13 = arith.remsi %12, %c3_i32_6 : i32
      %14 = arith.index_cast %11 : i32 to index
      %c0_7 = arith.constant 0 : index
      %c0_8 = arith.constant 0 : index
      %15 = vector.load %arg4[%14, %c0_7, %c0_8] : memref<3x18x18xf32, #tpu.memory_space<vmem>>, vector<1x18x18xf32>
      %16 = vector.shape_cast %15 : vector<1x18x18xf32> to vector<18x18xf32>
      %17 = arith.index_cast %13 : i32 to index
      %c0_9 = arith.constant 0 : index
      %c0_10 = arith.constant 0 : index
      %18 = vector.load %arg4[%17, %c0_9, %c0_10] : memref<3x18x18xf32, #tpu.memory_space<vmem>>, vector<1x18x18xf32>
      %19 = vector.shape_cast %18 : vector<1x18x18xf32> to vector<18x18xf32>
      %c0_11 = arith.constant 0 : index
      %c0_12 = arith.constant 0 : index
      %c0_13 = arith.constant 0 : index
      %20 = vector.load %arg2[%c0_11, %c0_12, %c0_13] : memref<1x16x16xf32, #tpu.memory_space<vmem>>, vector<1x16x16xf32>
      %21 = vector.shape_cast %20 : vector<1x16x16xf32> to vector<16x16xf32>
      %22 = vector.extract_strided_slice %16 {offsets = [1, 1], sizes = [16, 16], strides = [1, 1]} : vector<18x18xf32> to vector<16x16xf32>
      %cst = arith.constant 1.000000e+00 : f32
      %23 = vector.broadcast %cst : f32 to vector<16x16xf32>
      %24 = arith.mulf %23, %22 : vector<16x16xf32>
      %25 = vector.extract_strided_slice %19 {offsets = [0, 1], sizes = [16, 16], strides = [1, 1]} : vector<18x18xf32> to vector<16x16xf32>
      %cst_14 = arith.constant 1.000000e+00 : f32
      %26 = vector.broadcast %cst_14 : f32 to vector<16x16xf32>
      %27 = arith.mulf %26, %25 : vector<16x16xf32>
      %28 = arith.addf %24, %27 : vector<16x16xf32>
      %29 = vector.extract_strided_slice %19 {offsets = [1, 0], sizes = [16, 16], strides = [1, 1]} : vector<18x18xf32> to vector<16x16xf32>
      %cst_15 = arith.constant 1.000000e+00 : f32
      %30 = vector.broadcast %cst_15 : f32 to vector<16x16xf32>
      %31 = arith.mulf %30, %29 : vector<16x16xf32>
      %32 = arith.addf %28, %31 : vector<16x16xf32>
      %33 = vector.extract_strided_slice %19 {offsets = [1, 1], sizes = [16, 16], strides = [1, 1]} : vector<18x18xf32> to vector<16x16xf32>
      %cst_16 = arith.constant -6.000000e+00 : f32
      %34 = vector.broadcast %cst_16 : f32 to vector<16x16xf32>
      %35 = arith.mulf %34, %33 : vector<16x16xf32>
      %36 = arith.addf %32, %35 : vector<16x16xf32>
      %37 = vector.extract_strided_slice %19 {offsets = [1, 2], sizes = [16, 16], strides = [1, 1]} : vector<18x18xf32> to vector<16x16xf32>
      %cst_17 = arith.constant 1.000000e+00 : f32
      %38 = vector.broadcast %cst_17 : f32 to vector<16x16xf32>
      %39 = arith.mulf %38, %37 : vector<16x16xf32>
      %40 = arith.addf %36, %39 : vector<16x16xf32>
      %41 = vector.extract_strided_slice %19 {offsets = [2, 1], sizes = [16, 16], strides = [1, 1]} : vector<18x18xf32> to vector<16x16xf32>
      %cst_18 = arith.constant 1.000000e+00 : f32
      %42 = vector.broadcast %cst_18 : f32 to vector<16x16xf32>
      %43 = arith.mulf %42, %41 : vector<16x16xf32>
      %44 = arith.addf %40, %43 : vector<16x16xf32>
      %45 = vector.extract_strided_slice %2 {offsets = [1, 1], sizes = [16, 16], strides = [1, 1]} : vector<18x18xf32> to vector<16x16xf32>
      %cst_19 = arith.constant 1.000000e+00 : f32
      %46 = vector.broadcast %cst_19 : f32 to vector<16x16xf32>
      %47 = arith.mulf %46, %45 : vector<16x16xf32>
      %48 = arith.addf %44, %47 : vector<16x16xf32>
      %49 = arith.subf %48, %21 : vector<16x16xf32>
      %c0_20 = arith.constant 0 : index
      %c0_21 = arith.constant 0 : index
      %c0_22 = arith.constant 0 : index
      %50 = vector.load %arg3[%c0_20, %c0_21, %c0_22] : memref<1x16x16xf32, #tpu.memory_space<vmem>>, vector<1x16x16xf32>
      %51 = vector.shape_cast %50 : vector<1x16x16xf32> to vector<16x16xf32>
      %52 = vector.shape_cast %49 : vector<16x16xf32> to vector<1x16x16xf32>
      tpu.vector_store %arg3[%c0_20, %c0_21, %c0_22], %52 {strides = array<i32>} : memref<1x16x16xf32, #tpu.memory_space<vmem>>, vector<1x16x16xf32>,
    } else {
    }
    return
  }
  func.func @transform_0(%arg0: i32) -> (i32, i32, i32) {
    %c0_i32 = arith.constant 0 : i32
    %c0_i32_0 = arith.constant 0 : i32
    %c0_i32_1 = arith.constant 0 : i32
    return %arg0, %c0_i32, %c0_i32_0 : i32, i32, i32
  }
  func.func @transform_1(%arg0: i32) -> (i32, i32, i32) {
    %c2_i32 = arith.constant 2 : i32
    %0 = arith.subi %arg0, %c2_i32 : i32
    %c0_i32 = arith.constant 0 : i32
    %1 = arith.maxsi %0, %c0_i32 : i32
    %c0_i32_0 = arith.constant 0 : i32
    %c0_i32_1 = arith.constant 0 : i32
    %c0_i32_2 = arith.constant 0 : i32
    return %1, %c0_i32_0, %c0_i32_1 : i32, i32, i32
  }
  func.func @transform_2(%arg0: i32) -> (i32, i32, i32) {
    %c2_i32 = arith.constant 2 : i32
    %0 = arith.subi %arg0, %c2_i32 : i32
    %c0_i32 = arith.constant 0 : i32
    %1 = arith.maxsi %0, %c0_i32 : i32
    %c0_i32_0 = arith.constant 0 : i32
    %c0_i32_1 = arith.constant 0 : i32
    %c0_i32_2 = arith.constant 0 : i32
    return %1, %c0_i32_0, %c0_i32_1 : i32, i32, i32
  }
}

module attributes {stable_mosaic.version = 11 : i64} {
  func.func @kernel(%arg0: i32, %arg1: memref<1x18x18xf32, #tpu.memory_space<vmem>>, %arg2: memref<1x16x16xf32, #tpu.memory_space<vmem>>, %arg3: memref<1x16x16xf32, #tpu.memory_space<vmem>>, %arg4: memref<1x16x16xf32, #tpu.memory_space<vmem>>, %arg5: memref<3x18x18xf32, #tpu.memory_space<vmem>>) attributes {dimension_semantics = [#tpu.dimension_semantics<arbitrary>], iteration_bounds = array<i64: 10>, scalar_prefetch = 0 : i64, scratch_operands = 1 : i64, tpu.core_type = #tpu.core_type<tc>, window_params = [{transform_indices = @transform_0, window_bounds = array<i64: 1, 18, 18>}, {transform_indices = @transform_1, window_bounds = array<i64: 1, 16, 16>}, {transform_indices = @transform_2, window_bounds = array<i64: 1, 16, 16>}, {transform_indices = @transform_3, window_bounds = array<i64: 1, 16, 16>}]} {
    %c3_i32 = arith.constant 3 : i32
    %0 = arith.remsi %arg0, %c3_i32 : i32
    %c0 = arith.constant 0 : index
    %c0_0 = arith.constant 0 : index
    %c0_1 = arith.constant 0 : index
    %1 = vector.load %arg1[%c0, %c0_0, %c0_1] : memref<1x18x18xf32, #tpu.memory_space<vmem>>, vector<1x18x18xf32>
    %2 = vector.shape_cast %1 : vector<1x18x18xf32> to vector<18x18xf32>
    %3 = arith.index_cast %0 : i32 to index
    %c0_2 = arith.constant 0 : index
    %c0_3 = arith.constant 0 : index
    %4 = vector.load %arg5[%3, %c0_2, %c0_3] : memref<3x18x18xf32, #tpu.memory_space<vmem>>, vector<1x18x18xf32>
    %5 = vector.shape_cast %4 : vector<1x18x18xf32> to vector<18x18xf32>
    %6 = vector.shape_cast %2 : vector<18x18xf32> to vector<1x18x18xf32>
    tpu.vector_store %arg5[%3, %c0_2, %c0_3], %6 {strides = array<i32>} : memref<3x18x18xf32, #tpu.memory_space<vmem>>, vector<1x18x18xf32>,
    %c2_i32 = arith.constant 2 : i32
    %7 = arith.cmpi sge, %arg0, %c2_i32 : i32
    %8 = arith.extui %7 : i1 to i32
    %c0_i32 = arith.constant 0 : i32
    %9 = arith.cmpi ne, %8, %c0_i32 : i32
    scf.if %9 {
      %c1_i32 = arith.constant 1 : i32
      %10 = arith.addi %arg0, %c1_i32 : i32
      %c3_i32_4 = arith.constant 3 : i32
      %11 = arith.remsi %10, %c3_i32_4 : i32
      %c2_i32_5 = arith.constant 2 : i32
      %12 = arith.addi %arg0, %c2_i32_5 : i32
      %c3_i32_6 = arith.constant 3 : i32
      %13 = arith.remsi %12, %c3_i32_6 : i32
      %14 = arith.index_cast %11 : i32 to index
      %c0_7 = arith.constant 0 : index
      %c0_8 = arith.constant 0 : index
      %15 = vector.load %arg5[%14, %c0_7, %c0_8] : memref<3x18x18xf32, #tpu.memory_space<vmem>>, vector<1x18x18xf32>
      %16 = vector.shape_cast %15 : vector<1x18x18xf32> to vector<18x18xf32>
      %17 = arith.index_cast %13 : i32 to index
      %c0_9 = arith.constant 0 : index
      %c0_10 = arith.constant 0 : index
      %18 = vector.load %arg5[%17, %c0_9, %c0_10] : memref<3x18x18xf32, #tpu.memory_space<vmem>>, vector<1x18x18xf32>
      %19 = vector.shape_cast %18 : vector<1x18x18xf32> to vector<18x18xf32>
      %c0_11 = arith.constant 0 : index
      %c0_12 = arith.constant 0 : index
      %c0_13 = arith.constant 0 : index
      %20 = vector.load %arg2[%c0_11, %c0_12, %c0_13] : memref<1x16x16xf32, #tpu.memory_space<vmem>>, vector<1x16x16xf32>
      %21 = vector.shape_cast %20 : vector<1x16x16xf32> to vector<16x16xf32>
      %c0_14 = arith.constant 0 : index
      %c0_15 = arith.constant 0 : index
      %c0_16 = arith.constant 0 : index
      %22 = vector.load %arg3[%c0_14, %c0_15, %c0_16] : memref<1x16x16xf32, #tpu.memory_space<vmem>>, vector<1x16x16xf32>
      %23 = vector.shape_cast %22 : vector<1x16x16xf32> to vector<16x16xf32>
      %24 = vector.extract_strided_slice %16 {offsets = [1, 1], sizes = [16, 16], strides = [1, 1]} : vector<18x18xf32> to vector<16x16xf32>
      %cst = arith.constant 1.000000e+00 : f32
      %25 = vector.broadcast %cst : f32 to vector<16x16xf32>
      %26 = arith.mulf %25, %24 : vector<16x16xf32>
      %27 = vector.extract_strided_slice %19 {offsets = [0, 1], sizes = [16, 16], strides = [1, 1]} : vector<18x18xf32> to vector<16x16xf32>
      %cst_17 = arith.constant 1.000000e+00 : f32
      %28 = vector.broadcast %cst_17 : f32 to vector<16x16xf32>
      %29 = arith.mulf %28, %27 : vector<16x16xf32>
      %30 = arith.addf %26, %29 : vector<16x16xf32>
      %31 = vector.extract_strided_slice %19 {offsets = [1, 0], sizes = [16, 16], strides = [1, 1]} : vector<18x18xf32> to vector<16x16xf32>
      %cst_18 = arith.constant 1.000000e+00 : f32
      %32 = vector.broadcast %cst_18 : f32 to vector<16x16xf32>
      %33 = arith.mulf %32, %31 : vector<16x16xf32>
      %34 = arith.addf %30, %33 : vector<16x16xf32>
      %35 = vector.extract_strided_slice %19 {offsets = [1, 1], sizes = [16, 16], strides = [1, 1]} : vector<18x18xf32> to vector<16x16xf32>
      %cst_19 = arith.constant -6.000000e+00 : f32
      %36 = vector.broadcast %cst_19 : f32 to vector<16x16xf32>
      %37 = arith.mulf %36, %35 : vector<16x16xf32>
      %38 = arith.addf %34, %37 : vector<16x16xf32>
      %39 = vector.extract_strided_slice %19 {offsets = [1, 2], sizes = [16, 16], strides = [1, 1]} : vector<18x18xf32> to vector<16x16xf32>
      %cst_20 = arith.constant 1.000000e+00 : f32
      %40 = vector.broadcast %cst_20 : f32 to vector<16x16xf32>
      %41 = arith.mulf %40, %39 : vector<16x16xf32>
      %42 = arith.addf %38, %41 : vector<16x16xf32>
      %43 = vector.extract_strided_slice %19 {offsets = [2, 1], sizes = [16, 16], strides = [1, 1]} : vector<18x18xf32> to vector<16x16xf32>
      %cst_21 = arith.constant 1.000000e+00 : f32
      %44 = vector.broadcast %cst_21 : f32 to vector<16x16xf32>
      %45 = arith.mulf %44, %43 : vector<16x16xf32>
      %46 = arith.addf %42, %45 : vector<16x16xf32>
      %47 = vector.extract_strided_slice %2 {offsets = [1, 1], sizes = [16, 16], strides = [1, 1]} : vector<18x18xf32> to vector<16x16xf32>
      %cst_22 = arith.constant 1.000000e+00 : f32
      %48 = vector.broadcast %cst_22 : f32 to vector<16x16xf32>
      %49 = arith.mulf %48, %47 : vector<16x16xf32>
      %50 = arith.addf %46, %49 : vector<16x16xf32>
      %cst_23 = arith.constant -6.000000e+00 : f32
      %51 = vector.broadcast %cst_23 : f32 to vector<16x16xf32>
      %52 = arith.divf %50, %51 : vector<16x16xf32>
      %53 = arith.subf %21, %52 : vector<16x16xf32>
      %cst_24 = arith.constant -6.000000e+00 : f32
      %54 = vector.broadcast %cst_24 : f32 to vector<16x16xf32>
      %55 = arith.divf %23, %54 : vector<16x16xf32>
      %56 = arith.addf %53, %55 : vector<16x16xf32>
      %c0_25 = arith.constant 0 : index
      %c0_26 = arith.constant 0 : index
      %c0_27 = arith.constant 0 : index
      %57 = vector.load %arg4[%c0_25, %c0_26, %c0_27] : memref<1x16x16xf32, #tpu.memory_space<vmem>>, vector<1x16x16xf32>
      %58 = vector.shape_cast %57 : vector<1x16x16xf32> to vector<16x16xf32>
      %59 = vector.shape_cast %56 : vector<16x16xf32> to vector<1x16x16xf32>
      tpu.vector_store %arg4[%c0_25, %c0_26, %c0_27], %59 {strides = array<i32>} : memref<1x16x16xf32, #tpu.memory_space<vmem>>, vector<1x16x16xf32>,
    } else {
    }
    return
  }
  func.func @transform_0(%arg0: i32) -> (i32, i32, i32) {
    %c0_i32 = arith.constant 0 : i32
    %c0_i32_0 = arith.constant 0 : i32
    %c0_i32_1 = arith.constant 0 : i32
    return %arg0, %c0_i32, %c0_i32_0 : i32, i32, i32
  }
  func.func @transform_1(%arg0: i32) -> (i32, i32, i32) {
    %c2_i32 = arith.constant 2 : i32
    %0 = arith.subi %arg0, %c2_i32 : i32
    %c0_i32 = arith.constant 0 : i32
    %1 = arith.maxsi %0, %c0_i32 : i32
    %c0_i32_0 = arith.constant 0 : i32
    %c0_i32_1 = arith.constant 0 : i32
    %c0_i32_2 = arith.constant 0 : i32
    return %1, %c0_i32_0, %c0_i32_1 : i32, i32, i32
  }
  func.func @transform_2(%arg0: i32) -> (i32, i32, i32) {
    %c2_i32 = arith.constant 2 : i32
    %0 = arith.subi %arg0, %c2_i32 : i32
    %c0_i32 = arith.constant 0 : i32
    %1 = arith.maxsi %0, %c0_i32 : i32
    %c0_i32_0 = arith.constant 0 : i32
    %c0_i32_1 = arith.constant 0 : i32
    %c0_i32_2 = arith.constant 0 : i32
    return %1, %c0_i32_0, %c0_i32_1 : i32, i32, i32
  }
  func.func @transform_3(%arg0: i32) -> (i32, i32, i32) {
    %c2_i32 = arith.constant 2 : i32
    %0 = arith.subi %arg0, %c2_i32 : i32
    %c0_i32 = arith.constant 0 : i32
    %1 = arith.maxsi %0, %c0_i32 : i32
    %c0_i32_0 = arith.constant 0 : i32
    %c0_i32_1 = arith.constant 0 : i32
    %c0_i32_2 = arith.constant 0 : i32
    return %1, %c0_i32_0, %c0_i32_1 : i32, i32, i32
  }
}

module attributes {stable_mosaic.version = 11 : i64} {
  func.func @kernel(%arg0: i32, %arg1: memref<1x18x18xf32, #tpu.memory_space<vmem>>, %arg2: memref<1x16x16xf32, #tpu.memory_space<vmem>>, %arg3: memref<1x16x16xf32, #tpu.memory_space<vmem>>, %arg4: memref<1x16x16xf32, #tpu.memory_space<vmem>>, %arg5: memref<1x16x16xf32, #tpu.memory_space<vmem>>, %arg6: memref<1x16x16xf32, #tpu.memory_space<vmem>>, %arg7: memref<1x16x16xf32, #tpu.memory_space<vmem>>, %arg8: memref<3x18x18xf32, #tpu.memory_space<vmem>>) attributes {dimension_semantics = [#tpu.dimension_semantics<arbitrary>], iteration_bounds = array<i64: 10>, scalar_prefetch = 0 : i64, scratch_operands = 1 : i64, tpu.core_type = #tpu.core_type<tc>, window_params = [{transform_indices = @transform_0, window_bounds = array<i64: 1, 18, 18>}, {transform_indices = @transform_1, window_bounds = array<i64: 1, 16, 16>}, {transform_indices = @transform_2, window_bounds = array<i64: 1, 16, 16>}, {transform_indices = @transform_3, window_bounds = array<i64: 1, 16, 16>}, {transform_indices = @transform_4, window_bounds = array<i64: 1, 16, 16>}, {transform_indices = @transform_5, window_bounds = array<i64: 1, 16, 16>}, {transform_indices = @transform_6, window_bounds = array<i64: 1, 16, 16>}]} {
    %c3_i32 = arith.constant 3 : i32
    %0 = arith.remsi %arg0, %c3_i32 : i32
    %c0 = arith.constant 0 : index
    %c0_0 = arith.constant 0 : index
    %c0_1 = arith.constant 0 : index
    %1 = vector.load %arg1[%c0, %c0_0, %c0_1] : memref<1x18x18xf32, #tpu.memory_space<vmem>>, vector<1x18x18xf32>
    %2 = vector.shape_cast %1 : vector<1x18x18xf32> to vector<18x18xf32>
    %3 = arith.index_cast %0 : i32 to index
    %c0_2 = arith.constant 0 : index
    %c0_3 = arith.constant 0 : index
    %4 = vector.load %arg8[%3, %c0_2, %c0_3] : memref<3x18x18xf32, #tpu.memory_space<vmem>>, vector<1x18x18xf32>
    %5 = vector.shape_cast %4 : vector<1x18x18xf32> to vector<18x18xf32>
    %6 = vector.shape_cast %2 : vector<18x18xf32> to vector<1x18x18xf32>
    tpu.vector_store %arg8[%3, %c0_2, %c0_3], %6 {strides = array<i32>} : memref<3x18x18xf32, #tpu.memory_space<vmem>>, vector<1x18x18xf32>,
    %c2_i32 = arith.constant 2 : i32
    %7 = arith.cmpi sge, %arg0, %c2_i32 : i32
    %8 = arith.extui %7 : i1 to i32
    %c0_i32 = arith.constant 0 : i32
    %9 = arith.cmpi ne, %8, %c0_i32 : i32
    scf.if %9 {
      %c1_i32 = arith.constant 1 : i32
      %10 = arith.addi %arg0, %c1_i32 : i32
      %c3_i32_4 = arith.constant 3 : i32
      %11 = arith.remsi %10, %c3_i32_4 : i32
      %c2_i32_5 = arith.constant 2 : i32
      %12 = arith.addi %arg0, %c2_i32_5 : i32
      %c3_i32_6 = arith.constant 3 : i32
      %13 = arith.remsi %12, %c3_i32_6 : i32
      %14 = arith.index_cast %11 : i32 to index
      %c0_7 = arith.constant 0 : index
      %c0_8 = arith.constant 0 : index
      %15 = vector.load %arg8[%14, %c0_7, %c0_8] : memref<3x18x18xf32, #tpu.memory_space<vmem>>, vector<1x18x18xf32>
      %16 = vector.shape_cast %15 : vector<1x18x18xf32> to vector<18x18xf32>
      %17 = arith.index_cast %13 : i32 to index
      %c0_9 = arith.constant 0 : index
      %c0_10 = arith.constant 0 : index
      %18 = vector.load %arg8[%17, %c0_9, %c0_10] : memref<3x18x18xf32, #tpu.memory_space<vmem>>, vector<1x18x18xf32>
      %19 = vector.shape_cast %18 : vector<1x18x18xf32> to vector<18x18xf32>
      %c0_11 = arith.constant 0 : index
      %c0_12 = arith.constant 0 : index
      %c0_13 = arith.constant 0 : index
      %20 = vector.load %arg2[%c0_11, %c0_12, %c0_13] : memref<1x16x16xf32, #tpu.memory_space<vmem>>, vector<1x16x16xf32>
      %21 = vector.shape_cast %20 : vector<1x16x16xf32> to vector<16x16xf32>
      %c0_14 = arith.constant 0 : index
      %c0_15 = arith.constant 0 : index
      %c0_16 = arith.constant 0 : index
      %22 = vector.load %arg3[%c0_14, %c0_15, %c0_16] : memref<1x16x16xf32, #tpu.memory_space<vmem>>, vector<1x16x16xf32>
      %23 = vector.shape_cast %22 : vector<1x16x16xf32> to vector<16x16xf32>
      %c0_17 = arith.constant 0 : index
      %c0_18 = arith.constant 0 : index
      %c0_19 = arith.constant 0 : index
      %24 = vector.load %arg4[%c0_17, %c0_18, %c0_19] : memref<1x16x16xf32, #tpu.memory_space<vmem>>, vector<1x16x16xf32>
      %25 = vector.shape_cast %24 : vector<1x16x16xf32> to vector<16x16xf32>
      %26 = vector.extract_strided_slice %19 {offsets = [1, 0], sizes = [16, 16], strides = [1, 1]} : vector<18x18xf32> to vector<16x16xf32>
      %cst = arith.constant -5.000000e-01 : f32
      %27 = vector.broadcast %cst : f32 to vector<16x16xf32>
      %28 = arith.mulf %27, %26 : vector<16x16xf32>
      %29 = vector.extract_strided_slice %19 {offsets = [1, 2], sizes = [16, 16], strides = [1, 1]} : vector<18x18xf32> to vector<16x16xf32>
      %cst_20 = arith.constant 5.000000e-01 : f32
      %30 = vector.broadcast %cst_20 : f32 to vector<16x16xf32>
      %31 = arith.mulf %30, %29 : vector<16x16xf32>
      %32 = arith.addf %28, %31 : vector<16x16xf32>
      %cst_21 = arith.constant 5.000000e-01 : f32
      %33 = vector.broadcast %cst_21 : f32 to vector<16x16xf32>
      %34 = arith.mulf %32, %33 : vector<16x16xf32>
      %35 = vector.extract_strided_slice %19 {offsets = [0, 1], sizes = [16, 16], strides = [1, 1]} : vector<18x18xf32> to vector<16x16xf32>
      %cst_22 = arith.constant -5.000000e-01 : f32
      %36 = vector.broadcast %cst_22 : f32 to vector<16x16xf32>
      %37 = arith.mulf %36, %35 : vector<16x16xf32>
      %38 = vector.extract_strided_slice %19 {offsets = [2, 1], sizes = [16, 16], strides = [1, 1]} : vector<18x18xf32> to vector<16x16xf32>
      %cst_23 = arith.constant 5.000000e-01 : f32
      %39 = vector.broadcast %cst_23 : f32 to vector<16x16xf32>
      %40 = arith.mulf %39, %38 : vector<16x16xf32>
      %41 = arith.addf %37, %40 : vector<16x16xf32>
      %cst_24 = arith.constant 5.000000e-01 : f32
      %42 = vector.broadcast %cst_24 : f32 to vector<16x16xf32>
      %43 = arith.mulf %41, %42 : vector<16x16xf32>
      %44 = vector.extract_strided_slice %16 {offsets = [1, 1], sizes = [16, 16], strides = [1, 1]} : vector<18x18xf32> to vector<16x16xf32>
      %cst_25 = arith.constant -5.000000e-01 : f32
      %45 = vector.broadcast %cst_25 : f32 to vector<16x16xf32>
      %46 = arith.mulf %45, %44 : vector<16x16xf32>
      %47 = vector.extract_strided_slice %2 {offsets = [1, 1], sizes = [16, 16], strides = [1, 1]} : vector<18x18xf32> to vector<16x16xf32>
      %cst_26 = arith.constant 5.000000e-01 : f32
      %48 = vector.broadcast %cst_26 : f32 to vector<16x16xf32>
      %49 = arith.mulf %48, %47 : vector<16x16xf32>
      %50 = arith.addf %46, %49 : vector<16x16xf32>
      %cst_27 = arith.constant 5.000000e-01 : f32
      %51 = vector.broadcast %cst_27 : f32 to vector<16x16xf32>
      %52 = arith.mulf %50, %51 : vector<16x16xf32>
      %53 = arith.subf %21, %34 : vector<16x16xf32>
      %cst_28 = arith.constant 0.975609779 : f32
      %54 = vector.broadcast %cst_28 : f32 to vector<16x16xf32>
      %55 = arith.mulf %54, %53 : vector<16x16xf32>
      %56 = arith.subf %23, %43 : vector<16x16xf32>
      %cst_29 = arith.constant 0.975609779 : f32
      %57 = vector.broadcast %cst_29 : f32 to vector<16x16xf32>
      %58 = arith.mulf %57, %56 : vector<16x16xf32>
      %59 = arith.subf %25, %52 : vector<16x16xf32>
      %cst_30 = arith.constant 0.975609779 : f32
      %60 = vector.broadcast %cst_30 : f32 to vector<16x16xf32>
      %61 = arith.mulf %60, %59 : vector<16x16xf32>
      %c0_31 = arith.constant 0 : index
      %c0_32 = arith.constant 0 : index
      %c0_33 = arith.constant 0 : index
      %62 = vector.load %arg5[%c0_31, %c0_32, %c0_33] : memref<1x16x16xf32, #tpu.memory_space<vmem>>, vector<1x16x16xf32>
      %63 = vector.shape_cast %62 : vector<1x16x16xf32> to vector<16x16xf32>
      %64 = vector.shape_cast %55 : vector<16x16xf32> to vector<1x16x16xf32>
      tpu.vector_store %arg5[%c0_31, %c0_32, %c0_33], %64 {strides = array<i32>} : memref<1x16x16xf32, #tpu.memory_space<vmem>>, vector<1x16x16xf32>,
      %c0_34 = arith.constant 0 : index
      %c0_35 = arith.constant 0 : index
      %c0_36 = arith.constant 0 : index
      %65 = vector.load %arg6[%c0_34, %c0_35, %c0_36] : memref<1x16x16xf32, #tpu.memory_space<vmem>>, vector<1x16x16xf32>
      %66 = vector.shape_cast %65 : vector<1x16x16xf32> to vector<16x16xf32>
      %67 = vector.shape_cast %58 : vector<16x16xf32> to vector<1x16x16xf32>
      tpu.vector_store %arg6[%c0_34, %c0_35, %c0_36], %67 {strides = array<i32>} : memref<1x16x16xf32, #tpu.memory_space<vmem>>, vector<1x16x16xf32>,
      %c0_37 = arith.constant 0 : index
      %c0_38 = arith.constant 0 : index
      %c0_39 = arith.constant 0 : index
      %68 = vector.load %arg7[%c0_37, %c0_38, %c0_39] : memref<1x16x16xf32, #tpu.memory_space<vmem>>, vector<1x16x16xf32>
      %69 = vector.shape_cast %68 : vector<1x16x16xf32> to vector<16x16xf32>
      %70 = vector.shape_cast %61 : vector<16x16xf32> to vector<1x16x16xf32>
      tpu.vector_store %arg7[%c0_37, %c0_38, %c0_39], %70 {strides = array<i32>} : memref<1x16x16xf32, #tpu.memory_space<vmem>>, vector<1x16x16xf32>,
    } else {
    }
    return
  }
  func.func @transform_0(%arg0: i32) -> (i32, i32, i32) {
    %c0_i32 = arith.constant 0 : i32
    %c0_i32_0 = arith.constant 0 : i32
    %c0_i32_1 = arith.constant 0 : i32
    return %arg0, %c0_i32, %c0_i32_0 : i32, i32, i32
  }
  func.func @transform_1(%arg0: i32) -> (i32, i32, i32) {
    %c2_i32 = arith.constant 2 : i32
    %0 = arith.subi %arg0, %c2_i32 : i32
    %c0_i32 = arith.constant 0 : i32
    %1 = arith.maxsi %0, %c0_i32 : i32
    %c0_i32_0 = arith.constant 0 : i32
    %c0_i32_1 = arith.constant 0 : i32
    %c0_i32_2 = arith.constant 0 : i32
    return %1, %c0_i32_0, %c0_i32_1 : i32, i32, i32
  }
  func.func @transform_2(%arg0: i32) -> (i32, i32, i32) {
    %c2_i32 = arith.constant 2 : i32
    %0 = arith.subi %arg0, %c2_i32 : i32
    %c0_i32 = arith.constant 0 : i32
    %1 = arith.maxsi %0, %c0_i32 : i32
    %c0_i32_0 = arith.constant 0 : i32
    %c0_i32_1 = arith.constant 0 : i32
    %c0_i32_2 = arith.constant 0 : i32
    return %1, %c0_i32_0, %c0_i32_1 : i32, i32, i32
  }
  func.func @transform_3(%arg0: i32) -> (i32, i32, i32) {
    %c2_i32 = arith.constant 2 : i32
    %0 = arith.subi %arg0, %c2_i32 : i32
    %c0_i32 = arith.constant 0 : i32
    %1 = arith.maxsi %0, %c0_i32 : i32
    %c0_i32_0 = arith.constant 0 : i32
    %c0_i32_1 = arith.constant 0 : i32
    %c0_i32_2 = arith.constant 0 : i32
    return %1, %c0_i32_0, %c0_i32_1 : i32, i32, i32
  }
  func.func @transform_4(%arg0: i32) -> (i32, i32, i32) {
    %c2_i32 = arith.constant 2 : i32
    %0 = arith.subi %arg0, %c2_i32 : i32
    %c0_i32 = arith.constant 0 : i32
    %1 = arith.maxsi %0, %c0_i32 : i32
    %c0_i32_0 = arith.constant 0 : i32
    %c0_i32_1 = arith.constant 0 : i32
    %c0_i32_2 = arith.constant 0 : i32
    return %1, %c0_i32_0, %c0_i32_1 : i32, i32, i32
  }
  func.func @transform_5(%arg0: i32) -> (i32, i32, i32) {
    %c2_i32 = arith.constant 2 : i32
    %0 = arith.subi %arg0, %c2_i32 : i32
    %c0_i32 = arith.constant 0 : i32
    %1 = arith.maxsi %0, %c0_i32 : i32
    %c0_i32_0 = arith.constant 0 : i32
    %c0_i32_1 = arith.constant 0 : i32
    %c0_i32_2 = arith.constant 0 : i32
    return %1, %c0_i32_0, %c0_i32_1 : i32, i32, i32
  }
  func.func @transform_6(%arg0: i32) -> (i32, i32, i32) {
    %c2_i32 = arith.constant 2 : i32
    %0 = arith.subi %arg0, %c2_i32 : i32
    %c0_i32 = arith.constant 0 : i32
    %1 = arith.maxsi %0, %c0_i32 : i32
    %c0_i32_0 = arith.constant 0 : i32
    %c0_i32_1 = arith.constant 0 : i32
    %c0_i32_2 = arith.constant 0 : i32
    return %1, %c0_i32_0, %c0_i32_1 : i32, i32, i32
  }
}

</mosaic_0001>

<bundles_post_ra>
// kernel: ai4urban_forward.11
= control target key start
LH: loop header
LB: loop body
LE: loop exit
PB: predicated region body
PF: predicated region fallthrough
CT: control target
= control target key end

     0   :  { %s525_s18 = smov 0   ;;  %s560_s0 = inlined_call_operand.vmem [shape: f32[8,16,16], index: 0, kind: input, shape index: {}]   ;;  %s561_s1 = inlined_call_operand.vmem [shape: f32[8,16,16], index: 1, kind: input, shape index: {}]   ;;  %s562_s2 = inlined_call_operand.vmem [shape: f32[8,16,16], index: 2, kind: input, shape index: {}]   ;;  %s563_s3 = inlined_call_operand.vmem [shape: f32[8,16,16], index: 3, kind: output, shape index: {0}]   ;;  %s564_s4 = inlined_call_operand.vmem [shape: f32[8,16,16], index: 4, kind: output, shape index: {1}]   ;;  %s565_s5 = inlined_call_operand.vmem [shape: f32[8,16,16], index: 5, kind: output, shape index: {2}]  }
   0x1 LB: > { %s454_s19 = sadd.s32 4294967295, %s493_s18   ;;  %p458_p0 = scmp.ge.s32.totalorder %s493_s18, 1  ;;  %s493_s18 = sphi %s525_s18, %s16_s18  }
   0x2   : > { %p212_p1 = scmp.lt.s32.totalorder %s493_s18, 9 }
   0x4   : > { %p213_p2 = pnand %p458_p0, %p212_p1 }
   0x5   : > { %p260_p3 = scmp.lt.s32.totalorder (!%p213_p2), %s454_s19, 7 }
   0x6   : > { %216 = sbr.rel (%p213_p2) target bundleno = 23 (0x17), region = 32 }
   0xb   : > { %s567_s19 = smov (!%p260_p3, %s454_s19), 7  ;;  %vm302_vm0 = vcmask 130048  }
   0xc   : > { %s473_s20 = sshll.u32 %s567_s19, 4 }
   0xd   : > { %s264_s23 = scalar_lea.vmem %s560_s0, %s473_s20  ;;  %s279_s26 = scalar_lea.vmem %s563_s3, %s473_s20 }
   0xe   : > { %v290_v0 = vld [vmem:[%s264_s23] sm:$0xff]  ;;  %v291_v1 = vld [vmem:[%s264_s23 + $0x8] sm:$0xff]  ;;  %s269_s29 = scalar_lea.vmem %s561_s1, %s473_s20  ;;  %s274_s7 = scalar_lea.vmem %s562_s2, %s473_s20 }
   0xf   : > { %v296_v2 = vmul.f32 0.9756098, %v290_v0  ;;  %v297_v3 = vmul.f32 0.9756098, %v291_v1  ;;  %v292_v4 = vld [vmem:[%s269_s29] sm:$0xff]  ;;  %v293_v5 = vld [vmem:[%s269_s29 + $0x8] sm:$0xff]  ;;  %s284_s10 = scalar_lea.vmem %s564_s4, %s473_s20  ;;  %s289_s13 = scalar_lea.vmem %s565_s5, %s473_s20 }
  0x10   : > { %v298_v6 = vmul.f32 0.9756098, %v292_v4  ;;  %v299_v7 = vmul.f32 0.9756098, %v293_v5  ;;  %v294_v8 = vld [vmem:[%s274_s7] sm:$0xff]  ;;  %v295_v9 = vld [vmem:[%s274_s7 + $0x8] sm:$0xff] }
  0x11   : > { %303 = vst.msk [vmem:[%s279_s26] sm:$0xff] %vm302_vm0, %v296_v2  ;;  %v300_v10 = vmul.f32 0.9756098, %v294_v8  ;;  %v301_v11 = vmul.f32 0.9756098, %v295_v9 }
  0x12   : > { %304 = vst.msk [vmem:[%s279_s26 + $0x8] sm:$0xff] %vm302_vm0, %v297_v3 }
  0x13   : > { %305 = vst.msk [vmem:[%s284_s10] sm:$0xff] %vm302_vm0, %v298_v6 }
  0x14   : > { %306 = vst.msk [vmem:[%s284_s10 + $0x8] sm:$0xff] %vm302_vm0, %v299_v7 }
  0x15   : > { %307 = vst.msk [vmem:[%s289_s13] sm:$0xff] %vm302_vm0, %v300_v10 }
  0x16   : > { %308 = vst.msk [vmem:[%s289_s13 + $0x8] sm:$0xff] %vm302_vm0, %v301_v11 }
  0x17 PF: > { %s16_s18 = sadd.s32 1, %s493_s18  }
  0x18   : > { %p13_p4 = scmp.ge.s32.totalorder %s16_s18, 10  }
  0x1a   :  { %15 = sbr.rel (!%p13_p4) target bundleno = 1 (0x1), region = 92 }

// kernel: ai4urban_forward.16
= control target key start
LH: loop header
LB: loop body
LE: loop exit
PB: predicated region body
PF: predicated region fallthrough
CT: control target
= control target key end

     0   :  { %s574_s12 = smov 0   ;;  %s638_s0 = inlined_call_operand.vmem [shape: f32[10,18,18], index: 0, kind: input, shape index: {}]   ;;  %s639_s1 = inlined_call_operand.vmem [shape: f32[10,18,18], index: 1, kind: input, shape index: {}]   ;;  %s640_s2 = inlined_call_operand.vmem [shape: f32[10,18,18], index: 2, kind: input, shape index: {}]   ;;  %s641_s3 = inlined_call_operand.vmem [shape: f32[8,16,16], index: 3, kind: output, shape index: {}]  }
   0x1 LB: > { %s580_s13 = sadd.s32 4294967295, %s549_s12   ;;  %p497_p0 = scmp.ge.s32.totalorder %s549_s12, 1  ;;  %s549_s12 = sphi %s574_s12, %s13_s12  }
   0x2   : > { %p163_p1 = scmp.lt.s32.totalorder %s549_s12, 11 }
   0x4   : > { %p164_p2 = pnand %p497_p0, %p163_p1 }
   0x5   : > { %s501_s14 = sadd.s32 (!%p164_p2), 4294967294, %s580_s13  ;;  %p200_p5 = scmp.lt.s32.totalorder (!%p164_p2), %s580_s13, 9 }
   0x6   : > { %167 = sbr.rel (%p164_p2) target bundleno = 180 (0xb4), region = 32  ;;  %p216_p3 = scmp.gt.s32.totalorder (!%p164_p2), %s501_s14, 0 }
   0x7   : > { %p502_p4 = scmp.lt.s32.totalorder (!%p164_p2), %s501_s14, 7  ;;  %s227_s15 = ssub.s32 (!%p164_p2), 0, %s580_s13 }
   0x8   : > { %s509_s17 = smin.u32 (!%p164_p2), %s580_s13, %s227_s15  ;;  %p226_p6 = scmp.lt.s32.totalorder (!%p164_p2), %s580_s13, 0 }
   0x9   : > { %532 = sdivrem.u32 (!%p164_p2), %s509_s17, 3  ;;  %p510_p7 = scmp.lt.s32.totalorder (!%p164_p2), %s580_s13, 2 }
   0xb   : > { %s643_s14 = smov (!%p216_p3, %s501_s14), 0  ;;  %vm244_vm0 = vcmask 146432   ;;  %vm247_vm1 = vcmask 140288   ;;  %s261_s17 = sadd.s32 (!%p510_p7), 1, %s580_s13 }
   0xc   : > { %s645_s14 = smov (!%p502_p4, %s643_s14), 7  ;;  %s263_s18 = ssub.s32 (!%p510_p7), 0, %s261_s17 }
   0xd   : > { %s517_s16 = sshll.u32 %s645_s14, 4  ;;  %s269_s14 = sadd.s32 (!%p510_p7), 2, %s580_s13 }
   0xe   : > { %s591_s20 = scalar_lea.vmem %s641_s3, %s517_s16  ;;  %s271_s15 = ssub.s32 (!%p510_p7), 0, %s269_s14 }
   0xf   : > { %s201_s21 = scalar_select %p200_p5, %s580_s13, 9 }
  0x10   : > { %s512_s16 = smin.u32 (!%p510_p7), %s271_s15, %s269_s14  ;;  %s511_s19 = smin.u32 (!%p510_p7), %s263_s18, %s261_s17 }
  0x11   : > { %s518_s22 = smul.u32 24, %s201_s21  ;;  %p270_p8 = scmp.lt.s32.totalorder (!%p510_p7), %s269_s14, 0 }
  0x12   : > { %s533_s23 = spop.drf %532  ;;  %535 = sdivrem.u32 (!%p510_p7), %s512_s16, 3 }
  0x13   : > { %s534_s24 = spop.drf %532  ;;  %s204_s27 = scalar_lea.vmem %s638_s0, %s518_s22 }
  0x14   : > { %s231_s28 = ssub.s32 0, %s534_s24  ;;  %v233_v0 = vld [vmem:[%s204_s27] sm:$0xff]  ;;  %s209_s5 = scalar_lea.vmem %s639_s1, %s518_s22  ;;  %v234_v1 = vld [vmem:[%s204_s27 + $0x8] sm:$0xff]  ;;  %v235_v2 = vld [vmem:[%s204_s27 + $0x10] sm:$0x3] }
  0x15   : > { %s647_s28 = smov (!%p226_p6, %s231_s28), %s534_s24  ;;  %v236_v3 = vld [vmem:[%s209_s5] sm:$0xff]  ;;  %s214_s9 = scalar_lea.vmem %s640_s2, %s518_s22  ;;  %v237_v4 = vld [vmem:[%s209_s5 + $0x8] sm:$0xff]  ;;  %v238_v5 = vld [vmem:[%s209_s5 + $0x10] sm:$0x3] }
  0x16   : > { %s242_s29 = smul.u32 24, %s647_s28  ;;  %v608_v6 = vld [vmem:[%s214_s9] sm:$0xff]  ;;  %v611_v7 = vld [vmem:[%s214_s9 + $0x8] sm:$0xff]  ;;  %v614_v8 = vld [vmem:[%s214_s9 + $0x10] sm:$0x3]  ;;  %p262_p9 = scmp.lt.s32.totalorder (!%p510_p7), %s261_s17, 0 }
  0x17   : > { %538 = sdivrem.u32 (!%p510_p7), %s511_s19, 3  ;;  %s551_s30 = smov (!%p510_p7), 126  }
  0x18   : > { %s243_s6 = scalar_lea.vmem [#allocation2], %s242_s29  ;;  %s249_s10 = scalar_lea.vmem [#allocation3], %s242_s29 }
  0x19   : > { %245 = vst.msk [vmem:[%s243_s6] sm:$0xff] %vm244_vm0, %v233_v0  ;;  %s253_s11 = scalar_lea.vmem [#allocation4], %s242_s29  ;;  %s552_s5 = smov (!%p510_p7), 127  }
  0x1a   : > { %246 = vst.msk [vmem:[%s243_s6 + $0x8] sm:$0xff] %vm244_vm0, %v234_v1 }
  0x1b   : > { %248 = vst.msk [vmem:[%s243_s6 + $0x10] sm:$0x3] %vm247_vm1, %v235_v2  ;;  %s536_s21 = spop.drf (!%p510_p7), %535 }
  0x1c   : > { %250 = vst.msk [vmem:[%s249_s10] sm:$0xff] %vm244_vm0, %v236_v3  ;;  %s537_s22 = spop.drf (!%p510_p7), %535 }
  0x1d   : > { %251 = vst.msk [vmem:[%s249_s10 + $0x8] sm:$0xff] %vm244_vm0, %v237_v4  ;;  %260 = sbr.rel (%p510_p7) target bundleno = 180 (0xb4), region = 36  ;;  %s275_s23 = ssub.s32 (!%p510_p7), 0, %s537_s22 }
  0x1e   : > { %252 = vst.msk [vmem:[%s249_s10 + $0x10] sm:$0x3] %vm247_vm1, %v238_v5 }
  0x1f   : > { %254 = vst.msk [vmem:[%s253_s11] sm:$0xff] %vm244_vm0, %v608_v6 }
  0x20   : > { %255 = vst.msk [vmem:[%s253_s11 + $0x8] sm:$0xff] %vm244_vm0, %v611_v7  ;;  %s539_s24 = spop.drf (!%p510_p7), %538 }
  0x21   : > { %256 = vst.msk [vmem:[%s253_s11 + $0x10] sm:$0x3] %vm247_vm1, %v614_v8  ;;  %s540_s26 = spop.drf (!%p510_p7), %538 }
  0x22   : > { %s649_s23 = smov (!%p270_p8, %s275_s23), %s537_s22  ;;  %s267_s27 = ssub.s32 0, %s540_s26  ;;  %vm320_vm2 = vcmask 1045504   ;;  %v334_v35 = vmul.f32 0.5, %v611_v7  ;;  %v333_v37 = vmul.f32 0.5, %v608_v6  ;;  %vm341_vm3 = vcmask 1040384  }
  0x23   : > { %s277_s25 = smul.u32 24, %s649_s23  ;;  %s651_s27 = smov (!%p262_p9, %s267_s27), %s540_s26  ;;  %v335_v43 = vmul.f32 0.5, %v614_v8  ;;  %v553_v45 = vmov 0.5   ;;  %vm389_vm5 = vcmask 122880   ;;  %vm387_vm6 = vcmask 130048  }
  0x24   : > { %s286_s13 = smul.u32 24, %s651_s27  ;;  %541 = vrcp.f32 %v553_v45  ;;  %vm385_vm7 = vcmask 130049  }
  0x25   : > { %s278_s28 = scalar_lea.vmem [#allocation2], %s277_s25  ;;  %s282_s29 = scalar_lea.vmem [#allocation3], %s277_s25 }
  0x26   : > { %v281_v9 = vld [vmem:[%s278_s28 + $0x10] sm:$0x3]  ;;  %v284_v10 = vld [vmem:[%s282_s29 + $0x8] sm:$0xff]  ;;  %v625_v11 = vld [vmem:[%s278_s28] sm:$0xff]  ;;  %s287_s4 = scalar_lea.vmem [#allocation4], %s286_s13 }
  0x27   : > { %v296_v12 = vmul.f32 0.5, %v281_v9  ;;  %v294_v13 = vmul.f32 0.5, %v625_v11  ;;  %v283_v14 = vld [vmem:[%s282_s29] sm:$0xff]  ;;  %v315_v15 = vmul.f32 0.5, %v284_v10  ;;  %v285_v17 = vld [vmem:[%s282_s29 + $0x10] sm:$0x3] }
  0x28   : > { %v314_v16 = vmul.f32 0.5, %v283_v14  ;;  %v316_v19 = vmul.f32 0.5, %v285_v17  ;;  %v312_v21 = vmul.f32 -0.5, %v283_v14  ;;  %v280_v24 = vld [vmem:[%s278_s28 + $0x8] sm:$0xff]  ;;  %v313_v25 = vmul.f32 -0.5, %v284_v10  ;;  %v288_v30 = vld [vmem:[%s287_s4] sm:$0xff] }
  0x29   : > { %304 = vrot.lane.b32.xlu1 %v296_v12, %s551_s30  ;;  %300 = vrot.lane.b32.xlu0 %v294_v13, %s551_s30  ;;  %v322_v18 = vrot.slane %v315_v15, 2  ;;  %v289_v29 = vld [vmem:[%s287_s4 + $0x8] sm:$0xff]  ;;  %v295_v32 = vmul.f32 0.5, %v280_v24  ;;  %v330_v36 = vmul.f32 -0.5, %v288_v30  ;;  %v290_v41 = vld [vmem:[%s287_s4 + $0x10] sm:$0x3] }
  0x2a   : > { %v321_v20 = vrot.slane %v314_v16, 2  ;;  %v324_v22 = vrot.slane %v316_v19, 2  ;;  %v331_v34 = vmul.f32 -0.5, %v289_v29  ;;  %v332_v42 = vmul.f32 -0.5, %v290_v41  ;;  %v542_v47 = vpop.eup %541 }
  0x2b   : > { %v336_v39 = vadd.f32 %v333_v37, %v330_v36  ;;  %v376_v48 = vmul.f32 0.5, %v542_v47  ;;  %v293_v52 = vmul.f32 -0.5, %v281_v9  ;;  %vm380_vm4 = vweird.f32 %v542_v47 }
  0x2c   : > { %v323_v23 = vsel %vm320_vm2, %v321_v20, %v322_v18  ;;  %v325_v27 = vsel %vm320_vm2, %v322_v18, %v324_v22  ;;  %v337_v38 = vadd.f32 %v334_v35, %v331_v34  ;;  %v338_v44 = vadd.f32 %v335_v43, %v332_v42 }
  0x2d   : > { %v328_v26 = vadd.f32 %v323_v23, %v312_v21  ;;  %v329_v28 = vadd.f32 %v325_v27, %v313_v25  ;;  %v377_v50 = vsub.f32 1.0, %v376_v48  ;;  %v292_v1 = vmul.f32 -0.5, %v280_v24 }
  0x2e   : > { %v291_v2 = vmul.f32 -0.5, %v625_v11 }
  0x2f   : > { %v342_v31 = vrot.slane %v328_v26, 7  ;;  %v343_v33 = vrot.slane %v329_v28, 7  ;;  %v378_v51 = vmul.f32 %v542_v47, %v377_v50 }
  0x31   : > { %345 = vrot.lane.b32.xlu1 %v342_v31, %s552_s5  ;;  %302 = vrot.lane.b32.xlu0 %v295_v32, %s551_s30  ;;  %v344_v40 = vsel %vm341_vm3, %v342_v31, %v343_v33  ;;  %v379_v56 = vadd.f32 %v542_v47, %v378_v51 }
  0x32   : > { %349 = vrot.lane.b32.xlu2 %v343_v33, %s552_s5 }
  0x33   : > { %v381_v60 = vsel %vm380_vm4, %v542_v47, %v379_v56 }
  0x39   : > { %362 = vrot.lane.b32.xlu1 %v337_v38, %s552_s5  ;;  %360 = vrot.lane.b32.xlu0 %v336_v39, %s552_s5 }
  0x3a   : > { %347 = vrot.lane.b32.xlu2 %v344_v40, %s552_s5 }
  0x42   : > { %364 = vrot.lane.b32.xlu2 %v338_v44, %s552_s5 }
  0x8c   : > { %v350_v46 = vpop.permute.xlu2 %349 }
  0x94   : > { %v348_v49 = vpop.permute.xlu2 %347 }
  0x9b   : > { %v305_v53 = vpop.permute.xlu1 %304  ;;  %v301_v54 = vpop.permute.xlu0 %300 }
  0x9c   : > { %v311_v55 = vadd.f32 %v305_v53, %v293_v52  ;;  %v365_v58 = vpop.permute.xlu2 %364  ;;  %v309_v4 = vadd.f32 %v301_v54, %v291_v2 }
  0x9e   : > { %v356_v57 = vadd.f32 %v350_v46, %v311_v55 }
  0xa0   : > { %v371_v59 = vadd.f32 %v365_v58, %v356_v57 }
  0xa2   : > { %v374_v61 = vsub.f32 0.0, %v371_v59 }
  0xa3   : > { %v346_v62 = vpop.permute.xlu1 %345  ;;  %v303_v63 = vpop.permute.xlu0 %302 }
  0xa4   : > { %v384_v0 = vmul.f32 %v381_v60, %v374_v61  ;;  %v310_v3 = vadd.f32 %v303_v63, %v292_v1  ;;  %v354_v5 = vadd.f32 %v346_v62, %v309_v4 }
  0xa6   : > { %390 = vst.msk [vmem:[%s591_s20 + $0xf] sm:$0x1] %vm389_vm5, %v384_v0  ;;  %v355_v6 = vadd.f32 %v348_v49, %v310_v3 }
  0xab   : > { %v363_v7 = vpop.permute.xlu1 %362  ;;  %v361_v8 = vpop.permute.xlu0 %360 }
  0xac   : > { %v370_v9 = vadd.f32 %v363_v7, %v355_v6  ;;  %v369_v10 = vadd.f32 %v361_v8, %v354_v5 }
  0xae   : > { %v373_v12 = vsub.f32 0.0, %v370_v9  ;;  %v372_v13 = vsub.f32 0.0, %v369_v10 }
  0xb0   : > { %v383_v14 = vmul.f32 %v381_v60, %v373_v12  ;;  %v382_v15 = vmul.f32 %v381_v60, %v372_v13 }
  0xb2   : > { %388 = vst.msk [vmem:[%s591_s20 + $0x7] sm:$0xff] %vm387_vm6, %v383_v14 }
  0xb3   : > { %386 = vst.msk [vmem:[%s591_s20 - $0x1] sm:$0xfe] %vm385_vm7, %v382_v15 }
  0xb4 PF: > { %s13_s12 = sadd.s32 1, %s549_s12  }
  0xb5   : > { %p10_p10 = scmp.ge.s32.totalorder %s13_s12, 12  }
  0xb7   :  { %12 = sbr.rel (!%p10_p10) target bundleno = 1 (0x1), region = 78 }

// kernel: ai4urban_forward.12
= control target key start
LH: loop header
LB: loop body
LE: loop exit
PB: predicated region body
PF: predicated region fallthrough
CT: control target
= control target key end

     0   :  { %s1559_s21 = smov 0   ;;  %s2172_s0 = inlined_call_operand.vmem [shape: f32[10,18,18], index: 0, kind: input, shape index: {}]   ;;  %s2173_s1 = inlined_call_operand.vmem [shape: f32[10,18,18], index: 1, kind: input, shape index: {}]   ;;  %s2174_s2 = inlined_call_operand.vmem [shape: f32[10,18,18], index: 2, kind: input, shape index: {}]   ;;  %s2175_s3 = inlined_call_operand.vmem [shape: f32[8,16,16], index: 3, kind: input, shape index: {}]   ;;  %s2176_s4 = inlined_call_operand.vmem [shape: f32[8,16,16], index: 4, kind: output, shape index: {0}]   ;;  %s2177_s5 = inlined_call_operand.vmem [shape: f32[8,16,16], index: 5, kind: output, shape index: {1}]   ;;  %s2178_s6 = inlined_call_operand.vmem [shape: f32[8,16,16], index: 6, kind: output, shape index: {2}]  }
   0x1 LB: > { %s1565_s22 = sadd.s32 4294967295, %s1519_s21   ;;  %p1418_p0 = scmp.ge.s32.totalorder %s1519_s21, 1  ;;  %s1519_s21 = sphi %s1559_s21, %s17_s21  }
   0x2   : > { %p277_p1 = scmp.lt.s32.totalorder %s1519_s21, 11 }
   0x4   : > { %p278_p2 = pnand %p1418_p0, %p277_p1 }
   0x5   : > { %s1422_s23 = sadd.s32 (!%p278_p2), 4294967294, %s1565_s22  ;;  %s404_s24 = ssub.s32 (!%p278_p2), 0, %s1565_s22 }
   0x6   : > { %281 = sbr.rel (%p278_p2) target bundleno = 511 (0x1ff), region = 36  ;;  %p360_p3 = scmp.gt.s32.totalorder (!%p278_p2), %s1422_s23, 0 }
   0x7   : > { %p1423_p4 = scmp.lt.s32.totalorder (!%p278_p2), %s1422_s23, 7  ;;  %s1454_s26 = smin.u32 (!%p278_p2), %s1565_s22, %s404_s24 }
   0x8   : > { %p344_p5 = scmp.lt.s32.totalorder (!%p278_p2), %s1565_s22, 9  ;;  %1486 = sdivrem.u32 (!%p278_p2), %s1454_s26, 3 }
   0x9   : > { %p403_p6 = scmp.lt.s32.totalorder (!%p278_p2), %s1565_s22, 0  ;;  %p1455_p7 = scmp.lt.s32.totalorder (!%p278_p2), %s1565_s22, 2 }
   0xb   : > { %s2194_s23 = smov (!%p360_p3, %s1422_s23), 0  ;;  %vm421_vm0 = vcmask 146432   ;;  %vm424_vm1 = vcmask 140288  }
   0xc   : > { %s2196_s23 = smov (!%p1423_p4, %s2194_s23), 7 }
   0xd   : > { %s1462_s25 = sshll.u32 %s2196_s23, 4 }
   0xe   : > { %s1575_s29 = scalar_lea.vmem %s2175_s3, %s1462_s25  ;;  %s1580_s8 = scalar_lea.vmem %s2176_s4, %s1462_s25 }
   0xf   : > { %s1585_s11 = scalar_lea.vmem %s2177_s5, %s1462_s25  ;;  %s1590_s14 = scalar_lea.vmem %s2178_s6, %s1462_s25 }
  0x10   : > { %s345_s15 = scalar_select %p344_p5, %s1565_s22, 9 }
  0x11   : > { %s1487_s17 = spop.drf %1486 }
  0x12   : > { %s1472_s16 = smul.u32 24, %s345_s15  ;;  %s1488_s18 = spop.drf %1486 }
  0x13   : > { %s408_s24 = ssub.s32 0, %s1488_s18  ;;  %s446_s15 = sadd.s32 (!%p1455_p7), 2, %s1565_s22 }
  0x14   : > { %s348_s23 = scalar_lea.vmem %s2172_s0, %s1472_s16  ;;  %s2198_s24 = smov (!%p403_p6, %s408_s24), %s1488_s18 }
  0x15   : > { %v1598_v0 = vld [vmem:[%s348_s23] sm:$0xff]  ;;  %s419_s27 = smul.u32 24, %s2198_s24  ;;  %s353_s30 = scalar_lea.vmem %s2173_s1, %s1472_s16  ;;  %v1603_v1 = vld [vmem:[%s348_s23 + $0x8] sm:$0xff]  ;;  %v1605_v2 = vld [vmem:[%s348_s23 + $0x10] sm:$0x3] }
  0x16   : > { %v1609_v3 = vld [vmem:[%s353_s30] sm:$0xff]  ;;  %s358_s10 = scalar_lea.vmem %s2174_s2, %s1472_s16  ;;  %v1616_v4 = vld [vmem:[%s353_s30 + $0x8] sm:$0xff]  ;;  %v1620_v5 = vld [vmem:[%s353_s30 + $0x10] sm:$0x3]  ;;  %s448_s16 = ssub.s32 (!%p1455_p7), 0, %s446_s15 }
  0x17   : > { %s420_s26 = scalar_lea.vmem [#allocation2], %s419_s27  ;;  %s426_s12 = scalar_lea.vmem [#allocation3], %s419_s27  ;;  %v1624_v6 = vld [vmem:[%s358_s10] sm:$0xff]  ;;  %v1628_v7 = vld [vmem:[%s358_s10 + $0x8] sm:$0xff]  ;;  %v1632_v8 = vld [vmem:[%s358_s10 + $0x10] sm:$0x3] }
  0x18   : > { %422 = vst.msk [vmem:[%s420_s26] sm:$0xff] %vm421_vm0, %v1598_v0  ;;  %s430_s13 = scalar_lea.vmem [#allocation4], %s419_s27  ;;  %s1457_s17 = smin.u32 (!%p1455_p7), %s448_s16, %s446_s15 }
  0x19   : > { %423 = vst.msk [vmem:[%s420_s26 + $0x8] sm:$0xff] %vm421_vm0, %v1603_v1  ;;  %1489 = sdivrem.u32 (!%p1455_p7), %s1457_s17, 3  ;;  %s1643_s18 = sadd.s32 (!%p1455_p7), 1, %s1565_s22 }
  0x1a   : > { %425 = vst.msk [vmem:[%s420_s26 + $0x10] sm:$0x3] %vm424_vm1, %v1605_v2  ;;  %s440_s19 = ssub.s32 (!%p1455_p7), 0, %s1643_s18  ;;  %p447_p8 = scmp.lt.s32.totalorder (!%p1455_p7), %s446_s15, 0 }
  0x1b   : > { %427 = vst.msk [vmem:[%s426_s12] sm:$0xff] %vm421_vm0, %v1609_v3  ;;  %s1456_s20 = smin.u32 (!%p1455_p7), %s440_s19, %s1643_s18  ;;  %s1521_s22 = smov (!%p1455_p7), 1  }
  0x1c   : > { %428 = vst.msk [vmem:[%s426_s12 + $0x8] sm:$0xff] %vm421_vm0, %v1616_v4  ;;  %437 = sbr.rel (%p1455_p7) target bundleno = 511 (0x1ff), region = 40  ;;  %s1522_s26 = smov (!%p1455_p7), 127  }
  0x1d   : > { %429 = vst.msk [vmem:[%s426_s12 + $0x10] sm:$0x3] %vm424_vm1, %v1620_v5  ;;  %1492 = sdivrem.u32 (!%p1455_p7), %s1456_s20, 3  ;;  %p439_p9 = scmp.lt.s32.totalorder (!%p1455_p7), %s1643_s18, 0 }
  0x1e   : > { %431 = vst.msk [vmem:[%s430_s13] sm:$0xff] %vm421_vm0, %v1624_v6  ;;  %s1523_s10 = smov (!%p1455_p7), 126  }
  0x1f   : > { %432 = vst.msk [vmem:[%s430_s13 + $0x8] sm:$0xff] %vm421_vm0, %v1628_v7 }
  0x20   : > { %433 = vst.msk [vmem:[%s430_s13 + $0x10] sm:$0x3] %vm424_vm1, %v1632_v8 }
  0x21   : > { %vm518_vm2 = vcmask 1045504   ;;  %vm539_vm3 = vcmask 1040384   ;;  %v533_v29 = vmul.f32 0.5, %v1605_v2  ;;  %v531_v31 = vmul.f32 0.5, %v1598_v0 }
  0x22   : > { %s1490_s23 = spop.drf %1489  ;;  %v532_v38 = vmul.f32 0.5, %v1603_v1  ;;  %vm580_vm4 = vcmask 1046528  }
  0x23   : > { %s1491_s24 = spop.drf %1489 }
  0x24   : > { %s452_s27 = ssub.s32 0, %s1491_s24 }
  0x25   : > { %s2200_s27 = smov (!%p447_p8, %s452_s27), %s1491_s24 }
  0x26   : > { %s1493_s28 = spop.drf %1492  ;;  %s1647_s25 = smul.u32 24, %s2200_s27 }
  0x27   : > { %s1494_s7 = spop.drf %1492 }
  0x28   : > { %s460_s30 = scalar_lea.vmem [#allocation2], %s1647_s25  ;;  %s444_s9 = ssub.s32 0, %s1494_s7 }
  0x29   : > { %v1650_v9 = vld [vmem:[%s460_s30 + $0x8] sm:$0xff]  ;;  %v1652_v10 = vld [vmem:[%s460_s30] sm:$0xff]  ;;  %v1654_v11 = vld [vmem:[%s460_s30 + $0x10] sm:$0x3]  ;;  %s2202_s9 = smov (!%p439_p9, %s444_s9), %s1494_s7  ;;  %s468_s15 = scalar_lea.vmem [#allocation3], %s1647_s25 }
  0x2a   : > { %552 = vrot.lane.b32.xlu2 %v1650_v9, %s1521_s22  ;;  %568 = vrot.lane.b32.xlu0 %v1652_v10, %s1522_s26  ;;  %v500_v12 = vmul.f32 0.5, %v1652_v10  ;;  %v502_v13 = vmul.f32 0.5, %v1654_v11  ;;  %v501_v14 = vmul.f32 0.5, %v1650_v9  ;;  %v1674_v20 = vmul.f32 -0.5, %v1650_v9  ;;  %s1679_s12 = smul.u32 24, %s2202_s9  ;;  %v1716_v55 = vld [vmem:[%s468_s15 + $0x8] sm:$0xff] }
  0x2b   : > { %550 = vrot.lane.b32.xlu1 %v1652_v10, %s1521_s22  ;;  %v1677_v21 = vmul.f32 -0.5, %v1652_v10  ;;  %v540_v35 = vrot.slane %v1652_v10, 7  ;;  %v541_v36 = vrot.slane %v1650_v9, 7  ;;  %v584_v45 = vrot.slane %v1654_v11, 1  ;;  %v1718_v56 = vld [vmem:[%s468_s15] sm:$0xff]  ;;  %s476_s16 = scalar_lea.vmem [#allocation4], %s1647_s25 }
  0x2c   : > { %v519_v15 = vrot.slane %v500_v12, 2  ;;  %v522_v16 = vrot.slane %v502_v13, 2  ;;  %v520_v17 = vrot.slane %v501_v14, 2  ;;  %s455_s13 = scalar_lea.vmem [#allocation2], %s1679_s12  ;;  %v582_v46 = vrot.slane %v1650_v9, 1  ;;  %s464_s17 = scalar_lea.vmem [#allocation3], %s1679_s12 }
  0x2d   : > { %v458_v26 = vld [vmem:[%s455_s13 + $0x10] sm:$0x3]  ;;  %v456_v27 = vld [vmem:[%s455_s13] sm:$0xff]  ;;  %v457_v34 = vld [vmem:[%s455_s13 + $0x8] sm:$0xff]  ;;  %v542_v39 = vsel %vm539_vm3, %v540_v35, %v541_v36  ;;  %v581_v49 = vrot.slane %v1652_v10, 1  ;;  %v734_v58 = vmul.f32 0.5, %v1716_v55 }
  0x2e   : > { %v523_v18 = vsel %vm518_vm2, %v520_v17, %v522_v16  ;;  %v521_v19 = vsel %vm518_vm2, %v519_v15, %v520_v17  ;;  %v530_v28 = vmul.f32 -0.5, %v458_v26  ;;  %v528_v30 = vmul.f32 -0.5, %v456_v27  ;;  %v1720_v57 = vld [vmem:[%s468_s15 + $0x10] sm:$0x3]  ;;  %s472_s18 = scalar_lea.vmem [#allocation4], %s1679_s12 }
  0x2f   : > { %v527_v22 = vadd.f32 %v523_v18, %v1674_v20  ;;  %v526_v23 = vadd.f32 %v521_v19, %v1677_v21  ;;  %v529_v37 = vmul.f32 -0.5, %v457_v34  ;;  %v1694_v40 = vadd.f32 %v541_v36, %v458_v26 }
  0x30   : > { %v536_v41 = vadd.f32 %v533_v29, %v530_v28  ;;  %v534_v42 = vadd.f32 %v531_v31, %v528_v30  ;;  %v1696_v43 = vadd.f32 %v542_v39, %v457_v34  ;;  %v1703_v47 = vadd.f32 %v540_v35, %v456_v27 }
  0x31   : > { %v611_v24 = vand.u32 2147483647, %v527_v22  ;;  %v610_v25 = vand.u32 2147483647, %v526_v23  ;;  %v535_v48 = vadd.f32 %v532_v38, %v529_v37  ;;  %v1710_v50 = vsel %vm580_vm4, %v582_v46, %v584_v45 }
  0x32   : > { %554 = vrot.lane.b32.xlu2 %v1654_v11, %s1521_s22  ;;  %506 = vrot.lane.b32.xlu0 %v500_v12, %s1523_s10  ;;  %v1713_v51 = vsel %vm580_vm4, %v581_v49, %v582_v46  ;;  %v631_v52 = vand.u32 2147483647, %v536_v41  ;;  %v629_v53 = vand.u32 2147483647, %v534_v42  ;;  %v733_v59 = vmul.f32 0.5, %v1718_v56  ;;  %v1729_v12 = vld [vmem:[%s476_s16 + $0x8] sm:$0xff] }
  0x33   : > { %570 = vrot.lane.b32.xlu1 %v1650_v9, %s1522_s26  ;;  %v615_v32 = vrot.slane %v611_v24, 7  ;;  %v614_v33 = vrot.slane %v610_v25, 7  ;;  %v630_v54 = vand.u32 2147483647, %v535_v48  ;;  %v735_v60 = vmul.f32 0.5, %v1720_v57  ;;  %v1769_v48 = vld [vmem:[%s464_s17 + $0x8] sm:$0xff] }
  0x34   : > { %v752_v61 = vrot.slane %v734_v58, 2  ;;  %v751_v62 = vrot.slane %v733_v59, 2  ;;  %v947_v15 = vmul.f32 0.5, %v1729_v12  ;;  %v1744_v22 = vmul.f32 -0.5, %v1718_v56 }
  0x35   : > { %v616_v44 = vsel %vm539_vm3, %v614_v33, %v615_v32  ;;  %v754_v63 = vrot.slane %v735_v60, 2  ;;  %v1747_v23 = vmul.f32 -0.5, %v1716_v55  ;;  %v1760_v34 = vmul.f32 -0.5, %v1729_v12 }
  0x36   : > { %v753_v18 = vsel %vm518_vm2, %v751_v62, %v752_v61  ;;  %v965_v26 = vrot.slane %v947_v15, 2  ;;  %v761_v49 = vmul.f32 -0.5, %v1769_v48  ;;  %v763_v62 = vmul.f32 0.5, %v1609_v3 }
  0x37   : > { %v755_v19 = vsel %vm518_vm2, %v752_v61, %v754_v63  ;;  %v758_v24 = vadd.f32 %v753_v18, %v1744_v22 }
  0x38   : > { %v759_v25 = vadd.f32 %v755_v19, %v1747_v23 }
  0x39   : > { %v837_v29 = vand.u32 2147483647, %v758_v24  ;;  %v1789_v24 = vld [vmem:[%s472_s18 + $0x10] sm:$0x3] }
  0x3a   : > { %572 = vrot.lane.b32.xlu2 %v1654_v11, %s1522_s26  ;;  %508 = vrot.lane.b32.xlu0 %v501_v14, %s1523_s10  ;;  %v1733_v14 = vld [vmem:[%s476_s16 + $0x10] sm:$0x3]  ;;  %v838_v30 = vand.u32 2147483647, %v759_v25 }
  0x3b   : > { %510 = vrot.lane.b32.xlu1 %v502_v13, %s1523_s10  ;;  %v1731_v13 = vld [vmem:[%s476_s16] sm:$0xff]  ;;  %v948_v17 = vmul.f32 0.5, %v1733_v14  ;;  %v841_v35 = vrot.slane %v837_v29, 7  ;;  %v978_v29 = vmul.f32 0.5, %v1632_v8 }
  0x3c   : > { %v946_v16 = vmul.f32 0.5, %v1731_v13  ;;  %v842_v36 = vrot.slane %v838_v30, 7 }
  0x3d   : > { %v967_v28 = vrot.slane %v948_v17, 2 }
  0x3e   : > { %v964_v27 = vrot.slane %v946_v16, 2  ;;  %v843_v39 = vsel %vm539_vm3, %v841_v35, %v842_v36 }
  0x40   : > { %v966_v31 = vsel %vm518_vm2, %v964_v27, %v965_v26  ;;  %v1792_v27 = vld [vmem:[%s472_s18] sm:$0xff] }
  0x42   : > { %621 = vrot.lane.b32.xlu2 %v615_v32, %s1522_s26  ;;  %617 = vrot.lane.b32.xlu0 %v614_v33, %s1522_s26  ;;  %v968_v32 = vsel %vm518_vm2, %v965_v26, %v967_v28  ;;  %v1757_v33 = vmul.f32 -0.5, %v1731_v13  ;;  %v977_v26 = vmul.f32 0.5, %v1628_v7  ;;  %v975_v28 = vmul.f32 -0.5, %v1789_v24 }
  0x43   : > { %619 = vrot.lane.b32.xlu1 %v616_v44, %s1522_s26  ;;  %v972_v38 = vadd.f32 %v968_v32, %v1760_v34  ;;  %v976_v32 = vmul.f32 0.5, %v1624_v6 }
  0x44   : > { %v971_v37 = vadd.f32 %v966_v31, %v1757_v33  ;;  %v973_v31 = vmul.f32 -0.5, %v1792_v27 }
  0x45   : > { %v1051_v42 = vand.u32 2147483647, %v972_v38 }
  0x46   : > { %v1050_v41 = vand.u32 2147483647, %v971_v37  ;;  %v979_v37 = vadd.f32 %v976_v32, %v973_v31  ;;  %v485_v31 = vand.u32 2147483647, %v1718_v56 }
  0x47   : > { %v1055_v46 = vrot.slane %v1051_v42, 7 }
  0x48   : > { %v1054_v44 = vrot.slane %v1050_v41, 7  ;;  %v1069_v41 = vand.u32 2147483647, %v979_v37  ;;  %v486_v37 = vand.u32 2147483647, %v1716_v55 }
  0x4a   : > { %639 = vrot.lane.b32.xlu2 %v631_v52, %s1522_s26  ;;  %635 = vrot.lane.b32.xlu0 %v629_v53, %s1522_s26  ;;  %v764_v52 = vmul.f32 0.5, %v1616_v4  ;;  %v1773_v53 = vld [vmem:[%s464_s17 + $0x10] sm:$0x3] }
  0x4b   : > { %637 = vrot.lane.b32.xlu1 %v630_v54, %s1522_s26  ;;  %v1775_v54 = vld [vmem:[%s464_s17] sm:$0xff] }
  0x4c   : > { %v760_v61 = vmul.f32 -0.5, %v1775_v54  ;;  %v767_v63 = vadd.f32 %v764_v52, %v761_v49 }
  0x4e   : > { %v857_v18 = vand.u32 2147483647, %v767_v63  ;;  %v493_v63 = vand.u32 2147483647, %v1733_v14 }
  0x52   : > { %741 = vrot.lane.b32.xlu2 %v734_v58, %s1523_s10  ;;  %743 = vrot.lane.b32.xlu0 %v735_v60, %s1523_s10  ;;  %v762_v58 = vmul.f32 -0.5, %v1773_v53  ;;  %v1056_v60 = vsel %vm539_vm3, %v1054_v44, %v1055_v46 }
  0x53   : > { %739 = vrot.lane.b32.xlu1 %v733_v59, %s1523_s10  ;;  %v765_v59 = vmul.f32 0.5, %v1620_v5 }
  0x5a   : > { %954 = vrot.lane.b32.xlu2 %v947_v15, %s1523_s10  ;;  %956 = vrot.lane.b32.xlu0 %v948_v17, %s1523_s10  ;;  %v768_v15 = vadd.f32 %v765_v59, %v762_v58  ;;  %v1786_v17 = vld [vmem:[%s472_s18 + $0x8] sm:$0xff]  ;;  %v484_v59 = vand.u32 2147483647, %v1654_v11 }
  0x5b   : > { %952 = vrot.lane.b32.xlu1 %v946_v16, %s1523_s10  ;;  %v766_v16 = vadd.f32 %v763_v62, %v760_v61  ;;  %v974_v19 = vmul.f32 -0.5, %v1786_v17 }
  0x5c   : > { %v858_v25 = vand.u32 2147483647, %v768_v15 }
  0x5d   : > { %v856_v30 = vand.u32 2147483647, %v766_v16 }
  0x62   : > { %846 = vrot.lane.b32.xlu2 %v843_v39, %s1522_s26  ;;  %848 = vrot.lane.b32.xlu0 %v842_v36, %s1522_s26  ;;  %v981_v36 = vadd.f32 %v978_v29, %v975_v28 }
  0x63   : > { %844 = vrot.lane.b32.xlu1 %v841_v35, %s1522_s26  ;;  %v980_v35 = vadd.f32 %v977_v26, %v974_v19 }
  0x64   : > { %v1071_v39 = vand.u32 2147483647, %v981_v36  ;;  %v562_v36 = vmul.f32 -6.0, %v1652_v10 }
  0x65   : > { %v1070_v38 = vand.u32 2147483647, %v980_v35 }
  0x6a   : > { %1059 = vrot.lane.b32.xlu2 %v1056_v60, %s1522_s26  ;;  %1061 = vrot.lane.b32.xlu0 %v1055_v46, %s1522_s26  ;;  %v563_v46 = vmul.f32 -6.0, %v1650_v9  ;;  %v487_v60 = vand.u32 2147483647, %v1720_v57 }
  0x6b   : > { %1057 = vrot.lane.b32.xlu1 %v1054_v44, %s1522_s26 }
  0x6c   : > { %v490_v62 = vadd.f32 %v487_v60, %v484_v59 }
  0x6e   : > { %v496_v15 = vadd.f32 %v493_v63, %v490_v62 }
  0x70   : > { %v1831_v19 = vmul.f32 0.33333334, %v496_v15  ;;  %v499_v15 = vmul.f32 -0.5, %v1654_v11 }
  0x72   : > { %864 = vrot.lane.b32.xlu2 %v857_v18, %s1522_s26  ;;  %866 = vrot.lane.b32.xlu0 %v858_v25, %s1522_s26 }
  0x73   : > { %862 = vrot.lane.b32.xlu1 %v856_v30, %s1522_s26  ;;  %v482_v30 = vand.u32 2147483647, %v1652_v10 }
  0x7a   : > { %1077 = vrot.lane.b32.xlu2 %v1070_v38, %s1522_s26  ;;  %1079 = vrot.lane.b32.xlu0 %v1071_v39, %s1522_s26 }
  0x7b   : > { %1075 = vrot.lane.b32.xlu1 %v1069_v41, %s1522_s26 }
  0x82   : > { %785 = vrot.lane.b32.xlu2 %v1720_v57, %s1521_s22  ;;  %781 = vrot.lane.b32.xlu0 %v1718_v56, %s1521_s22 }
  0x83   : > { %783 = vrot.lane.b32.xlu1 %v1716_v55, %s1521_s22 }
  0x84   : > { %v553_v42 = vpop.permute.xlu2 %552 }
  0x85   : > { %v560_v44 = vadd.f32 %v553_v42, %v1696_v43  ;;  %v564_v43 = vmul.f32 -6.0, %v1654_v11  ;;  %v491_v42 = vand.u32 2147483647, %v1731_v13 }
  0x87   : > { %v566_v49 = vadd.f32 %v563_v46, %v560_v44  ;;  %v492_v46 = vand.u32 2147483647, %v1729_v12 }
  0x8a   : > { %998 = vrot.lane.b32.xlu2 %v1733_v14, %s1521_s22  ;;  %994 = vrot.lane.b32.xlu0 %v1731_v13, %s1521_s22 }
  0x8b   : > { %996 = vrot.lane.b32.xlu1 %v1729_v12, %s1521_s22 }
  0x8c   : > { %v555_v52 = vpop.permute.xlu2 %554 }
  0x8d   : > { %v561_v58 = vadd.f32 %v555_v52, %v1694_v40 }
  0x8f   : > { %v567_v61 = vadd.f32 %v564_v43, %v561_v58 }
  0x92   : > { %803 = vrot.lane.b32.xlu2 %v1720_v57, %s1522_s26  ;;  %799 = vrot.lane.b32.xlu0 %v1718_v56, %s1522_s26 }
  0x93   : > { %801 = vrot.lane.b32.xlu1 %v1716_v55, %s1522_s26 }
  0x94   : > { %v573_v40 = vpop.permute.xlu2 %572 }
  0x95   : > { %v579_v16 = vadd.f32 %v573_v40, %v567_v61 }
  0x97   : > { %v591_v18 = vadd.f32 %v584_v45, %v579_v16  ;;  %v483_v45 = vand.u32 2147483647, %v1650_v9 }
  0x99   : > { %v594_v25 = vadd.f32 %v591_v18, %v1605_v2  ;;  %v488_v2 = vadd.f32 %v485_v31, %v482_v30  ;;  %v489_v41 = vadd.f32 %v486_v37, %v483_v45 }
  0x9b   : > { %v1835_v26 = vmul.f32 %v1831_v19, %v594_v25  ;;  %v494_v59 = vadd.f32 %v491_v42, %v488_v2  ;;  %v495_v60 = vadd.f32 %v492_v46, %v489_v41 }
  0x9c   : > { %v622_v28 = vpop.permute.xlu2 %621  ;;  %v569_v29 = vpop.permute.xlu0 %568 }
  0x9d   : > { %v551_v32 = vpop.permute.xlu1 %550  ;;  %v1848_v61 = vmul.f32 0.33333334, %v494_v59  ;;  %v1850_v62 = vmul.f32 0.33333334, %v495_v60 }
  0x9e   : > { %v559_v35 = vadd.f32 %v551_v32, %v1703_v47 }
  0xa0   : > { %v565_v38 = vadd.f32 %v562_v36, %v559_v35 }
  0xa2   : > { %v577_v39 = vadd.f32 %v569_v29, %v565_v38 }
  0xa4   : > { %v589_v44 = vadd.f32 %v1713_v51, %v577_v39  ;;  %v507_v52 = vpop.permute.xlu0 %506  ;;  %v640_v58 = vpop.permute.xlu2 %639 }
  0xa5   : > { %v571_v47 = vpop.permute.xlu1 %570  ;;  %v515_v32 = vadd.f32 %v507_v52, %v1677_v21 }
  0xa6   : > { %v592_v10 = vadd.f32 %v589_v44, %v1598_v0  ;;  %v578_v9 = vadd.f32 %v571_v47, %v566_v49 }
  0xa7   : > { %v607_v37 = vand.u32 2147483647, %v515_v32 }
  0xa8   : > { %v590_v43 = vadd.f32 %v1710_v50, %v578_v9  ;;  %v1854_v51 = vmul.f32 %v1848_v61, %v592_v10 }
  0xaa   : > { %v593_v63 = vadd.f32 %v590_v43, %v1603_v1 }
  0xac   : > { %v1857_v40 = vmul.f32 %v1850_v62, %v593_v63  ;;  %v509_v16 = vpop.permute.xlu0 %508  ;;  %v742_v0 = vpop.permute.xlu2 %741 }
  0xad   : > { %v511_v18 = vpop.permute.xlu1 %510  ;;  %v516_v35 = vadd.f32 %v509_v16, %v1674_v20  ;;  %v749_v47 = vadd.f32 %v742_v0, %v1747_v23 }
  0xae   : > { %v517_v49 = vadd.f32 %v511_v18, %v499_v15 }
  0xaf   : > { %v608_v38 = vand.u32 2147483647, %v516_v35  ;;  %v835_v60 = vand.u32 2147483647, %v749_v47 }
  0xb0   : > { %v609_v25 = vand.u32 2147483647, %v517_v49 }
  0xb2   : > { %v628_v50 = vadd.f32 %v622_v28, %v609_v25 }
  0xb4   : > { %v618_v29 = vpop.permute.xlu0 %617  ;;  %v955_v30 = vpop.permute.xlu2 %954  ;;  %v646_v31 = vadd.f32 %v640_v58, %v628_v50 }
  0xb5   : > { %v620_v1 = vpop.permute.xlu1 %619  ;;  %v626_v11 = vadd.f32 %v618_v29, %v607_v37  ;;  %v962_v15 = vadd.f32 %v955_v30, %v1760_v34 }
  0xb6   : > { %v649_v36 = vmul.f32 0.33333334, %v646_v31  ;;  %v627_v2 = vadd.f32 %v620_v1, %v608_v38 }
  0xb7   : > { %v1048_v25 = vand.u32 2147483647, %v962_v15 }
  0xb8   : > { %v652_v45 = vadd.f32 0.001, %v649_v36  ;;  %v732_v36 = vmul.f32 -0.5, %v1720_v57 }
  0xba   : > { %660 = vrot.lane.b32.xlu2 %v652_v45, %s1521_s22 }
  0xbc   : > { %v847_v39 = vpop.permute.xlu2 %846  ;;  %v636_v41 = vpop.permute.xlu0 %635 }
  0xbd   : > { %v638_v42 = vpop.permute.xlu1 %637  ;;  %v644_v28 = vadd.f32 %v636_v41, %v626_v11  ;;  %v854_v9 = vadd.f32 %v847_v39, %v835_v60  ;;  %v1875_v39 = vld [vmem:[%s1575_s29 + $0x8] sm:$0xff]  ;;  %v772_v41 = vrot.slane %v1716_v55, 7 }
  0xbe   : > { %v645_v44 = vadd.f32 %v638_v42, %v627_v2  ;;  %v1872_v2 = vld [vmem:[%s1575_s29] sm:$0xff] }
  0xbf   : > { %v647_v46 = vmul.f32 0.33333334, %v644_v28  ;;  %v945_v28 = vmul.f32 -0.5, %v1733_v14 }
  0xc0   : > { %v648_v58 = vmul.f32 0.33333334, %v645_v44 }
  0xc1   : > { %v650_v59 = vadd.f32 0.001, %v647_v46 }
  0xc2   : > { %v651_v21 = vadd.f32 0.001, %v648_v58 }
  0xc3   : > { %656 = vrot.lane.b32.xlu0 %v650_v59, %s1521_s22  ;;  %v712_v59 = vrot.slane %v1872_v2, 7 }
  0xc4   : > { %658 = vrot.lane.b32.xlu1 %v651_v21, %s1521_s22  ;;  %v1060_v20 = vpop.permute.xlu2 %1059  ;;  %v744_v52 = vpop.permute.xlu0 %743 }
  0xc5   : > { %v740_v10 = vpop.permute.xlu1 %739  ;;  %v1067_v29 = vadd.f32 %v1060_v20, %v1048_v25  ;;  %v750_v45 = vadd.f32 %v744_v52, %v732_v36 }
  0xc6   : > { %v748_v38 = vadd.f32 %v740_v10, %v1744_v22  ;;  %v713_v22 = vrot.slane %v1875_v39, 7  ;;  %v779_v10 = vadd.f32 %v772_v41, %v1773_v53 }
  0xc7   : > { %v836_v11 = vand.u32 2147483647, %v750_v45 }
  0xc8   : > { %v834_v42 = vand.u32 2147483647, %v748_v38 }
  0xcc   : > { %v865_v43 = vpop.permute.xlu2 %864  ;;  %v957_v63 = vpop.permute.xlu0 %956 }
  0xcd   : > { %v872_v16 = vadd.f32 %v865_v43, %v854_v9  ;;  %v953_v18 = vpop.permute.xlu1 %952  ;;  %v963_v20 = vadd.f32 %v957_v63, %v945_v28 }
  0xce   : > { %v961_v60 = vadd.f32 %v953_v18, %v1757_v33 }
  0xcf   : > { %v875_v49 = vmul.f32 0.33333334, %v872_v16  ;;  %v1049_v25 = vand.u32 2147483647, %v963_v20 }
  0xd1   : > { %v878_v50 = vadd.f32 0.001, %v875_v49  ;;  %v714_v49 = vsel %vm539_vm3, %v712_v59, %v713_v22 }
  0xd3   : > { %885 = vrot.lane.b32.xlu1 %v878_v50, %s1521_s22 }
  0xd4   : > { %v1078_v31 = vpop.permute.xlu2 %1077  ;;  %v849_v32 = vpop.permute.xlu0 %848 }
  0xd5   : > { %v1085_v23 = vadd.f32 %v1078_v31, %v1067_v29  ;;  %v845_v0 = vpop.permute.xlu1 %844  ;;  %v855_v44 = vadd.f32 %v849_v32, %v836_v11  ;;  %v795_v29 = vmul.f32 -6.0, %v1720_v57  ;;  %v1047_v31 = vand.u32 2147483647, %v961_v60 }
  0xd6   : > { %v853_v46 = vadd.f32 %v845_v0, %v834_v42  ;;  %v794_v60 = vmul.f32 -6.0, %v1716_v55 }
  0xd7   : > { %v1088_v1 = vmul.f32 0.33333334, %v1085_v23 }
  0xd9   : > { %v1091_v35 = vadd.f32 0.001, %v1088_v1 }
  0xdb   : > { %1098 = vrot.lane.b32.xlu1 %v1091_v35, %s1521_s22  ;;  %v814_v35 = vrot.slane %v1720_v57, 1  ;;  %v771_v57 = vrot.slane %v1718_v56, 7 }
  0xdc   : > { %v1062_v34 = vpop.permute.xlu0 %1061  ;;  %v786_v30 = vpop.permute.xlu2 %785 }
  0xdd   : > { %v1058_v37 = vpop.permute.xlu1 %1057  ;;  %v792_v15 = vadd.f32 %v786_v30, %v779_v10  ;;  %v1068_v23 = vadd.f32 %v1062_v34, %v1049_v25  ;;  %v793_v10 = vmul.f32 -6.0, %v1718_v56 }
  0xde   : > { %v1066_v63 = vadd.f32 %v1058_v37, %v1047_v31 }
  0xdf   : > { %v798_v53 = vadd.f32 %v795_v29, %v792_v15 }
  0xe3   : > { %1014 = vrot.lane.b32.xlu1 %v1729_v12, %s1522_s26 }
  0xe4   : > { %v867_v58 = vpop.permute.xlu0 %866  ;;  %v1883_v21 = vpop.permute.xlu2 %998 }
  0xe5   : > { %v863_v52 = vpop.permute.xlu1 %862  ;;  %v873_v47 = vadd.f32 %v867_v58, %v855_v44  ;;  %v773_v44 = vsel %vm539_vm3, %v771_v57, %v772_v41  ;;  %v811_v41 = vrot.slane %v1718_v56, 1 }
  0xe6   : > { %v871_v9 = vadd.f32 %v863_v52, %v853_v46  ;;  %v777_v46 = vadd.f32 %v771_v57, %v1775_v54  ;;  %v778_v20 = vadd.f32 %v773_v44, %v1769_v48  ;;  %v603_v57 = vand.u32 2147483647, %v1835_v26 }
  0xe7   : > { %v876_v43 = vmul.f32 0.33333334, %v873_v47 }
  0xe8   : > { %v874_v16 = vmul.f32 0.33333334, %v871_v9  ;;  %v812_v9 = vrot.slane %v1716_v55, 1 }
  0xe9   : > { %v879_v50 = vadd.f32 0.001, %v876_v43 }
  0xea   : > { %v877_v32 = vadd.f32 0.001, %v874_v16  ;;  %v813_v25 = vsel %vm580_vm4, %v811_v41, %v812_v9 }
  0xeb   : > { %717 = vrot.lane.b32.xlu1 %v714_v49, %s1521_s22  ;;  %887 = vrot.lane.b32.xlu2 %v879_v50, %s1521_s22  ;;  %v815_v50 = vsel %vm580_vm4, %v812_v9, %v814_v35 }
  0xec   : > { %883 = vrot.lane.b32.xlu0 %v877_v32, %s1521_s22  ;;  %v1080_v33 = vpop.permute.xlu0 %1079  ;;  %v804_v18 = vpop.permute.xlu2 %803 }
  0xed   : > { %v1076_v0 = vpop.permute.xlu1 %1075  ;;  %v1086_v1 = vadd.f32 %v1080_v33, %v1068_v23  ;;  %v810_v36 = vadd.f32 %v804_v18, %v798_v53  ;;  %v984_v18 = vrot.slane %v1731_v13, 7 }
  0xee   : > { %v1084_v30 = vadd.f32 %v1076_v0, %v1066_v63 }
  0xef   : > { %v1089_v45 = vmul.f32 0.33333334, %v1086_v1  ;;  %v821_v38 = vadd.f32 %v814_v35, %v810_v36 }
  0xf0   : > { %v1087_v11 = vmul.f32 0.33333334, %v1084_v30 }
  0xf1   : > { %v1092_v34 = vadd.f32 0.001, %v1089_v45  ;;  %v824_v2 = vadd.f32 %v821_v38, %v1620_v5 }
  0xf2   : > { %v1090_v39 = vadd.f32 0.001, %v1087_v11 }
  0xf3   : > { %1100 = vrot.lane.b32.xlu2 %v1092_v34, %s1521_s22  ;;  %v1896_v37 = vmul.f32 %v824_v2, %v1831_v19  ;;  %v1007_v2 = vmul.f32 -6.0, %v1729_v12 }
  0xf4   : > { %1096 = vrot.lane.b32.xlu0 %v1090_v39, %s1521_s22  ;;  %v782_v42 = vpop.permute.xlu0 %781  ;;  %v1025_v39 = vrot.slane %v1729_v12, 1 }
  0xf5   : > { %v784_v28 = vpop.permute.xlu1 %783  ;;  %v790_v52 = vadd.f32 %v782_v42, %v777_v46  ;;  %v1027_v42 = vrot.slane %v1733_v14, 1 }
  0xf6   : > { %v791_v47 = vadd.f32 %v784_v28, %v778_v20 }
  0xf7   : > { %v796_v43 = vadd.f32 %v793_v10, %v790_v52 }
  0xf8   : > { %v797_v54 = vadd.f32 %v794_v60, %v791_v47 }
  0xfb   : > { %1016 = vrot.lane.b32.xlu2 %v1733_v14, %s1522_s26 }
  0xfc   : > { %1012 = vrot.lane.b32.xlu0 %v1731_v13, %s1522_s26  ;;  %v1905_v5 = vpop.permute.xlu0 %994 }
  0xfd   : > { %v1908_v58 = vpop.permute.xlu1 %996 }
 0x103   : > { %719 = vrot.lane.b32.xlu2 %v713_v22, %s1521_s22 }
 0x104   : > { %715 = vrot.lane.b32.xlu0 %v712_v59, %s1521_s22  ;;  %v800_v15 = vpop.permute.xlu0 %799 }
 0x105   : > { %v802_v16 = vpop.permute.xlu1 %801  ;;  %v808_v49 = vadd.f32 %v800_v15, %v796_v43  ;;  %v1028_v43 = vsel %vm580_vm4, %v1025_v39, %v1027_v42 }
 0x106   : > { %v809_v48 = vadd.f32 %v802_v16, %v797_v54  ;;  %v830_v54 = vand.u32 2147483647, %v1896_v37 }
 0x107   : > { %v819_v29 = vadd.f32 %v813_v25, %v808_v49 }
 0x108   : > { %v820_v31 = vadd.f32 %v815_v50, %v809_v48  ;;  %v606_v50 = vmul.f32 0.1, %v603_v57 }
 0x109   : > { %v822_v55 = vadd.f32 %v819_v29, %v1609_v3  ;;  %v985_v3 = vrot.slane %v1729_v12, 7 }
 0x10a   : > { %v823_v56 = vadd.f32 %v820_v31, %v1616_v4 }
 0x10b   : > { %v1922_v22 = vmul.f32 %v822_v55, %v1848_v61  ;;  %v986_v30 = vsel %vm539_vm3, %v984_v18, %v985_v3  ;;  %v992_v38 = vadd.f32 %v985_v3, %v1789_v24  ;;  %v1008_v24 = vmul.f32 -6.0, %v1733_v14 }
 0x10c   : > { %v1925_v59 = vmul.f32 %v823_v56, %v1850_v62  ;;  %v991_v34 = vadd.f32 %v986_v30, %v1786_v17  ;;  %v602_v17 = vand.u32 2147483647, %v1857_v40 }
 0x10d   : > { %v1005_v40 = vadd.f32 %v1883_v21, %v992_v38 }
 0x10e   : > { %v1004_v15 = vadd.f32 %v1908_v58, %v991_v34  ;;  %v829_v16 = vand.u32 2147483647, %v1925_v59  ;;  %v605_v29 = vmul.f32 0.1, %v602_v17 }
 0x10f   : > { %v1011_v56 = vadd.f32 %v1008_v24, %v1005_v40 }
 0x110   : > { %v1010_v3 = vadd.f32 %v1007_v2, %v1004_v15 }
 0x114   : > { %v661_v32 = vpop.permute.xlu2 %660 }
 0x115   : > { %1495 = vrcp.f32 %v661_v32  ;;  %vm700_vm6 = vweird.f32 %v661_v32  ;;  %v706_v10 = vand.u32 2147483648, %v661_v32  ;;  %v704_v41 = vand.u32 2147483647, %v661_v32 }
 0x117   : > { %v707_v31 = vor.u32 1.1754944e-38, %v706_v10  ;;  %vm705_vm10 = vcmp.eq.f32.partialorder %v704_v41, 8.507059e+37 }
 0x11b   : > { %v1930_v53 = vpop.eup %1495 }
 0x11c   : > { %v696_v63 = vmul.f32 %v1930_v53, %v661_v32  ;;  %vm701_vm5 = vweird.f32 %v1930_v53  ;;  %v2002_v32 = vmul.f32 0.1, %v830_v54 }
 0x11d   : > { %vm1977_vm7 = vmor %vm700_vm6, %vm701_vm5 }
 0x11e   : > { %v697_v4 = vsub.f32 1.0, %v696_v63 }
 0x120   : > { %v698_v36 = vmul.f32 %v1930_v53, %v697_v4 }
 0x122   : > { %v699_v44 = vadd.f32 %v1930_v53, %v698_v36 }
 0x124   : > { %v703_v21 = vsel %vm1977_vm7, %v1930_v53, %v699_v44  ;;  %v2004_v53 = vmul.f32 0.1, %v829_v16 }
 0x125   : > { %v708_v4 = vsel %vm705_vm10, %v707_v31, %v703_v21 }
 0x135   : > { %v1950_v11 = vpop.permute.xlu0 %656 }
 0x136   : > { %v1927_v23 = vpop.permute.xlu1 %658 }
 0x137   : > { %1497 = vrcp.f32 %v1927_v23  ;;  %v691_v48 = vand.u32 2147483648, %v1927_v23  ;;  %vm685_vm9 = vweird.f32 %v1927_v23  ;;  %v689_v58 = vand.u32 2147483647, %v1927_v23 }
 0x139   : > { %v692_v36 = vor.u32 1.1754944e-38, %v691_v48  ;;  %vm690_vm12 = vcmp.eq.f32.partialorder %v689_v58, 8.507059e+37 }
 0x13d   : > { %v1933_v33 = vpop.eup %1497 }
 0x13e   : > { %v681_v0 = vmul.f32 %v1933_v33, %v1927_v23  ;;  %vm686_vm8 = vweird.f32 %v1933_v33 }
 0x13f   : > { %vm2008_vm11 = vmor %vm685_vm9, %vm686_vm8 }
 0x140   : > { %v682_v45 = vsub.f32 1.0, %v681_v0 }
 0x142   : > { %v683_v20 = vmul.f32 %v1933_v33, %v682_v45 }
 0x144   : > { %v684_v49 = vadd.f32 %v1933_v33, %v683_v20 }
 0x145   : > { %v1939_v1 = vpop.permute.xlu1 %885  ;;  %v1941_v35 = vpop.permute.xlu2 %887 }
 0x146   : > { %1499 = vrcp.f32 %v1939_v1  ;;  %v688_v34 = vsel %vm2008_vm11, %v1933_v33, %v684_v49  ;;  %v916_v20 = vand.u32 2147483647, %v1939_v1  ;;  %v933_v10 = vand.u32 2147483648, %v1941_v35 }
 0x147   : > { %1501 = vrcp.f32 %v1941_v35  ;;  %v693_v41 = vsel %vm690_vm12, %v692_v36, %v688_v34  ;;  %vm912_vm15 = vweird.f32 %v1939_v1  ;;  %vm927_vm0 = vweird.f32 %v1941_v35 }
 0x148   : > { %1503 = vrcp.f32 %v1950_v11  ;;  %v931_v14 = vand.u32 2147483647, %v1941_v35  ;;  %vm917_vm3 = vcmp.eq.f32.partialorder %v916_v20, 8.507059e+37 }
 0x14a   : > { %vm932_vm7 = vcmp.eq.f32.partialorder %v931_v14, 8.507059e+37 }
 0x14c   : > { %v1956_v28 = vpop.eup %1499 }
 0x14d   : > { %v1962_v46 = vpop.eup %1501  ;;  %v908_v52 = vmul.f32 %v1956_v28, %v1939_v1  ;;  %v1969_v47 = vpop.permute.xlu1 %1098  ;;  %vm913_vm13 = vweird.f32 %v1956_v28 }
 0x14e   : > { %v1971_v26 = vpop.permute.xlu2 %1100  ;;  %v923_v60 = vmul.f32 %v1962_v46, %v1941_v35  ;;  %1505 = vrcp.f32 %v1969_v47  ;;  %v1996_v37 = vpop.eup %1503  ;;  %vm928_vm14 = vweird.f32 %v1962_v46  ;;  %vm2041_vm1 = vmor %vm912_vm15, %vm913_vm13  ;;  %vm1125_vm5 = vweird.f32 %v1969_v47 }
 0x14f   : > { %1507 = vrcp.f32 %v1971_v26  ;;  %v909_v25 = vsub.f32 1.0, %v908_v52  ;;  %v2025_v17 = vmul.f32 %v1996_v37, %v1950_v11  ;;  %v918_v52 = vand.u32 2147483648, %v1939_v1  ;;  %vm2051_vm2 = vmor %vm927_vm0, %vm928_vm14 }
 0x150   : > { %v924_v55 = vsub.f32 1.0, %v923_v60  ;;  %v1129_v36 = vand.u32 2147483647, %v1969_v47  ;;  %vm1140_vm10 = vweird.f32 %v1971_v26  ;;  %vm671_vm14 = vweird.f32 %v1996_v37 }
 0x151   : > { %v910_v23 = vmul.f32 %v1956_v28, %v909_v25  ;;  %v919_v31 = vor.u32 1.1754944e-38, %v918_v52  ;;  %v990_v52 = vadd.f32 %v984_v18, %v1792_v27  ;;  %vm670_vm15 = vweird.f32 %v1950_v11 }
 0x152   : > { %v925_v57 = vmul.f32 %v1962_v46, %v924_v55  ;;  %vm1130_vm12 = vcmp.eq.f32.partialorder %v1129_v36, 8.507059e+37  ;;  %vm2130_vm0 = vmor %vm670_vm15, %vm671_vm14 }
 0x153   : > { %v911_v9 = vadd.f32 %v1956_v28, %v910_v23  ;;  %v1131_v23 = vand.u32 2147483648, %v1969_v47 }
 0x154   : > { %v2000_v59 = vpop.eup %1505  ;;  %v926_v54 = vadd.f32 %v1962_v46, %v925_v57 }
 0x155   : > { %v2012_v0 = vpop.eup %1507  ;;  %v1121_v30 = vmul.f32 %v2000_v59, %v1969_v47  ;;  %v1015_v45 = vpop.permute.xlu1 %1014  ;;  %v915_v35 = vsel %vm2041_vm1, %v1956_v28, %v911_v9  ;;  %vm1126_vm6 = vweird.f32 %v2000_v59 }
 0x156   : > { %v1017_v38 = vpop.permute.xlu2 %1016  ;;  %v1136_v2 = vmul.f32 %v2012_v0, %v1971_v26  ;;  %v1022_v44 = vadd.f32 %v1015_v45, %v1010_v3  ;;  %v930_v58 = vsel %vm2051_vm2, %v1962_v46, %v926_v54  ;;  %vm1141_vm8 = vweird.f32 %v2012_v0  ;;  %vm2082_vm9 = vmor %vm1125_vm5, %vm1126_vm6 }
 0x157   : > { %v1023_v24 = vadd.f32 %v1017_v38, %v1011_v56  ;;  %v1122_v60 = vsub.f32 1.0, %v1121_v30  ;;  %vm2102_vm11 = vmor %vm1140_vm10, %vm1141_vm8  ;;  %vm1172_vm10 = vcmask 122880  }
 0x158   : > { %v1033_v33 = vadd.f32 %v1028_v43, %v1022_v44  ;;  %v1137_v15 = vsub.f32 1.0, %v1136_v2  ;;  %v1146_v2 = vand.u32 2147483648, %v1971_v26 }
 0x159   : > { %v1034_v40 = vadd.f32 %v1027_v42, %v1023_v24  ;;  %v709_v42 = vmul.f32 %v708_v4, %v606_v50  ;;  %v1123_v49 = vmul.f32 %v2000_v59, %v1122_v60  ;;  %v920_v4 = vsel %vm917_vm3, %v919_v31, %v915_v35 }
 0x15a   : > { %v1036_v16 = vadd.f32 %v1033_v33, %v1628_v7  ;;  %v694_v7 = vmul.f32 %v693_v41, %v605_v29  ;;  %v1138_v29 = vmul.f32 %v2012_v0, %v1137_v15  ;;  %v921_v44 = vmul.f32 %v920_v4, %v2004_v53 }
 0x15b   : > { %v1037_v21 = vadd.f32 %v1034_v40, %v1632_v8  ;;  %v667_v8 = vsub.f32 1.0, %v2025_v17  ;;  %v1124_v63 = vadd.f32 %v2000_v59, %v1123_v49  ;;  %v1144_v24 = vand.u32 2147483647, %v1971_v26 }
 0x15c   : > { %v1039_v48 = vmul.f32 %v1036_v16, %v1850_v62  ;;  %v1139_v45 = vadd.f32 %v2012_v0, %v1138_v29  ;;  %v1132_v53 = vor.u32 1.1754944e-38, %v1131_v23  ;;  %v1147_v40 = vor.u32 1.1754944e-38, %v1146_v2 }
 0x15d   : > { %v1040_v25 = vmul.f32 %v1037_v21, %v1831_v19  ;;  %v2058_v50 = vpop.permute.xlu1 %717  ;;  %v934_v19 = vor.u32 1.1754944e-38, %v933_v10  ;;  %v1128_v20 = vsel %vm2082_vm9, %v2000_v59, %v1124_v63  ;;  %v668_v10 = vmul.f32 %v1996_v37, %v667_v8 }
 0x15e   : > { %v2060_v62 = vpop.permute.xlu2 %719  ;;  %v725_v55 = vmin.f32 %v694_v7, %v2058_v50  ;;  %v2067_v56 = vpop.permute.xlu0 %883  ;;  %v1042_v3 = vand.u32 2147483647, %v1039_v48  ;;  %v938_v60 = vmin.f32 %v921_v44, %v2058_v50  ;;  %v1143_v33 = vsel %vm2102_vm11, %v2012_v0, %v1139_v45 }
 0x15f   : > { %v726_v28 = vmin.f32 %v709_v42, %v2060_v62  ;;  %1509 = vrcp.f32 %v2067_v56  ;;  %v935_v46 = vsel %vm932_vm7, %v934_v19, %v930_v58  ;;  %v1043_v38 = vand.u32 2147483647, %v1040_v25 }
 0x160   : > { %v728_v30 = vmul.f32 0.9756098, %v725_v55  ;;  %v1045_v17 = vmul.f32 0.1, %v1042_v3  ;;  %v936_v47 = vmul.f32 %v935_v46, %v2002_v32  ;;  %v1133_v9 = vsel %vm1130_vm12, %v1132_v53, %v1128_v20 }
 0x161   : > { %v729_v34 = vmul.f32 0.9756098, %v726_v28  ;;  %v1046_v32 = vmul.f32 0.1, %v1043_v38  ;;  %vm1145_vm13 = vcmp.eq.f32.partialorder %v1144_v24, 8.507059e+37  ;;  %v1003_v15 = vadd.f32 %v1905_v5, %v990_v52 }
 0x162   : > { %1161 = vrot.lane.b32.xlu1 %v728_v30, %s1522_s26  ;;  %v939_v27 = vmin.f32 %v936_v47, %v2060_v62  ;;  %v1134_v54 = vmul.f32 %v1133_v9, %v1045_v17  ;;  %v1148_v16 = vsel %vm1145_vm13, %v1147_v40, %v1143_v33  ;;  %v941_v14 = vmul.f32 0.9756098, %v938_v60 }
 0x163   : > { %1163 = vrot.lane.b32.xlu2 %v729_v34, %s1522_s26  ;;  %v1149_v42 = vmul.f32 %v1148_v16, %v1046_v32  ;;  %v669_v43 = vadd.f32 %v1996_v37, %v668_v10  ;;  %v1006_v49 = vmul.f32 -6.0, %v1731_v13  ;;  %v674_v48 = vand.u32 2147483647, %v1950_v11 }
 0x164   : > { %v942_v0 = vmul.f32 0.9756098, %v939_v27  ;;  %v676_v25 = vand.u32 2147483648, %v1950_v11  ;;  %v1151_v7 = vmin.f32 %v1134_v54, %v2058_v50  ;;  %v1024_v5 = vrot.slane %v1731_v13, 1 }
 0x165   : > { %v2107_v59 = vpop.eup %1509  ;;  %v1009_v1 = vadd.f32 %v1006_v49, %v1003_v15  ;;  %v1152_v19 = vmin.f32 %v1149_v42, %v2060_v62  ;;  %v601_v58 = vand.u32 2147483647, %v1854_v51  ;;  %v673_v13 = vsel %vm2130_vm0, %v1996_v37, %v669_v43 }
 0x166   : > { %v2113_v18 = vpop.permute.xlu0 %1096  ;;  %v893_v41 = vmul.f32 %v2107_v59, %v2067_v56  ;;  %v677_v11 = vor.u32 1.1754944e-38, %v676_v25  ;;  %v1026_v28 = vsel %vm580_vm4, %v1024_v5, %v1025_v39  ;;  %v1154_v63 = vmul.f32 0.9756098, %v1151_v7 }
 0x167   : > { %1511 = vrcp.f32 %v2113_v18  ;;  %vm675_vm1 = vcmp.eq.f32.partialorder %v674_v48, 8.507059e+37  ;;  %vm898_vm2 = vweird.f32 %v2107_v59  ;;  %v903_v36 = vand.u32 2147483648, %v2067_v56 }
 0x168   : > { %v894_v21 = vsub.f32 1.0, %v893_v41  ;;  %v1155_v51 = vmul.f32 0.9756098, %v1152_v19  ;;  %v678_v23 = vsel %vm675_vm1, %v677_v11, %v673_v13  ;;  %vm897_vm3 = vweird.f32 %v2067_v56 }
 0x169   : > { %v901_v37 = vand.u32 2147483647, %v2067_v56  ;;  %v604_v39 = vmul.f32 0.1, %v601_v58  ;;  %v828_v46 = vand.u32 2147483647, %v1922_v22  ;;  %vm899_vm4 = vmor %vm897_vm3, %vm898_vm2  ;;  %vm1110_vm7 = vweird.f32 %v2113_v18 }
 0x16a   : > { %1179 = vrot.lane.b32.xlu1 %v941_v14, %s1522_s26  ;;  %v895_v31 = vmul.f32 %v2107_v59, %v894_v21  ;;  %v904_v57 = vor.u32 1.1754944e-38, %v903_v36  ;;  %v1116_v22 = vand.u32 2147483648, %v2113_v18  ;;  %v1114_v47 = vand.u32 2147483647, %v2113_v18 }
 0x16b   : > { %1181 = vrot.lane.b32.xlu2 %v942_v0, %s1522_s26  ;;  %v679_v38 = vmul.f32 %v678_v23, %v604_v39  ;;  %vm902_vm5 = vcmp.eq.f32.partialorder %v901_v37, 8.507059e+37  ;;  %v831_v44 = vmul.f32 0.1, %v828_v46  ;;  %vm1170_vm11 = vcmask 130048  }
 0x16c   : > { %v896_v3 = vadd.f32 %v2107_v59, %v895_v31  ;;  %v1117_v26 = vor.u32 1.1754944e-38, %v1116_v22  ;;  %vm1115_vm9 = vcmp.eq.f32.partialorder %v1114_v47, 8.507059e+37  ;;  %vm1168_vm12 = vcmask 130049  }
 0x16d   : > { %v1512_v8 = vpop.eup %1511 }
 0x16e   : > { %v1106_v29 = vmul.f32 %v1512_v8, %v2113_v18  ;;  %v1013_v55 = vpop.permute.xlu0 %1012  ;;  %v900_v34 = vsel %vm899_vm4, %v2107_v59, %v896_v3  ;;  %vm1111_vm6 = vweird.f32 %v1512_v8 }
 0x16f   : > { %v1021_v50 = vadd.f32 %v1013_v55, %v1009_v1  ;;  %vm1112_vm8 = vmor %vm1110_vm7, %vm1111_vm6 }
 0x170   : > { %v1107_v62 = vsub.f32 1.0, %v1106_v29 }
 0x171   : > { %v1032_v4 = vadd.f32 %v1026_v28, %v1021_v50 }
 0x172   : > { %1194 = vrot.lane.b32.xlu1 %v1154_v63, %s1522_s26  ;;  %v1108_v30 = vmul.f32 %v1512_v8, %v1107_v62 }
 0x173   : > { %v1035_v12 = vadd.f32 %v1032_v4, %v1624_v6  ;;  %1196 = vrot.lane.b32.xlu2 %v1155_v51, %s1522_s26  ;;  %v905_v6 = vsel %vm902_vm5, %v904_v57, %v900_v34 }
 0x174   : > { %v1109_v24 = vadd.f32 %v1512_v8, %v1108_v30 }
 0x175   : > { %v1038_v45 = vmul.f32 %v1035_v12, %v1848_v61  ;;  %v906_v61 = vmul.f32 %v905_v6, %v831_v44 }
 0x176   : > { %v716_v2 = vpop.permute.xlu0 %715  ;;  %v1113_v10 = vsel %vm1112_vm8, %v1512_v8, %v1109_v24 }
 0x177   : > { %v724_v56 = vmin.f32 %v679_v38, %v716_v2  ;;  %v1041_v17 = vand.u32 2147483647, %v1038_v45  ;;  %v937_v53 = vmin.f32 %v906_v61, %v716_v2  ;;  %v1118_v60 = vsel %vm1115_vm9, %v1117_v26, %v1113_v10 }
 0x179   : > { %v727_v20 = vmul.f32 0.9756098, %v724_v56  ;;  %v1044_v52 = vmul.f32 0.1, %v1041_v17  ;;  %v940_v32 = vmul.f32 0.9756098, %v937_v53 }
 0x17b   : > { %1159 = vrot.lane.b32.xlu0 %v727_v20, %s1522_s26  ;;  %v1119_v59 = vmul.f32 %v1118_v60, %v1044_v52 }
 0x17d   : > { %v1150_v33 = vmin.f32 %v1119_v59, %v716_v2 }
 0x17f   : > { %v1153_v27 = vmul.f32 0.9756098, %v1150_v33 }
 0x183   : > { %1177 = vrot.lane.b32.xlu0 %v940_v32, %s1522_s26 }
 0x18b   : > { %1192 = vrot.lane.b32.xlu0 %v1153_v27, %s1522_s26 }
 0x1bd   : > { %v1164_v18 = vpop.permute.xlu2 %1163 }
 0x1be   : > { %1173 = vst.msk [vmem:[%s1580_s8 + $0xf] sm:$0x1] %vm1172_vm10, %v1164_v18 }
 0x1c5   : > { %v1182_v40 = vpop.permute.xlu2 %1181 }
 0x1c6   : > { %1188 = vst.msk [vmem:[%s1585_s11 + $0xf] sm:$0x1] %vm1172_vm10, %v1182_v40 }
 0x1cd   : > { %v1197_v9 = vpop.permute.xlu2 %1196 }
 0x1ce   : > { %1203 = vst.msk [vmem:[%s1590_s14 + $0xf] sm:$0x1] %vm1172_vm10, %v1197_v9 }
 0x1d4   : > { %v1162_v41 = vpop.permute.xlu1 %1161 }
 0x1d5   : > { %1171 = vst.msk [vmem:[%s1580_s8 + $0x7] sm:$0xff] %vm1170_vm11, %v1162_v41 }
 0x1dc   : > { %v1180_v54 = vpop.permute.xlu1 %1179 }
 0x1dd   : > { %1187 = vst.msk [vmem:[%s1585_s11 + $0x7] sm:$0xff] %vm1170_vm11, %v1180_v54 }
 0x1e4   : > { %v1195_v15 = vpop.permute.xlu1 %1194 }
 0x1e5   : > { %1202 = vst.msk [vmem:[%s1590_s14 + $0x7] sm:$0xff] %vm1170_vm11, %v1195_v15 }
 0x1ed   : > { %v1160_v16 = vpop.permute.xlu0 %1159 }
 0x1ee   : > { %1169 = vst.msk [vmem:[%s1580_s8 - $0x1] sm:$0xfe] %vm1168_vm12, %v1160_v16 }
 0x1f5   : > { %v1178_v21 = vpop.permute.xlu0 %1177 }
 0x1f6   : > { %1186 = vst.msk [vmem:[%s1585_s11 - $0x1] sm:$0xfe] %vm1168_vm12, %v1178_v21 }
 0x1fd   : > { %v1193_v14 = vpop.permute.xlu0 %1192 }
 0x1fe   : > { %1201 = vst.msk [vmem:[%s1590_s14 - $0x1] sm:$0xfe] %vm1168_vm12, %v1193_v14 }
 0x1ff PF: > { %s17_s21 = sadd.s32 1, %s1519_s21  }
 0x200   : > { %p14_p10 = scmp.ge.s32.totalorder %s17_s21, 12  }
 0x202   :  { %16 = sbr.rel (!%p14_p10) target bundleno = 1 (0x1), region = 112 }

// kernel: ai4urban_forward.17
= control target key start
LH: loop header
LB: loop body
LE: loop exit
PB: predicated region body
PF: predicated region fallthrough
CT: control target
= control target key end

     0   :  { %s509_s9 = smov 0   ;;  %s575_s0 = inlined_call_operand.vmem [shape: f32[10,18,18], index: 0, kind: input, shape index: {}]   ;;  %s576_s1 = inlined_call_operand.vmem [shape: f32[8,16,16], index: 1, kind: input, shape index: {}]   ;;  %s577_s2 = inlined_call_operand.vmem [shape: f32[8,16,16], index: 2, kind: output, shape index: {}]  }
   0x1 LB: > { %s515_s10 = sadd.s32 4294967295, %s490_s9   ;;  %p432_p0 = scmp.ge.s32.totalorder %s490_s9, 1  ;;  %s490_s9 = sphi %s509_s9, %s12_s9  }
   0x2   : > { %p140_p1 = scmp.lt.s32.totalorder %s490_s9, 11 }
   0x4   : > { %p141_p2 = pnand %p432_p0, %p140_p1 }
   0x5   : > { %s434_s11 = sadd.s32 (!%p141_p2), 4294967294, %s515_s10  ;;  %s201_s12 = ssub.s32 (!%p141_p2), 0, %s515_s10 }
   0x6   : > { %144 = sbr.rel (%p141_p2) target bundleno = 285 (0x11d), region = 28  ;;  %p179_p3 = scmp.gt.s32.totalorder (!%p141_p2), %s434_s11, 0 }
   0x7   : > { %p435_p4 = scmp.lt.s32.totalorder (!%p141_p2), %s434_s11, 7  ;;  %s450_s14 = smin.u32 (!%p141_p2), %s515_s10, %s201_s12 }
   0x8   : > { %p173_p5 = scmp.lt.s32.totalorder (!%p141_p2), %s515_s10, 9  ;;  %475 = sdivrem.u32 (!%p141_p2), %s450_s14, 3 }
   0x9   : > { %p200_p6 = scmp.lt.s32.totalorder (!%p141_p2), %s515_s10, 0  ;;  %p451_p7 = scmp.lt.s32.totalorder (!%p141_p2), %s515_s10, 2 }
   0xb   : > { %s579_s11 = smov (!%p179_p3, %s434_s11), 0  ;;  %vm212_vm0 = vcmask 146432   ;;  %vm215_vm1 = vcmask 140288   ;;  %s229_s3 = sadd.s32 (!%p451_p7), 2, %s515_s10 }
   0xc   : > { %s581_s11 = smov (!%p435_p4, %s579_s11), 7  ;;  %s231_s4 = ssub.s32 (!%p451_p7), 0, %s229_s3 }
   0xd   : > { %s458_s13 = sshll.u32 %s581_s11, 4  ;;  %s453_s5 = smin.u32 (!%p451_p7), %s231_s4, %s229_s3 }
   0xe   : > { %s525_s17 = scalar_lea.vmem %s576_s1, %s458_s13  ;;  %s530_s20 = scalar_lea.vmem %s577_s2, %s458_s13 }
   0xf   : > { %s174_s21 = scalar_select %p173_p5, %s515_s10, 9 }
  0x10   : > { %478 = sdivrem.u32 (!%p451_p7), %s453_s5, 3  ;;  %s221_s6 = sadd.s32 (!%p451_p7), 1, %s515_s10 }
  0x11   : > { %s462_s22 = smul.u32 24, %s174_s21  ;;  %s476_s23 = spop.drf %475 }
  0x12   : > { %s477_s24 = spop.drf %475  ;;  %s223_s7 = ssub.s32 (!%p451_p7), 0, %s221_s6 }
  0x13   : > { %s177_s27 = scalar_lea.vmem %s575_s0, %s462_s22  ;;  %s205_s28 = ssub.s32 0, %s477_s24 }
  0x14   : > { %s583_s28 = smov (!%p200_p6, %s205_s28), %s477_s24  ;;  %v538_v0 = vld [vmem:[%s177_s27] sm:$0xff]  ;;  %v540_v1 = vld [vmem:[%s177_s27 + $0x8] sm:$0xff]  ;;  %v542_v2 = vld [vmem:[%s177_s27 + $0x10] sm:$0x3]  ;;  %s452_s8 = smin.u32 (!%p451_p7), %s223_s7, %s221_s6 }
  0x15   : > { %s210_s29 = smul.u32 24, %s583_s28  ;;  %p230_p8 = scmp.lt.s32.totalorder (!%p451_p7), %s229_s3, 0 }
  0x16   : > { %220 = sbr.rel (%p451_p7) target bundleno = 285 (0x11d), region = 32  ;;  %p222_p9 = scmp.lt.s32.totalorder (!%p451_p7), %s221_s6, 0 }
  0x17   : > { %s211_s30 = scalar_lea.vmem [#allocation2], %s210_s29  ;;  %481 = sdivrem.u32 (!%p451_p7), %s452_s8, 3 }
  0x18   : > { %213 = vst.msk [vmem:[%s211_s30] sm:$0xff] %vm212_vm0, %v538_v0  ;;  %s492_s10 = smov (!%p451_p7), 1   ;;  %s493_s21 = smov (!%p451_p7), 127  }
  0x19   : > { %214 = vst.msk [vmem:[%s211_s30 + $0x8] sm:$0xff] %vm212_vm0, %v540_v1  ;;  %s479_s11 = spop.drf (!%p451_p7), %478 }
  0x1a   : > { %216 = vst.msk [vmem:[%s211_s30 + $0x10] sm:$0x3] %vm215_vm1, %v542_v2  ;;  %s480_s12 = spop.drf (!%p451_p7), %478 }
  0x1b   : > { %s235_s13 = ssub.s32 0, %s480_s12  ;;  %vm251_vm2 = vcmask 1040384   ;;  %vm292_vm3 = vcmask 1046528   ;;  %v247_v20 = vld [vmem:[%s525_s17] sm:$0xff]  ;;  %v248_v21 = vld [vmem:[%s525_s17 + $0x8] sm:$0xff]  ;;  %vm340_vm4 = vcmask 122880  }
  0x1c   : > { %s585_s13 = smov (!%p230_p8, %s235_s13), %s480_s12  ;;  %v309_v22 = vrot.slane %v247_v20, 7  ;;  %v310_v23 = vrot.slane %v248_v21, 7  ;;  %vm336_vm5 = vcmask 130049   ;;  %vm338_vm6 = vcmask 130048  }
  0x1d   : > { %s242_s15 = smul.u32 24, %s585_s13 }
  0x1e   : > { %v311_v24 = vsel %vm251_vm2, %v309_v22, %v310_v23 }
  0x1f   : > { %s243_s19 = scalar_lea.vmem [#allocation2], %s242_s15 }
  0x20   : > { %s482_s14 = spop.drf %481 }
  0x21   : > { %s483_s16 = spop.drf %481  ;;  %v246_v3 = vld [vmem:[%s243_s19 + $0x10] sm:$0x3]  ;;  %v244_v4 = vld [vmem:[%s243_s19] sm:$0xff]  ;;  %v245_v5 = vld [vmem:[%s243_s19 + $0x8] sm:$0xff] }
  0x22   : > { %s227_s18 = ssub.s32 0, %s483_s16  ;;  %266 = vrot.lane.b32.xlu1 %v246_v3, %s492_s10  ;;  %262 = vrot.lane.b32.xlu0 %v244_v4, %s492_s10  ;;  %v253_v6 = vrot.slane %v245_v5, 7  ;;  %v252_v7 = vrot.slane %v244_v4, 7  ;;  %v296_v8 = vrot.slane %v246_v3, 1  ;;  %v294_v9 = vrot.slane %v245_v5, 1 }
  0x23   : > { %s587_s18 = smov (!%p222_p9, %s227_s18), %s483_s16  ;;  %282 = vrot.lane.b32.xlu2 %v245_v5, %s493_s21  ;;  %v293_v10 = vrot.slane %v244_v4, 1  ;;  %v276_v31 = vmul.f32 -6.0, %v246_v3  ;;  %v274_v32 = vmul.f32 -6.0, %v244_v4  ;;  %v275_v41 = vmul.f32 -6.0, %v245_v5 }
  0x24   : > { %s237_s22 = smul.u32 24, %s587_s18  ;;  %v254_v11 = vsel %vm251_vm2, %v252_v7, %v253_v6  ;;  %v297_v13 = vsel %vm292_vm3, %v294_v9, %v296_v8 }
  0x25   : > { %v295_v12 = vsel %vm292_vm3, %v293_v10, %v294_v9 }
  0x26   : > { %s238_s23 = scalar_lea.vmem [#allocation2], %s237_s22 }
  0x27   : > { %v241_v14 = vld [vmem:[%s238_s23 + $0x10] sm:$0x3]  ;;  %v239_v15 = vld [vmem:[%s238_s23] sm:$0xff]  ;;  %v240_v16 = vld [vmem:[%s238_s23 + $0x8] sm:$0xff] }
  0x28   : > { %v260_v17 = vadd.f32 %v253_v6, %v241_v14  ;;  %v258_v18 = vadd.f32 %v252_v7, %v239_v15  ;;  %v259_v19 = vadd.f32 %v254_v11, %v240_v16 }
  0x2a   : > { %280 = vrot.lane.b32.xlu1 %v244_v4, %s493_s21  ;;  %264 = vrot.lane.b32.xlu0 %v245_v5, %s492_s10 }
  0x2b   : > { %284 = vrot.lane.b32.xlu2 %v246_v3, %s493_s21 }
  0x32   : > { %312 = vrot.lane.b32.xlu0 %v309_v22, %s492_s10  ;;  %314 = vrot.lane.b32.xlu1 %v311_v24, %s492_s10 }
  0x33   : > { %316 = vrot.lane.b32.xlu2 %v310_v23, %s492_s10 }
  0x7d   : > { %v283_v25 = vpop.permute.xlu2 %282 }
  0x85   : > { %v285_v26 = vpop.permute.xlu2 %284 }
  0x8d   : > { %v317_v37 = vpop.permute.xlu2 %316 }
  0x94   : > { %v267_v27 = vpop.permute.xlu1 %266  ;;  %v263_v28 = vpop.permute.xlu0 %262 }
  0x95   : > { %v273_v29 = vadd.f32 %v267_v27, %v260_v17  ;;  %v271_v30 = vadd.f32 %v263_v28, %v258_v18 }
  0x97   : > { %v279_v33 = vadd.f32 %v276_v31, %v273_v29  ;;  %v277_v34 = vadd.f32 %v274_v32, %v271_v30 }
  0x99   : > { %v291_v35 = vadd.f32 %v285_v26, %v279_v33 }
  0x9b   : > { %v303_v36 = vadd.f32 %v296_v8, %v291_v35 }
  0x9c   : > { %v281_v38 = vpop.permute.xlu1 %280  ;;  %v265_v39 = vpop.permute.xlu0 %264 }
  0x9d   : > { %v289_v40 = vadd.f32 %v281_v38, %v277_v34  ;;  %v272_v42 = vadd.f32 %v265_v39, %v259_v19  ;;  %v306_v43 = vadd.f32 %v303_v36, %v542_v2 }
  0x9f   : > { %v301_v44 = vadd.f32 %v295_v12, %v289_v40  ;;  %v278_v45 = vadd.f32 %v275_v41, %v272_v42  ;;  %v323_v46 = vsub.f32 %v306_v43, %v317_v37 }
  0xa1   : > { %v290_v47 = vadd.f32 %v283_v25, %v278_v45  ;;  %331 = vrot.lane.b32.xlu2 %v323_v46, %s493_s21  ;;  %v304_v48 = vadd.f32 %v301_v44, %v538_v0 }
  0xa3   : > { %v302_v49 = vadd.f32 %v297_v13, %v290_v47 }
  0xa4   : > { %v313_v50 = vpop.permute.xlu0 %312  ;;  %v315_v51 = vpop.permute.xlu1 %314 }
  0xa5   : > { %v321_v52 = vsub.f32 %v304_v48, %v313_v50  ;;  %v305_v53 = vadd.f32 %v302_v49, %v540_v1 }
  0xa7   : > { %v322_v54 = vsub.f32 %v305_v53, %v315_v51  ;;  %327 = vrot.lane.b32.xlu0 %v321_v52, %s493_s21 }
  0xa9   : > { %329 = vrot.lane.b32.xlu1 %v322_v54, %s493_s21 }
  0xfb   : > { %v332_v55 = vpop.permute.xlu2 %331 }
  0xfc   : > { %341 = vst.msk [vmem:[%s530_s20 + $0xf] sm:$0x1] %vm340_vm4, %v332_v55 }
 0x119   : > { %v328_v56 = vpop.permute.xlu0 %327 }
 0x11a   : > { %337 = vst.msk [vmem:[%s530_s20 - $0x1] sm:$0xfe] %vm336_vm5, %v328_v56 }
 0x11b   : > { %v330_v57 = vpop.permute.xlu1 %329 }
 0x11c   : > { %339 = vst.msk [vmem:[%s530_s20 + $0x7] sm:$0xff] %vm338_vm6, %v330_v57 }
 0x11d PF: > { %s12_s9 = sadd.s32 1, %s490_s9  }
 0x11e   : > { %p9_p10 = scmp.ge.s32.totalorder %s12_s9, 12  }
 0x120   :  { %11 = sbr.rel (!%p9_p10) target bundleno = 1 (0x1), region = 68 }

// kernel: ai4urban_forward.15
= control target key start
LH: loop header
LB: loop body
LE: loop exit
PB: predicated region body
PF: predicated region fallthrough
CT: control target
= control target key end

     0   :  { %s2373_s21 = smov 0   ;;  %s3499_s0 = inlined_call_operand.vmem [shape: f32[10,18,18], index: 0, kind: input, shape index: {}]   ;;  %s3500_s1 = inlined_call_operand.vmem [shape: f32[10,18,18], index: 1, kind: input, shape index: {}]   ;;  %s3501_s2 = inlined_call_operand.vmem [shape: f32[10,18,18], index: 2, kind: input, shape index: {}]   ;;  %s3502_s3 = inlined_call_operand.vmem [shape: f32[10,18,18], index: 3, kind: input, shape index: {}]   ;;  %s3503_s4 = inlined_call_operand.vmem [shape: f32[10,18,18], index: 4, kind: input, shape index: {}]   ;;  %s3504_s5 = inlined_call_operand.vmem [shape: f32[10,18,18], index: 5, kind: input, shape index: {}]   ;;  %s3505_s6 = inlined_call_operand.vmem [shape: f32[10,18,18], index: 6, kind: input, shape index: {}]   ;;  %s3506_s7 = inlined_call_operand.vmem [shape: f32[8,16,16], index: 7, kind: input, shape index: {}]   ;;  %s3507_s8 = inlined_call_operand.vmem [shape: f32[8,16,16], index: 8, kind: input, shape index: {}]   ;;  %s3508_s9 = inlined_call_operand.vmem [shape: f32[8,16,16], index: 9, kind: input, shape index: {}]   ;;  %s3509_s10 = inlined_call_operand.vmem [shape: f32[8,16,16], index: 10, kind: output, shape index: {0}]   ;;  %s3510_s11 = inlined_call_operand.vmem [shape: f32[8,16,16], index: 11, kind: output, shape index: {1}]   ;;  %s3511_s12 = inlined_call_operand.vmem [shape: f32[8,16,16], index: 12, kind: output, shape index: {2}]  }
   0x1   :  { %3575 = sst [smem:[#allocation46_spill]] %s3506_s7 }
   0x2   :  { %3576 = sst [smem:[#allocation47_spill]] %s3507_s8 }
   0x3 LB: > { %s2379_s22 = sadd.s32 4294967295, %s2303_s21   ;;  %p2185_p0 = scmp.ge.s32.totalorder %s2303_s21, 1  ;;  %s2303_s21 = sphi %s2373_s21, %s23_s21  }
   0x4   : > { %p511_p1 = scmp.lt.s32.totalorder %s2303_s21, 11 }
   0x6   : > { %p512_p2 = pnand %p2185_p0, %p511_p1 }
   0x8   : > { %515 = sbr.rel (%p512_p2) target bundleno = 547 (0x223), region = 60 }
   0xd   : > { %s2193_s23 = sadd.s32 4294967294, %s2379_s22  ;;  %s728_s24 = ssub.s32 0, %s2379_s22  ;;  %vm757_vm0 = vcmask 146432   ;;  %vm760_vm1 = vcmask 140288  }
   0xe   : > { %p662_p3 = scmp.gt.s32.totalorder %s2193_s23, 0  ;;  %p2194_p4 = scmp.lt.s32.totalorder %s2193_s23, 7 }
   0xf   : > { %s2241_s26 = smin.u32 %s2379_s22, %s728_s24  ;;  %s3577_s7 = sld [smem:[#allocation46_spill]] }
  0x10   : > { %s3689_s23 = smov (!%p662_p3, %s2193_s23), 0  ;;  %s3578_s8 = sld [smem:[#allocation47_spill]] }
  0x11   : > { %s3691_s23 = smov (!%p2194_p4, %s3689_s23), 7  ;;  %p626_p5 = scmp.lt.s32.totalorder %s2379_s22, 9 }
  0x12   : > { %s2249_s25 = sshll.u32 %s3691_s23, 4  ;;  %2279 = sdivrem.u32 %s2241_s26, 3 }
  0x13   : > { %s2399_s17 = scalar_lea.vmem %s3508_s9, %s2249_s25  ;;  %s2404_s20 = scalar_lea.vmem %s3509_s10, %s2249_s25 }
  0x14   : > { %s2409_s27 = scalar_lea.vmem %s3510_s11, %s2249_s25  ;;  %s2414_s30 = scalar_lea.vmem %s3511_s12, %s2249_s25 }
  0x15   : > { %s2389_s29 = scalar_lea.vmem %s3577_s7, %s2249_s25  ;;  %p727_p6 = scmp.lt.s32.totalorder %s2379_s22, 0 }
  0x16   : > { %s2394_s14 = scalar_lea.vmem %s3578_s8, %s2249_s25  ;;  %p2242_p7 = scmp.lt.s32.totalorder %s2379_s22, 2 }
  0x17   : > { %s627_s13 = scalar_select %p626_p5, %s2379_s22, 9 }
  0x19   : > { %s2418_s15 = smul.u32 24, %s627_s13 }
  0x1b   : > { %s2280_s16 = spop.drf %2279  ;;  %s630_s24 = scalar_lea.vmem %s3499_s0, %s2418_s15 }
  0x1c   : > { %s2281_s18 = spop.drf %2279  ;;  %v2425_v0 = vld [vmem:[%s630_s24] sm:$0xff]  ;;  %s635_s28 = scalar_lea.vmem %s3500_s1, %s2418_s15  ;;  %v2433_v1 = vld [vmem:[%s630_s24 + $0x8] sm:$0xff]  ;;  %v2435_v2 = vld [vmem:[%s630_s24 + $0x10] sm:$0x3] }
  0x1d   : > { %s732_s8 = ssub.s32 0, %s2281_s18  ;;  %3579 = vst [vmem:[#allocation9_spill] sm:$0xff] %v2435_v2  ;;  %v2440_v3 = vld [vmem:[%s635_s28] sm:$0xff]  ;;  %v2448_v4 = vld [vmem:[%s635_s28 + $0x8] sm:$0xff]  ;;  %v2452_v5 = vld [vmem:[%s635_s28 + $0x10] sm:$0x3]  ;;  %s645_s25 = scalar_lea.vmem %s3502_s3, %s2418_s15 }
  0x1e   : > { %s3693_s8 = smov (!%p727_p6, %s732_s8), %s2281_s18  ;;  %3580 = vst [vmem:[#allocation10_spill] sm:$0xff] %v2440_v3  ;;  %s640_s18 = scalar_lea.vmem %s3501_s2, %s2418_s15  ;;  %v2474_v9 = vld [vmem:[%s645_s25] sm:$0xff]  ;;  %v2482_v10 = vld [vmem:[%s645_s25 + $0x8] sm:$0xff]  ;;  %v2486_v11 = vld [vmem:[%s645_s25 + $0x10] sm:$0x3] }
  0x1f   : > { %s2427_s7 = smul.u32 24, %s3693_s8  ;;  %3581 = vst [vmem:[#allocation11_spill] sm:$0xff] %v2448_v4  ;;  %v2457_v6 = vld [vmem:[%s640_s18] sm:$0xff]  ;;  %v2465_v7 = vld [vmem:[%s640_s18 + $0x8] sm:$0xff]  ;;  %v2469_v8 = vld [vmem:[%s640_s18 + $0x10] sm:$0x3]  ;;  %s650_s8 = scalar_lea.vmem %s3503_s4, %s2418_s15 }
  0x20   : > { %3582 = vst [vmem:[#allocation12_spill] sm:$0xff] %v2452_v5  ;;  %v2491_v12 = vld [vmem:[%s650_s8] sm:$0xff]  ;;  %s655_s23 = scalar_lea.vmem %s3504_s5, %s2418_s15  ;;  %v2499_v13 = vld [vmem:[%s650_s8 + $0x8] sm:$0xff]  ;;  %v2503_v14 = vld [vmem:[%s650_s8 + $0x10] sm:$0x3]  ;;  %s660_s28 = scalar_lea.vmem %s3505_s6, %s2418_s15 }
  0x21   : > { %s756_s13 = scalar_lea.vmem [#allocation2], %s2427_s7  ;;  %s762_s19 = scalar_lea.vmem [#allocation3], %s2427_s7  ;;  %3583 = vst [vmem:[#allocation13_spill] sm:$0xff] %v2457_v6  ;;  %v2508_v15 = vld [vmem:[%s655_s23] sm:$0xff]  ;;  %v2516_v16 = vld [vmem:[%s655_s23 + $0x8] sm:$0xff] }
  0x22   : > { %758 = vst.msk [vmem:[%s756_s13] sm:$0xff] %vm757_vm0, %v2425_v0  ;;  %s766_s26 = scalar_lea.vmem [#allocation4], %s2427_s7  ;;  %s770_s16 = scalar_lea.vmem [#allocation5], %s2427_s7  ;;  %v2520_v17 = vld [vmem:[%s655_s23 + $0x10] sm:$0x3]  ;;  %v2525_v18 = vld [vmem:[%s660_s28] sm:$0xff] }
  0x23   : > { %759 = vst.msk [vmem:[%s756_s13 + $0x8] sm:$0xff] %vm757_vm0, %v2433_v1  ;;  %s774_s24 = scalar_lea.vmem [#allocation6], %s2427_s7  ;;  %v2529_v19 = vld [vmem:[%s660_s28 + $0x8] sm:$0xff]  ;;  %v2533_v20 = vld [vmem:[%s660_s28 + $0x10] sm:$0x3]  ;;  %s782_s15 = scalar_lea.vmem [#allocation8], %s2427_s7 }
  0x24   : > { %761 = vst.msk [vmem:[%s756_s13 + $0x10] sm:$0x3] %vm760_vm1, %v2435_v2  ;;  %s778_s13 = scalar_lea.vmem [#allocation7], %s2427_s7 }
  0x25   : > { %763 = vst.msk [vmem:[%s762_s19] sm:$0xff] %vm757_vm0, %v2440_v3 }
  0x26   : > { %764 = vst.msk [vmem:[%s762_s19 + $0x8] sm:$0xff] %vm757_vm0, %v2448_v4 }
  0x27   : > { %3584 = vst [vmem:[#allocation14_spill] sm:$0xff] %v2465_v7 }
  0x28   : > { %765 = vst.msk [vmem:[%s762_s19 + $0x10] sm:$0x3] %vm760_vm1, %v2452_v5 }
  0x29   : > { %3585 = vst [vmem:[#allocation15_spill] sm:$0xff] %v2469_v8 }
  0x2a   : > { %767 = vst.msk [vmem:[%s766_s26] sm:$0xff] %vm757_vm0, %v2457_v6 }
  0x2b   : > { %768 = vst.msk [vmem:[%s766_s26 + $0x8] sm:$0xff] %vm757_vm0, %v2465_v7 }
  0x2c   : > { %769 = vst.msk [vmem:[%s766_s26 + $0x10] sm:$0x3] %vm760_vm1, %v2469_v8 }
  0x2d   : > { %771 = vst.msk [vmem:[%s770_s16] sm:$0xff] %vm757_vm0, %v2474_v9 }
  0x2e   : > { %3586 = vst [vmem:[#allocation16_spill] sm:$0xff] %v2491_v12 }
  0x2f   : > { %772 = vst.msk [vmem:[%s770_s16 + $0x8] sm:$0xff] %vm757_vm0, %v2482_v10 }
  0x30   : > { %3587 = vst [vmem:[#allocation17_spill] sm:$0xff] %v2499_v13 }
  0x31   : > { %773 = vst.msk [vmem:[%s770_s16 + $0x10] sm:$0x3] %vm760_vm1, %v2486_v11 }
  0x32   : > { %3588 = vst [vmem:[#allocation18_spill] sm:$0xff] %v2503_v14 }
  0x33   : > { %775 = vst.msk [vmem:[%s774_s24] sm:$0xff] %vm757_vm0, %v2491_v12 }
  0x34   : > { %3589 = vst [vmem:[#allocation19_spill] sm:$0xff] %v2508_v15 }
  0x35   : > { %776 = vst.msk [vmem:[%s774_s24 + $0x8] sm:$0xff] %vm757_vm0, %v2499_v13 }
  0x36   : > { %3590 = vst [vmem:[#allocation20_spill] sm:$0xff] %v2516_v16 }
  0x37   : > { %777 = vst.msk [vmem:[%s774_s24 + $0x10] sm:$0x3] %vm760_vm1, %v2503_v14 }
  0x38   : > { %3591 = vst [vmem:[#allocation21_spill] sm:$0xff] %v2520_v17 }
  0x39   : > { %779 = vst.msk [vmem:[%s778_s13] sm:$0xff] %vm757_vm0, %v2508_v15 }
  0x3a   : > { %3592 = vst [vmem:[#allocation22_spill] sm:$0xff] %v2525_v18 }
  0x3b   : > { %780 = vst.msk [vmem:[%s778_s13 + $0x8] sm:$0xff] %vm757_vm0, %v2516_v16 }
  0x3c   : > { %3593 = vst [vmem:[#allocation23_spill] sm:$0xff] %v2529_v19 }
  0x3d   : > { %781 = vst.msk [vmem:[%s778_s13 + $0x10] sm:$0x3] %vm760_vm1, %v2520_v17  ;;  %789 = sbr.rel (%p2242_p7) target bundleno = 547 (0x223), region = 64 }
  0x3e   : > { %3594 = vst [vmem:[#allocation24_spill] sm:$0xff] %v2533_v20 }
  0x3f   : > { %783 = vst.msk [vmem:[%s782_s15] sm:$0xff] %vm757_vm0, %v2525_v18 }
  0x40   : > { %784 = vst.msk [vmem:[%s782_s15 + $0x8] sm:$0xff] %vm757_vm0, %v2529_v19 }
  0x41   : > { %785 = vst.msk [vmem:[%s782_s15 + $0x10] sm:$0x3] %vm760_vm1, %v2533_v20 }
  0x42   : > { %s798_s8 = sadd.s32 2, %s2379_s22  ;;  %s2545_s19 = sadd.s32 1, %s2379_s22  ;;  %vm894_vm2 = vcmask 1045504   ;;  %vm959_vm3 = vcmask 1040384   ;;  %vm1000_vm4 = vcmask 1046528   ;;  %vm1864_vm5 = vcmask 130048  }
  0x43   : > { %s800_s16 = ssub.s32 0, %s798_s8  ;;  %s792_s7 = ssub.s32 0, %s2545_s19 }
  0x44   : > { %s2244_s18 = smin.u32 %s800_s16, %s798_s8  ;;  %s2243_s23 = smin.u32 %s792_s7, %s2545_s19 }
  0x45   : > { %2282 = sdivrem.u32 %s2244_s18, 3  ;;  %p799_p8 = scmp.lt.s32.totalorder %s798_s8, 0 }
  0x46   : > { %2285 = sdivrem.u32 %s2243_s23, 3  ;;  %s2305_s22 = smov 1  }
  0x47   : > { %s2306_s16 = smov 126   ;;  %s2307_s23 = smov 127  }
  0x48   : > { %p791_p9 = scmp.lt.s32.totalorder %s2545_s19, 0 }
  0x4e   : > { %s2283_s24 = spop.drf %2282 }
  0x4f   : > { %s2284_s25 = spop.drf %2282 }
  0x50   : > { %s804_s26 = ssub.s32 0, %s2284_s25  ;;  %s2286_s28 = spop.drf %2285 }
  0x51   : > { %s3695_s26 = smov (!%p799_p8, %s804_s26), %s2284_s25 }
  0x52   : > { %s2549_s13 = smul.u32 24, %s3695_s26  ;;  %s2287_s26 = spop.drf %2285 }
  0x53   : > { %s796_s28 = ssub.s32 0, %s2287_s26 }
  0x54   : > { %s2552_s15 = scalar_lea.vmem [#allocation2], %s2549_s13  ;;  %s860_s8 = scalar_lea.vmem [#allocation8], %s2549_s13 }
  0x55   : > { %v2555_v21 = vld [vmem:[%s2552_s15 + $0x10] sm:$0x3]  ;;  %v2558_v22 = vld [vmem:[%s2552_s15] sm:$0xff]  ;;  %v2561_v23 = vld [vmem:[%s2552_s15 + $0x8] sm:$0xff]  ;;  %s2591_s18 = scalar_lea.vmem [#allocation3], %s2549_s13  ;;  %s836_s7 = scalar_lea.vmem [#allocation5], %s2549_s13 }
  0x56   : > { %974 = vrot.lane.b32.xlu2 %v2555_v21, %s2305_s22  ;;  %972 = vrot.lane.b32.xlu1 %v2561_v23, %s2305_s22  ;;  %v922_v24 = vmul.f32 0.5, %v2561_v23  ;;  %v923_v25 = vmul.f32 0.5, %v2555_v21  ;;  %v921_v26 = vmul.f32 0.5, %v2558_v22  ;;  %v2573_v29 = vld [vmem:[%s860_s8 + $0x10] sm:$0x3]  ;;  %v2575_v31 = vld [vmem:[%s860_s8] sm:$0xff]  ;;  %s3697_s28 = smov (!%p791_p9, %s796_s28), %s2287_s26 }
  0x57   : > { %970 = vrot.lane.b32.xlu0 %v2558_v22, %s2305_s22  ;;  %v2579_v33 = vmul.f32 0.5, %v2573_v29  ;;  %v2582_v34 = vmul.f32 0.5, %v2575_v31  ;;  %v2594_v36 = vld [vmem:[%s2591_s18] sm:$0xff]  ;;  %v2597_v37 = vld [vmem:[%s2591_s18 + $0x8] sm:$0xff]  ;;  %v2606_v41 = vld [vmem:[%s836_s7 + $0x10] sm:$0x3] }
  0x58   : > { %v940_v27 = vrot.slane %v922_v24, 2  ;;  %v942_v28 = vrot.slane %v923_v25, 2  ;;  %v939_v30 = vrot.slane %v921_v26, 2  ;;  %3595 = vst [vmem:[#allocation25_spill] sm:$0xff] %v2597_v37  ;;  %v2600_v38 = vld [vmem:[%s836_s7 + $0x8] sm:$0xff]  ;;  %v2604_v40 = vld [vmem:[%s836_s7] sm:$0xff]  ;;  %v2623_v46 = vmul.f32 %v2606_v41, %v2555_v21 }
  0x59   : > { %v2602_v39 = vld [vmem:[%s860_s8 + $0x8] sm:$0xff]  ;;  %v2609_v42 = vmul.f32 0.5, %v2594_v36  ;;  %v2612_v43 = vmul.f32 0.5, %v2597_v37  ;;  %v2616_v44 = vmul.f32 %v2600_v38, %v2561_v23  ;;  %v2627_v47 = vmul.f32 %v2604_v40, %v2558_v22  ;;  %v2636_v50 = vld [vmem:[%s2591_s18 + $0x10] sm:$0x3]  ;;  %s2677_s24 = scalar_lea.vmem [#allocation4], %s2549_s13 }
  0x5a   : > { %v943_v32 = vsel %vm894_vm2, %v940_v27, %v942_v28  ;;  %v941_v35 = vsel %vm894_vm2, %v939_v30, %v940_v27  ;;  %v2619_v45 = vmul.f32 0.5, %v2602_v39  ;;  %v3513_v52 = vrot.slane %v2623_v46, 1  ;;  %v2680_v63 = vld [vmem:[%s2677_s24] sm:$0xff]  ;;  %v2696_v27 = vld [vmem:[%s2677_s24 + $0x10] sm:$0x3]  ;;  %s844_s25 = scalar_lea.vmem [#allocation6], %s2549_s13 }
  0x5b   : > { %v1255_v48 = vrot.slane %v2609_v42, 2  ;;  %v1256_v49 = vrot.slane %v2612_v43, 2  ;;  %v3514_v51 = vrot.slane %v2616_v44, 7  ;;  %v3512_v53 = vrot.slane %v2627_v47, 7  ;;  %s2836_s19 = smul.u32 24, %s3697_s28  ;;  %s852_s7 = scalar_lea.vmem [#allocation7], %s2549_s13 }
  0x5c   : > { %v2642_v54 = vmul.f32 0.5, %v2636_v50  ;;  %v1067_v56 = vrot.slane %v2616_v44, 1  ;;  %v1066_v58 = vrot.slane %v2627_v47, 1  ;;  %v2738_v8 = vmul.f32 -0.5, %v2680_v63  ;;  %v2884_v4 = vld [vmem:[%s852_s7 + $0x8] sm:$0xff] }
  0x5d   : > { %v1257_v55 = vsel %vm894_vm2, %v1255_v48, %v1256_v49  ;;  %v2651_v57 = vsel %vm959_vm3, %v3512_v53, %v3514_v51  ;;  %v1549_v48 = vmul.f32 0.5, %v2680_v63  ;;  %v895_v53 = vrot.slane %v2582_v34, 2  ;;  %s2846_s8 = scalar_lea.vmem [#allocation2], %s2836_s19  ;;  %s3015_s13 = scalar_lea.vmem [#allocation3], %s2836_s19 }
  0x5e   : > { %883 = vrot.lane.b32.xlu1 %v2579_v33, %s2306_s16  ;;  %929 = vrot.lane.b32.xlu2 %v922_v24, %s2306_s16  ;;  %v2655_v59 = vsel %vm1000_vm4, %v1066_v58, %v1067_v56  ;;  %v2660_v60 = vsel %vm1000_vm4, %v1067_v56, %v3513_v52  ;;  %v1258_v61 = vrot.slane %v2642_v54, 2  ;;  %v2683_v24 = vmul.f32 -0.5, %v2561_v23  ;;  %3602 = vst [vmem:[#allocation32_spill] sm:$0xff] %v2738_v8  ;;  %s848_s26 = scalar_lea.vmem [#allocation7], %s2836_s19 }
  0x5f   : > { %879 = vrot.lane.b32.xlu0 %v2582_v34, %s2306_s16  ;;  %v1551_v56 = vmul.f32 0.5, %v2696_v27  ;;  %v896_v52 = vrot.slane %v2619_v45, 2  ;;  %v1567_v51 = vrot.slane %v1549_v48, 2  ;;  %v1050_v13 = vmul.f32 -6.0, %v2623_v46 }
  0x60   : > { %v1259_v62 = vsel %vm894_vm2, %v1256_v49, %v1258_v61  ;;  %v2701_v28 = vadd.f32 %v943_v32, %v2683_v24 }
  0x61   : > { %v1570_v18 = vrot.slane %v1551_v56, 2  ;;  %v2735_v17 = vsel %vm894_vm2, %v895_v53, %v896_v52 }
  0x62   : > { %3596 = vst [vmem:[#allocation26_spill] sm:$0xff] %v2701_v28  ;;  %v3525_v58 = vrot.slane %v2701_v28, 7  ;;  %v2880_v28 = vld [vmem:[%s852_s7 + $0x10] sm:$0x3] }
  0x63   : > { %3601 = vst [vmem:[#allocation31_spill] sm:$0xff] %v2735_v17 }
  0x66   : > { %931 = vrot.lane.b32.xlu2 %v923_v25, %s2306_s16  ;;  %927 = vrot.lane.b32.xlu1 %v921_v26, %s2306_s16  ;;  %v2686_v25 = vmul.f32 -0.5, %v2558_v22  ;;  %v2693_v26 = vld [vmem:[%s2677_s24 + $0x8] sm:$0xff] }
  0x67   : > { %881 = vrot.lane.b32.xlu0 %v2619_v45, %s2306_s16  ;;  %v1550_v49 = vmul.f32 0.5, %v2693_v26  ;;  %v2730_v45 = vmul.f32 -0.5, %v2597_v37  ;;  %v2741_v16 = vmul.f32 -0.5, %v2693_v26 }
  0x68   : > { %v2704_v30 = vadd.f32 %v941_v35, %v2686_v25  ;;  %v2727_v35 = vmul.f32 -0.5, %v2594_v36 }
  0x69   : > { %v1568_v32 = vrot.slane %v1550_v49, 2  ;;  %3600 = vst [vmem:[#allocation30_spill] sm:$0xff] %v2730_v45 }
  0x6a   : > { %3597 = vst [vmem:[#allocation27_spill] sm:$0xff] %v2704_v30  ;;  %v3524_v61 = vrot.slane %v2704_v30, 7 }
  0x6b   : > { %3599 = vst [vmem:[#allocation29_spill] sm:$0xff] %v2727_v35  ;;  %v1569_v20 = vsel %vm894_vm2, %v1567_v51, %v1568_v32  ;;  %v1571_v19 = vsel %vm894_vm2, %v1568_v32, %v1570_v18 }
  0x6c   : > { %v2724_v34 = vsel %vm959_vm3, %v3524_v61, %v3525_v58  ;;  %3603 = vst [vmem:[#allocation33_spill] sm:$0xff] %v2741_v16  ;;  %v2744_v61 = vadd.f32 %v1257_v55, %v2727_v35  ;;  %v2747_v58 = vadd.f32 %v1259_v62, %v2730_v45  ;;  %v2750_v7 = vadd.f32 %v1569_v20, %v2738_v8 }
  0x6d   : > { %3598 = vst [vmem:[#allocation28_spill] sm:$0xff] %v2724_v34  ;;  %v2753_v18 = vadd.f32 %v1571_v19, %v2741_v16  ;;  %v898_v19 = vrot.slane %v2579_v33, 2  ;;  %v2785_v33 = vmul.f32 -0.5, %v2602_v39  ;;  %v2806_v39 = vld [vmem:[%s844_s25] sm:$0xff]  ;;  %v920_v16 = vmul.f32 -0.5, %v2555_v21 }
  0x6e   : > { %992 = vrot.lane.b32.xlu2 %v2555_v21, %s2307_s23  ;;  %990 = vrot.lane.b32.xlu1 %v2561_v23, %s2307_s23  ;;  %3604 = vst [vmem:[#allocation34_spill] sm:$0xff] %v2744_v61  ;;  %v3529_v51 = vrot.slane %v2744_v61, 7  ;;  %v3528_v53 = vrot.slane %v2747_v58, 7  ;;  %v3531_v55 = vrot.slane %v2750_v7, 7  ;;  %v3615_v45 = vrot.slane %v2623_v46, 1 }
  0x6f   : > { %988 = vrot.lane.b32.xlu0 %v2558_v22, %s2307_s23  ;;  %3605 = vst [vmem:[#allocation35_spill] sm:$0xff] %v2747_v58  ;;  %v3530_v20 = vrot.slane %v2753_v18, 7 }
  0x70   : > { %3606 = vst [vmem:[#allocation36_spill] sm:$0xff] %v2750_v7  ;;  %v2771_v62 = vsel %vm959_vm3, %v3529_v51, %v3528_v53  ;;  %v899_v53 = vsel %vm894_vm2, %v896_v52, %v898_v19  ;;  %v2817_v52 = vld [vmem:[%s844_s25 + $0x10] sm:$0x3] }
  0x71   : > { %3607 = vst [vmem:[#allocation37_spill] sm:$0xff] %v2753_v18  ;;  %v2778_v32 = vsel %vm959_vm3, %v3531_v55, %v3530_v20  ;;  %v2791_v51 = vadd.f32 %v899_v53, %v2785_v33  ;;  %v2823_v53 = vmul.f32 %v2817_v52, %v2636_v50 }
  0x72   : > { %3608 = vst [vmem:[#allocation38_spill] sm:$0xff] %v2771_v62 }
  0x73   : > { %3609 = vst [vmem:[#allocation39_spill] sm:$0xff] %v2778_v32  ;;  %v984_v32 = vmul.f32 -6.0, %v2555_v21 }
  0x74   : > { %3610 = vst [vmem:[#allocation40_spill] sm:$0xff] %v2791_v51 }
  0x75   : > { %3611 = vst [vmem:[#allocation41_spill] sm:$0xff] %v2823_v53 }
  0x76   : > { %1040 = vrot.lane.b32.xlu2 %v2623_v46, %s2305_s22  ;;  %1038 = vrot.lane.b32.xlu1 %v2616_v44, %s2305_s22 }
  0x77   : > { %1036 = vrot.lane.b32.xlu0 %v2627_v47, %s2305_s22 }
  0x7e   : > { %1058 = vrot.lane.b32.xlu2 %v2623_v46, %s2307_s23  ;;  %1056 = vrot.lane.b32.xlu1 %v2616_v44, %s2307_s23 }
  0x7f   : > { %1054 = vrot.lane.b32.xlu0 %v2627_v47, %s2307_s23 }
  0x86   : > { %1096 = vrot.lane.b32.xlu2 %v2606_v41, %s2305_s22  ;;  %1094 = vrot.lane.b32.xlu1 %v2600_v38, %s2305_s22 }
  0x87   : > { %1092 = vrot.lane.b32.xlu0 %v2604_v40, %s2305_s22 }
  0x8e   : > { %1114 = vrot.lane.b32.xlu2 %v2606_v41, %s2307_s23  ;;  %1112 = vrot.lane.b32.xlu1 %v2600_v38, %s2307_s23 }
  0x8f   : > { %1110 = vrot.lane.b32.xlu0 %v2604_v40, %s2307_s23 }
  0x96   : > { %1243 = vrot.lane.b32.xlu2 %v2609_v42, %s2306_s16  ;;  %1247 = vrot.lane.b32.xlu1 %v2642_v54, %s2306_s16  ;;  %v2810_v42 = vmul.f32 %v2806_v39, %v2594_v36  ;;  %v2819_v54 = vld [vmem:[%s844_s25 + $0x8] sm:$0xff]  ;;  %s3051_s25 = scalar_lea.vmem [#allocation6], %s2836_s19 }
  0x97   : > { %1245 = vrot.lane.b32.xlu0 %v2612_v43, %s2306_s16  ;;  %v2827_v19 = vmul.f32 %v2819_v54, %v2597_v37 }
  0x99   : > { %3612 = vst [vmem:[#allocation42_spill] sm:$0xff] %v2827_v19 }
  0x9e   : > { %1285 = vrot.lane.b32.xlu2 %v2594_v36, %s2305_s22  ;;  %1289 = vrot.lane.b32.xlu1 %v2636_v50, %s2305_s22 }
  0x9f   : > { %1287 = vrot.lane.b32.xlu0 %v2597_v37, %s2305_s22 }
  0xa6   : > { %1303 = vrot.lane.b32.xlu2 %v2594_v36, %s2307_s23  ;;  %1307 = vrot.lane.b32.xlu1 %v2636_v50, %s2307_s23 }
  0xa7   : > { %1305 = vrot.lane.b32.xlu0 %v2597_v37, %s2307_s23 }
  0xae   : > { %1350 = vrot.lane.b32.xlu2 %v2810_v42, %s2305_s22  ;;  %1557 = vrot.lane.b32.xlu1 %v1550_v49, %s2306_s16  ;;  %v961_v49 = vrot.slane %v2561_v23, 7 }
  0xaf   : > { %1555 = vrot.lane.b32.xlu0 %v1549_v48, %s2306_s16 }
  0xb0   : > { %v975_v43 = vpop.permute.xlu2 %974 }
  0xb6   : > { %1559 = vrot.lane.b32.xlu2 %v1551_v56, %s2306_s16  ;;  %1354 = vrot.lane.b32.xlu1 %v2823_v53, %s2305_s22  ;;  %v2849_v56 = vld [vmem:[%s2846_s8 + $0x10] sm:$0x3]  ;;  %s2860_s16 = scalar_lea.vmem [#allocation5], %s2836_s19 }
  0xb7   : > { %1352 = vrot.lane.b32.xlu0 %v2827_v19, %s2305_s22  ;;  %3613 = vst [vmem:[#allocation43_spill] sm:$0xff] %v2849_v56  ;;  %v968_v55 = vadd.f32 %v961_v49, %v2849_v56  ;;  %v835_v7 = vld [vmem:[%s2860_s16 + $0x10] sm:$0x3] }
  0xb8   : > { %v2834_v48 = vpop.permute.xlu2 %929  ;;  %v1017_v15 = vmul.f32 %v835_v7, %v2849_v56  ;;  %v2878_v56 = vld [vmem:[%s852_s7] sm:$0xff] }
  0xb9   : > { %v981_v51 = vadd.f32 %v975_v43, %v968_v55 }
  0xbb   : > { %v987_v18 = vadd.f32 %v984_v32, %v981_v51  ;;  %v872_v51 = vmul.f32 -0.5, %v2573_v29  ;;  %v3614_v32 = vrot.slane %v2616_v44, 7  ;;  %v960_v29 = vrot.slane %v2558_v22, 7 }
  0xbd   : > { %v1034_v6 = vadd.f32 %v3614_v32, %v1017_v15  ;;  %v3551_v15 = vrot.slane %v2555_v21, 1  ;;  %v2899_v32 = vmul.f32 %v2884_v4, %v2693_v26  ;;  %v962_v14 = vsel %vm959_vm3, %v960_v29, %v961_v49 }
  0xbe   : > { %1368 = vrot.lane.b32.xlu2 %v2810_v42, %s2307_s23  ;;  %1372 = vrot.lane.b32.xlu1 %v2823_v53, %s2307_s23  ;;  %v2914_v53 = vld [vmem:[%s2846_s8] sm:$0xff]  ;;  %v1023_v49 = vmul.f32 %v2486_v11, %v2435_v2 }
  0xbf   : > { %1370 = vrot.lane.b32.xlu0 %v2827_v19, %s2307_s23  ;;  %v966_v12 = vadd.f32 %v960_v29, %v2914_v53 }
  0xc0   : > { %v932_v20 = vpop.permute.xlu2 %931 }
  0xc1   : > { %v938_v35 = vadd.f32 %v932_v20, %v920_v16  ;;  %v2938_v20 = vld [vmem:[%s2860_s16 + $0x8] sm:$0xff] }
  0xc6   : > { %1597 = vrot.lane.b32.xlu2 %v2680_v63, %s2305_s22  ;;  %1601 = vrot.lane.b32.xlu1 %v2696_v27, %s2305_s22 }
  0xc7   : > { %1599 = vrot.lane.b32.xlu0 %v2693_v26, %s2305_s22 }
  0xc8   : > { %v973_v62 = vpop.permute.xlu1 %972  ;;  %v993_v58 = vpop.permute.xlu2 %992 }
  0xc9   : > { %v999_v55 = vadd.f32 %v993_v58, %v987_v18  ;;  %v971_v43 = vpop.permute.xlu0 %970 }
  0xca   : > { %v979_v37 = vadd.f32 %v971_v43, %v966_v12 }
  0xce   : > { %1406 = vrot.lane.b32.xlu2 %v2806_v39, %s2305_s22  ;;  %1410 = vrot.lane.b32.xlu1 %v2817_v52, %s2305_s22 }
  0xcf   : > { %1408 = vrot.lane.b32.xlu0 %v2819_v54, %s2305_s22 }
  0xd0   : > { %v884_v61 = vpop.permute.xlu1 %883  ;;  %v1041_v30 = vpop.permute.xlu2 %1040 }
  0xd1   : > { %v2873_v58 = vadd.f32 %v884_v61, %v872_v51  ;;  %v1047_v18 = vadd.f32 %v1041_v30, %v1034_v6  ;;  %v2875_v34 = vpop.permute.xlu0 %879  ;;  %v2889_v6 = vmul.f32 %v2878_v56, %v2680_v63  ;;  %v2893_v30 = vmul.f32 %v2880_v28, %v2696_v27 }
  0xd2   : > { %v1011_v51 = vadd.f32 %v3551_v15, %v999_v55 }
  0xd3   : > { %v1053_v61 = vadd.f32 %v1050_v13, %v1047_v18  ;;  %v2909_v13 = vld [vmem:[%s2846_s8 + $0x8] sm:$0xff] }
  0xd4   : > { %v967_v55 = vadd.f32 %v962_v14, %v2909_v13  ;;  %v1014_v15 = vadd.f32 %v1011_v51, %v2435_v2  ;;  %v937_v51 = vadd.f32 %v2834_v48, %v2683_v24 }
  0xd6   : > { %1662 = vrot.lane.b32.xlu2 %v2889_v6, %s2305_s22  ;;  %1666 = vrot.lane.b32.xlu1 %v2893_v30, %s2305_s22  ;;  %v980_v19 = vadd.f32 %v973_v62, %v967_v55 }
  0xd7   : > { %1664 = vrot.lane.b32.xlu0 %v2899_v32, %s2305_s22 }
  0xd8   : > { %v1059_v18 = vpop.permute.xlu2 %1058  ;;  %v928_v5 = vpop.permute.xlu1 %927 }
  0xd9   : > { %v1065_v17 = vadd.f32 %v1059_v18, %v1053_v61  ;;  %v882_v8 = vpop.permute.xlu0 %881  ;;  %v1083_v61 = vrot.slane %v2600_v38, 7  ;;  %v1138_v18 = vmul.f32 %v1014_v15, %v2606_v41  ;;  %v936_v29 = vadd.f32 %v928_v5, %v2686_v25 }
  0xda   : > { %v2921_v3 = vadd.f32 %v882_v8, %v2785_v33  ;;  %v983_v8 = vmul.f32 -6.0, %v2561_v23  ;;  %v1002_v15 = vrot.slane %v2561_v23, 1 }
  0xdb   : > { %v1076_v14 = vadd.f32 %v3615_v45, %v1065_v17  ;;  %v982_v17 = vmul.f32 -6.0, %v2558_v22  ;;  %v1090_v5 = vadd.f32 %v1083_v61, %v835_v7 }
  0xdc   : > { %v986_v12 = vadd.f32 %v983_v8, %v980_v19 }
  0xdd   : > { %v1079_v2 = vadd.f32 %v1076_v14, %v1023_v49  ;;  %v985_v24 = vadd.f32 %v982_v17, %v979_v37  ;;  %v1106_v37 = vmul.f32 -6.0, %v2606_v41  ;;  %v3616_v49 = vrot.slane %v2627_v47, 7 }
  0xde   : > { %1164 = vrot.lane.b32.xlu2 %v938_v35, %s2305_s22  ;;  %1162 = vrot.lane.b32.xlu1 %v937_v51, %s2305_s22  ;;  %v2943_v35 = vld [vmem:[%s2860_s16] sm:$0xff] }
  0xdf   : > { %v2934_v46 = vadd.f32 %v1138_v18, %v1079_v2  ;;  %1160 = vrot.lane.b32.xlu0 %v936_v29, %s2305_s22  ;;  %v1016_v2 = vmul.f32 %v2938_v20, %v2909_v13  ;;  %v1015_v19 = vmul.f32 %v2943_v35, %v2914_v53  ;;  %v1001_v18 = vrot.slane %v2558_v22, 1 }
  0xe0   : > { %v1097_v16 = vpop.permute.xlu2 %1096  ;;  %v991_v45 = vpop.permute.xlu1 %990 }
  0xe1   : > { %v989_v25 = vpop.permute.xlu0 %988  ;;  %v998_v62 = vadd.f32 %v991_v45, %v986_v12  ;;  %v1103_v48 = vadd.f32 %v1097_v16, %v1090_v5  ;;  %v1033_v43 = vadd.f32 %v2651_v57, %v1016_v2  ;;  %v1032_v14 = vadd.f32 %v3616_v49, %v1015_v19 }
  0xe2   : > { %v997_v33 = vadd.f32 %v989_v25, %v985_v24  ;;  %v1049_v12 = vmul.f32 -6.0, %v2616_v44  ;;  %v1125_v16 = vrot.slane %v2606_v41, 1  ;;  %v1048_v45 = vmul.f32 -6.0, %v2627_v47 }
  0xe3   : > { %v1109_v7 = vadd.f32 %v1106_v37, %v1103_v48  ;;  %v3617_v5 = vrot.slane %v2555_v21, 1  ;;  %v1003_v19 = vsel %vm1000_vm4, %v1001_v18, %v1002_v15  ;;  %v2977_v44 = vmul.f32 -0.5, %v2575_v31 }
  0xe5   : > { %v1005_v25 = vsel %vm1000_vm4, %v1002_v15, %v3617_v5  ;;  %v1022_v15 = vmul.f32 %v2482_v10, %v2433_v1  ;;  %v893_v5 = vmul.f32 0.5, %v2873_v58  ;;  %v3018_v58 = vld [vmem:[%s3015_s13] sm:$0xff] }
  0xe6   : > { %1718 = vrot.lane.b32.xlu2 %v2878_v56, %s2305_s22  ;;  %1722 = vrot.lane.b32.xlu1 %v2880_v28, %s2305_s22  ;;  %v1010_v37 = vadd.f32 %v1005_v25, %v998_v62 }
  0xe7   : > { %1720 = vrot.lane.b32.xlu0 %v2884_v4, %s2305_s22 }
  0xe8   : > { %v1115_v55 = vpop.permute.xlu2 %1114  ;;  %v1039_v51 = vpop.permute.xlu1 %1038  ;;  %v1013_v62 = vadd.f32 %v1010_v37, %v2433_v1 }
  0xe9   : > { %v1121_v29 = vadd.f32 %v1115_v55, %v1109_v7  ;;  %v1037_v8 = vpop.permute.xlu0 %1036  ;;  %v1046_v17 = vadd.f32 %v1039_v51, %v1033_v43  ;;  %v1009_v7 = vadd.f32 %v1003_v19, %v997_v33  ;;  %v888_v51 = vadd.f32 %v2875_v34, %v2977_v44 }
  0xea   : > { %v1045_v24 = vadd.f32 %v1037_v8, %v1032_v14  ;;  %v1082_v14 = vrot.slane %v2604_v40, 7  ;;  %v892_v8 = vmul.f32 0.5, %v2921_v3  ;;  %v1275_v34 = vrot.slane %v2594_v36, 7 }
  0xeb   : > { %v1052_v57 = vadd.f32 %v1049_v12, %v1046_v17  ;;  %v1132_v48 = vadd.f32 %v1125_v16, %v1121_v29  ;;  %v1012_v31 = vadd.f32 %v1009_v7, %v2425_v0 }
  0xec   : > { %v1051_v2 = vadd.f32 %v1048_v45, %v1045_v24  ;;  %v1137_v24 = vmul.f32 %v1013_v62, %v2600_v38  ;;  %v1281_v7 = vadd.f32 %v1275_v34, %v3018_v58  ;;  %v1226_v62 = vrot.slane %v893_v5, 1 }
  0xed   : > { %v1135_v47 = vadd.f32 %v1132_v48, %v2486_v11  ;;  %v1021_v11 = vmul.f32 %v2474_v9, %v2425_v0  ;;  %v1136_v3 = vmul.f32 %v1012_v31, %v2604_v40  ;;  %v1224_v48 = vrot.slane %v892_v8, 1 }
  0xee   : > { %1615 = vrot.lane.b32.xlu2 %v2680_v63, %s2307_s23  ;;  %1619 = vrot.lane.b32.xlu1 %v2696_v27, %s2307_s23  ;;  %v1105_v8 = vmul.f32 -6.0, %v2600_v38 }
  0xef   : > { %1617 = vrot.lane.b32.xlu0 %v2693_v26, %s2307_s23  ;;  %v2994_v17 = vmul.f32 %v1135_v47, %v2555_v21 }
  0xf0   : > { %v2980_v43 = vpop.permute.xlu2 %1243  ;;  %v1057_v55 = vpop.permute.xlu1 %1056 }
  0xf1   : > { %v1055_v33 = vpop.permute.xlu0 %1054  ;;  %v1064_v49 = vadd.f32 %v1057_v55, %v1052_v57  ;;  %v1084_v57 = vsel %vm959_vm3, %v1082_v14, %v1083_v61 }
  0xf2   : > { %v1063_v18 = vadd.f32 %v1055_v33, %v1051_v2  ;;  %v1089_v55 = vadd.f32 %v1084_v57, %v2938_v20  ;;  %v1104_v20 = vmul.f32 -6.0, %v2604_v40 }
  0xf3   : > { %v1075_v29 = vadd.f32 %v2660_v60, %v1064_v49  ;;  %v891_v60 = vmul.f32 0.5, %v888_v51 }
  0xf4   : > { %v1074_v12 = vadd.f32 %v2655_v59, %v1063_v18 }
  0xf5   : > { %v1078_v45 = vadd.f32 %v1075_v29, %v1022_v15  ;;  %v1223_v33 = vrot.slane %v891_v60, 1  ;;  %v1088_v15 = vadd.f32 %v1082_v14, %v2943_v35  ;;  %v1297_v29 = vmul.f32 -6.0, %v2594_v36 }
  0xf6   : > { %v1077_v25 = vadd.f32 %v1074_v12, %v1021_v11  ;;  %1424 = vrot.lane.b32.xlu2 %v2806_v39, %s2307_s23  ;;  %1428 = vrot.lane.b32.xlu1 %v2817_v52, %s2307_s23  ;;  %v3028_v11 = vsel %vm1000_vm4, %v1224_v48, %v1226_v62  ;;  %v1340_v62 = vrot.slane %v2810_v42, 7 }
  0xf7   : > { %v3008_v59 = vadd.f32 %v1137_v24, %v1078_v45  ;;  %1426 = vrot.lane.b32.xlu0 %v2819_v54, %s2307_s23  ;;  %3618 = vst [vmem:[#allocation44_spill] sm:$0xff] %v3028_v11  ;;  %v3031_v18 = vsel %vm1000_vm4, %v1223_v33, %v1224_v48  ;;  %v1123_v48 = vrot.slane %v2600_v38, 1  ;;  %v3620_v33 = vld [vmem:[#allocation25_spill] sm:$0xff] }
  0xf8   : > { %v3012_v2 = vadd.f32 %v1136_v3, %v1077_v25  ;;  %v1286_v61 = vpop.permute.xlu2 %1285  ;;  %v1095_v19 = vpop.permute.xlu1 %1094  ;;  %3619 = vst [vmem:[#allocation45_spill] sm:$0xff] %v3031_v18  ;;  %v1122_v25 = vrot.slane %v2604_v40, 1 }
  0xf9   : > { %v1093_v47 = vpop.permute.xlu0 %1092  ;;  %v1294_v49 = vadd.f32 %v1286_v61, %v1281_v7  ;;  %v1102_v51 = vadd.f32 %v1095_v19, %v1089_v55  ;;  %v1236_v55 = vmul.f32 -0.5, %v2636_v50  ;;  %v1126_v40 = vsel %vm1000_vm4, %v1123_v48, %v1125_v16 }
  0xfa   : > { %v1101_v31 = vadd.f32 %v1093_v47, %v1088_v15  ;;  %v3054_v47 = vld [vmem:[%s3051_s25] sm:$0xff]  ;;  %v1276_v15 = vrot.slane %v3620_v33, 7  ;;  %v1124_v38 = vsel %vm1000_vm4, %v1122_v25, %v1123_v48  ;;  %v3084_v48 = vld [vmem:[%s3015_s13 + $0x8] sm:$0xff] }
  0xfb   : > { %v1300_v35 = vadd.f32 %v1297_v29, %v1294_v49  ;;  %v1108_v14 = vadd.f32 %v1105_v8, %v1102_v51  ;;  %v3621_v49 = vld [vmem:[#allocation29_spill] sm:$0xff] }
  0xfc   : > { %v1107_v24 = vadd.f32 %v1104_v20, %v1101_v31  ;;  %v1252_v51 = vadd.f32 %v2980_v43, %v3621_v49  ;;  %v1329_v20 = vmul.f32 %v3054_v47, %v3018_v58  ;;  %v1315_v43 = vrot.slane %v2594_v36, 1  ;;  %3624 = vst [vmem:[#allocation29_spill] sm:$0xff] %v3084_v48 }
  0xfd   : > { %v1277_v41 = vsel %vm959_vm3, %v1275_v34, %v1276_v15 }
  0xfe   : > { %1680 = vrot.lane.b32.xlu2 %v2889_v6, %s2307_s23  ;;  %1684 = vrot.lane.b32.xlu1 %v2893_v30, %s2307_s23  ;;  %v1282_v34 = vadd.f32 %v1277_v41, %v3084_v48 }
  0xff   : > { %1682 = vrot.lane.b32.xlu0 %v2899_v32, %s2307_s23 }
 0x100   : > { %v1304_v12 = vpop.permute.xlu2 %1303  ;;  %v1113_v45 = vpop.permute.xlu1 %1112 }
 0x101   : > { %v1312_v57 = vadd.f32 %v1304_v12, %v1300_v35  ;;  %v1111_v5 = vpop.permute.xlu0 %1110  ;;  %v1120_v60 = vadd.f32 %v1113_v45, %v1108_v14  ;;  %v3622_v35 = vld [vmem:[#allocation30_spill] sm:$0xff]  ;;  %v1316_v12 = vrot.slane %v3620_v33, 1  ;;  %v3077_v45 = vld [vmem:[%s3015_s13 + $0x10] sm:$0x3] }
 0x102   : > { %v1119_v3 = vadd.f32 %v1111_v5, %v1107_v24  ;;  %3623 = vst [vmem:[#allocation25_spill] sm:$0xff] %v3077_v45 }
 0x103   : > { %v1131_v8 = vadd.f32 %v1126_v40, %v1120_v60 }
 0x104   : > { %v1130_v29 = vadd.f32 %v1124_v38, %v1119_v3  ;;  %v1346_v3 = vadd.f32 %v1340_v62, %v1329_v20  ;;  %v3625_v20 = vld [vmem:[#allocation42_spill] sm:$0xff] }
 0x105   : > { %v1134_v60 = vadd.f32 %v1131_v8, %v2482_v10  ;;  %v1380_v8 = vrot.slane %v2810_v42, 1 }
 0x106   : > { %1736 = vrot.lane.b32.xlu2 %v2878_v56, %s2307_s23  ;;  %1740 = vrot.lane.b32.xlu1 %v2880_v28, %s2307_s23  ;;  %v1133_v5 = vadd.f32 %v1130_v29, %v2474_v9  ;;  %v1299_v29 = vmul.f32 -6.0, %v2636_v50 }
 0x107   : > { %1738 = vrot.lane.b32.xlu0 %v2884_v4, %s2307_s23 }
 0x108   : > { %v1351_v61 = vpop.permute.xlu2 %1350  ;;  %v1248_v19 = vpop.permute.xlu1 %1247  ;;  %v3093_v40 = vmul.f32 %v1133_v5, %v2558_v22 }
 0x109   : > { %v1246_v7 = vpop.permute.xlu0 %1245  ;;  %v1254_v31 = vadd.f32 %v1248_v19, %v1236_v55  ;;  %v1283_v19 = vadd.f32 %v1276_v15, %v3077_v45  ;;  %v1317_v55 = vsel %vm1000_vm4, %v1315_v43, %v1316_v12  ;;  %v1359_v49 = vadd.f32 %v1351_v61, %v1346_v3  ;;  %v3626_v43 = vld [vmem:[#allocation10_spill] sm:$0xff] }
 0x10a   : > { %v1253_v14 = vadd.f32 %v1246_v7, %v3622_v35  ;;  %v1548_v7 = vmul.f32 -0.5, %v2696_v27  ;;  %v1362_v15 = vmul.f32 -6.0, %v2810_v42  ;;  %v3567_v61 = vrot.slane %v3625_v20, 1 }
 0x10c   : > { %v1365_v35 = vadd.f32 %v1362_v15, %v1359_v49  ;;  %v1382_v49 = vsel %vm1000_vm4, %v1380_v8, %v3567_v61  ;;  %v1341_v8 = vrot.slane %v3625_v20, 7 }
 0x10e   : > { %1474 = vrot.lane.b32.xlu2 %v1252_v51, %s2305_s22  ;;  %1478 = vrot.lane.b32.xlu1 %v1254_v31, %s2305_s22  ;;  %v1323_v51 = vadd.f32 %v1317_v55, %v1312_v57  ;;  %v3096_v31 = vmul.f32 %v1134_v60, %v2561_v23  ;;  %v1298_v57 = vmul.f32 -6.0, %v3620_v33  ;;  %v3629_v55 = vld [vmem:[#allocation32_spill] sm:$0xff] }
 0x10f   : > { %1476 = vrot.lane.b32.xlu0 %v1253_v14, %s2305_s22 }
 0x110   : > { %v1560_v16 = vpop.permute.xlu2 %1559  ;;  %v1290_v24 = vpop.permute.xlu1 %1289  ;;  %v1326_v41 = vadd.f32 %v1323_v51, %v3626_v43 }
 0x111   : > { %v1288_v25 = vpop.permute.xlu0 %1287  ;;  %v1296_v9 = vadd.f32 %v1290_v24, %v1283_v19  ;;  %v1566_v10 = vadd.f32 %v1560_v16, %v1548_v7  ;;  %v3627_v16 = vld [vmem:[#allocation16_spill] sm:$0xff] }
 0x112   : > { %v1295_v38 = vadd.f32 %v1288_v25, %v1282_v34  ;;  %v1335_v24 = vmul.f32 %v3627_v16, %v3626_v43 }
 0x113   : > { %v1302_v14 = vadd.f32 %v1299_v29, %v1296_v9 }
 0x114   : > { %v1301_v60 = vadd.f32 %v1298_v57, %v1295_v38 }
 0x116   : > { %1790 = vrot.lane.b32.xlu1 %v1566_v10, %s2305_s22  ;;  %v1450_v10 = vmul.f32 %v1326_v41, %v2806_v39 }
 0x118   : > { %v1369_v5 = vpop.permute.xlu2 %1368  ;;  %v1308_v3 = vpop.permute.xlu1 %1307 }
 0x119   : > { %v1377_v25 = vadd.f32 %v1369_v5, %v1365_v35  ;;  %v1306_v19 = vpop.permute.xlu0 %1305  ;;  %v1314_v7 = vadd.f32 %v1308_v3, %v1302_v14  ;;  %v3120_v35 = vld [vmem:[%s3051_s25 + $0x10] sm:$0x3]  ;;  %v3628_v5 = vld [vmem:[#allocation33_spill] sm:$0xff] }
 0x11a   : > { %v1313_v9 = vadd.f32 %v1306_v19, %v1301_v60  ;;  %v3127_v60 = vld [vmem:[%s3051_s25 + $0x8] sm:$0xff]  ;;  %v1331_v41 = vmul.f32 %v3120_v35, %v3077_v45 }
 0x11b   : > { %v1388_v51 = vadd.f32 %v1382_v49, %v1377_v25  ;;  %v1330_v19 = vmul.f32 %v3127_v60, %v3084_v48 }
 0x11c   : > { %v1348_v49 = vadd.f32 %v1341_v8, %v1331_v41  ;;  %v1363_v41 = vmul.f32 -6.0, %v3625_v20 }
 0x11d   : > { %v1391_v38 = vadd.f32 %v1388_v51, %v1335_v24  ;;  %v3630_v24 = vld [vmem:[#allocation31_spill] sm:$0xff] }
 0x11e   : > { %v902_v25 = vadd.f32 %v3630_v24, %v2977_v44 }
 0x11f   : > { %v3115_v15 = vadd.f32 %v1450_v10, %v1391_v38  ;;  %v1318_v38 = vrot.slane %v2636_v50, 1 }
 0x120   : > { %v3117_v29 = vpop.permute.xlu2 %1597  ;;  %v1558_v57 = vpop.permute.xlu1 %1557 }
 0x121   : > { %v1556_v14 = vpop.permute.xlu0 %1555  ;;  %v1565_v3 = vadd.f32 %v1558_v57, %v3628_v5  ;;  %v3631_v5 = vld [vmem:[#allocation41_spill] sm:$0xff]  ;;  %v1319_v42 = vsel %vm1000_vm4, %v1316_v12, %v1318_v38  ;;  %v3569_v12 = vrot.slane %v2693_v26, 7 }
 0x122   : > { %v1564_v34 = vadd.f32 %v1556_v14, %v3629_v55  ;;  %v1342_v55 = vsel %vm959_vm3, %v1340_v62, %v1341_v8  ;;  %v1325_v62 = vadd.f32 %v1318_v38, %v1314_v7  ;;  %v1324_v8 = vadd.f32 %v1319_v42, %v1313_v9  ;;  %v3634_v7 = vld [vmem:[#allocation11_spill] sm:$0xff]  ;;  %v3635_v38 = vld [vmem:[#allocation17_spill] sm:$0xff] }
 0x123   : > { %1788 = vrot.lane.b32.xlu0 %v1565_v3, %s2305_s22  ;;  %v904_v3 = vmul.f32 0.5, %v902_v25  ;;  %v1347_v37 = vadd.f32 %v1342_v55, %v1330_v19  ;;  %v1383_v61 = vrot.slane %v3631_v5, 1  ;;  %v3632_v55 = vld [vmem:[#allocation12_spill] sm:$0xff] }
 0x124   : > { %1786 = vrot.lane.b32.xlu2 %v1564_v34, %s2305_s22  ;;  %v1364_v34 = vmul.f32 -6.0, %v3631_v5  ;;  %v1327_v9 = vadd.f32 %v1324_v8, %v3634_v7  ;;  %v1336_v5 = vmul.f32 %v3635_v38, %v3634_v7  ;;  %v3638_v8 = vrot.slane %v2680_v63, 7  ;;  %s3175_s22 = scalar_lea.vmem [#allocation4], %s2836_s19 }
 0x126   : > { %v1589_v45 = vsel %vm959_vm3, %v3638_v8, %v3569_v12 }
 0x128   : > { %v3139_v51 = vpop.permute.xlu2 %1406  ;;  %v1355_v10 = vpop.permute.xlu1 %1354 }
 0x129   : > { %v1353_v57 = vpop.permute.xlu0 %1352  ;;  %v1361_v14 = vadd.f32 %v1355_v10, %v1348_v49  ;;  %v3636_v49 = vrot.slane %v3625_v20, 1 }
 0x12a   : > { %v1360_v24 = vadd.f32 %v1353_v57, %v1347_v37  ;;  %v3633_v37 = vld [vmem:[#allocation18_spill] sm:$0xff] }
 0x12b   : > { %v1367_v44 = vadd.f32 %v1364_v34, %v1361_v14  ;;  %1536 = vrot.lane.b32.xlu0 %v904_v3, %s2307_s23  ;;  %v1328_v14 = vadd.f32 %v1325_v62, %v3632_v55  ;;  %v1337_v57 = vmul.f32 %v3633_v37, %v3632_v55  ;;  %v3637_v62 = vsub.f32 %v2934_v46, %v2994_v17  ;;  %v3178_v46 = vld [vmem:[%s3175_s22 + $0x8] sm:$0xff] }
 0x12c   : > { %v1366_v25 = vadd.f32 %v1363_v41, %v1360_v24  ;;  %v1384_v24 = vsel %vm1000_vm4, %v3636_v49, %v1383_v61 }
 0x12d   : > { %v1150_v18 = vmul.f32 0.5, %v3637_v62 }
 0x130   : > { %v3150_v10 = vpop.permute.xlu2 %1662  ;;  %v1373_v19 = vpop.permute.xlu1 %1372 }
 0x131   : > { %v1371_v34 = vpop.permute.xlu0 %1370  ;;  %v1379_v3 = vadd.f32 %v1373_v19, %v1367_v44  ;;  %v1452_v44 = vmul.f32 %v1328_v14, %v2817_v52  ;;  %v1594_v14 = vadd.f32 %v1589_v45, %v3178_v46 }
 0x132   : > { %v1378_v42 = vadd.f32 %v1371_v34, %v1366_v25  ;;  %v1451_v25 = vmul.f32 %v1327_v9, %v2819_v54 }
 0x133   : > { %v1390_v41 = vadd.f32 %v1383_v61, %v1379_v3  ;;  %v1153_v61 = vmul.f32 0.15, %v1150_v18  ;;  %v3640_v3 = vld [vmem:[#allocation26_spill] sm:$0xff] }
 0x134   : > { %v1389_v11 = vadd.f32 %v1384_v24, %v1378_v42  ;;  %v3641_v42 = vrot.slane %v3640_v3, 7 }
 0x135   : > { %v1393_v19 = vadd.f32 %v1390_v41, %v1337_v57  ;;  %v1156_v24 = vmul.f32 0.5, %v1153_v61  ;;  %v3643_v61 = vld [vmem:[#allocation43_spill] sm:$0xff] }
 0x136   : > { %v1392_v20 = vadd.f32 %v1389_v11, %v1336_v5  ;;  %v1188_v9 = vmul.f32 %v3641_v42, %v2636_v50  ;;  %v950_v3 = vmul.f32 -0.5, %v3643_v61  ;;  %v3645_v61 = vsub.f32 %v3012_v2, %v3093_v40  ;;  %v3646_v2 = vld [vmem:[#allocation28_spill] sm:$0xff] }
 0x137   : > { %v3172_v34 = vadd.f32 %v1452_v44, %v1393_v19  ;;  %v1187_v40 = vmul.f32 %v3646_v2, %v3620_v33 }
 0x138   : > { %v3180_v17 = vadd.f32 %v1451_v25, %v1392_v20  ;;  %v1165_v49 = vpop.permute.xlu2 %1164  ;;  %v3183_v57 = vpop.permute.xlu1 %1601  ;;  %v1191_v44 = vmul.f32 0.5, %v1188_v9  ;;  %v3570_v20 = vrot.slane %v2806_v39, 7 }
 0x139   : > { %v1171_v11 = vmul.f32 %v1165_v49, %v2555_v21  ;;  %v1600_v5 = vpop.permute.xlu0 %1599  ;;  %v3642_v49 = vld [vmem:[#allocation9_spill] sm:$0xff] }
 0x13a   : > { %3639 = vst [vmem:[#allocation30_spill] sm:$0xff] %v3180_v17  ;;  %v3189_v18 = vadd.f32 %v1600_v5, %v1594_v14  ;;  %v953_v14 = vmul.f32 0.5, %v3642_v49  ;;  %v1402_v42 = vadd.f32 %v3570_v20, %v3054_v47  ;;  %v949_v5 = vmul.f32 -0.5, %v2909_v13 }
 0x13b   : > { %v1174_v41 = vmul.f32 0.5, %v1171_v11  ;;  %v952_v11 = vmul.f32 0.5, %v2433_v1  ;;  %v948_v49 = vmul.f32 -0.5, %v2914_v53  ;;  %v1148_v47 = vmul.f32 0.5, %v3645_v61  ;;  %v3647_v61 = vld [vmem:[#allocation27_spill] sm:$0xff] }
 0x13c   : > { %v956_v12 = vadd.f32 %v953_v14, %v950_v3  ;;  %v1418_v20 = vmul.f32 -6.0, %v2806_v39  ;;  %v1436_v1 = vrot.slane %v2806_v39, 1  ;;  %v3648_v17 = vrot.slane %v3647_v61, 7  ;;  %v3253_v61 = vld [vmem:[%s3175_s22] sm:$0xff] }
 0x13d   : > { %v1177_v62 = vsub.f32 %v1156_v24, %v1174_v41  ;;  %v1415_v24 = vadd.f32 %v3139_v51, %v1402_v42  ;;  %v3644_v41 = vsub.f32 %v3008_v59, %v3096_v31  ;;  %v955_v51 = vadd.f32 %v952_v11, %v949_v5 }
 0x13e   : > { %v1197_v3 = vmul.f32 %v956_v12, %v2696_v27  ;;  %v1186_v13 = vmul.f32 %v3648_v17, %v2594_v36 }
 0x13f   : > { %v3191_v19 = vsub.f32 %v1177_v62, %v1191_v44  ;;  %v1149_v62 = vmul.f32 0.5, %v3644_v41  ;;  %v951_v44 = vmul.f32 0.5, %v2425_v0  ;;  %v1421_v42 = vadd.f32 %v1418_v20, %v1415_v24 }
 0x140   : > { %v3193_v8 = vpop.permute.xlu2 %1718  ;;  %v3195_v45 = vpop.permute.xlu1 %1410  ;;  %v1151_v0 = vmul.f32 0.15, %v1148_v47  ;;  %v3649_v20 = vrot.slane %v2819_v54, 1  ;;  %v1189_v17 = vmul.f32 0.5, %v1186_v13 }
 0x141   : > { %v3197_v25 = vpop.permute.xlu0 %1408  ;;  %v1152_v55 = vmul.f32 0.15, %v1149_v62  ;;  %v954_v59 = vadd.f32 %v951_v44, %v948_v49  ;;  %v1196_v44 = vmul.f32 %v955_v51, %v2693_v26  ;;  %v3573_v51 = vrot.slane %v2878_v56, 7 }
 0x142   : > { %v1438_v11 = vsel %vm1000_vm4, %v1436_v1, %v3649_v20  ;;  %v1154_v33 = vmul.f32 0.5, %v1151_v0  ;;  %v1397_v0 = vrot.slane %v2819_v54, 7 }
 0x143   : > { %v1155_v62 = vmul.f32 0.5, %v1152_v55  ;;  %v1195_v12 = vmul.f32 %v954_v59, %v2680_v63  ;;  %v849_v55 = vld [vmem:[%s848_s26] sm:$0xff] }
 0x145   : > { %v1198_v13 = vmul.f32 0.5, %v1195_v12 }
 0x148   : > { %v3200_v50 = vpop.permute.xlu2 %1615  ;;  %v3202_v21 = vpop.permute.xlu1 %1666 }
 0x149   : > { %v3209_v9 = vpop.permute.xlu0 %1664 }
 0x150   : > { %v1425_v31 = vpop.permute.xlu2 %1424  ;;  %v1163_v41 = vpop.permute.xlu1 %1162 }
 0x151   : > { %v1433_v48 = vadd.f32 %v1425_v31, %v1421_v42  ;;  %v1170_v53 = vmul.f32 %v1163_v41, %v2561_v23  ;;  %v1161_v14 = vpop.permute.xlu0 %1160  ;;  %v1190_v42 = vmul.f32 0.5, %v1187_v40  ;;  %v1200_v31 = vmul.f32 0.5, %v1197_v3 }
 0x152   : > { %v1169_v5 = vmul.f32 %v1161_v14, %v2558_v22  ;;  %v1199_v22 = vmul.f32 0.5, %v1196_v44  ;;  %v3650_v14 = vld [vmem:[#allocation34_spill] sm:$0xff]  ;;  %v3264_v44 = vld [vmem:[%s848_s26 + $0x10] sm:$0x3] }
 0x153   : > { %v1444_v24 = vadd.f32 %v1438_v11, %v1433_v48  ;;  %v1173_v23 = vmul.f32 0.5, %v1170_v53  ;;  %v1203_v48 = vsub.f32 %v3191_v19, %v1200_v31  ;;  %v3652_v11 = vrot.slane %v2680_v63, 7  ;;  %v3269_v31 = vld [vmem:[%s3175_s22 + $0x10] sm:$0x3] }
 0x154   : > { %v1172_v49 = vmul.f32 0.5, %v1169_v5 }
 0x155   : > { %v1176_v47 = vsub.f32 %v1155_v62, %v1173_v23  ;;  %v1447_v1 = vadd.f32 %v1444_v24, %v3627_v16  ;;  %v3651_v16 = vrot.slane %v3650_v14, 7  ;;  %v1593_v5 = vadd.f32 %v3652_v11, %v3253_v61  ;;  %v3262_v23 = vld [vmem:[%s848_s26 + $0x8] sm:$0xff] }
 0x156   : > { %v1175_v41 = vsub.f32 %v1154_v33, %v1172_v49  ;;  %v1652_v24 = vrot.slane %v2889_v6, 7  ;;  %v1653_v62 = vrot.slane %v2899_v32, 7  ;;  %v1641_v49 = vmul.f32 %v849_v55, %v3253_v61 }
 0x157   : > { %v1193_v2 = vsub.f32 %v1176_v47, %v1190_v42  ;;  %v3250_v3 = vmul.f32 %v3651_v16, %v2594_v36  ;;  %v1456_v12 = vmul.f32 %v1447_v1, %v2594_v36  ;;  %v1210_v42 = vrot.slane %v1203_v48, 1 }
 0x158   : > { %v1192_v53 = vsub.f32 %v1175_v41, %v1189_v17  ;;  %v3243_v59 = vpop.permute.xlu2 %1680  ;;  %v3245_v40 = vpop.permute.xlu1 %1722  ;;  %v1714_v17 = vadd.f32 %v3573_v51, %v849_v55  ;;  %v3653_v41 = vrot.slane %v2806_v39, 7  ;;  %v1643_v36 = vmul.f32 %v3264_v44, %v3269_v31 }
 0x159   : > { %v3255_v19 = vpop.permute.xlu0 %1720  ;;  %v1202_v20 = vsub.f32 %v1193_v2, %v1199_v22  ;;  %v1627_v22 = vrot.slane %v2680_v63, 1  ;;  %v1654_v48 = vsel %vm959_vm3, %v1652_v24, %v1653_v62  ;;  %v1692_v55 = vrot.slane %v2889_v6, 1 }
 0x15a   : > { %v1201_v33 = vsub.f32 %v1192_v53, %v1198_v13  ;;  %v1398_v2 = vsel %vm959_vm3, %v3653_v41, %v1397_v0  ;;  %v1642_v13 = vmul.f32 %v3262_v23, %v3178_v46  ;;  %v1658_v11 = vadd.f32 %v1652_v24, %v1641_v49 }
 0x15b   : > { %v1208_v47 = vrot.slane %v1202_v20, 1  ;;  %v1606_v20 = vadd.f32 %v3117_v29, %v1593_v5  ;;  %v1459_v41 = vsub.f32 %v3115_v15, %v1456_v12  ;;  %v1403_v53 = vadd.f32 %v1398_v2, %v3127_v60 }
 0x15c   : > { %v1207_v14 = vrot.slane %v1201_v33, 1  ;;  %v1727_v33 = vadd.f32 %v3193_v8, %v1714_v17  ;;  %v1404_v39 = vadd.f32 %v1397_v0, %v3120_v35  ;;  %v1671_v29 = vadd.f32 %v3150_v10, %v1658_v11 }
 0x15d   : > { %v1211_v1 = vsel %vm1000_vm4, %v1208_v47, %v1210_v42  ;;  %v3654_v42 = vrot.slane %v2693_v26, 7  ;;  %v3655_v8 = vrot.slane %v2693_v26, 1  ;;  %v1659_v15 = vadd.f32 %v1654_v48, %v1642_v13 }
 0x15e   : > { %1214 = vrot.lane.b32.xlu1 %v1211_v1, %s2307_s23  ;;  %v1209_v16 = vsel %vm1000_vm4, %v1207_v14, %v1208_v47  ;;  %v1609_v1 = vmul.f32 -6.0, %v2680_v63  ;;  %v1730_v24 = vmul.f32 -6.0, %v2878_v56  ;;  %v1660_v12 = vadd.f32 %v1653_v62, %v1643_v36 }
 0x15f   : > { %1212 = vrot.lane.b32.xlu0 %v1209_v16, %s2307_s23  ;;  %v1595_v51 = vadd.f32 %v3654_v42, %v3269_v31  ;;  %v1629_v5 = vsel %vm1000_vm4, %v1627_v22, %v3655_v8  ;;  %v1674_v60 = vmul.f32 -6.0, %v2889_v6  ;;  %v3656_v35 = vrot.slane %v2899_v32, 1 }
 0x160   : > { %v1737_v47 = vpop.permute.xlu2 %1736  ;;  %v3298_v14 = vpop.permute.xlu1 %1619  ;;  %v1709_v0 = vrot.slane %v2884_v4, 7  ;;  %v1417_v17 = vadd.f32 %v3195_v45, %v1404_v39  ;;  %v1612_v10 = vadd.f32 %v1609_v1, %v1606_v20  ;;  %v1733_v2 = vadd.f32 %v1730_v24, %v1727_v33 }
 0x161   : > { %v1618_v49 = vpop.permute.xlu0 %1617  ;;  %v1694_v63 = vsel %vm1000_vm4, %v1692_v55, %v3656_v35  ;;  %v1462_v16 = vmul.f32 0.5, %v1459_v41  ;;  %v1416_v22 = vadd.f32 %v3197_v25, %v1403_v53  ;;  %v1748_v13 = vrot.slane %v2878_v56, 1  ;;  %v3325_v41 = vld [vmem:[%s2677_s24 + $0x10] sm:$0x3] }
 0x162   : > { %v3574_v62 = vrot.slane %v2884_v4, 1  ;;  %v1439_v6 = vrot.slane %v2817_v52, 1  ;;  %v1624_v36 = vadd.f32 %v3200_v50, %v1612_v10  ;;  %v1677_v48 = vadd.f32 %v1674_v60, %v1671_v29  ;;  %v3336_v10 = vld [vmem:[%s2552_s15] sm:$0xff] }
 0x163   : > { %v1745_v55 = vadd.f32 %v1737_v47, %v1733_v2  ;;  %v1420_v11 = vmul.f32 -6.0, %v2817_v52  ;;  %v3657_v45 = vrot.slane %v2878_v56, 7  ;;  %v1611_v20 = vmul.f32 -6.0, %v2696_v27 }
 0x164   : > { %v1610_v25 = vmul.f32 -6.0, %v2693_v26  ;;  %v1419_v53 = vmul.f32 -6.0, %v2819_v54  ;;  %v1689_v33 = vadd.f32 %v3243_v59, %v1677_v48  ;;  %v1465_v42 = vmul.f32 0.15, %v1462_v16 }
 0x165   : > { %v1710_v39 = vsel %vm959_vm3, %v3657_v45, %v1709_v0  ;;  %v1423_v1 = vadd.f32 %v1420_v11, %v1417_v17  ;;  %v1750_v52 = vsel %vm1000_vm4, %v1748_v13, %v3574_v62  ;;  %v3658_v8 = vrot.slane %v2819_v54, 1  ;;  %v3659_v13 = vld [vmem:[#allocation13_spill] sm:$0xff]  ;;  %v3660_v11 = vld [vmem:[#allocation19_spill] sm:$0xff] }
 0x166   : > { %v1613_v47 = vadd.f32 %v1610_v25, %v3189_v18  ;;  %v1422_v60 = vadd.f32 %v1419_v53, %v1416_v22  ;;  %v1635_v59 = vadd.f32 %v1629_v5, %v1624_v36  ;;  %v1756_v35 = vadd.f32 %v1750_v52, %v1745_v55 }
 0x167   : > { %v1440_v24 = vsel %vm1000_vm4, %v3658_v8, %v1439_v6  ;;  %v1608_v48 = vadd.f32 %v3183_v57, %v1595_v51  ;;  %v1647_v18 = vmul.f32 %v3660_v11, %v3659_v13  ;;  %v1700_v62 = vadd.f32 %v1694_v63, %v1689_v33 }
 0x168   : > { %v1475_v27 = vpop.permute.xlu2 %1474  ;;  %v1429_v29 = vpop.permute.xlu1 %1428  ;;  %v1625_v45 = vadd.f32 %v1618_v49, %v1613_v47  ;;  %v1468_v54 = vmul.f32 0.5, %v1465_v42  ;;  %v1672_v5 = vadd.f32 %v3209_v9, %v1659_v15  ;;  %v3661_v22 = vrot.slane %v3325_v41, 1 }
 0x169   : > { %v1483_v2 = vmul.f32 %v3336_v10, %v1475_v27  ;;  %v1435_v17 = vadd.f32 %v1429_v29, %v1423_v1  ;;  %v1427_v16 = vpop.permute.xlu0 %1426  ;;  %v3662_v36 = vrot.slane %v2693_v26, 1  ;;  %v1503_v53 = vmul.f32 0.5, %v3250_v3 }
 0x16a   : > { %v1434_v25 = vadd.f32 %v1427_v16, %v1422_v60  ;;  %v1638_v51 = vadd.f32 %v1635_v59, %v3659_v13  ;;  %v1673_v49 = vadd.f32 %v3202_v21, %v1660_v12  ;;  %v1759_v63 = vadd.f32 %v1756_v35, %v3660_v11  ;;  %v3663_v60 = vld [vmem:[#allocation14_spill] sm:$0xff]  ;;  %v3381_v11 = vld [vmem:[%s2591_s18 + $0x8] sm:$0xff] }
 0x16b   : > { %v1486_v50 = vmul.f32 0.5, %v1483_v2  ;;  %v1446_v8 = vadd.f32 %v1439_v6, %v1435_v17  ;;  %v1631_v55 = vsel %vm1000_vm4, %v3662_v36, %v3661_v22  ;;  %v1676_v9 = vmul.f32 -6.0, %v2893_v30  ;;  %v3375_v2 = vld [vmem:[%s2591_s18 + $0x10] sm:$0x3]  ;;  %v3667_v36 = vld [vmem:[#allocation15_spill] sm:$0xff] }
 0x16c   : > { %v1445_v57 = vadd.f32 %v1440_v24, %v1434_v25  ;;  %v1636_v6 = vadd.f32 %v1631_v55, %v1625_v45  ;;  %v1695_v15 = vrot.slane %v2893_v30, 1  ;;  %v1675_v26 = vmul.f32 -6.0, %v2899_v32  ;;  %v3363_v30 = vld [vmem:[%s2677_s24] sm:$0xff]  ;;  %v3668_v55 = vld [vmem:[#allocation21_spill] sm:$0xff] }
 0x16d   : > { %v1489_v33 = vsub.f32 %v1468_v54, %v1486_v50  ;;  %v1703_v42 = vadd.f32 %v1700_v62, %v1647_v18  ;;  %v1614_v1 = vadd.f32 %v1611_v20, %v1608_v48  ;;  %v1449_v3 = vadd.f32 %v1446_v8, %v3633_v37 }
 0x16e   : > { %v1716_v47 = vadd.f32 %v1709_v0, %v3264_v44  ;;  %v1715_v21 = vadd.f32 %v1710_v39, %v3262_v23  ;;  %v1448_v12 = vadd.f32 %v1445_v57, %v3635_v38  ;;  %v1678_v27 = vadd.f32 %v1675_v26, %v1672_v5  ;;  %v3664_v23 = vld [vmem:[#allocation20_spill] sm:$0xff] }
 0x16f   : > { %v3355_v52 = vsub.f32 %v1489_v33, %v1503_v53  ;;  %v1762_v29 = vmul.f32 %v1638_v51, %v2878_v56  ;;  %v1768_v62 = vmul.f32 %v3363_v30, %v1759_v63  ;;  %v1626_v20 = vadd.f32 %v3298_v14, %v1614_v1 }
 0x170   : > { %v1685_v50 = vpop.permute.xlu1 %1684  ;;  %v1679_v24 = vadd.f32 %v1676_v9, %v1673_v49  ;;  %v1639_v44 = vadd.f32 %v1636_v6, %v3663_v60  ;;  %v1648_v0 = vmul.f32 %v3664_v23, %v3663_v60  ;;  %v3665_v38 = vrot.slane %v2899_v32, 1  ;;  %v3669_v9 = vld [vmem:[#allocation30_spill] sm:$0xff] }
 0x171   : > { %v1683_v37 = vpop.permute.xlu0 %1682  ;;  %v1765_v56 = vadd.f32 %v1762_v29, %v1703_v42  ;;  %v1729_v35 = vadd.f32 %v3245_v40, %v1716_v47  ;;  %v1458_v17 = vmul.f32 %v3375_v2, %v1449_v3  ;;  %v1267_v16 = vmul.f32 0.5, %v3626_v43  ;;  %v3670_v42 = vld [vmem:[#allocation29_spill] sm:$0xff] }
 0x172   : > { %v1696_v39 = vsel %vm1000_vm4, %v3665_v38, %v1695_v15  ;;  %v1690_v59 = vadd.f32 %v1683_v37, %v1678_v27  ;;  %v1691_v14 = vadd.f32 %v1685_v50, %v1679_v24  ;;  %v1728_v48 = vadd.f32 %v3255_v19, %v1715_v21  ;;  %v3671_v50 = vld [vmem:[#allocation12_spill] sm:$0xff]  ;;  %v3672_v27 = vld [vmem:[#allocation25_spill] sm:$0xff] }
 0x173   : > { %v1457_v18 = vmul.f32 %v3381_v11, %v1448_v12  ;;  %v1268_v45 = vmul.f32 0.5, %v3634_v7  ;;  %v3666_v25 = vmov %v3661_v22  ;;  %v1732_v40 = vmul.f32 -6.0, %v2880_v28 }
 0x174   : > { %v1701_v32 = vadd.f32 %v1696_v39, %v1690_v59  ;;  %v1637_v54 = vadd.f32 %v3666_v25, %v1626_v20  ;;  %v1771_v8 = vsub.f32 %v1765_v56, %v1768_v62  ;;  %v1763_v5 = vmul.f32 %v1639_v44, %v2884_v4  ;;  %v3673_v62 = vld [vmem:[#allocation36_spill] sm:$0xff] }
 0x175   : > { %v1751_v43 = vrot.slane %v2880_v28, 1  ;;  %v1731_v19 = vmul.f32 -6.0, %v2884_v4  ;;  %v1649_v53 = vmul.f32 %v3668_v55, %v3667_v36  ;;  %v1702_v57 = vadd.f32 %v1695_v15, %v1691_v14 }
 0x176   : > { %v1704_v22 = vadd.f32 %v1701_v32, %v1648_v0  ;;  %v1735_v51 = vadd.f32 %v1732_v40, %v1729_v35  ;;  %v1461_v7 = vsub.f32 %v3172_v34, %v1458_v17  ;;  %v1264_v49 = vmul.f32 -0.5, %v3018_v58  ;;  %v2293_v34 = vld [vmem:[%s2591_s18] sm:$0xff]  ;;  %v3676_v32 = vld [vmem:[#allocation35_spill] sm:$0xff]  ;;  %s3434_s18 = scalar_lea.vmem [#allocation8], %s2836_s19 }
 0x177   : > { %v1734_v6 = vadd.f32 %v1731_v19, %v1728_v48  ;;  %v1460_v26 = vsub.f32 %v3669_v9, %v1457_v18  ;;  %v1265_v1 = vmul.f32 -0.5, %v3670_v42  ;;  %v1640_v3 = vadd.f32 %v1637_v54, %v3667_v36  ;;  %v3427_v42 = vld [vmem:[%s2552_s15 + $0x8] sm:$0xff] }
 0x178   : > { %v3395_v63 = vadd.f32 %v1763_v5, %v1704_v22  ;;  %v1741_v33 = vpop.permute.xlu1 %1740  ;;  %v1774_v12 = vmul.f32 0.5, %v1771_v8  ;;  %v1269_v15 = vmul.f32 0.5, %v3671_v50  ;;  %v1266_v29 = vmul.f32 -0.5, %v3672_v27  ;;  %v858_v27 = vld [vmem:[%s3434_s18 + $0x8] sm:$0xff] }
 0x179   : > { %v1747_v47 = vadd.f32 %v1741_v33, %v1735_v51  ;;  %v1739_v21 = vpop.permute.xlu0 %1738  ;;  %v3674_v58 = vrot.slane %v3673_v62, 7  ;;  %v1705_v37 = vadd.f32 %v1702_v57, %v1649_v53  ;;  %v3675_v0 = vrot.slane %v2884_v4, 1  ;;  %v3678_v53 = vld [vmem:[#allocation38_spill] sm:$0xff]  ;;  %v2295_v33 = vld [vmem:[%s2552_s15 + $0x10] sm:$0x3] }
 0x17a   : > { %v1746_v24 = vadd.f32 %v1739_v21, %v1734_v6  ;;  %v1464_v39 = vmul.f32 0.5, %v1461_v7  ;;  %v1270_v59 = vadd.f32 %v1267_v16, %v1264_v49  ;;  %v1463_v35 = vmul.f32 0.5, %v1460_v26 }
 0x17b   : > { %v1812_v20 = vmul.f32 %v2293_v34, %v3674_v58  ;;  %v1758_v44 = vadd.f32 %v1751_v43, %v1747_v47  ;;  %v1752_v38 = vsel %vm1000_vm4, %v3675_v0, %v1751_v43  ;;  %v1271_v17 = vadd.f32 %v1268_v45, %v1265_v1  ;;  %v3417_v43 = vld [vmem:[%s2677_s24 + $0x8] sm:$0xff] }
 0x17c   : > { %v1757_v56 = vadd.f32 %v1752_v38, %v1746_v24  ;;  %v1764_v14 = vmul.f32 %v1640_v3, %v2880_v28  ;;  %v1777_v18 = vmul.f32 0.15, %v1774_v12  ;;  %v3677_v25 = vrot.slane %v3676_v32, 7 }
 0x17d   : > { %v1761_v48 = vadd.f32 %v1758_v44, %v3668_v55  ;;  %v1272_v40 = vadd.f32 %v1269_v15, %v1266_v29  ;;  %v1815_v8 = vmul.f32 0.5, %v1812_v20  ;;  %v1467_v28 = vmul.f32 0.15, %v1464_v39  ;;  %v859_v29 = vld [vmem:[%s3434_s18 + $0x10] sm:$0x3] }
 0x17e   : > { %v1502_v54 = vmul.f32 %v3375_v2, %v3677_v25  ;;  %v1760_v4 = vadd.f32 %v1757_v56, %v3664_v23  ;;  %v1787_v5 = vpop.permute.xlu2 %1786  ;;  %v1767_v16 = vadd.f32 %v1764_v14, %v1705_v37  ;;  %v1501_v57 = vmul.f32 %v3381_v11, %v3678_v53  ;;  %v3680_v56 = vld [vmem:[#allocation24_spill] sm:$0xff] }
 0x17f   : > { %v1770_v22 = vmul.f32 %v3325_v41, %v1761_v48  ;;  %v1795_v45 = vmul.f32 %v3336_v10, %v1787_v5  ;;  %v1466_v51 = vmul.f32 0.15, %v1463_v35  ;;  %v1509_v23 = vmul.f32 %v3363_v30, %v1270_v59 }
 0x180   : > { %v3420_v19 = vmul.f32 %v3417_v43, %v1760_v4  ;;  %v1479_v55 = vpop.permute.xlu1 %1478  ;;  %v1780_v7 = vmul.f32 0.5, %v1777_v18  ;;  %v1505_v26 = vmul.f32 0.5, %v1502_v54  ;;  %v1511_v3 = vmul.f32 %v3325_v41, %v1272_v40  ;;  %v3681_v40 = vld [vmem:[#allocation37_spill] sm:$0xff] }
 0x181   : > { %v1798_v49 = vmul.f32 0.5, %v1795_v45  ;;  %v1485_v6 = vmul.f32 %v2295_v33, %v1479_v55  ;;  %v1477_v9 = vpop.permute.xlu0 %1476  ;;  %v1773_v10 = vsub.f32 %v1767_v16, %v1770_v22  ;;  %v1470_v12 = vmul.f32 0.5, %v1467_v28 }
 0x182   : > { %v1484_v1 = vmul.f32 %v3427_v42, %v1477_v9  ;;  %v1772_v47 = vsub.f32 %v3395_v63, %v3420_v19  ;;  %v1469_v34 = vmul.f32 0.5, %v1466_v51  ;;  %v1510_v58 = vmul.f32 %v3417_v43, %v1271_v17  ;;  %v3679_v63 = vld [vmem:[#allocation23_spill] sm:$0xff] }
 0x183   : > { %v1801_v21 = vsub.f32 %v1780_v7, %v1798_v49  ;;  %v1488_v50 = vmul.f32 0.5, %v1485_v6  ;;  %v1776_v15 = vmul.f32 0.5, %v1773_v10  ;;  %v1512_v20 = vmul.f32 0.5, %v1509_v23 }
 0x184   : > { %v1487_v62 = vmul.f32 0.5, %v1484_v1  ;;  %v1504_v44 = vmul.f32 0.5, %v1501_v57  ;;  %v910_v0 = vmul.f32 0.5, %v3679_v63  ;;  %v907_v39 = vmul.f32 -0.5, %v858_v27  ;;  %v3683_v27 = vld [vmem:[#allocation39_spill] sm:$0xff] }
 0x185   : > { %v3439_v24 = vsub.f32 %v1801_v21, %v1815_v8  ;;  %v1491_v37 = vsub.f32 %v1470_v12, %v1488_v50  ;;  %v908_v59 = vmul.f32 -0.5, %v859_v29  ;;  %v911_v35 = vmul.f32 0.5, %v3680_v56 }
 0x186   : > { %v1490_v38 = vsub.f32 %v1469_v34, %v1487_v62  ;;  %v1779_v48 = vmul.f32 0.15, %v1776_v15  ;;  %v1514_v18 = vmul.f32 0.5, %v1511_v3  ;;  %v1513_v54 = vmul.f32 0.5, %v1510_v58 }
 0x187   : > { %v1508_v14 = vsub.f32 %v1491_v37, %v1505_v26  ;;  %v1515_v17 = vsub.f32 %v3355_v52, %v1512_v20  ;;  %v3682_v4 = vrot.slane %v3681_v40, 7  ;;  %v913_v45 = vadd.f32 %v910_v0, %v907_v39 }
 0x188   : > { %v1507_v32 = vsub.f32 %v1490_v38, %v1504_v44  ;;  %v1791_v25 = vpop.permute.xlu1 %1790  ;;  %v914_v28 = vadd.f32 %v911_v35, %v908_v59  ;;  %v1782_v19 = vmul.f32 0.5, %v1779_v48  ;;  %v1579_v57 = vmul.f32 0.5, %v3659_v13  ;;  %v3684_v59 = vld [vmem:[#allocation22_spill] sm:$0xff] }
 0x189   : > { %v1814_v8 = vmul.f32 %v3375_v2, %v3682_v4  ;;  %v1797_v5 = vmul.f32 %v2295_v33, %v1791_v25  ;;  %v1517_v16 = vsub.f32 %v1508_v14, %v1514_v18  ;;  %v1576_v51 = vmul.f32 -0.5, %v3253_v61  ;;  %v3685_v4 = vld [vmem:[#allocation40_spill] sm:$0xff] }
 0x18a   : > { %v1516_v22 = vsub.f32 %v1507_v32, %v1513_v54  ;;  %v1521_v23 = vrot.slane %v1515_v17, 1  ;;  %v1581_v52 = vmul.f32 0.5, %v3667_v36  ;;  %v1578_v49 = vmul.f32 -0.5, %v3269_v31 }
 0x18b   : > { %v1800_v55 = vmul.f32 0.5, %v1797_v5  ;;  %v1524_v53 = vrot.slane %v1517_v16, 1  ;;  %v1817_v6 = vmul.f32 0.5, %v1814_v8  ;;  %v916_v10 = vmul.f32 0.5, %v913_v45  ;;  %v865_v16 = vld [vmem:[%s2389_s29 + $0x8] sm:$0xff] }
 0x18c   : > { %v1522_v7 = vrot.slane %v1516_v22, 1  ;;  %v917_v26 = vmul.f32 0.5, %v914_v28  ;;  %v1580_v61 = vmul.f32 0.5, %v3663_v60  ;;  %v1577_v13 = vmul.f32 -0.5, %v3178_v46  ;;  %v857_v46 = vld [vmem:[%s3434_s18] sm:$0xff] }
 0x18d   : > { %v1803_v2 = vsub.f32 %v1782_v19, %v1800_v55  ;;  %v1775_v36 = vmul.f32 0.5, %v1772_v47  ;;  %v1584_v31 = vadd.f32 %v1581_v52, %v1578_v49  ;;  %v1582_v3 = vadd.f32 %v1579_v57, %v1576_v51  ;;  %v864_v22 = vld [vmem:[%s2389_s29] sm:$0xff]  ;;  %v3687_v51 = vld [vmem:[#allocation45_spill] sm:$0xff] }
 0x18e   : > { %v1523_v33 = vsel %vm1000_vm4, %v1521_v23, %v1522_v7  ;;  %v1525_v9 = vsel %vm1000_vm4, %v1522_v7, %v1524_v53  ;;  %v1850_v21 = vrot.slane %v916_v10, 1  ;;  %v1852_v12 = vrot.slane %v917_v26, 1  ;;  %v3686_v53 = vld [vmem:[#allocation44_spill] sm:$0xff]  ;;  %v866_v49 = vld [vmem:[%s2394_s14] sm:$0xff]  ;;  %v869_v26 = vld [vmem:[%s2399_s17 + $0x8] sm:$0xff] }
 0x18f   : > { %v1820_v1 = vsub.f32 %v1803_v2, %v1817_v6  ;;  %1526 = vrot.lane.b32.xlu2 %v1523_v33, %s2307_s23  ;;  %1528 = vrot.lane.b32.xlu0 %v1525_v9, %s2307_s23  ;;  %v1583_v50 = vadd.f32 %v1580_v61, %v1577_v13  ;;  %v1778_v15 = vmul.f32 0.15, %v1775_v36  ;;  %v1813_v29 = vmul.f32 %v3381_v11, %v3683_v27  ;;  %v867_v27 = vld [vmem:[%s2394_s14 + $0x8] sm:$0xff] }
 0x190   : > { %v1823_v62 = vmul.f32 %v3325_v41, %v1584_v31  ;;  %v1853_v60 = vsel %vm1000_vm4, %v1850_v21, %v1852_v12  ;;  %v1821_v20 = vmul.f32 %v3363_v30, %v1582_v3  ;;  %v906_v39 = vmul.f32 -0.5, %v857_v46  ;;  %v868_v3 = vld [vmem:[%s2399_s17] sm:$0xff] }
 0x191   : > { %v1781_v47 = vmul.f32 0.5, %v1778_v15  ;;  %v1822_v44 = vmul.f32 %v3417_v43, %v1583_v50  ;;  %v1816_v63 = vmul.f32 0.5, %v1813_v29  ;;  %v909_v41 = vmul.f32 0.5, %v3684_v59 }
 0x192   : > { %v1826_v0 = vmul.f32 0.5, %v1823_v62  ;;  %v1824_v11 = vmul.f32 0.5, %v1821_v20  ;;  %v905_v8 = vmul.f32 0.5, %v3685_v4 }
 0x193   : > { %v912_v48 = vadd.f32 %v909_v41, %v906_v39 }
 0x194   : > { %v1829_v35 = vsub.f32 %v1820_v1, %v1826_v0  ;;  %v1827_v14 = vsub.f32 %v3439_v24, %v1824_v11 }
 0x195   : > { %v1789_v34 = vpop.permute.xlu0 %1788  ;;  %v915_v17 = vmul.f32 0.5, %v912_v48 }
 0x196   : > { %v1796_v58 = vmul.f32 %v3427_v42, %v1789_v34  ;;  %v1825_v42 = vmul.f32 0.5, %v1822_v44  ;;  %v1836_v32 = vrot.slane %v1829_v35, 1  ;;  %v1833_v25 = vrot.slane %v1827_v14, 1 }
 0x197   : > { %1856 = vrot.lane.b32.xlu0 %v1853_v60, %s2307_s23  ;;  %v1849_v40 = vrot.slane %v915_v17, 1 }
 0x198   : > { %v1799_v37 = vmul.f32 0.5, %v1796_v58 }
 0x199   : > { %v1851_v24 = vsel %vm1000_vm4, %v1849_v40, %v1850_v21 }
 0x19a   : > { %v1802_v38 = vsub.f32 %v1781_v47, %v1799_v37 }
 0x19c   : > { %v1819_v56 = vsub.f32 %v1802_v38, %v1816_v63 }
 0x19d   : > { %v1537_v5 = vpop.permute.xlu0 %1536 }
 0x19e   : > { %v1828_v30 = vsub.f32 %v1819_v56, %v1825_v42 }
 0x1a0   : > { %v1834_v18 = vrot.slane %v1828_v30, 1 }
 0x1a2   : > { %v1837_v43 = vsel %vm1000_vm4, %v1834_v18, %v1836_v32  ;;  %v1835_v54 = vsel %vm1000_vm4, %v1833_v25, %v1834_v18 }
 0x1a3   : > { %1840 = vrot.lane.b32.xlu2 %v1837_v43, %s2307_s23  ;;  %1838 = vrot.lane.b32.xlu1 %v1835_v54, %s2307_s23 }
 0x1ab   : > { %1538 = vrot.lane.b32.xlu1 %v905_v8, %s2307_s23  ;;  %1854 = vrot.lane.b32.xlu2 %v1851_v24, %s2307_s23 }
 0x1d0   : > { %v1215_v45 = vpop.permute.xlu1 %1214 }
 0x1d1   : > { %v1219_v28 = vadd.f32 %v1215_v45, %v865_v16  ;;  %v1213_v19 = vpop.permute.xlu0 %1212 }
 0x1d2   : > { %v1218_v55 = vadd.f32 %v1213_v19, %v864_v22 }
 0x1d3   : > { %v1231_v57 = vsub.f32 %v1219_v28, %v3686_v53 }
 0x1d4   : > { %v1230_v23 = vsub.f32 %v1218_v55, %v3687_v51 }
 0x1d5   : > { %v1233_v7 = vmul.f32 0.9756098, %v1231_v57 }
 0x1d6   : > { %v1232_v52 = vmul.f32 0.9756098, %v1230_v23 }
 0x1d7   : > { %1866 = vst.msk [vmem:[%s2404_s20 + $0x8] sm:$0xff] %vm1864_vm5, %v1233_v7 }
 0x1d8   : > { %1865 = vst.msk [vmem:[%s2404_s20] sm:$0xff] %vm1864_vm5, %v1232_v52 }
 0x1e9   : > { %v1527_v6 = vpop.permute.xlu2 %1526 }
 0x1ea   : > { %v1532_v2 = vadd.f32 %v1527_v6, %v866_v49 }
 0x1ec   : > { %v1542_v33 = vsub.f32 %v1532_v2, %v1537_v5 }
 0x1ee   : > { %v1544_v9 = vmul.f32 0.9756098, %v1542_v33 }
 0x1f0   : > { %1867 = vst.msk [vmem:[%s2409_s27] sm:$0xff] %vm1864_vm5, %v1544_v9 }
 0x1fd   : > { %v1841_v1 = vpop.permute.xlu2 %1840 }
 0x1fe   : > { %v1845_v61 = vadd.f32 %v1841_v1, %v869_v26 }
 0x201   : > { %v1529_v10 = vpop.permute.xlu0 %1528 }
 0x202   : > { %v1533_v34 = vadd.f32 %v1529_v10, %v867_v27 }
 0x205   : > { %v1855_v50 = vpop.permute.xlu2 %1854 }
 0x209   : > { %v1857_v13 = vpop.permute.xlu0 %1856 }
 0x20a   : > { %v1861_v36 = vsub.f32 %v1845_v61, %v1857_v13 }
 0x20c   : > { %v1863_v31 = vmul.f32 0.9756098, %v1861_v36 }
 0x20e   : > { %1870 = vst.msk [vmem:[%s2414_s30 + $0x8] sm:$0xff] %vm1864_vm5, %v1863_v31 }
 0x215   : > { %v1839_v21 = vpop.permute.xlu1 %1838 }
 0x216   : > { %v1844_v12 = vadd.f32 %v1839_v21, %v868_v3 }
 0x218   : > { %v1860_v15 = vsub.f32 %v1844_v12, %v1855_v50 }
 0x21a   : > { %v1862_v29 = vmul.f32 0.9756098, %v1860_v15 }
 0x21c   : > { %1869 = vst.msk [vmem:[%s2414_s30] sm:$0xff] %vm1864_vm5, %v1862_v29 }
 0x21d   : > { %v1539_v62 = vpop.permute.xlu1 %1538 }
 0x21e   : > { %v1543_v58 = vsub.f32 %v1533_v34, %v1539_v62 }
 0x220   : > { %v1545_v60 = vmul.f32 0.9756098, %v1543_v58 }
 0x222   : > { %1868 = vst.msk [vmem:[%s2409_s27 + $0x8] sm:$0xff] %vm1864_vm5, %v1545_v60 }
 0x223 PF: > { %s23_s21 = sadd.s32 1, %s2303_s21  }
 0x224   : > { %p20_p10 = scmp.ge.s32.totalorder %s23_s21, 12  }
 0x226   :  { %22 = sbr.rel (!%p20_p10) target bundleno = 3 (0x3), region = 166 }

// kernel: ai4urban_forward.13
= control target key start
LH: loop header
LB: loop body
LE: loop exit
PB: predicated region body
PF: predicated region fallthrough
CT: control target
= control target key end

     0   :  { %s2078_s30 = smov 0   ;;  %s3143_s0 = inlined_call_operand.vmem [shape: f32[10,18,18], index: 0, kind: input, shape index: {}]   ;;  %s3144_s1 = inlined_call_operand.vmem [shape: f32[10,18,18], index: 1, kind: input, shape index: {}]   ;;  %s3145_s2 = inlined_call_operand.vmem [shape: f32[10,18,18], index: 2, kind: input, shape index: {}]   ;;  %s3146_s3 = inlined_call_operand.vmem [shape: f32[10,18,18], index: 3, kind: input, shape index: {}]   ;;  %s3147_s4 = inlined_call_operand.vmem [shape: f32[10,18,18], index: 4, kind: input, shape index: {}]   ;;  %s3148_s5 = inlined_call_operand.vmem [shape: f32[10,18,18], index: 5, kind: input, shape index: {}]   ;;  %s3149_s6 = inlined_call_operand.vmem [shape: f32[10,18,18], index: 6, kind: input, shape index: {}]   ;;  %s3150_s7 = inlined_call_operand.vmem [shape: f32[8,16,16], index: 7, kind: output, shape index: {0}]   ;;  %s3151_s8 = inlined_call_operand.vmem [shape: f32[8,16,16], index: 8, kind: output, shape index: {1}]   ;;  %s3152_s9 = inlined_call_operand.vmem [shape: f32[8,16,16], index: 9, kind: output, shape index: {2}]  }
   0x1 LB: > { %s2084_s10 = sadd.s32 4294967295, %s2023_s30   ;;  %p1938_p0 = scmp.ge.s32.totalorder %s2023_s30, 1  ;;  %s2023_s30 = sphi %s2078_s30, %s20_s30  }
   0x2   : > { %p370_p1 = scmp.lt.s32.totalorder %s2023_s30, 11 }
   0x4   : > { %p371_p2 = pnand %p1938_p0, %p370_p1 }
   0x6   : > { %374 = sbr.rel (%p371_p2) target bundleno = 543 (0x21f), region = 48 }
   0xb   : > { %s1946_s11 = sadd.s32 4294967294, %s2084_s10  ;;  %p455_p5 = scmp.lt.s32.totalorder %s2084_s10, 9  ;;  %vm553_vm0 = vcmask 146432   ;;  %vm556_vm1 = vcmask 140288  }
   0xc   : > { %p491_p3 = scmp.gt.s32.totalorder %s1946_s11, 0  ;;  %p1947_p4 = scmp.lt.s32.totalorder %s1946_s11, 7 }
   0xd   : > { %s524_s12 = ssub.s32 0, %s2084_s10  ;;  %p523_p6 = scmp.lt.s32.totalorder %s2084_s10, 0 }
   0xe   : > { %s3293_s11 = smov (!%p491_p3, %s1946_s11), 0  ;;  %s1970_s14 = smin.u32 %s2084_s10, %s524_s12 }
   0xf   : > { %s3295_s11 = smov (!%p1947_p4, %s3293_s11), 7  ;;  %1999 = sdivrem.u32 %s1970_s14, 3 }
  0x10   : > { %s1978_s13 = sshll.u32 %s3295_s11, 4  ;;  %p1971_p7 = scmp.lt.s32.totalorder %s2084_s10, 2 }
  0x11   : > { %s2095_s17 = scalar_lea.vmem %s3150_s7, %s1978_s13  ;;  %s2100_s20 = scalar_lea.vmem %s3151_s8, %s1978_s13 }
  0x12   : > { %s2105_s23 = scalar_lea.vmem %s3152_s9, %s1978_s13 }
  0x13   : > { %s456_s24 = scalar_select %p455_p5, %s2084_s10, 9 }
  0x15   : > { %s2108_s25 = smul.u32 24, %s456_s24 }
  0x17   : > { %s459_s11 = scalar_lea.vmem %s3143_s0, %s2108_s25  ;;  %s464_s16 = scalar_lea.vmem %s3144_s1, %s2108_s25 }
  0x18   : > { %s2000_s26 = spop.drf %1999  ;;  %v2115_v0 = vld [vmem:[%s459_s11] sm:$0xff]  ;;  %v2123_v1 = vld [vmem:[%s459_s11 + $0x8] sm:$0xff]  ;;  %v2125_v2 = vld [vmem:[%s459_s11 + $0x10] sm:$0x3]  ;;  %s469_s22 = scalar_lea.vmem %s3145_s2, %s2108_s25 }
  0x19   : > { %s2001_s27 = spop.drf %1999  ;;  %v2130_v3 = vld [vmem:[%s464_s16] sm:$0xff]  ;;  %v2138_v4 = vld [vmem:[%s464_s16 + $0x8] sm:$0xff]  ;;  %v2142_v5 = vld [vmem:[%s464_s16 + $0x10] sm:$0x3]  ;;  %s474_s28 = scalar_lea.vmem %s3146_s3, %s2108_s25 }
  0x1a   : > { %s528_s12 = ssub.s32 0, %s2001_s27  ;;  %3207 = vst [vmem:[#allocation9_spill] sm:$0xff] %v2130_v3  ;;  %v2147_v6 = vld [vmem:[%s469_s22] sm:$0xff]  ;;  %v2155_v7 = vld [vmem:[%s469_s22 + $0x8] sm:$0xff]  ;;  %v2159_v8 = vld [vmem:[%s469_s22 + $0x10] sm:$0x3]  ;;  %s479_s14 = scalar_lea.vmem %s3147_s4, %s2108_s25 }
  0x1b   : > { %s3297_s12 = smov (!%p523_p6, %s528_s12), %s2001_s27  ;;  %3208 = vst [vmem:[#allocation10_spill] sm:$0xff] %v2138_v4  ;;  %v2164_v9 = vld [vmem:[%s474_s28] sm:$0xff]  ;;  %v2172_v10 = vld [vmem:[%s474_s28 + $0x8] sm:$0xff]  ;;  %v2176_v11 = vld [vmem:[%s474_s28 + $0x10] sm:$0x3]  ;;  %s484_s19 = scalar_lea.vmem %s3148_s5, %s2108_s25 }
  0x1c   : > { %s2117_s13 = smul.u32 24, %s3297_s12  ;;  %3209 = vst [vmem:[#allocation11_spill] sm:$0xff] %v2147_v6  ;;  %v2181_v12 = vld [vmem:[%s479_s14] sm:$0xff]  ;;  %v2189_v13 = vld [vmem:[%s479_s14 + $0x8] sm:$0xff]  ;;  %v2193_v14 = vld [vmem:[%s479_s14 + $0x10] sm:$0x3]  ;;  %s489_s26 = scalar_lea.vmem %s3149_s6, %s2108_s25 }
  0x1d   : > { %3210 = vst [vmem:[#allocation12_spill] sm:$0xff] %v2155_v7  ;;  %v2198_v15 = vld [vmem:[%s484_s19] sm:$0xff]  ;;  %v2206_v16 = vld [vmem:[%s484_s19 + $0x8] sm:$0xff]  ;;  %v2210_v17 = vld [vmem:[%s484_s19 + $0x10] sm:$0x3] }
  0x1e   : > { %s552_s18 = scalar_lea.vmem [#allocation2], %s2117_s13  ;;  %s558_s24 = scalar_lea.vmem [#allocation3], %s2117_s13  ;;  %3211 = vst [vmem:[#allocation13_spill] sm:$0xff] %v2159_v8  ;;  %v2215_v18 = vld [vmem:[%s489_s26] sm:$0xff]  ;;  %v2219_v19 = vld [vmem:[%s489_s26 + $0x8] sm:$0xff] }
  0x1f   : > { %554 = vst.msk [vmem:[%s552_s18] sm:$0xff] %vm553_vm0, %v2115_v0  ;;  %s562_s29 = scalar_lea.vmem [#allocation4], %s2117_s13  ;;  %s566_s15 = scalar_lea.vmem [#allocation5], %s2117_s13  ;;  %v2223_v20 = vld [vmem:[%s489_s26 + $0x10] sm:$0x3] }
  0x20   : > { %555 = vst.msk [vmem:[%s552_s18 + $0x8] sm:$0xff] %vm553_vm0, %v2123_v1  ;;  %s570_s21 = scalar_lea.vmem [#allocation6], %s2117_s13  ;;  %s574_s27 = scalar_lea.vmem [#allocation7], %s2117_s13 }
  0x21   : > { %557 = vst.msk [vmem:[%s552_s18 + $0x10] sm:$0x3] %vm556_vm1, %v2125_v2  ;;  %s578_s25 = scalar_lea.vmem [#allocation8], %s2117_s13 }
  0x22   : > { %559 = vst.msk [vmem:[%s558_s24] sm:$0xff] %vm553_vm0, %v2130_v3 }
  0x23   : > { %560 = vst.msk [vmem:[%s558_s24 + $0x8] sm:$0xff] %vm553_vm0, %v2138_v4 }
  0x24   : > { %561 = vst.msk [vmem:[%s558_s24 + $0x10] sm:$0x3] %vm556_vm1, %v2142_v5 }
  0x25   : > { %563 = vst.msk [vmem:[%s562_s29] sm:$0xff] %vm553_vm0, %v2147_v6 }
  0x26   : > { %564 = vst.msk [vmem:[%s562_s29 + $0x8] sm:$0xff] %vm553_vm0, %v2155_v7 }
  0x27   : > { %565 = vst.msk [vmem:[%s562_s29 + $0x10] sm:$0x3] %vm556_vm1, %v2159_v8 }
  0x28   : > { %567 = vst.msk [vmem:[%s566_s15] sm:$0xff] %vm553_vm0, %v2164_v9 }
  0x29   : > { %3212 = vst [vmem:[#allocation14_spill] sm:$0xff] %v2181_v12 }
  0x2a   : > { %568 = vst.msk [vmem:[%s566_s15 + $0x8] sm:$0xff] %vm553_vm0, %v2172_v10 }
  0x2b   : > { %3213 = vst [vmem:[#allocation15_spill] sm:$0xff] %v2189_v13 }
  0x2c   : > { %569 = vst.msk [vmem:[%s566_s15 + $0x10] sm:$0x3] %vm556_vm1, %v2176_v11 }
  0x2d   : > { %571 = vst.msk [vmem:[%s570_s21] sm:$0xff] %vm553_vm0, %v2181_v12 }
  0x2e   : > { %3214 = vst [vmem:[#allocation16_spill] sm:$0xff] %v2198_v15 }
  0x2f   : > { %572 = vst.msk [vmem:[%s570_s21 + $0x8] sm:$0xff] %vm553_vm0, %v2189_v13 }
  0x30   : > { %3215 = vst [vmem:[#allocation17_spill] sm:$0xff] %v2206_v16 }
  0x31   : > { %573 = vst.msk [vmem:[%s570_s21 + $0x10] sm:$0x3] %vm556_vm1, %v2193_v14 }
  0x32   : > { %3216 = vst [vmem:[#allocation18_spill] sm:$0xff] %v2210_v17 }
  0x33   : > { %575 = vst.msk [vmem:[%s574_s27] sm:$0xff] %vm553_vm0, %v2198_v15 }
  0x34   : > { %3217 = vst [vmem:[#allocation19_spill] sm:$0xff] %v2215_v18 }
  0x35   : > { %576 = vst.msk [vmem:[%s574_s27 + $0x8] sm:$0xff] %vm553_vm0, %v2206_v16 }
  0x36   : > { %3218 = vst [vmem:[#allocation20_spill] sm:$0xff] %v2219_v19 }
  0x37   : > { %577 = vst.msk [vmem:[%s574_s27 + $0x10] sm:$0x3] %vm556_vm1, %v2210_v17  ;;  %585 = sbr.rel (%p1971_p7) target bundleno = 543 (0x21f), region = 52 }
  0x38   : > { %3219 = vst [vmem:[#allocation21_spill] sm:$0xff] %v2223_v20 }
  0x39   : > { %579 = vst.msk [vmem:[%s578_s25] sm:$0xff] %vm553_vm0, %v2215_v18 }
  0x3a   : > { %580 = vst.msk [vmem:[%s578_s25 + $0x8] sm:$0xff] %vm553_vm0, %v2219_v19 }
  0x3b   : > { %581 = vst.msk [vmem:[%s578_s25 + $0x10] sm:$0x3] %vm556_vm1, %v2223_v20 }
  0x3c   : > { %s594_s28 = sadd.s32 2, %s2084_s10  ;;  %s2235_s12 = sadd.s32 1, %s2084_s10  ;;  %vm684_vm2 = vcmask 1045504   ;;  %vm749_vm3 = vcmask 1040384   ;;  %vm790_vm4 = vcmask 1046528   ;;  %vm1634_vm5 = vcmask 122880  }
  0x3d   : > { %s596_s29 = ssub.s32 0, %s594_s28  ;;  %s588_s13 = ssub.s32 0, %s2235_s12  ;;  %vm1632_vm6 = vcmask 130048   ;;  %vm1630_vm7 = vcmask 130049  }
  0x3e   : > { %s1973_s11 = smin.u32 %s596_s29, %s594_s28  ;;  %s1972_s14 = smin.u32 %s588_s13, %s2235_s12 }
  0x3f   : > { %2002 = sdivrem.u32 %s1973_s11, 3  ;;  %p595_p8 = scmp.lt.s32.totalorder %s594_s28, 0 }
  0x40   : > { %2005 = sdivrem.u32 %s1972_s14, 3  ;;  %s2025_s10 = smov 1  }
  0x41   : > { %s2026_s26 = smov 126   ;;  %s2027_s28 = smov 127  }
  0x42   : > { %p587_p9 = scmp.lt.s32.totalorder %s2235_s12, 0 }
  0x48   : > { %s2003_s15 = spop.drf %2002 }
  0x49   : > { %s2004_s16 = spop.drf %2002 }
  0x4a   : > { %s600_s18 = ssub.s32 0, %s2004_s16  ;;  %s2006_s19 = spop.drf %2005 }
  0x4b   : > { %s3299_s18 = smov (!%p595_p8, %s600_s18), %s2004_s16  ;;  %s2007_s13 = spop.drf %2005 }
  0x4c   : > { %s2239_s21 = smul.u32 24, %s3299_s18  ;;  %s592_s14 = ssub.s32 0, %s2007_s13 }
  0x4d   : > { %s3301_s14 = smov (!%p587_p9, %s592_s14), %s2007_s13 }
  0x4e   : > { %s2242_s22 = scalar_lea.vmem [#allocation2], %s2239_s21  ;;  %s656_s24 = scalar_lea.vmem [#allocation8], %s2239_s21 }
  0x4f   : > { %v2245_v21 = vld [vmem:[%s2242_s22 + $0x10] sm:$0x3]  ;;  %v2248_v22 = vld [vmem:[%s2242_s22] sm:$0xff]  ;;  %v2251_v23 = vld [vmem:[%s2242_s22 + $0x8] sm:$0xff]  ;;  %s632_s27 = scalar_lea.vmem [#allocation5], %s2239_s21  ;;  %s2304_s25 = scalar_lea.vmem [#allocation3], %s2239_s21 }
  0x50   : > { %764 = vrot.lane.b32.xlu2 %v2245_v21, %s2025_s10  ;;  %762 = vrot.lane.b32.xlu1 %v2251_v23, %s2025_s10  ;;  %v712_v24 = vmul.f32 0.5, %v2251_v23  ;;  %v2259_v25 = vld [vmem:[%s656_s24] sm:$0xff]  ;;  %v713_v26 = vmul.f32 0.5, %v2245_v21  ;;  %v2265_v28 = vld [vmem:[%s656_s24 + $0x8] sm:$0xff]  ;;  %v711_v38 = vmul.f32 0.5, %v2248_v22  ;;  %s2380_s29 = scalar_lea.vmem [#allocation4], %s2239_s21 }
  0x51   : > { %760 = vrot.lane.b32.xlu0 %v2248_v22, %s2025_s10  ;;  %v663_v27 = vmul.f32 0.5, %v2259_v25  ;;  %v664_v29 = vmul.f32 0.5, %v2265_v28  ;;  %v2268_v30 = vld [vmem:[%s656_s24 + $0x10] sm:$0x3]  ;;  %v2280_v41 = vld [vmem:[%s632_s27 + $0x8] sm:$0xff]  ;;  %v2284_v43 = vld [vmem:[%s632_s27] sm:$0xff] }
  0x52   : > { %v730_v31 = vrot.slane %v712_v24, 2  ;;  %v732_v33 = vrot.slane %v713_v26, 2  ;;  %v665_v35 = vmul.f32 0.5, %v2268_v30  ;;  %v729_v40 = vrot.slane %v711_v38, 2  ;;  %v2282_v42 = vld [vmem:[%s632_s27 + $0x10] sm:$0x3] }
  0x53   : > { %v685_v32 = vrot.slane %v663_v27, 2  ;;  %v686_v34 = vrot.slane %v664_v29, 2  ;;  %v2288_v44 = vmul.f32 %v2280_v41, %v2251_v23  ;;  %v2295_v46 = vmul.f32 %v2282_v42, %v2245_v21  ;;  %v2307_v49 = vld [vmem:[%s2304_s25] sm:$0xff]  ;;  %v2310_v50 = vld [vmem:[%s2304_s25 + $0x8] sm:$0xff]  ;;  %v2313_v51 = vld [vmem:[%s2304_s25 + $0x10] sm:$0x3] }
  0x54   : > { %v733_v36 = vsel %vm684_vm2, %v730_v31, %v732_v33  ;;  %v688_v39 = vrot.slane %v665_v35, 2  ;;  %v731_v47 = vsel %vm684_vm2, %v729_v40, %v730_v31  ;;  %v2301_v48 = vmul.f32 %v2284_v43, %v2248_v22  ;;  %s640_s11 = scalar_lea.vmem [#allocation6], %s2239_s21  ;;  %s2532_s15 = smul.u32 24, %s3301_s14 }
  0x55   : > { %v2273_v37 = vsel %vm684_vm2, %v685_v32, %v686_v34  ;;  %v3155_v52 = vrot.slane %v2288_v44, 7  ;;  %v3154_v53 = vrot.slane %v2295_v46, 1  ;;  %v2318_v54 = vmul.f32 0.5, %v2307_v49  ;;  %s648_s18 = scalar_lea.vmem [#allocation7], %s2239_s21 }
  0x56   : > { %v689_v45 = vsel %vm684_vm2, %v686_v34, %v688_v39  ;;  %v2321_v55 = vmul.f32 0.5, %v2310_v50  ;;  %v3153_v56 = vrot.slane %v2301_v48, 7  ;;  %v2325_v57 = vmul.f32 0.5, %v2313_v51  ;;  %v2389_v39 = vld [vmem:[%s2380_s29 + $0x10] sm:$0x3]  ;;  %s2542_s12 = scalar_lea.vmem [#allocation2], %s2532_s15 }
  0x57   : > { %v857_v58 = vrot.slane %v2288_v44, 1  ;;  %v856_v60 = vrot.slane %v2301_v48, 1  ;;  %v1039_v62 = vrot.slane %v2318_v54, 2  ;;  %v2362_v31 = vmul.f32 -0.5, %v2251_v23  ;;  %s2556_s16 = scalar_lea.vmem [#allocation5], %s2532_s15  ;;  %s2690_s19 = scalar_lea.vmem [#allocation3], %s2532_s15 }
  0x58   : > { %673 = vrot.lane.b32.xlu1 %v665_v35, %s2026_s26  ;;  %719 = vrot.lane.b32.xlu2 %v712_v24, %s2026_s26  ;;  %v2333_v59 = vsel %vm749_vm3, %v3153_v56, %v3155_v52  ;;  %v1040_v63 = vrot.slane %v2321_v55, 2  ;;  %v2365_v32 = vmul.f32 -0.5, %v2248_v22  ;;  %v2383_v35 = vld [vmem:[%s2380_s29] sm:$0xff]  ;;  %v2416_v52 = vmul.f32 -0.5, %v2265_v28  ;;  %s2722_s21 = scalar_lea.vmem [#allocation6], %s2532_s15  ;;  %s2802_s24 = scalar_lea.vmem [#allocation4], %s2532_s15 }
  0x59   : > { %669 = vrot.lane.b32.xlu0 %v663_v27, %s2026_s26  ;;  %v2343_v61 = vsel %vm790_vm4, %v857_v58, %v3154_v53  ;;  %v2350_v24 = vsel %vm790_vm4, %v856_v60, %v857_v58  ;;  %v2372_v33 = vadd.f32 %v733_v36, %v2362_v31  ;;  %v1327_v58 = vmul.f32 0.5, %v2389_v39 }
  0x5a   : > { %v1041_v27 = vsel %vm684_vm2, %v1039_v62, %v1040_v63  ;;  %v2375_v34 = vadd.f32 %v731_v47, %v2365_v32  ;;  %v2394_v47 = vmul.f32 0.5, %v2383_v35  ;;  %v2413_v53 = vmul.f32 -0.5, %v2259_v25 }
  0x5b   : > { %3220 = vst [vmem:[#allocation22_spill] sm:$0xff] %v2372_v33  ;;  %v3159_v36 = vrot.slane %v2372_v33, 7  ;;  %v693_v19 = vadd.f32 %v689_v45, %v2416_v52  ;;  %v3196_v12 = vrot.slane %v2245_v21, 1  ;;  %v662_v33 = vmul.f32 -0.5, %v2268_v30 }
  0x5c   : > { %3221 = vst [vmem:[#allocation23_spill] sm:$0xff] %v2375_v34  ;;  %v3158_v40 = vrot.slane %v2375_v34, 7  ;;  %v692_v18 = vadd.f32 %v2273_v37, %v2413_v53  ;;  %v2436_v37 = vmul.f32 -0.5, %v2383_v35  ;;  %v840_v34 = vmul.f32 -6.0, %v2295_v46 }
  0x5e   : > { %v2407_v62 = vsel %vm749_vm3, %v3158_v40, %v3159_v36  ;;  %v2422_v40 = vmul.f32 -0.5, %v2307_v49  ;;  %v2425_v36 = vmul.f32 -0.5, %v2310_v50  ;;  %3225 = vst [vmem:[#allocation27_spill] sm:$0xff] %v2436_v37 }
  0x5f   : > { %3222 = vst [vmem:[#allocation24_spill] sm:$0xff] %v2407_v62  ;;  %v710_v62 = vmul.f32 -0.5, %v2245_v21 }
  0x60   : > { %721 = vrot.lane.b32.xlu2 %v713_v26, %s2026_s26  ;;  %717 = vrot.lane.b32.xlu1 %v711_v38, %s2026_s26  ;;  %v1042_v26 = vrot.slane %v2325_v57, 2  ;;  %v2386_v38 = vld [vmem:[%s2380_s29 + $0x8] sm:$0xff]  ;;  %v2428_v15 = vadd.f32 %v1041_v27, %v2422_v40  ;;  %v2445_v27 = vmul.f32 0.5, %v692_v18 }
  0x61   : > { %671 = vrot.lane.b32.xlu0 %v664_v29, %s2026_s26  ;;  %v1326_v60 = vmul.f32 0.5, %v2386_v38  ;;  %v2439_v45 = vmul.f32 -0.5, %v2386_v38 }
  0x62   : > { %v1043_v29 = vsel %vm684_vm2, %v1040_v63, %v1042_v26  ;;  %v1343_v63 = vrot.slane %v2394_v47, 2  ;;  %v1346_v26 = vrot.slane %v1327_v58, 2  ;;  %3223 = vst [vmem:[#allocation25_spill] sm:$0xff] %v2428_v15  ;;  %v3171_v16 = vrot.slane %v2445_v27, 7 }
  0x63   : > { %v1344_v56 = vrot.slane %v1326_v60, 2  ;;  %v2431_v25 = vadd.f32 %v1043_v29, %v2425_v36  ;;  %3226 = vst [vmem:[#allocation28_spill] sm:$0xff] %v2439_v45  ;;  %v2447_v29 = vmul.f32 0.5, %v693_v19 }
  0x64   : > { %3227 = vst [vmem:[#allocation29_spill] sm:$0xff] %v2445_v27  ;;  %v774_v27 = vmul.f32 -6.0, %v2245_v21 }
  0x65   : > { %3224 = vst [vmem:[#allocation26_spill] sm:$0xff] %v2431_v25  ;;  %v1345_v28 = vsel %vm684_vm2, %v1343_v63, %v1344_v56  ;;  %v1347_v6 = vsel %vm684_vm2, %v1344_v56, %v1346_v26  ;;  %v3169_v26 = vrot.slane %v2428_v15, 7  ;;  %v3174_v20 = vrot.slane %v2431_v25, 7 }
  0x66   : > { %3228 = vst [vmem:[#allocation30_spill] sm:$0xff] %v2447_v29  ;;  %v2452_v56 = vadd.f32 %v1345_v28, %v2436_v37  ;;  %v2455_v63 = vadd.f32 %v1347_v6, %v2439_v45  ;;  %v3172_v18 = vrot.slane %v2447_v29, 7  ;;  %v631_v29 = vld [vmem:[%s2556_s16 + $0x10] sm:$0x3]  ;;  %v873_v45 = vrot.slane %v2280_v41, 7 }
  0x67   : > { %v2468_v6 = vsel %vm749_vm3, %v3169_v26, %v3174_v20 }
  0x68   : > { %782 = vrot.lane.b32.xlu2 %v2245_v21, %s2027_s28  ;;  %780 = vrot.lane.b32.xlu1 %v2251_v23, %s2027_s28  ;;  %3229 = vst [vmem:[#allocation31_spill] sm:$0xff] %v2452_v56  ;;  %v3170_v19 = vrot.slane %v2452_v56, 7  ;;  %v3173_v7 = vrot.slane %v2455_v63, 7  ;;  %v2479_v28 = vsel %vm749_vm3, %v3171_v16, %v3172_v18  ;;  %v751_v56 = vrot.slane %v2251_v23, 7 }
  0x69   : > { %778 = vrot.lane.b32.xlu0 %v2248_v22, %s2027_s28  ;;  %3230 = vst [vmem:[#allocation32_spill] sm:$0xff] %v2455_v63 }
  0x6a   : > { %3231 = vst [vmem:[#allocation33_spill] sm:$0xff] %v2468_v6  ;;  %v2488_v26 = vsel %vm749_vm3, %v3170_v19, %v3173_v7 }
  0x6b   : > { %3232 = vst [vmem:[#allocation34_spill] sm:$0xff] %v2479_v28 }
  0x6c   : > { %3233 = vst [vmem:[#allocation35_spill] sm:$0xff] %v2488_v26 }
  0x70   : > { %830 = vrot.lane.b32.xlu2 %v2295_v46, %s2025_s10  ;;  %828 = vrot.lane.b32.xlu1 %v2288_v44, %s2025_s10 }
  0x71   : > { %826 = vrot.lane.b32.xlu0 %v2301_v48, %s2025_s10 }
  0x78   : > { %848 = vrot.lane.b32.xlu2 %v2295_v46, %s2027_s28  ;;  %846 = vrot.lane.b32.xlu1 %v2288_v44, %s2027_s28 }
  0x79   : > { %844 = vrot.lane.b32.xlu0 %v2301_v48, %s2027_s28 }
  0x80   : > { %886 = vrot.lane.b32.xlu2 %v2282_v42, %s2025_s10  ;;  %884 = vrot.lane.b32.xlu1 %v2280_v41, %s2025_s10 }
  0x81   : > { %882 = vrot.lane.b32.xlu0 %v2284_v43, %s2025_s10 }
  0x88   : > { %904 = vrot.lane.b32.xlu2 %v2282_v42, %s2027_s28  ;;  %902 = vrot.lane.b32.xlu1 %v2280_v41, %s2027_s28 }
  0x89   : > { %900 = vrot.lane.b32.xlu0 %v2284_v43, %s2027_s28 }
  0x90   : > { %1031 = vrot.lane.b32.xlu2 %v2325_v57, %s2026_s26  ;;  %1029 = vrot.lane.b32.xlu1 %v2321_v55, %s2026_s26  ;;  %v2505_v55 = vld [vmem:[%s640_s11 + $0x10] sm:$0x3]  ;;  %v2507_v57 = vld [vmem:[%s640_s11] sm:$0xff] }
  0x91   : > { %1027 = vrot.lane.b32.xlu0 %v2318_v54, %s2026_s26  ;;  %v2503_v54 = vld [vmem:[%s640_s11 + $0x8] sm:$0xff]  ;;  %v2511_v19 = vmul.f32 %v2505_v55, %v2313_v51  ;;  %v2519_v18 = vmul.f32 %v2507_v57, %v2307_v49 }
  0x92   : > { %v2515_v16 = vmul.f32 %v2503_v54, %v2310_v50 }
  0x98   : > { %1073 = vrot.lane.b32.xlu2 %v2313_v51, %s2025_s10  ;;  %1071 = vrot.lane.b32.xlu1 %v2310_v50, %s2025_s10 }
  0x99   : > { %1069 = vrot.lane.b32.xlu0 %v2307_v49, %s2025_s10 }
  0xa0   : > { %1091 = vrot.lane.b32.xlu2 %v2313_v51, %s2027_s28  ;;  %1089 = vrot.lane.b32.xlu1 %v2310_v50, %s2027_s28 }
  0xa1   : > { %1087 = vrot.lane.b32.xlu0 %v2307_v49, %s2027_s28 }
  0xa8   : > { %1138 = vrot.lane.b32.xlu2 %v2511_v19, %s2025_s10  ;;  %1136 = vrot.lane.b32.xlu1 %v2515_v16, %s2025_s10 }
  0xa9   : > { %1134 = vrot.lane.b32.xlu0 %v2519_v18, %s2025_s10 }
  0xaa   : > { %v765_v7 = vpop.permute.xlu2 %764 }
  0xb0   : > { %1335 = vrot.lane.b32.xlu2 %v1327_v58, %s2026_s26  ;;  %1333 = vrot.lane.b32.xlu1 %v1326_v60, %s2026_s26 }
  0xb1   : > { %1331 = vrot.lane.b32.xlu0 %v2394_v47, %s2026_s26  ;;  %v2545_v47 = vld [vmem:[%s2542_s12 + $0x10] sm:$0x3] }
  0xb2   : > { %v720_v20 = vpop.permute.xlu2 %719  ;;  %v758_v60 = vadd.f32 %v751_v56, %v2545_v47 }
  0xb4   : > { %v771_v26 = vadd.f32 %v765_v7, %v758_v60  ;;  %v807_v60 = vmul.f32 %v631_v29, %v2545_v47 }
  0xb6   : > { %v777_v28 = vadd.f32 %v774_v27, %v771_v26  ;;  %v3234_v27 = vrot.slane %v2288_v44, 7 }
  0xb8   : > { %1156 = vrot.lane.b32.xlu2 %v2511_v19, %s2027_s28  ;;  %1154 = vrot.lane.b32.xlu1 %v2515_v16, %s2027_s28  ;;  %v824_v26 = vadd.f32 %v3234_v27, %v807_v60  ;;  %v727_v60 = vadd.f32 %v720_v20, %v2362_v31  ;;  %v2585_v31 = vld [vmem:[%s2542_s12] sm:$0xff] }
  0xb9   : > { %1152 = vrot.lane.b32.xlu0 %v2519_v18, %s2027_s28 }
  0xba   : > { %v722_v58 = vpop.permute.xlu2 %721 }
  0xbb   : > { %v728_v27 = vadd.f32 %v722_v58, %v710_v62 }
  0xc0   : > { %1375 = vrot.lane.b32.xlu2 %v2386_v38, %s2025_s10  ;;  %1373 = vrot.lane.b32.xlu1 %v2383_v35, %s2025_s10 }
  0xc1   : > { %1190 = vrot.lane.b32.xlu0 %v2507_v57, %s2025_s10 }
  0xc2   : > { %v763_v15 = vpop.permute.xlu1 %762  ;;  %v783_v6 = vpop.permute.xlu2 %782 }
  0xc3   : > { %v789_v17 = vadd.f32 %v783_v6, %v777_v28  ;;  %v761_v7 = vpop.permute.xlu0 %760  ;;  %v750_v6 = vrot.slane %v2248_v22, 7 }
  0xc5   : > { %v752_v13 = vsel %vm749_vm3, %v750_v6, %v751_v56  ;;  %v801_v4 = vadd.f32 %v3196_v12, %v789_v17  ;;  %v813_v17 = vmul.f32 %v2176_v11, %v2125_v2  ;;  %v756_v58 = vadd.f32 %v750_v6, %v2585_v31 }
  0xc7   : > { %v804_v20 = vadd.f32 %v801_v4, %v2125_v2  ;;  %v769_v4 = vadd.f32 %v761_v7, %v756_v58 }
  0xc8   : > { %1194 = vrot.lane.b32.xlu2 %v2505_v55, %s2025_s10  ;;  %1192 = vrot.lane.b32.xlu1 %v2503_v54, %s2025_s10 }
  0xc9   : > { %1377 = vrot.lane.b32.xlu0 %v2389_v39, %s2025_s10 }
  0xca   : > { %v674_v8 = vpop.permute.xlu1 %673  ;;  %v831_v63 = vpop.permute.xlu2 %830 }
  0xcb   : > { %v837_v28 = vadd.f32 %v831_v63, %v824_v26  ;;  %v670_v25 = vpop.permute.xlu0 %669  ;;  %v2580_v63 = vld [vmem:[%s2542_s12 + $0x8] sm:$0xff]  ;;  %v680_v37 = vadd.f32 %v674_v8, %v662_v33  ;;  %v3235_v8 = vrot.slane %v2295_v46, 1 }
  0xcc   : > { %v757_v26 = vadd.f32 %v752_v13, %v2580_v63 }
  0xcd   : > { %v843_v3 = vadd.f32 %v840_v34, %v837_v28  ;;  %v683_v33 = vmul.f32 0.5, %v680_v37 }
  0xd0   : > { %954 = vrot.lane.b32.xlu2 %v728_v27, %s2025_s10  ;;  %952 = vrot.lane.b32.xlu1 %v727_v60, %s2025_s10  ;;  %v770_v27 = vadd.f32 %v763_v15, %v757_v26  ;;  %v772_v15 = vmul.f32 -6.0, %v2248_v22 }
  0xd2   : > { %v849_v34 = vpop.permute.xlu2 %848  ;;  %v718_v28 = vpop.permute.xlu1 %717  ;;  %v775_v26 = vadd.f32 %v772_v15, %v769_v4  ;;  %v2631_v4 = vld [vmem:[%s648_s18] sm:$0xff]  ;;  %v3238_v15 = vrot.slane %v2301_v48, 7 }
  0xd3   : > { %v855_v62 = vadd.f32 %v849_v34, %v843_v3  ;;  %v672_v30 = vpop.permute.xlu0 %671  ;;  %v726_v56 = vadd.f32 %v718_v28, %v2365_v32  ;;  %v928_v3 = vmul.f32 %v804_v20, %v2282_v42  ;;  %v678_v32 = vadd.f32 %v670_v25, %v2413_v53  ;;  %v2605_v28 = vld [vmem:[%s2556_s16 + $0x8] sm:$0xff]  ;;  %3237 = vst [vmem:[#allocation37_spill] sm:$0xff] %v2631_v4 }
  0xd4   : > { %v679_v60 = vadd.f32 %v672_v30, %v2416_v52  ;;  %v773_v52 = vmul.f32 -6.0, %v2251_v23  ;;  %v880_v25 = vadd.f32 %v873_v45, %v631_v29  ;;  %v2615_v30 = vld [vmem:[%s2556_s16] sm:$0xff] }
  0xd5   : > { %v866_v13 = vadd.f32 %v3235_v8, %v855_v62  ;;  %950 = vrot.lane.b32.xlu0 %v726_v56, %s2025_s10  ;;  %v681_v53 = vmul.f32 0.5, %v678_v32  ;;  %v2610_v62 = vld [vmem:[%s648_s18 + $0x8] sm:$0xff]  ;;  %v805_v8 = vmul.f32 %v2615_v30, %v2585_v31  ;;  %v792_v32 = vrot.slane %v2251_v23, 1 }
  0xd6   : > { %v682_v12 = vmul.f32 0.5, %v679_v60  ;;  %v776_v37 = vadd.f32 %v773_v52, %v770_v27  ;;  %v806_v60 = vmul.f32 %v2605_v28, %v2580_v63  ;;  %v2626_v29 = vmul.f32 %v2610_v62, %v2386_v38 }
  0xd7   : > { %v869_v6 = vadd.f32 %v866_v13, %v813_v17  ;;  %v896_v13 = vmul.f32 -6.0, %v2282_v42 }
  0xd8   : > { %1007 = vrot.lane.b32.xlu2 %v683_v33, %s2025_s10  ;;  %1005 = vrot.lane.b32.xlu1 %v682_v12, %s2025_s10  ;;  %v2612_v12 = vld [vmem:[%s648_s18 + $0x10] sm:$0x3] }
  0xd9   : > { %v2602_v46 = vadd.f32 %v928_v3, %v869_v6  ;;  %3236 = vst [vmem:[#allocation36_spill] sm:$0xff] %v2612_v12  ;;  %v2622_v27 = vmul.f32 %v2612_v12, %v2389_v39  ;;  %v823_v3 = vadd.f32 %v2333_v59, %v806_v60  ;;  %v791_v6 = vrot.slane %v2248_v22, 1 }
  0xda   : > { %v887_v7 = vpop.permute.xlu2 %886  ;;  %v781_v34 = vpop.permute.xlu1 %780  ;;  %v838_v59 = vmul.f32 -6.0, %v2301_v48  ;;  %v915_v60 = vrot.slane %v2282_v42, 1 }
  0xdb   : > { %v779_v20 = vpop.permute.xlu0 %778  ;;  %v788_v17 = vadd.f32 %v781_v34, %v776_v37  ;;  %v893_v58 = vadd.f32 %v887_v7, %v880_v25  ;;  %v822_v37 = vadd.f32 %v3238_v15, %v805_v8  ;;  %v2644_v25 = vmul.f32 %v2631_v4, %v2383_v35 }
  0xdc   : > { %v787_v56 = vadd.f32 %v779_v20, %v775_v26  ;;  %v839_v20 = vmul.f32 -6.0, %v2288_v44  ;;  %v3239_v8 = vrot.slane %v2245_v21, 1 }
  0xdd   : > { %1003 = vrot.lane.b32.xlu0 %v681_v53, %s2025_s10  ;;  %v899_v33 = vadd.f32 %v896_v13, %v893_v58 }
  0xe0   : > { %1442 = vrot.lane.b32.xlu2 %v2622_v27, %s2025_s10  ;;  %1440 = vrot.lane.b32.xlu1 %v2626_v29, %s2025_s10 }
  0xe2   : > { %v905_v52 = vpop.permute.xlu2 %904  ;;  %v829_v7 = vpop.permute.xlu1 %828 }
  0xe3   : > { %v911_v26 = vadd.f32 %v905_v52, %v899_v33  ;;  %v827_v34 = vpop.permute.xlu0 %826  ;;  %v836_v53 = vadd.f32 %v829_v7, %v823_v3  ;;  %v795_v33 = vsel %vm790_vm4, %v792_v32, %v3239_v8  ;;  %v793_v52 = vsel %vm790_vm4, %v791_v6, %v792_v32 }
  0xe4   : > { %v835_v58 = vadd.f32 %v827_v34, %v822_v37  ;;  %v800_v15 = vadd.f32 %v795_v33, %v788_v17  ;;  %v799_v37 = vadd.f32 %v793_v52, %v787_v56  ;;  %v812_v17 = vmul.f32 %v2172_v10, %v2123_v1 }
  0xe5   : > { %1438 = vrot.lane.b32.xlu0 %v2644_v25, %s2025_s10  ;;  %v842_v13 = vadd.f32 %v839_v20, %v836_v53  ;;  %v922_v44 = vadd.f32 %v915_v60, %v911_v26  ;;  %v811_v6 = vmul.f32 %v2164_v9, %v2115_v0  ;;  %v1060_v33 = vrot.slane %v2310_v50, 7 }
  0xe6   : > { %v841_v3 = vadd.f32 %v838_v59, %v835_v58  ;;  %v803_v34 = vadd.f32 %v800_v15, %v2123_v1  ;;  %v802_v56 = vadd.f32 %v799_v37, %v2115_v0  ;;  %v2693_v37 = vld [vmem:[%s2690_s19 + $0x10] sm:$0x3] }
  0xe7   : > { %v925_v53 = vadd.f32 %v922_v44, %v2176_v11 }
  0xe8   : > { %1498 = vrot.lane.b32.xlu2 %v2612_v12, %s2025_s10  ;;  %1496 = vrot.lane.b32.xlu1 %v2610_v62, %s2025_s10  ;;  %v927_v11 = vmul.f32 %v803_v34, %v2280_v41  ;;  %v926_v52 = vmul.f32 %v802_v56, %v2284_v43  ;;  %v1067_v34 = vadd.f32 %v1060_v33, %v2693_v37 }
  0xe9   : > { %v2676_v8 = vmul.f32 %v925_v53, %v2245_v21 }
  0xea   : > { %v2661_v48 = vpop.permute.xlu2 %1031  ;;  %v847_v7 = vpop.permute.xlu1 %846 }
  0xeb   : > { %v845_v20 = vpop.permute.xlu0 %844  ;;  %v854_v32 = vadd.f32 %v847_v7, %v842_v13 }
  0xec   : > { %v853_v26 = vadd.f32 %v845_v20, %v841_v3 }
  0xed   : > { %v865_v58 = vadd.f32 %v2343_v61, %v854_v32  ;;  %1494 = vrot.lane.b32.xlu0 %v2631_v4, %s2025_s10  ;;  %v872_v61 = vrot.slane %v2284_v43, 7 }
  0xee   : > { %v864_v59 = vadd.f32 %v2350_v24, %v853_v26 }
  0xef   : > { %v868_v13 = vadd.f32 %v865_v58, %v812_v17  ;;  %v878_v17 = vadd.f32 %v872_v61, %v2615_v30  ;;  %v874_v26 = vsel %vm749_vm3, %v872_v61, %v873_v45  ;;  %v894_v58 = vmul.f32 -6.0, %v2284_v43 }
  0xf0   : > { %v867_v15 = vadd.f32 %v864_v59, %v811_v6  ;;  %1395 = vrot.lane.b32.xlu2 %v2389_v39, %s2027_s28  ;;  %1393 = vrot.lane.b32.xlu1 %v2386_v38, %s2027_s28  ;;  %v1083_v6 = vmul.f32 -6.0, %v2313_v51  ;;  %v895_v45 = vmul.f32 -6.0, %v2280_v41 }
  0xf1   : > { %v2685_v24 = vadd.f32 %v927_v11, %v868_v13 }
  0xf2   : > { %v2687_v3 = vadd.f32 %v926_v52, %v867_v15  ;;  %v1074_v44 = vpop.permute.xlu2 %1073  ;;  %v885_v7 = vpop.permute.xlu1 %884  ;;  %v879_v52 = vadd.f32 %v874_v26, %v2605_v28  ;;  %v913_v28 = vrot.slane %v2280_v41, 1 }
  0xf3   : > { %v883_v53 = vpop.permute.xlu0 %882  ;;  %v1080_v32 = vadd.f32 %v1074_v44, %v1067_v34 }
  0xf4   : > { %v891_v56 = vadd.f32 %v883_v53, %v878_v17  ;;  %v892_v53 = vadd.f32 %v885_v7, %v879_v52  ;;  %v912_v17 = vrot.slane %v2284_v43, 1  ;;  %v1059_v7 = vrot.slane %v2307_v49, 7 }
  0xf5   : > { %1391 = vrot.lane.b32.xlu0 %v2383_v35, %s2027_s28  ;;  %v1086_v30 = vadd.f32 %v1083_v6, %v1080_v32  ;;  %v916_v41 = vsel %vm790_vm4, %v913_v28, %v915_v60 }
  0xf6   : > { %v897_v11 = vadd.f32 %v894_v58, %v891_v56  ;;  %v898_v61 = vadd.f32 %v895_v45, %v892_v53  ;;  %v2725_v58 = vld [vmem:[%s2722_s21 + $0x10] sm:$0x3]  ;;  %v1061_v43 = vsel %vm749_vm3, %v1059_v7, %v1060_v33 }
  0xf7   : > { %v1115_v52 = vmul.f32 %v2725_v58, %v2693_v37 }
  0xf8   : > { %1212 = vrot.lane.b32.xlu2 %v2505_v55, %s2027_s28  ;;  %1210 = vrot.lane.b32.xlu1 %v2503_v54, %s2027_s28 }
  0xfa   : > { %v1092_v59 = vpop.permute.xlu2 %1091  ;;  %v903_v13 = vpop.permute.xlu1 %902 }
  0xfb   : > { %v1098_v15 = vadd.f32 %v1092_v59, %v1086_v30  ;;  %v901_v44 = vpop.permute.xlu0 %900  ;;  %v910_v6 = vadd.f32 %v903_v13, %v898_v61  ;;  %v914_v30 = vsel %vm790_vm4, %v912_v17, %v913_v28  ;;  %v1125_v13 = vrot.slane %v2515_v16, 7  ;;  %v2748_v17 = vld [vmem:[%s2690_s19] sm:$0xff] }
  0xfc   : > { %v909_v34 = vadd.f32 %v901_v44, %v897_v11  ;;  %v2742_v44 = vld [vmem:[%s2690_s19 + $0x8] sm:$0xff]  ;;  %3241 = vst [vmem:[#allocation39_spill] sm:$0xff] %v2748_v17 }
  0xfd   : > { %1208 = vrot.lane.b32.xlu0 %v2507_v57, %s2027_s28  ;;  %v921_v11 = vadd.f32 %v916_v41, %v910_v6  ;;  %3240 = vst [vmem:[#allocation38_spill] sm:$0xff] %v2742_v44  ;;  %v1066_v42 = vadd.f32 %v1061_v43, %v2742_v44  ;;  %v1132_v45 = vadd.f32 %v1125_v13, %v1115_v52  ;;  %v1020_v6 = vmul.f32 -0.5, %v2313_v51 }
  0xfe   : > { %v920_v59 = vadd.f32 %v914_v30, %v909_v34  ;;  %v1102_v30 = vrot.slane %v2313_v51, 1  ;;  %v1065_v41 = vadd.f32 %v1059_v7, %v2748_v17  ;;  %v1148_v43 = vmul.f32 -6.0, %v2511_v19 }
  0xff   : > { %v924_v34 = vadd.f32 %v921_v11, %v2172_v10 }
 0x100   : > { %1460 = vrot.lane.b32.xlu2 %v2622_v27, %s2027_s28  ;;  %1458 = vrot.lane.b32.xlu1 %v2626_v29, %s2027_s28  ;;  %v923_v33 = vadd.f32 %v920_v59, %v2164_v9  ;;  %v1038_v9 = vadd.f32 %v2661_v48, %v1020_v6  ;;  %v1109_v10 = vadd.f32 %v1102_v30, %v1098_v15  ;;  %v1081_v48 = vmul.f32 -6.0, %v2307_v49 }
 0x101   : > { %v1100_v15 = vrot.slane %v2310_v50, 1 }
 0x102   : > { %v1139_v32 = vpop.permute.xlu2 %1138  ;;  %v1030_v56 = vpop.permute.xlu1 %1029  ;;  %v2759_v52 = vmul.f32 %v923_v33, %v2248_v22 }
 0x103   : > { %v1028_v26 = vpop.permute.xlu0 %1027  ;;  %v1145_v20 = vadd.f32 %v1139_v32, %v1132_v45  ;;  %v1037_v59 = vadd.f32 %v1030_v56, %v2425_v36  ;;  %v1082_v32 = vmul.f32 -6.0, %v2310_v50  ;;  %v1099_v36 = vrot.slane %v2307_v49, 1 }
 0x104   : > { %v1124_v45 = vrot.slane %v2519_v18, 7  ;;  %v1036_v6 = vadd.f32 %v1028_v26, %v2422_v40  ;;  %v1324_v40 = vmul.f32 -0.5, %v2389_v39 }
 0x105   : > { %1456 = vrot.lane.b32.xlu0 %v2644_v25, %s2027_s28 }
 0x108   : > { %1516 = vrot.lane.b32.xlu2 %v2612_v12, %s2027_s28  ;;  %1514 = vrot.lane.b32.xlu1 %v2610_v62, %s2027_s28  ;;  %v2779_v12 = vld [vmem:[%s2722_s21 + $0x8] sm:$0xff] }
 0x10a   : > { %v1336_v60 = vpop.permute.xlu2 %1335  ;;  %v1072_v53 = vpop.permute.xlu1 %1071 }
 0x10b   : > { %v1070_v61 = vpop.permute.xlu0 %1069  ;;  %v1079_v28 = vadd.f32 %v1072_v53, %v1066_v42  ;;  %v2762_v42 = vmul.f32 %v924_v34, %v2251_v23  ;;  %v1151_v53 = vadd.f32 %v1148_v43, %v1145_v20  ;;  %v3202_v34 = vrot.slane %v2386_v38, 7 }
 0x10c   : > { %v1078_v11 = vadd.f32 %v1070_v61, %v1065_v41  ;;  %v1112_v61 = vadd.f32 %v1109_v10, %v2142_v5  ;;  %v1121_v41 = vmul.f32 %v2193_v14, %v2142_v5  ;;  %v1103_v10 = vsel %vm790_vm4, %v1100_v15, %v1102_v30 }
 0x10d   : > { %1512 = vrot.lane.b32.xlu0 %v2631_v4, %s2027_s28  ;;  %v1085_v33 = vadd.f32 %v1082_v32, %v1079_v28  ;;  %v3243_v43 = vrot.slane %v2383_v35, 7 }
 0x10f   : > { %v1365_v30 = vsel %vm749_vm3, %v3243_v43, %v3202_v34  ;;  %v1165_v34 = vrot.slane %v2515_v16, 1 }
 0x110   : > { %1262 = vrot.lane.b32.xlu2 %v1038_v9, %s2025_s10  ;;  %1260 = vrot.lane.b32.xlu1 %v1037_v59, %s2025_s10  ;;  %v1084_v59 = vadd.f32 %v1081_v48, %v1078_v11  ;;  %v3242_v11 = vrot.slane %v2511_v19, 1  ;;  %v1101_v48 = vsel %vm790_vm4, %v1099_v36, %v1100_v15  ;;  %v2805_v15 = vld [vmem:[%s2802_s24 + $0x8] sm:$0xff] }
 0x112   : > { %v1157_v9 = vpop.permute.xlu2 %1156  ;;  %v1090_v7 = vpop.permute.xlu1 %1089 }
 0x113   : > { %v1163_v4 = vadd.f32 %v1157_v9, %v1151_v53  ;;  %v1088_v56 = vpop.permute.xlu0 %1087  ;;  %v1097_v20 = vadd.f32 %v1090_v7, %v1085_v33  ;;  %v1114_v7 = vmul.f32 %v2779_v12, %v2742_v44  ;;  %v1342_v33 = vadd.f32 %v1336_v60, %v1324_v40 }
 0x114   : > { %v1096_v26 = vadd.f32 %v1088_v56, %v1084_v59  ;;  %v1126_v56 = vsel %vm749_vm3, %v1124_v45, %v1125_v13 }
 0x115   : > { %v1174_v32 = vadd.f32 %v3242_v11, %v1163_v4  ;;  %v1108_v53 = vadd.f32 %v1103_v10, %v1097_v20  ;;  %1258 = vrot.lane.b32.xlu0 %v1036_v6, %s2025_s10  ;;  %v1236_v4 = vmul.f32 %v1112_v61, %v2505_v55  ;;  %v1370_v6 = vadd.f32 %v1365_v30, %v2805_v15  ;;  %v2813_v61 = vld [vmem:[%s2722_s21] sm:$0xff] }
 0x116   : > { %v1107_v9 = vadd.f32 %v1101_v48, %v1096_v26  ;;  %v1131_v59 = vadd.f32 %v1126_v56, %v1114_v7  ;;  %v743_v10 = vmul.f32 0.5, %v2125_v2  ;;  %v740_v11 = vmul.f32 -0.5, %v2545_v47  ;;  %v3244_v7 = vld [vmem:[#allocation28_spill] sm:$0xff] }
 0x117   : > { %v1177_v36 = vadd.f32 %v1174_v32, %v1121_v41  ;;  %v1113_v41 = vmul.f32 %v2813_v61, %v2748_v17  ;;  %v1147_v2 = vmul.f32 -6.0, %v2515_v16  ;;  %v1146_v47 = vmul.f32 -6.0, %v2519_v18  ;;  %v3250_v16 = vld [vmem:[#allocation15_spill] sm:$0xff] }
 0x118   : > { %1566 = vrot.lane.b32.xlu2 %v1342_v33, %s2025_s10 }
 0x119   : > { %v2807_v60 = vadd.f32 %v1236_v4, %v1177_v36  ;;  %v1130_v56 = vadd.f32 %v1124_v45, %v1113_v41  ;;  %v3245_v4 = vld [vmem:[#allocation27_spill] sm:$0xff]  ;;  %v1164_v45 = vrot.slane %v2519_v18, 1  ;;  %v3251_v18 = vld [vmem:[#allocation9_spill] sm:$0xff] }
 0x11a   : > { %v1376_v20 = vpop.permute.xlu2 %1375  ;;  %v1137_v40 = vpop.permute.xlu1 %1136 }
 0x11b   : > { %v2810_v43 = vadd.f32 %v1376_v20, %v1370_v6  ;;  %v1135_v13 = vpop.permute.xlu0 %1134  ;;  %v1144_v26 = vadd.f32 %v1137_v40, %v1131_v59  ;;  %v3246_v6 = vsub.f32 %v2602_v46, %v2676_v8  ;;  %v746_v20 = vadd.f32 %v743_v10, %v740_v11  ;;  %v3249_v11 = vld [vmem:[#allocation10_spill] sm:$0xff] }
 0x11c   : > { %v1143_v40 = vadd.f32 %v1135_v13, %v1130_v56  ;;  %v1111_v56 = vadd.f32 %v1108_v53, %v3249_v11  ;;  %v1166_v53 = vsel %vm790_vm4, %v1164_v45, %v1165_v34 }
 0x11d   : > { %v940_v59 = vmul.f32 0.5, %v3246_v6  ;;  %v1150_v41 = vadd.f32 %v1147_v2, %v1144_v26  ;;  %v987_v13 = vmul.f32 %v746_v20, %v2389_v39  ;;  %v1120_v6 = vmul.f32 %v3250_v16, %v3249_v11  ;;  %v3252_v2 = vld [vmem:[#allocation14_spill] sm:$0xff] }
 0x11e   : > { %v1149_v8 = vadd.f32 %v1146_v47, %v1143_v40  ;;  %v1110_v26 = vadd.f32 %v1107_v9, %v3251_v18  ;;  %v3253_v40 = vrot.slane %v2511_v19, 1  ;;  %v1235_v44 = vmul.f32 %v1111_v56, %v2503_v54 }
 0x11f   : > { %v990_v19 = vmul.f32 0.5, %v987_v13  ;;  %v739_v13 = vmul.f32 -0.5, %v2580_v63 }
 0x120   : > { %v1168_v47 = vsel %vm790_vm4, %v1165_v34, %v3253_v40  ;;  %v1234_v9 = vmul.f32 %v1110_v26, %v2507_v57 }
 0x122   : > { %v2819_v32 = vpop.permute.xlu2 %1194  ;;  %v1334_v48 = vpop.permute.xlu1 %1333 }
 0x123   : > { %v1332_v33 = vpop.permute.xlu0 %1331  ;;  %v1341_v30 = vadd.f32 %v1334_v48, %v3244_v7  ;;  %v943_v48 = vmul.f32 0.15, %v940_v59 }
 0x124   : > { %v1340_v36 = vadd.f32 %v1332_v33, %v3245_v4  ;;  %v3247_v33 = vld [vmem:[#allocation22_spill] sm:$0xff] }
 0x125   : > { %1564 = vrot.lane.b32.xlu1 %v1341_v30, %s2025_s10  ;;  %v3248_v7 = vrot.slane %v3247_v33, 7  ;;  %v1119_v33 = vmul.f32 %v3252_v2, %v3251_v18  ;;  %v946_v20 = vmul.f32 0.5, %v943_v48 }
 0x126   : > { %1562 = vrot.lane.b32.xlu0 %v1340_v36, %s2025_s10  ;;  %s2890_s10 = scalar_lea.vmem [#allocation7], %s2532_s15 }
 0x127   : > { %v978_v30 = vmul.f32 %v3248_v7, %v2313_v51 }
 0x12a   : > { %v955_v46 = vpop.permute.xlu2 %954  ;;  %v1155_v10 = vpop.permute.xlu1 %1154 }
 0x12b   : > { %v961_v4 = vmul.f32 %v955_v46, %v2245_v21  ;;  %v1153_v36 = vpop.permute.xlu0 %1152  ;;  %v1162_v59 = vadd.f32 %v1155_v10, %v1150_v41  ;;  %v981_v41 = vmul.f32 0.5, %v978_v30 }
 0x12c   : > { %v1161_v7 = vadd.f32 %v1153_v36, %v1149_v8 }
 0x12d   : > { %v964_v28 = vmul.f32 0.5, %v961_v4  ;;  %v1173_v46 = vadd.f32 %v1168_v47, %v1162_v59 }
 0x12e   : > { %v1172_v17 = vadd.f32 %v1166_v53, %v1161_v7  ;;  %v738_v7 = vmul.f32 -0.5, %v2585_v31  ;;  %v3256_v53 = vld [vmem:[#allocation24_spill] sm:$0xff]  ;;  %v1181_v31 = vrot.slane %v2503_v54, 7 }
 0x12f   : > { %v967_v11 = vsub.f32 %v946_v20, %v964_v28  ;;  %v1176_v10 = vadd.f32 %v1173_v46, %v1120_v6 }
 0x130   : > { %v1175_v16 = vadd.f32 %v1172_v17, %v1119_v33 }
 0x131   : > { %v984_v18 = vsub.f32 %v967_v11, %v981_v41  ;;  %v2849_v8 = vadd.f32 %v1235_v44, %v1176_v10  ;;  %v742_v44 = vmul.f32 0.5, %v2123_v1  ;;  %v3254_v11 = vsub.f32 %v2685_v24, %v2762_v42 }
 0x132   : > { %v2851_v36 = vadd.f32 %v1234_v9, %v1175_v16  ;;  %v1008_v48 = vpop.permute.xlu2 %1007  ;;  %v2853_v4 = vpop.permute.xlu1 %1373  ;;  %v3255_v1 = vsub.f32 %v2687_v3, %v2759_v52  ;;  %v977_v24 = vmul.f32 %v3256_v53, %v2310_v50  ;;  %v623_v53 = vld [vmem:[%s2802_s24 + $0x10] sm:$0x3] }
 0x133   : > { %v993_v34 = vsub.f32 %v984_v18, %v990_v19  ;;  %v2855_v59 = vpop.permute.xlu0 %1190  ;;  %v939_v16 = vmul.f32 0.5, %v3254_v11  ;;  %v745_v26 = vadd.f32 %v742_v44, %v739_v13  ;;  %v1188_v11 = vadd.f32 %v1181_v31, %v2725_v58 }
 0x134   : > { %v938_v63 = vmul.f32 0.5, %v3255_v1  ;;  %v980_v19 = vmul.f32 0.5, %v977_v24  ;;  %v2894_v1 = vld [vmem:[%s2242_s22 + $0x8] sm:$0xff]  ;;  %v1204_v58 = vmul.f32 -6.0, %v2505_v55 }
 0x135   : > { %v996_v45 = vmul.f32 0.5, %v993_v34  ;;  %v942_v33 = vmul.f32 0.15, %v939_v16  ;;  %v986_v41 = vmul.f32 %v745_v26, %v2386_v38  ;;  %v3257_v34 = vld [vmem:[#allocation23_spill] sm:$0xff] }
 0x136   : > { %v3258_v3 = vrot.slane %v3257_v34, 7 }
 0x137   : > { %v999_v28 = vadd.f32 %v996_v45, %v2245_v21  ;;  %v741_v21 = vmul.f32 0.5, %v2115_v0  ;;  %v945_v42 = vmul.f32 0.5, %v942_v33  ;;  %v941_v0 = vmul.f32 0.15, %v938_v63 }
 0x138   : > { %v976_v52 = vmul.f32 %v3258_v3, %v2307_v49  ;;  %v989_v50 = vmul.f32 0.5, %v986_v41  ;;  %v1201_v49 = vadd.f32 %v2819_v32, %v1188_v11  ;;  %v1223_v3 = vrot.slane %v2505_v55, 1 }
 0x139   : > { %v1014_v30 = vsub.f32 %v999_v28, %v1008_v48  ;;  %v744_v10 = vadd.f32 %v741_v21, %v738_v7  ;;  %v944_v28 = vmul.f32 0.5, %v941_v0  ;;  %v647_v21 = vld [vmem:[%s2890_s10 + $0x10] sm:$0x3] }
 0x13a   : > { %v2858_v56 = vpop.permute.xlu2 %1442  ;;  %v2860_v6 = vpop.permute.xlu1 %1192  ;;  %v979_v26 = vmul.f32 0.5, %v976_v52  ;;  %v1419_v32 = vmul.f32 %v647_v21, %v623_v53  ;;  %v1207_v41 = vadd.f32 %v1204_v58, %v1201_v49  ;;  %v1387_v49 = vmul.f32 -6.0, %v2389_v39 }
 0x13b   : > { %v1017_v17 = vmul.f32 0.9756098, %v1014_v30  ;;  %v1378_v18 = vpop.permute.xlu0 %1377  ;;  %v985_v13 = vmul.f32 %v744_v10, %v2383_v35 }
 0x13d   : > { %1625 = vrot.lane.b32.xlu2 %v1017_v17, %s2027_s28 }
 0x142   : > { %v2870_v40 = vpop.permute.xlu2 %1498  ;;  %v953_v47 = vpop.permute.xlu1 %952 }
 0x143   : > { %v960_v20 = vmul.f32 %v953_v47, %v2251_v23  ;;  %v988_v47 = vmul.f32 0.5, %v985_v13  ;;  %v1050_v13 = vmul.f32 -0.5, %v2693_v37  ;;  %v1452_v37 = vmul.f32 -6.0, %v2622_v27 }
 0x145   : > { %v963_v46 = vmul.f32 0.5, %v960_v20 }
 0x147   : > { %v966_v9 = vsub.f32 %v945_v42, %v963_v46  ;;  %v951_v48 = vpop.permute.xlu0 %950  ;;  %v1429_v42 = vrot.slane %v2626_v29, 7 }
 0x148   : > { %v959_v23 = vmul.f32 %v951_v48, %v2248_v22 }
 0x149   : > { %v983_v45 = vsub.f32 %v966_v9, %v980_v19  ;;  %v3259_v19 = vrot.slane %v2386_v38, 7 }
 0x14a   : > { %v962_v30 = vmul.f32 0.5, %v959_v23  ;;  %v1396_v17 = vpop.permute.xlu2 %1395  ;;  %v1006_v44 = vpop.permute.xlu1 %1005  ;;  %v2906_v23 = vld [vmem:[%s2242_s22] sm:$0xff] }
 0x14b   : > { %v992_v16 = vsub.f32 %v983_v45, %v989_v50  ;;  %v1371_v48 = vadd.f32 %v3259_v19, %v623_v53  ;;  %v1436_v50 = vadd.f32 %v1429_v42, %v1419_v32  ;;  %v645_v19 = vld [vmem:[%s2890_s10] sm:$0xff] }
 0x14c   : > { %v965_v33 = vsub.f32 %v944_v28, %v962_v30 }
 0x14d   : > { %v995_v22 = vmul.f32 0.5, %v992_v16  ;;  %v1384_v28 = vadd.f32 %v1378_v18, %v1371_v48  ;;  %v1180_v16 = vrot.slane %v2507_v57, 7 }
 0x14e   : > { %v982_v7 = vsub.f32 %v965_v33, %v979_v26  ;;  %v1449_v26 = vadd.f32 %v2858_v56, %v1436_v50  ;;  %v1485_v33 = vrot.slane %v2610_v62, 7  ;;  %v3260_v56 = vld [vmem:[#allocation26_spill] sm:$0xff]  ;;  %v3265_v50 = vld [vmem:[#allocation13_spill] sm:$0xff] }
 0x14f   : > { %v998_v63 = vadd.f32 %v2894_v1, %v995_v22  ;;  %v1004_v20 = vpop.permute.xlu0 %1003 }
 0x150   : > { %v991_v24 = vsub.f32 %v982_v7, %v988_v47  ;;  %v2923_v7 = vld [vmem:[%s2802_s24] sm:$0xff]  ;;  %v1390_v47 = vadd.f32 %v1387_v49, %v1384_v28  ;;  %v1455_v48 = vadd.f32 %v1452_v37, %v1449_v26  ;;  %v1357_v28 = vmul.f32 0.5, %v3265_v50 }
 0x151   : > { %v1013_v46 = vsub.f32 %v998_v63, %v1006_v44  ;;  %v1053_v44 = vmul.f32 0.5, %v2142_v5  ;;  %v1428_v26 = vrot.slane %v2644_v25, 7  ;;  %v1417_v49 = vmul.f32 %v645_v19, %v2923_v7 }
 0x152   : > { %v994_v10 = vmul.f32 0.5, %v991_v24  ;;  %v1213_v0 = vpop.permute.xlu2 %1212  ;;  %v2900_v9 = vpop.permute.xlu1 %1440  ;;  %v3262_v24 = vrot.slane %v2383_v35, 7 }
 0x153   : > { %v1016_v34 = vmul.f32 0.9756098, %v1013_v46  ;;  %v1219_v52 = vadd.f32 %v1213_v0, %v1207_v41  ;;  %v2927_v63 = vadd.f32 %v1053_v44, %v1050_v13  ;;  %v1402_v0 = vadd.f32 %v1396_v17, %v1390_v47 }
 0x154   : > { %v997_v45 = vadd.f32 %v2906_v23, %v994_v10  ;;  %v1369_v32 = vadd.f32 %v3262_v24, %v2923_v7  ;;  %v1492_v10 = vadd.f32 %v1485_v33, %v647_v21  ;;  %v646_v21 = vld [vmem:[%s2890_s10 + $0x8] sm:$0xff]  ;;  %v3268_v24 = vld [vmem:[#allocation18_spill] sm:$0xff] }
 0x155   : > { %v1230_v30 = vadd.f32 %v1223_v3, %v1219_v52  ;;  %1623 = vrot.lane.b32.xlu1 %v1016_v34, %s2027_s28  ;;  %v2943_v34 = vld [vmem:[%s2304_s25 + $0x10] sm:$0x3] }
 0x156   : > { %v1012_v11 = vsub.f32 %v997_v45, %v1004_v20  ;;  %v3261_v20 = vrot.slane %v3260_v56, 7  ;;  %v1186_v45 = vadd.f32 %v1180_v16, %v2813_v61  ;;  %v1505_v44 = vadd.f32 %v2870_v40, %v1492_v10 }
 0x157   : > { %v2920_v18 = vpop.permute.xlu0 %1438  ;;  %v1233_v5 = vadd.f32 %v1230_v30, %v2193_v14  ;;  %v1182_v14 = vsel %vm749_vm3, %v1180_v16, %v1181_v31  ;;  %v1354_v30 = vmul.f32 -0.5, %v623_v53  ;;  %v1406_v31 = vrot.slane %v2389_v39, 1  ;;  %v3266_v53 = vld [vmem:[#allocation37_spill] sm:$0xff]  ;;  %v3267_v39 = vld [vmem:[#allocation36_spill] sm:$0xff] }
 0x158   : > { %v1015_v22 = vmul.f32 0.9756098, %v1012_v11  ;;  %v1286_v58 = vmul.f32 %v3261_v20, %v2313_v51  ;;  %v3263_v51 = vld [vmem:[#allocation32_spill] sm:$0xff]  ;;  %v1187_v11 = vadd.f32 %v1182_v14, %v2779_v12  ;;  %v1471_v16 = vrot.slane %v2622_v27, 1  ;;  %v3272_v27 = vld [vmem:[#allocation21_spill] sm:$0xff] }
 0x159   : > { %v3264_v52 = vrot.slane %v3263_v51, 7  ;;  %v1242_v17 = vmul.f32 %v2943_v34, %v1233_v5  ;;  %v1413_v61 = vadd.f32 %v1406_v31, %v1402_v0  ;;  %v1484_v47 = vrot.slane %v3266_v53, 7 }
 0x15a   : > { %v1461_v46 = vpop.permute.xlu2 %1460  ;;  %v2935_v41 = vpop.permute.xlu1 %1496  ;;  %1621 = vrot.lane.b32.xlu0 %v1015_v22, %s2027_s28  ;;  %v1386_v22 = vmul.f32 -6.0, %v2386_v38  ;;  %v1508_v37 = vmul.f32 -6.0, %v3267_v39  ;;  %v1360_v5 = vadd.f32 %v1357_v28, %v1354_v30  ;;  %v1418_v56 = vmul.f32 %v646_v21, %v2805_v15 }
 0x15b   : > { %v2948_v35 = vmul.f32 %v2943_v34, %v3264_v52  ;;  %v1467_v13 = vadd.f32 %v1461_v46, %v1455_v48  ;;  %v1404_v12 = vrot.slane %v2386_v38, 1  ;;  %v1425_v46 = vmul.f32 %v3268_v24, %v3265_v50 }
 0x15c   : > { %v1389_v20 = vadd.f32 %v1386_v22, %v2810_v43  ;;  %v1511_v10 = vadd.f32 %v1508_v37, %v1505_v44  ;;  %v1245_v0 = vsub.f32 %v2807_v60, %v1242_v17  ;;  %v1382_v48 = vadd.f32 %v2853_v4, %v1369_v32  ;;  %v2985_v32 = vld [vmem:[%s2380_s29] sm:$0xff] }
 0x15d   : > { %v1478_v14 = vadd.f32 %v1471_v16, %v1467_v13  ;;  %v1430_v51 = vsel %vm749_vm3, %v1428_v26, %v1429_v42  ;;  %v2977_v52 = vadd.f32 %v1428_v26, %v1417_v49  ;;  %v1527_v38 = vrot.slane %v3267_v39, 1 }
 0x15e   : > { %v1416_v30 = vadd.f32 %v1413_v61, %v3265_v50  ;;  %v1486_v22 = vsel %vm749_vm3, %v1484_v47, %v1485_v33  ;;  %v1200_v60 = vadd.f32 %v2860_v6, %v1187_v11  ;;  %v1407_v4 = vsel %vm790_vm4, %v1404_v12, %v1406_v31 }
 0x15f   : > { %v2962_v40 = vpop.permute.xlu0 %1494  ;;  %v1385_v42 = vmul.f32 -6.0, %v2985_v32  ;;  %v1403_v17 = vrot.slane %v2985_v32, 1  ;;  %v1481_v26 = vadd.f32 %v1478_v14, %v1425_v46  ;;  %v1248_v61 = vmul.f32 0.5, %v1245_v0 }
 0x160   : > { %v1435_v33 = vadd.f32 %v1430_v51, %v1418_v56  ;;  %v2991_v37 = vadd.f32 %v1486_v22, %v646_v21  ;;  %v1540_v31 = vmul.f32 %v1416_v30, %v3267_v39  ;;  %v1220_v22 = vrot.slane %v2507_v57, 1 }
 0x161   : > { %v1388_v6 = vadd.f32 %v1385_v42, %v1382_v48  ;;  %v1405_v46 = vsel %vm790_vm4, %v1403_v17, %v1404_v12  ;;  %v1251_v0 = vmul.f32 0.15, %v1248_v61  ;;  %v1202_v12 = vmul.f32 -6.0, %v2507_v57 }
 0x162   : > { %v1517_v43 = vpop.permute.xlu2 %1516  ;;  %v1394_v28 = vpop.permute.xlu1 %1393  ;;  %v1448_v17 = vadd.f32 %v2900_v9, %v1435_v33  ;;  %v3269_v33 = vld [vmem:[#allocation15_spill] sm:$0xff] }
 0x163   : > { %v1523_v13 = vadd.f32 %v1517_v43, %v1511_v10  ;;  %v1401_v44 = vadd.f32 %v1394_v28, %v1389_v20  ;;  %v2993_v20 = vadd.f32 %v1484_v47, %v645_v19  ;;  %v1289_v43 = vmul.f32 0.5, %v1286_v58 }
 0x164   : > { %v1203_v28 = vmul.f32 -6.0, %v2503_v54  ;;  %v1221_v19 = vrot.slane %v2503_v54, 1  ;;  %v1543_v47 = vadd.f32 %v1540_v31, %v1481_v26  ;;  %v1199_v58 = vadd.f32 %v2855_v59, %v1186_v45 }
 0x165   : > { %v1534_v49 = vadd.f32 %v1527_v38, %v1523_v13  ;;  %v1412_v50 = vadd.f32 %v1407_v4, %v1401_v44  ;;  %v3000_v13 = vld [vmem:[%s2380_s29 + $0x10] sm:$0x3]  ;;  %v1593_v45 = vmul.f32 0.5, %v2948_v35 }
 0x166   : > { %v1295_v21 = vmul.f32 %v3000_v13, %v2927_v63  ;;  %v2013_v44 = vld [vmem:[%s2242_s22 + $0x10] sm:$0x3]  ;;  %v1599_v54 = vmul.f32 %v3000_v13, %v1360_v5  ;;  %v1224_v59 = vsel %vm790_vm4, %v1221_v19, %v1223_v3  ;;  %v1205_v31 = vadd.f32 %v1202_v12, %v1199_v58  ;;  %s3044_s22 = scalar_lea.vmem [#allocation8], %s2532_s15 }
 0x167   : > { %v1537_v11 = vadd.f32 %v1534_v49, %v3268_v24  ;;  %v1392_v10 = vpop.permute.xlu0 %1391  ;;  %v1206_v24 = vadd.f32 %v1203_v28, %v1200_v60  ;;  %v1254_v60 = vmul.f32 0.5, %v1251_v0  ;;  %v1469_v5 = vrot.slane %v2626_v29, 1  ;;  %v3270_v58 = vld [vmem:[#allocation12_spill] sm:$0xff] }
 0x168   : > { %v1400_v14 = vadd.f32 %v1392_v10, %v1388_v6  ;;  %v1298_v26 = vmul.f32 0.5, %v1295_v21  ;;  %v1222_v6 = vsel %vm790_vm4, %v1220_v22, %v1221_v19  ;;  %v1602_v28 = vmul.f32 0.5, %v1599_v54 }
 0x169   : > { %v1546_v56 = vmul.f32 %v3000_v13, %v1537_v11  ;;  %v1451_v11 = vmul.f32 -6.0, %v2626_v29  ;;  %v1450_v3 = vmul.f32 -6.0, %v2644_v25  ;;  %v1525_v21 = vrot.slane %v2610_v62, 1 }
 0x16a   : > { %v3007_v48 = vadd.f32 %v1405_v46, %v1400_v14  ;;  %v1263_v51 = vpop.permute.xlu2 %1262  ;;  %v1211_v30 = vpop.permute.xlu1 %1210  ;;  %v1468_v46 = vrot.slane %v2644_v25, 1  ;;  %v1507_v14 = vmul.f32 -6.0, %v2610_v62  ;;  %v3271_v25 = vld [vmem:[#allocation17_spill] sm:$0xff] }
 0x16b   : > { %v1269_v4 = vmul.f32 %v2013_v44, %v1263_v51  ;;  %v1218_v63 = vadd.f32 %v1211_v30, %v1206_v24  ;;  %v1549_v42 = vsub.f32 %v1543_v47, %v1546_v56  ;;  %v3027_v47 = vld [vmem:[%s2304_s25 + $0x8] sm:$0xff]  ;;  %v1454_v0 = vadd.f32 %v1451_v11, %v1448_v17 }
 0x16c   : > { %v1447_v24 = vadd.f32 %v2920_v18, %v2977_v52  ;;  %v1415_v51 = vadd.f32 %v1412_v50, %v3270_v58  ;;  %v1424_v22 = vmul.f32 %v3271_v25, %v3270_v58  ;;  %v1504_v17 = vadd.f32 %v2935_v41, %v2991_v37  ;;  %v655_v50 = vld [vmem:[%s3044_s22 + $0x10] sm:$0x3] }
 0x16d   : > { %v1272_v49 = vmul.f32 0.5, %v1269_v4  ;;  %v1229_v61 = vadd.f32 %v1224_v59, %v1218_v63  ;;  %v1552_v57 = vmul.f32 0.5, %v1549_v42  ;;  %v1472_v18 = vsel %vm790_vm4, %v1469_v5, %v1471_v16 }
 0x16e   : > { %v1470_v52 = vsel %vm790_vm4, %v1468_v46, %v1469_v5  ;;  %v1453_v41 = vadd.f32 %v1450_v3, %v1447_v24  ;;  %v701_v37 = vmul.f32 0.5, %v3272_v27  ;;  %v698_v11 = vmul.f32 -0.5, %v655_v50  ;;  %v3273_v5 = vld [vmem:[#allocation11_spill] sm:$0xff]  ;;  %v3277_v24 = vld [vmem:[#allocation10_spill] sm:$0xff] }
 0x16f   : > { %v1275_v9 = vsub.f32 %v1254_v60, %v1272_v49  ;;  %v1232_v10 = vadd.f32 %v1229_v61, %v3269_v33  ;;  %v1209_v55 = vpop.permute.xlu0 %1208  ;;  %v1555_v29 = vmul.f32 0.15, %v1552_v57  ;;  %v3049_v61 = vld [vmem:[%s2304_s25] sm:$0xff]  ;;  %v3274_v33 = vld [vmem:[#allocation16_spill] sm:$0xff]  ;;  %v1510_v3 = vadd.f32 %v1507_v14, %v1504_v17 }
 0x170   : > { %v1217_v35 = vadd.f32 %v1209_v55, %v1205_v31  ;;  %v1528_v14 = vsel %vm790_vm4, %v1525_v21, %v1527_v38  ;;  %v1506_v17 = vmul.f32 -6.0, %v3266_v53  ;;  %v3079_v38 = vld [vmem:[%s2380_s29 + $0x8] sm:$0xff] }
 0x171   : > { %v1292_v19 = vsub.f32 %v1275_v9, %v1289_v43  ;;  %v1241_v56 = vmul.f32 %v3027_v47, %v1232_v10  ;;  %v1414_v9 = vadd.f32 %v3007_v48, %v3273_v5  ;;  %v1423_v10 = vmul.f32 %v3274_v33, %v3273_v5 }
 0x172   : > { %v1228_v30 = vadd.f32 %v1222_v6, %v1217_v35  ;;  %v1567_v12 = vpop.permute.xlu2 %1566  ;;  %v1459_v4 = vpop.permute.xlu1 %1458  ;;  %v1503_v48 = vadd.f32 %v2962_v40, %v2993_v20  ;;  %v1524_v20 = vrot.slane %v3266_v53, 1 }
 0x173   : > { %v1301_v43 = vsub.f32 %v1292_v19, %v1298_v26  ;;  %v1573_v63 = vmul.f32 %v2013_v44, %v1567_v12  ;;  %v1466_v42 = vadd.f32 %v1459_v4, %v1454_v0  ;;  %v1244_v54 = vsub.f32 %v2849_v8, %v1241_v56  ;;  %v3275_v56 = vld [vmem:[#allocation30_spill] sm:$0xff] }
 0x174   : > { %v1231_v59 = vadd.f32 %v1228_v30, %v3252_v2  ;;  %v1558_v44 = vmul.f32 0.5, %v1555_v29  ;;  %v1539_v8 = vmul.f32 %v1415_v51, %v2610_v62  ;;  %v3276_v29 = vrot.slane %v3275_v56, 7 }
 0x175   : > { %v1304_v26 = vmul.f32 0.5, %v1301_v43  ;;  %v1576_v60 = vmul.f32 0.5, %v1573_v63  ;;  %v1477_v49 = vadd.f32 %v1472_v18, %v1466_v42  ;;  %v1052_v51 = vmul.f32 0.5, %v3277_v24 }
 0x176   : > { %v1240_v2 = vmul.f32 %v3049_v61, %v1231_v59 }
 0x177   : > { %v1579_v16 = vsub.f32 %v1558_v44, %v1576_v60  ;;  %v1480_v57 = vadd.f32 %v1477_v49, %v1424_v22  ;;  %v1457_v6 = vpop.permute.xlu0 %1456  ;;  %v1307_v31 = vadd.f32 %v2943_v34, %v1304_v26  ;;  %v3278_v34 = vld [vmem:[#allocation38_spill] sm:$0xff] }
 0x178   : > { %v1465_v55 = vadd.f32 %v1457_v6, %v1453_v41  ;;  %v1243_v35 = vsub.f32 %v2851_v36, %v1240_v2  ;;  %v1049_v30 = vmul.f32 -0.5, %v3278_v34  ;;  %v704_v36 = vadd.f32 %v701_v37, %v698_v11  ;;  %v3279_v41 = vld [vmem:[#allocation9_spill] sm:$0xff]  ;;  %v3280_v37 = vld [vmem:[#allocation39_spill] sm:$0xff] }
 0x179   : > { %v1596_v46 = vsub.f32 %v1579_v16, %v1593_v45  ;;  %v3059_v19 = vadd.f32 %v1539_v8, %v1480_v57  ;;  %v1318_v0 = vsub.f32 %v1307_v31, %v3276_v29  ;;  %v1538_v45 = vmul.f32 %v1414_v9, %v3266_v53 }
 0x17a   : > { %v1476_v12 = vadd.f32 %v1470_v52, %v1465_v55  ;;  %v1515_v22 = vpop.permute.xlu1 %1514  ;;  %v1509_v52 = vadd.f32 %v1506_v17, %v1503_v48  ;;  %v707_v39 = vmul.f32 0.5, %v704_v36  ;;  %v1055_v60 = vadd.f32 %v1052_v51, %v1049_v30  ;;  %v3282_v51 = vld [vmem:[#allocation25_spill] sm:$0xff] }
 0x17b   : > { %v1605_v4 = vsub.f32 %v1596_v46, %v1602_v28  ;;  %v1522_v43 = vadd.f32 %v1515_v22, %v1510_v3  ;;  %v1321_v63 = vmul.f32 0.9756098, %v1318_v0  ;;  %v1247_v28 = vmul.f32 0.5, %v1244_v54 }
 0x17c   : > { %v1479_v42 = vadd.f32 %v1476_v12, %v1423_v10  ;;  %v1526_v2 = vsel %vm790_vm4, %v1524_v20, %v1525_v21  ;;  %v1051_v27 = vmul.f32 0.5, %v3279_v41  ;;  %v1246_v6 = vmul.f32 0.5, %v1243_v35  ;;  %v3284_v20 = vld [vmem:[#allocation34_spill] sm:$0xff] }
 0x17d   : > { %v1608_v59 = vmul.f32 0.5, %v1605_v4  ;;  %v1533_v40 = vadd.f32 %v1528_v14, %v1522_v43  ;;  %1643 = vrot.lane.b32.xlu2 %v1321_v63, %s2027_s28  ;;  %v1250_v53 = vmul.f32 0.15, %v1247_v28  ;;  %v1294_v46 = vmul.f32 %v3079_v38, %v1055_v60 }
 0x17e   : > { %v1541_v18 = vadd.f32 %v1538_v45, %v1479_v42  ;;  %v1249_v35 = vmul.f32 0.15, %v1246_v6  ;;  %v3283_v34 = vrot.slane %v3282_v51, 7 }
 0x17f   : > { %v1536_v50 = vadd.f32 %v1533_v40, %v3271_v25  ;;  %v1513_v26 = vpop.permute.xlu0 %1512  ;;  %v1611_v44 = vadd.f32 %v3000_v13, %v1608_v59  ;;  %v1048_v25 = vmul.f32 -0.5, %v3280_v37  ;;  %v3281_v13 = vld [vmem:[#allocation33_spill] sm:$0xff]  ;;  %v1253_v21 = vmul.f32 0.5, %v1250_v53 }
 0x180   : > { %v1521_v49 = vadd.f32 %v1513_v26, %v1509_v52  ;;  %v1285_v31 = vmul.f32 %v3027_v47, %v3281_v13  ;;  %v1284_v30 = vmul.f32 %v3049_v61, %v3283_v34  ;;  %v1297_v12 = vmul.f32 0.5, %v1294_v46  ;;  %v3288_v13 = vld [vmem:[#allocation31_spill] sm:$0xff] }
 0x181   : > { %v1545_v8 = vmul.f32 %v3079_v38, %v1536_v50  ;;  %v1614_v54 = vsub.f32 %v1611_v44, %v707_v39  ;;  %v1054_v3 = vadd.f32 %v1051_v27, %v1048_v25  ;;  %v1252_v22 = vmul.f32 0.5, %v1249_v35  ;;  %v3291_v34 = vld [vmem:[#allocation19_spill] sm:$0xff] }
 0x182   : > { %v1532_v16 = vadd.f32 %v1526_v2, %v1521_v49  ;;  %v1261_v57 = vpop.permute.xlu1 %1260  ;;  %v1288_v29 = vmul.f32 0.5, %v1285_v31  ;;  %v1287_v36 = vmul.f32 0.5, %v1284_v30  ;;  %v1356_v52 = vmul.f32 0.5, %v3270_v58  ;;  %v3285_v58 = vld [vmem:[#allocation29_spill] sm:$0xff] }
 0x183   : > { %v1268_v11 = vmul.f32 %v2894_v1, %v1261_v57  ;;  %v1617_v9 = vmul.f32 0.9756098, %v1614_v54  ;;  %v1548_v10 = vsub.f32 %v3059_v19, %v1545_v8  ;;  %v1293_v43 = vmul.f32 %v2985_v32, %v1054_v3 }
 0x184   : > { %v1535_v62 = vadd.f32 %v1532_v16, %v3274_v33  ;;  %v1355_v39 = vmul.f32 0.5, %v3273_v5  ;;  %v1352_v44 = vmul.f32 -0.5, %v2923_v7  ;;  %v3286_v54 = vrot.slane %v3285_v58, 7  ;;  %v3287_v7 = vld [vmem:[#allocation35_spill] sm:$0xff] }
 0x185   : > { %v1271_v55 = vmul.f32 0.5, %v1268_v11  ;;  %1658 = vrot.lane.b32.xlu2 %v1617_v9, %s2027_s28  ;;  %v1296_v17 = vmul.f32 0.5, %v1293_v43  ;;  %v1551_v26 = vmul.f32 0.5, %v1548_v10  ;;  %v1589_v25 = vmul.f32 %v3027_v47, %v3287_v7  ;;  %v654_v10 = vld [vmem:[%s3044_s22 + $0x8] sm:$0xff] }
 0x186   : > { %v1544_v56 = vmul.f32 %v2985_v32, %v1535_v62  ;;  %v1358_v41 = vadd.f32 %v1355_v39, %v1352_v44  ;;  %v3289_v31 = vrot.slane %v3288_v13, 7  ;;  %v699_v30 = vmul.f32 0.5, %v3291_v34 }
 0x187   : > { %v1274_v0 = vsub.f32 %v1253_v21, %v1271_v55  ;;  %v1259_v24 = vpop.permute.xlu0 %1258  ;;  %v1554_v53 = vmul.f32 0.15, %v1551_v26 }
 0x188   : > { %v1267_v19 = vmul.f32 %v2906_v23, %v1259_v24  ;;  %v1547_v33 = vsub.f32 %v1541_v18, %v1544_v56  ;;  %v1353_v18 = vmul.f32 -0.5, %v2805_v15  ;;  %v1588_v11 = vmul.f32 %v3049_v61, %v3289_v31 }
 0x189   : > { %v1291_v48 = vsub.f32 %v1274_v0, %v1288_v29  ;;  %v1557_v62 = vmul.f32 0.5, %v1554_v53  ;;  %v1597_v3 = vmul.f32 %v2985_v32, %v1358_v41  ;;  %v1592_v56 = vmul.f32 0.5, %v1589_v25  ;;  %v3290_v0 = vld [vmem:[#allocation20_spill] sm:$0xff] }
 0x18a   : > { %v1270_v4 = vmul.f32 0.5, %v1267_v19  ;;  %v1550_v49 = vmul.f32 0.5, %v1547_v33  ;;  %v1359_v2 = vadd.f32 %v1356_v52, %v1353_v18  ;;  %v697_v29 = vmul.f32 -0.5, %v654_v10 }
 0x18b   : > { %v1300_v63 = vsub.f32 %v1291_v48, %v1297_v12  ;;  %v700_v24 = vmul.f32 0.5, %v3290_v0  ;;  %v1600_v12 = vmul.f32 0.5, %v1597_v3 }
 0x18c   : > { %v1273_v45 = vsub.f32 %v1252_v22, %v1270_v4  ;;  %v1553_v5 = vmul.f32 0.15, %v1550_v49  ;;  %v1598_v55 = vmul.f32 %v3079_v38, %v1359_v2 }
 0x18d   : > { %v1303_v42 = vmul.f32 0.5, %v1300_v63  ;;  %v703_v4 = vadd.f32 %v700_v24, %v697_v29 }
 0x18e   : > { %v1290_v14 = vsub.f32 %v1273_v45, %v1287_v36  ;;  %v1556_v46 = vmul.f32 0.5, %v1553_v5  ;;  %v1601_v33 = vmul.f32 0.5, %v1598_v55 }
 0x18f   : > { %v1306_v59 = vadd.f32 %v3027_v47, %v1303_v42  ;;  %v653_v47 = vld [vmem:[%s3044_s22] sm:$0xff]  ;;  %v706_v42 = vmul.f32 0.5, %v703_v4 }
 0x190   : > { %v1299_v40 = vsub.f32 %v1290_v14, %v1296_v17 }
 0x191   : > { %v1317_v28 = vsub.f32 %v1306_v59, %v3284_v20 }
 0x192   : > { %v1302_v50 = vmul.f32 0.5, %v1299_v40 }
 0x193   : > { %v1320_v60 = vmul.f32 0.9756098, %v1317_v28 }
 0x194   : > { %v1305_v8 = vadd.f32 %v3049_v61, %v1302_v50  ;;  %v1591_v61 = vmul.f32 0.5, %v1588_v11 }
 0x195   : > { %1641 = vrot.lane.b32.xlu1 %v1320_v60, %s2027_s28 }
 0x196   : > { %v1316_v15 = vsub.f32 %v1305_v8, %v3286_v54 }
 0x197   : > { %v1565_v27 = vpop.permute.xlu1 %1564  ;;  %v1626_v37 = vpop.permute.xlu2 %1625 }
 0x198   : > { %v1572_v16 = vmul.f32 %v2894_v1, %v1565_v27  ;;  %v1563_v57 = vpop.permute.xlu0 %1562  ;;  %1635 = vst.msk [vmem:[%s2095_s17 + $0xf] sm:$0x1] %vm1634_vm5, %v1626_v37  ;;  %v1319_v6 = vmul.f32 0.9756098, %v1316_v15 }
 0x199   : > { %v1571_v9 = vmul.f32 %v2906_v23, %v1563_v57  ;;  %v696_v23 = vmul.f32 -0.5, %v653_v47 }
 0x19a   : > { %v1575_v21 = vmul.f32 0.5, %v1572_v16  ;;  %1639 = vrot.lane.b32.xlu0 %v1319_v6, %s2027_s28 }
 0x19b   : > { %v1574_v1 = vmul.f32 0.5, %v1571_v9  ;;  %v702_v63 = vadd.f32 %v699_v30, %v696_v23 }
 0x19c   : > { %v1578_v35 = vsub.f32 %v1557_v62, %v1575_v21 }
 0x19d   : > { %v1577_v51 = vsub.f32 %v1556_v46, %v1574_v1  ;;  %v705_v17 = vmul.f32 0.5, %v702_v63 }
 0x19e   : > { %v1595_v19 = vsub.f32 %v1578_v35, %v1592_v56 }
 0x19f   : > { %v1594_v48 = vsub.f32 %v1577_v51, %v1591_v61 }
 0x1a0   : > { %v1604_v22 = vsub.f32 %v1595_v19, %v1601_v33 }
 0x1a1   : > { %v1603_v43 = vsub.f32 %v1594_v48, %v1600_v12 }
 0x1a2   : > { %v1607_v36 = vmul.f32 0.5, %v1604_v22 }
 0x1a3   : > { %v1606_v45 = vmul.f32 0.5, %v1603_v43 }
 0x1a4   : > { %v1610_v14 = vadd.f32 %v3079_v38, %v1607_v36 }
 0x1a5   : > { %v1609_v59 = vadd.f32 %v2985_v32, %v1606_v45 }
 0x1a6   : > { %v1613_v40 = vsub.f32 %v1610_v14, %v706_v42 }
 0x1a7   : > { %v1612_v20 = vsub.f32 %v1609_v59, %v705_v17 }
 0x1a8   : > { %v1616_v28 = vmul.f32 0.9756098, %v1613_v40 }
 0x1a9   : > { %v1615_v52 = vmul.f32 0.9756098, %v1612_v20 }
 0x1aa   : > { %1656 = vrot.lane.b32.xlu1 %v1616_v28, %s2027_s28 }
 0x1ab   : > { %1654 = vrot.lane.b32.xlu0 %v1615_v52, %s2027_s28 }
 0x1c7   : > { %v1624_v18 = vpop.permute.xlu1 %1623 }
 0x1c8   : > { %1633 = vst.msk [vmem:[%s2095_s17 + $0x7] sm:$0xff] %vm1632_vm6, %v1624_v18 }
 0x1cc   : > { %v1622_v38 = vpop.permute.xlu0 %1621 }
 0x1cd   : > { %1631 = vst.msk [vmem:[%s2095_s17 - $0x1] sm:$0xfe] %vm1630_vm7, %v1622_v38 }
 0x1d7   : > { %v1644_v32 = vpop.permute.xlu2 %1643 }
 0x1d8   : > { %1650 = vst.msk [vmem:[%s2100_s20 + $0xf] sm:$0x1] %vm1634_vm5, %v1644_v32 }
 0x1df   : > { %v1659_v50 = vpop.permute.xlu2 %1658 }
 0x1e0   : > { %1665 = vst.msk [vmem:[%s2105_s23 + $0xf] sm:$0x1] %vm1634_vm5, %v1659_v50 }
 0x207   : > { %v1642_v26 = vpop.permute.xlu1 %1641 }
 0x208   : > { %1649 = vst.msk [vmem:[%s2100_s20 + $0x7] sm:$0xff] %vm1632_vm6, %v1642_v26 }
 0x20c   : > { %v1640_v39 = vpop.permute.xlu0 %1639 }
 0x20d   : > { %1648 = vst.msk [vmem:[%s2100_s20 - $0x1] sm:$0xfe] %vm1630_vm7, %v1640_v39 }
 0x21c   : > { %v1657_v44 = vpop.permute.xlu1 %1656 }
 0x21d   : > { %1664 = vst.msk [vmem:[%s2105_s23 + $0x7] sm:$0xff] %vm1632_vm6, %v1657_v44  ;;  %v1655_v60 = vpop.permute.xlu0 %1654 }
 0x21e   : > { %1663 = vst.msk [vmem:[%s2105_s23 - $0x1] sm:$0xfe] %vm1630_vm7, %v1655_v60 }
 0x21f PF: > { %s20_s30 = sadd.s32 1, %s2023_s30  }
 0x220   : > { %p17_p10 = scmp.ge.s32.totalorder %s20_s30, 12  }
 0x222   :  { %19 = sbr.rel (!%p17_p10) target bundleno = 1 (0x1), region = 145 }

// kernel: sub.8
= control target key start
LH: loop header
LB: loop body
LE: loop exit
PB: predicated region body
PF: predicated region fallthrough
CT: control target
= control target key end

     0   :  { %s364_s0 = inlined_call_operand.vmem [shape: f32[8,16,16], index: 0, kind: input, shape index: {}]   ;;  %s365_s1 = inlined_call_operand.vmem [shape: f32[8,16,16], index: 1, kind: input, shape index: {}]   ;;  %s366_s2 = inlined_call_operand.vmem [shape: f32[8,16,16], index: 2, kind: output, shape index: {}]  }
   0x1   :  { %v3_v0 = vld [vmem:[%s364_s0] sm:$0xff]  ;;  %v160_v2 = vld [vmem:[%s364_s0 + $0x10] sm:$0xff]  ;;  %v181_v23 = vld [vmem:[%s364_s0 + $0x8] sm:$0xff] }
   0x2   :  { %v4_v1 = vld [vmem:[%s365_s1] sm:$0xff]  ;;  %v161_v4 = vld [vmem:[%s365_s1 + $0x10] sm:$0xff]  ;;  %v182_v24 = vld [vmem:[%s365_s1 + $0x8] sm:$0xff] }
   0x3   :  { %v7_v3 = vsub.f32 %v3_v0, %v4_v1  ;;  %v163_v5 = vld [vmem:[%s364_s0 + $0x20] sm:$0xff]  ;;  %v16_v7 = vsub.f32 %v160_v2, %v161_v4  ;;  %v166_v9 = vld [vmem:[%s364_s0 + $0x30] sm:$0xff]  ;;  %v86_v26 = vsub.f32 %v181_v23, %v182_v24  ;;  %v184_v27 = vld [vmem:[%s364_s0 + $0x18] sm:$0xff] }
   0x4   :  { %v164_v6 = vld [vmem:[%s365_s1 + $0x20] sm:$0xff]  ;;  %v167_v10 = vld [vmem:[%s365_s1 + $0x30] sm:$0xff]  ;;  %v185_v28 = vld [vmem:[%s365_s1 + $0x18] sm:$0xff] }
   0x5   :  { %v26_v8 = vsub.f32 %v163_v5, %v164_v6  ;;  %v169_v11 = vld [vmem:[%s364_s0 + $0x40] sm:$0xff]  ;;  %9 = vst [vmem:[%s366_s2] sm:$0xff] %v7_v3  ;;  %v36_v12 = vsub.f32 %v166_v9, %v167_v10  ;;  %v172_v14 = vld [vmem:[%s364_s0 + $0x50] sm:$0xff]  ;;  %v187_v29 = vld [vmem:[%s364_s0 + $0x28] sm:$0xff]  ;;  %v96_v30 = vsub.f32 %v184_v27, %v185_v28 }
   0x6   :  { %v170_v13 = vld [vmem:[%s365_s1 + $0x40] sm:$0xff]  ;;  %v173_v15 = vld [vmem:[%s365_s1 + $0x50] sm:$0xff]  ;;  %162 = vst [vmem:[%s366_s2 + $0x10] sm:$0xff] %v16_v7  ;;  %v188_v31 = vld [vmem:[%s365_s1 + $0x28] sm:$0xff] }
   0x7   :  { %v46_v16 = vsub.f32 %v169_v11, %v170_v13  ;;  %v56_v17 = vsub.f32 %v172_v14, %v173_v15  ;;  %v175_v18 = vld [vmem:[%s364_s0 + $0x60] sm:$0xff]  ;;  %v178_v20 = vld [vmem:[%s364_s0 + $0x70] sm:$0xff]  ;;  %165 = vst [vmem:[%s366_s2 + $0x20] sm:$0xff] %v26_v8  ;;  %v190_v32 = vld [vmem:[%s364_s0 + $0x38] sm:$0xff]  ;;  %v106_v34 = vsub.f32 %v187_v29, %v188_v31 }
   0x8   :  { %v176_v19 = vld [vmem:[%s365_s1 + $0x60] sm:$0xff]  ;;  %v179_v22 = vld [vmem:[%s365_s1 + $0x70] sm:$0xff]  ;;  %168 = vst [vmem:[%s366_s2 + $0x30] sm:$0xff] %v36_v12  ;;  %v191_v33 = vld [vmem:[%s365_s1 + $0x38] sm:$0xff] }
   0x9   :  { %v66_v21 = vsub.f32 %v175_v18, %v176_v19  ;;  %v76_v25 = vsub.f32 %v178_v20, %v179_v22  ;;  %171 = vst [vmem:[%s366_s2 + $0x40] sm:$0xff] %v46_v16  ;;  %v116_v35 = vsub.f32 %v190_v32, %v191_v33  ;;  %v193_v36 = vld [vmem:[%s364_s0 + $0x48] sm:$0xff]  ;;  %v196_v38 = vld [vmem:[%s364_s0 + $0x58] sm:$0xff] }
   0xa   :  { %174 = vst [vmem:[%s366_s2 + $0x50] sm:$0xff] %v56_v17  ;;  %v194_v37 = vld [vmem:[%s365_s1 + $0x48] sm:$0xff]  ;;  %v197_v40 = vld [vmem:[%s365_s1 + $0x58] sm:$0xff] }
   0xb   :  { %177 = vst [vmem:[%s366_s2 + $0x60] sm:$0xff] %v66_v21  ;;  %v126_v39 = vsub.f32 %v193_v36, %v194_v37  ;;  %v199_v41 = vld [vmem:[%s364_s0 + $0x68] sm:$0xff]  ;;  %v136_v43 = vsub.f32 %v196_v38, %v197_v40  ;;  %v202_v45 = vld [vmem:[%s364_s0 + $0x78] sm:$0xff] }
   0xc   :  { %v200_v42 = vld [vmem:[%s365_s1 + $0x68] sm:$0xff]  ;;  %180 = vst [vmem:[%s366_s2 + $0x70] sm:$0xff] %v76_v25  ;;  %v203_v46 = vld [vmem:[%s365_s1 + $0x78] sm:$0xff] }
   0xd   :  { %v146_v44 = vsub.f32 %v199_v41, %v200_v42  ;;  %183 = vst [vmem:[%s366_s2 + $0x8] sm:$0xff] %v86_v26  ;;  %v156_v47 = vsub.f32 %v202_v45, %v203_v46 }
   0xe   :  { %186 = vst [vmem:[%s366_s2 + $0x18] sm:$0xff] %v96_v30 }
   0xf   :  { %189 = vst [vmem:[%s366_s2 + $0x28] sm:$0xff] %v106_v34 }
  0x10   :  { %192 = vst [vmem:[%s366_s2 + $0x38] sm:$0xff] %v116_v35 }
  0x11   :  { %195 = vst [vmem:[%s366_s2 + $0x48] sm:$0xff] %v126_v39 }
  0x12   :  { %198 = vst [vmem:[%s366_s2 + $0x58] sm:$0xff] %v136_v43 }
  0x13   :  { %201 = vst [vmem:[%s366_s2 + $0x68] sm:$0xff] %v146_v44 }
  0x14   :  { %204 = vst [vmem:[%s366_s2 + $0x78] sm:$0xff] %v156_v47 }

// kernel: ai4urban_forward.18
= control target key start
LH: loop header
LB: loop body
LE: loop exit
PB: predicated region body
PF: predicated region fallthrough
CT: control target
= control target key end

     0   :  { %s611_s12 = smov 0   ;;  %s678_s0 = inlined_call_operand.vmem [shape: f32[10,18,18], index: 0, kind: input, shape index: {}]   ;;  %s679_s1 = inlined_call_operand.vmem [shape: f32[8,16,16], index: 1, kind: input, shape index: {}]   ;;  %s680_s2 = inlined_call_operand.vmem [shape: f32[8,16,16], index: 2, kind: input, shape index: {}]   ;;  %s681_s3 = inlined_call_operand.vmem [shape: f32[8,16,16], index: 3, kind: output, shape index: {}]  }
   0x1 LB: > { %s617_s13 = sadd.s32 4294967295, %s586_s12   ;;  %p514_p0 = scmp.ge.s32.totalorder %s586_s12, 1  ;;  %s586_s12 = sphi %s611_s12, %s13_s12  }
   0x2   : > { %p187_p1 = scmp.lt.s32.totalorder %s586_s12, 11 }
   0x4   : > { %p188_p2 = pnand %p514_p0, %p187_p1 }
   0x5   : > { %s516_s14 = sadd.s32 (!%p188_p2), 4294967294, %s617_s13  ;;  %p230_p5 = scmp.lt.s32.totalorder (!%p188_p2), %s617_s13, 9 }
   0x6   : > { %191 = sbr.rel (%p188_p2) target bundleno = 294 (0x126), region = 32  ;;  %p236_p3 = scmp.gt.s32.totalorder (!%p188_p2), %s516_s14, 0 }
   0x7   : > { %p517_p4 = scmp.lt.s32.totalorder (!%p188_p2), %s516_s14, 7  ;;  %s269_s15 = ssub.s32 (!%p188_p2), 0, %s617_s13 }
   0x8   : > { %s540_s17 = smin.u32 (!%p188_p2), %s617_s13, %s269_s15  ;;  %p268_p6 = scmp.lt.s32.totalorder (!%p188_p2), %s617_s13, 0 }
   0x9   : > { %569 = sdivrem.u32 (!%p188_p2), %s540_s17, 3  ;;  %p541_p7 = scmp.lt.s32.totalorder (!%p188_p2), %s617_s13, 2 }
   0xb   : > { %s683_s14 = smov (!%p236_p3, %s516_s14), 0  ;;  %vm280_vm0 = vcmask 146432   ;;  %vm283_vm1 = vcmask 140288   ;;  %s297_s10 = sadd.s32 (!%p541_p7), 2, %s617_s13 }
   0xc   : > { %s685_s14 = smov (!%p517_p4, %s683_s14), 7  ;;  %s299_s11 = ssub.s32 (!%p541_p7), 0, %s297_s10 }
   0xd   : > { %s548_s16 = sshll.u32 %s685_s14, 4  ;;  %s543_s14 = smin.u32 (!%p541_p7), %s299_s11, %s297_s10 }
   0xe   : > { %s628_s20 = scalar_lea.vmem %s679_s1, %s548_s16  ;;  %s633_s23 = scalar_lea.vmem %s680_s2, %s548_s16 }
   0xf   : > { %s638_s26 = scalar_lea.vmem %s681_s3, %s548_s16  ;;  %572 = sdivrem.u32 (!%p541_p7), %s543_s14, 3 }
  0x10   : > { %s231_s27 = scalar_select %p230_p5, %s617_s13, 9 }
  0x11   : > { %s289_s15 = sadd.s32 (!%p541_p7), 1, %s617_s13  ;;  %p298_p8 = scmp.lt.s32.totalorder (!%p541_p7), %s297_s10, 0 }
  0x12   : > { %s555_s28 = smul.u32 24, %s231_s27  ;;  %s570_s29 = spop.drf %569 }
  0x13   : > { %s571_s30 = spop.drf %569  ;;  %s291_s16 = ssub.s32 (!%p541_p7), 0, %s289_s15 }
  0x14   : > { %s234_s6 = scalar_lea.vmem %s678_s0, %s555_s28  ;;  %s273_s7 = ssub.s32 0, %s571_s30 }
  0x15   : > { %s687_s7 = smov (!%p268_p6, %s273_s7), %s571_s30  ;;  %v645_v0 = vld [vmem:[%s234_s6] sm:$0xff]  ;;  %v647_v1 = vld [vmem:[%s234_s6 + $0x8] sm:$0xff]  ;;  %v649_v2 = vld [vmem:[%s234_s6 + $0x10] sm:$0x3]  ;;  %s542_s17 = smin.u32 (!%p541_p7), %s291_s16, %s289_s15 }
  0x16   : > { %s278_s8 = smul.u32 24, %s687_s7  ;;  %p290_p9 = scmp.lt.s32.totalorder (!%p541_p7), %s289_s15, 0 }
  0x17   : > { %288 = sbr.rel (%p541_p7) target bundleno = 294 (0x126), region = 36  ;;  %s588_s13 = smov (!%p541_p7), 1  }
  0x18   : > { %s279_s9 = scalar_lea.vmem [#allocation2], %s278_s8  ;;  %575 = sdivrem.u32 (!%p541_p7), %s542_s17, 3 }
  0x19   : > { %281 = vst.msk [vmem:[%s279_s9] sm:$0xff] %vm280_vm0, %v645_v0  ;;  %s573_s18 = spop.drf (!%p541_p7), %572  ;;  %s589_s29 = smov (!%p541_p7), 127  }
  0x1a   : > { %282 = vst.msk [vmem:[%s279_s9 + $0x8] sm:$0xff] %vm280_vm0, %v647_v1  ;;  %s574_s19 = spop.drf (!%p541_p7), %572 }
  0x1b   : > { %284 = vst.msk [vmem:[%s279_s9 + $0x10] sm:$0x3] %vm283_vm1, %v649_v2  ;;  %s303_s21 = ssub.s32 (!%p541_p7), 0, %s574_s19 }
  0x1c   : > { %s689_s21 = smov (!%p298_p8, %s303_s21), %s574_s19  ;;  %vm321_vm2 = vcmask 1040384   ;;  %vm362_vm3 = vcmask 1046528   ;;  %v590_v20 = vmov -6.0   ;;  %v318_v59 = vld [vmem:[%s633_s23 + $0x8] sm:$0xff]  ;;  %v317_v60 = vld [vmem:[%s633_s23] sm:$0xff]  ;;  %vm407_vm5 = vcmask 130048  }
  0x1d   : > { %s310_s24 = smul.u32 24, %s689_s21  ;;  %578 = vrcp.f32 %v590_v20  ;;  %v316_v61 = vld [vmem:[%s628_s20 + $0x8] sm:$0xff]  ;;  %v315_v62 = vld [vmem:[%s628_s20] sm:$0xff] }
  0x1f   : > { %s311_s28 = scalar_lea.vmem [#allocation2], %s310_s24 }
  0x21   : > { %s576_s22 = spop.drf %575 }
  0x22   : > { %s577_s25 = spop.drf %575  ;;  %v314_v3 = vld [vmem:[%s311_s28 + $0x10] sm:$0x3]  ;;  %v312_v4 = vld [vmem:[%s311_s28] sm:$0xff]  ;;  %v313_v5 = vld [vmem:[%s311_s28 + $0x8] sm:$0xff] }
  0x23   : > { %s295_s27 = ssub.s32 0, %s577_s25  ;;  %336 = vrot.lane.b32.xlu1 %v314_v3, %s588_s13  ;;  %332 = vrot.lane.b32.xlu0 %v312_v4, %s588_s13  ;;  %v323_v6 = vrot.slane %v313_v5, 7  ;;  %v322_v7 = vrot.slane %v312_v4, 7  ;;  %v366_v8 = vrot.slane %v314_v3, 1  ;;  %v364_v9 = vrot.slane %v313_v5, 1  ;;  %v579_v22 = vpop.eup %578 }
  0x24   : > { %s691_s27 = smov (!%p290_p9, %s295_s27), %s577_s25  ;;  %352 = vrot.lane.b32.xlu2 %v313_v5, %s589_s29  ;;  %v363_v10 = vrot.slane %v312_v4, 1  ;;  %v378_v23 = vmul.f32 -6.0, %v579_v22  ;;  %v346_v28 = vmul.f32 -6.0, %v314_v3  ;;  %v344_v29 = vmul.f32 -6.0, %v312_v4 }
  0x25   : > { %s305_s30 = smul.u32 24, %s691_s27  ;;  %v324_v11 = vsel %vm321_vm2, %v322_v7, %v323_v6  ;;  %v367_v13 = vsel %vm362_vm3, %v364_v9, %v366_v8  ;;  %v345_v40 = vmul.f32 -6.0, %v313_v5  ;;  %vm382_vm4 = vweird.f32 %v579_v22 }
  0x26   : > { %v365_v12 = vsel %vm362_vm3, %v363_v10, %v364_v9  ;;  %v379_v30 = vsub.f32 1.0, %v378_v23 }
  0x27   : > { %s306_s4 = scalar_lea.vmem [#allocation2], %s305_s30 }
  0x28   : > { %v309_v14 = vld [vmem:[%s306_s4 + $0x10] sm:$0x3]  ;;  %v307_v15 = vld [vmem:[%s306_s4] sm:$0xff]  ;;  %v308_v16 = vld [vmem:[%s306_s4 + $0x8] sm:$0xff]  ;;  %v380_v35 = vmul.f32 %v579_v22, %v379_v30 }
  0x29   : > { %v330_v17 = vadd.f32 %v323_v6, %v309_v14  ;;  %v328_v18 = vadd.f32 %v322_v7, %v307_v15  ;;  %v329_v19 = vadd.f32 %v324_v11, %v308_v16 }
  0x2a   : > { %v381_v42 = vadd.f32 %v579_v22, %v380_v35 }
  0x2b   : > { %350 = vrot.lane.b32.xlu1 %v312_v4, %s589_s29  ;;  %334 = vrot.lane.b32.xlu0 %v313_v5, %s588_s13 }
  0x2c   : > { %354 = vrot.lane.b32.xlu2 %v314_v3, %s589_s29  ;;  %v383_v48 = vsel %vm382_vm4, %v579_v22, %v381_v42 }
  0x2d   : > { %v404_v63 = vmul.f32 %v383_v48, %v318_v59 }
  0x7e   : > { %v353_v21 = vpop.permute.xlu2 %352 }
  0x86   : > { %v355_v33 = vpop.permute.xlu2 %354 }
  0x95   : > { %v337_v24 = vpop.permute.xlu1 %336  ;;  %v333_v25 = vpop.permute.xlu0 %332 }
  0x96   : > { %v343_v26 = vadd.f32 %v337_v24, %v330_v17  ;;  %v341_v27 = vadd.f32 %v333_v25, %v328_v18 }
  0x98   : > { %v349_v31 = vadd.f32 %v346_v28, %v343_v26  ;;  %v347_v32 = vadd.f32 %v344_v29, %v341_v27 }
  0x9a   : > { %v361_v34 = vadd.f32 %v355_v33, %v349_v31 }
  0x9c   : > { %v373_v36 = vadd.f32 %v366_v8, %v361_v34 }
  0x9d   : > { %v351_v37 = vpop.permute.xlu1 %350  ;;  %v335_v38 = vpop.permute.xlu0 %334 }
  0x9e   : > { %v359_v39 = vadd.f32 %v351_v37, %v347_v32  ;;  %v342_v41 = vadd.f32 %v335_v38, %v329_v19  ;;  %v376_v45 = vadd.f32 %v373_v36, %v649_v2 }
  0xa0   : > { %v371_v43 = vadd.f32 %v365_v12, %v359_v39  ;;  %v348_v44 = vadd.f32 %v345_v40, %v342_v41  ;;  %v386_v50 = vmul.f32 %v383_v48, %v376_v45 }
  0xa2   : > { %v374_v46 = vadd.f32 %v371_v43, %v645_v0  ;;  %v360_v47 = vadd.f32 %v353_v21, %v348_v44  ;;  %v393_v54 = vrot.slane %v386_v50, 1  ;;  %v403_v0 = vmul.f32 %v383_v48, %v317_v60 }
  0xa4   : > { %v372_v49 = vadd.f32 %v367_v13, %v360_v47  ;;  %v384_v51 = vmul.f32 %v383_v48, %v374_v46 }
  0xa6   : > { %v375_v52 = vadd.f32 %v372_v49, %v647_v1  ;;  %v390_v55 = vrot.slane %v384_v51, 1 }
  0xa8   : > { %v385_v53 = vmul.f32 %v383_v48, %v375_v52 }
  0xaa   : > { %v391_v56 = vrot.slane %v385_v53, 1 }
  0xac   : > { %v394_v57 = vsel %vm362_vm3, %v391_v56, %v393_v54  ;;  %v392_v58 = vsel %vm362_vm3, %v390_v55, %v391_v56 }
  0xad   : > { %397 = vrot.lane.b32.xlu1 %v394_v57, %s589_s29  ;;  %395 = vrot.lane.b32.xlu0 %v392_v58, %s589_s29 }
 0x11f   : > { %v398_v1 = vpop.permute.xlu1 %397  ;;  %v396_v2 = vpop.permute.xlu0 %395 }
 0x120   : > { %v402_v3 = vsub.f32 %v316_v61, %v398_v1  ;;  %v401_v4 = vsub.f32 %v315_v62, %v396_v2 }
 0x122   : > { %v406_v5 = vadd.f32 %v404_v63, %v402_v3  ;;  %v405_v6 = vadd.f32 %v403_v0, %v401_v4 }
 0x124   : > { %409 = vst.msk [vmem:[%s638_s26 + $0x8] sm:$0xff] %vm407_vm5, %v406_v5 }
 0x125   : > { %408 = vst.msk [vmem:[%s638_s26] sm:$0xff] %vm407_vm5, %v405_v6 }
 0x126 PF: > { %s13_s12 = sadd.s32 1, %s586_s12  }
 0x127   : > { %p10_p10 = scmp.ge.s32.totalorder %s13_s12, 12  }
 0x129   :  { %12 = sbr.rel (!%p10_p10) target bundleno = 1 (0x1), region = 75 }

// kernel: ai4urban_forward.21
= control target key start
LH: loop header
LB: loop body
LE: loop exit
PB: predicated region body
PF: predicated region fallthrough
CT: control target
= control target key end

     0   :  { %s1314_s0 = inlined_call_operand.vmem [shape: f32[10,18,18], index: 0, kind: input, shape index: {}]   ;;  %s1315_s1 = inlined_call_operand.vmem [shape: f32[8,16,16], index: 1, kind: input, shape index: {}]   ;;  %s1316_s2 = inlined_call_operand.vmem [shape: f32[8,16,16], index: 2, kind: input, shape index: {}]   ;;  %s1317_s3 = inlined_call_operand.vmem [shape: f32[8,16,16], index: 3, kind: input, shape index: {}]   ;;  %s1318_s4 = inlined_call_operand.hbm [shape: f32[8,16,16], index: 4, kind: output, shape index: {0}]   ;;  %s1319_s5 = inlined_call_operand.hbm [shape: f32[8,16,16], index: 5, kind: output, shape index: {1}]   ;;  %s1320_s6 = inlined_call_operand.hbm [shape: f32[8,16,16], index: 6, kind: output, shape index: {2}]  }
   0x1   :  { %1325 = sst [smem:[#allocation13_spill]] %s1314_s0 }
   0x2   :  { %1326 = sst [smem:[#allocation14_spill]] %s1315_s1 }
   0x3   :  { %1327 = sst [smem:[#allocation15_spill]] %s1316_s2 }
   0x4   :  { %1328 = sst [smem:[#allocation16_spill]] %s1317_s3 }
   0x5   :  { %12 = vsyncpa [#allocation4], 0 }
   0x6   :  { %14 = vsyncpa [#allocation4 + $0x1], 0 }
   0x7   :  { %15 = vsyncpa [#allocation6], 0 }
   0x8   :  { %17 = vsyncpa [#allocation6 + $0x1], 0  ;;  %s1109_s21 = smov 0   ;;  %s1111_s22 = smov 0  }
   0x9   :  { %s1113_s23 = smov 0   ;;  %s1115_s24 = smov 0  }
   0xa LB: > { %1329 = sst [smem:[#allocation10_spill]] %s1064_s23  ;;  %s1130_s25 = sadd.s32 4294967295, %s1068_s24   ;;  %s1068_s24 = sphi %s1115_s24, %s1339_s24   ;;  %s1064_s23 = sphi %s1113_s23, %s1341_s23   ;;  %s1060_s22 = sphi %s1111_s22, %s1343_s22   ;;  %s1056_s21 = sphi %s1109_s21, %s1342_s21  }
   0xb   : > { %s1133_s26 = sadd.s32 4294967294, %s1068_s24   ;;  %s1136_s27 = sadd.s32 1, %s1068_s24  }
   0xc   : > { %1330 = sst [smem:[#allocation11_spill]] %s1136_s27  ;;  %p150_p0 = scmp.gt.s32.totalorder %s1133_s26, 0 }
   0xd   : > { %s815_s28 = sadd.s32 4294967294, %s1136_s27  ;;  %s158_s29 = sadd.s32 1, %s1064_s23 }
   0xe   : > { %s151_s30 = scalar_select %p150_p0, %s1133_s26, 0 }
   0xf   : > { %p153_p1 = scmp.gt.s32.totalorder %s815_s28, 0  ;;  %p168_p2 = scmp.ne.s32.totalorder %s1064_s23, %s1060_s22 }
  0x10   : > { %p169_p3 = scmp.eq.s32.totalorder %s1130_s25, 9  ;;  %p174_p4 = scmp.ne.s32.totalorder %s1060_s22, %s1056_s21 }
  0x11   : > { %s1345_s28 = smov (!%p153_p1, %s815_s28), 0  ;;  %p175_p6 = scmp.eq.s32.totalorder %s1133_s26, 9 }
  0x12   : > { %p1147_p5 = por %p169_p3, %p168_p2  ;;  %s155_s8 = ssub.s32 %s151_s30, %s1345_s28 }
  0x13   : > { %p822_p7 = scmp.ge.s32.totalorder %s1068_s24, 1  ;;  %p156_p8 = scmp.eq.s32.totalorder %s155_s8, 0 }
  0x14   : > { %p1153_p9 = por %p175_p6, %p174_p4  ;;  %p307_p10 = scmp.lt.s32.totalorder %s1068_s24, 11 }
  0x15   : > { %s1159_s10 = scalar_select %p156_p8, %s1064_s23, %s158_s29  }
  0x16   : > { %p308_p11 = pnand %p822_p7, %p307_p10 }
  0x17   : > { %1333 = sst [smem:[#allocation12_spill]] %s1159_s10  ;;  %s1321_s11 = sand.u32 (!%p308_p11), 1, %s1060_s22  }
  0x18   : > { %311 = sbr.rel (%p308_p11) target bundleno = 245 (0xf5), region = 36  ;;  %s1164_s12 = sshll.u32 (!%p308_p11), %s1321_s11, 4 }
  0x19   : > { %s827_s13 = sadd.s32 (!%p308_p11), 4294967294, %s1130_s25  ;;  %s419_s15 = ssub.s32 (!%p308_p11), 0, %s1130_s25 }
  0x1a   : > { %p377_p12 = scmp.gt.s32.totalorder (!%p308_p11), %s827_s13, 0  ;;  %p828_p13 = scmp.lt.s32.totalorder (!%p308_p11), %s827_s13, 7 }
  0x1b   : > { %s851_s16 = smin.u32 (!%p308_p11), %s1130_s25, %s419_s15  ;;  %p371_p0 = scmp.lt.s32.totalorder (!%p308_p11), %s1130_s25, 9 }
  0x1c   : > { %937 = sdivrem.u32 (!%p308_p11), %s851_s16, 3  ;;  %s1334_s1 = sld [smem:[#allocation14_spill]] (!%p308_p11) }
  0x1d   : > { %s1167_s14 = scalar_select %p377_p12, %s827_s13, 0  ;;  %vm430_vm0 = vcmask 146432   ;;  %vm433_vm1 = vcmask 140288  }
  0x1e   : > { %s1335_s2 = sld [smem:[#allocation15_spill]]  ;;  %p418_p1 = scmp.lt.s32.totalorder %s1130_s25, 0 }
  0x1f   : > { %s870_s17 = scalar_select %p828_p13, %s1167_s14, 7 }
  0x20   : > { %s1336_s3 = sld [smem:[#allocation16_spill]]  ;;  %s1194_s11 = scalar_lea.vmem [#allocation3], %s1164_s12 }
  0x21   : > { %s871_s18 = sshll.u32 %s870_s17, 4  ;;  %s1337_s0 = sld [smem:[#allocation13_spill]] }
  0x22   : > { %s1176_s28 = scalar_lea.vmem %s1334_s1, %s871_s18  ;;  %p852_p2 = scmp.lt.s32.totalorder %s1130_s25, 2 }
  0x23   : > { %s372_s15 = scalar_select %p371_p0, %s1130_s25, 9 }
  0x24   : > { %s1181_s8 = scalar_lea.vmem %s1335_s2, %s871_s18 }
  0x25   : > { %s881_s23 = smul.u32 24, %s372_s15  ;;  %s938_s16 = spop.drf %937 }
  0x26   : > { %s1186_s13 = scalar_lea.vmem %s1336_s3, %s871_s18  ;;  %s939_s17 = spop.drf %937 }
  0x27   : > { %s375_s1 = scalar_lea.vmem %s1337_s0, %s881_s23  ;;  %s423_s29 = ssub.s32 0, %s939_s17 }
  0x28   : > { %s1347_s29 = smov (!%p418_p1, %s423_s29), %s939_s17  ;;  %v425_v0 = vld [vmem:[%s375_s1] sm:$0xff]  ;;  %v426_v1 = vld [vmem:[%s375_s1 + $0x8] sm:$0xff]  ;;  %v427_v2 = vld [vmem:[%s375_s1 + $0x10] sm:$0x3]  ;;  %s1197_s18 = scalar_lea.vmem [#allocation5], %s1164_s12 }
  0x29   : > { %s428_s30 = smul.u32 24, %s1347_s29  ;;  %s1200_s15 = scalar_lea.vmem [#allocation7], %s1164_s12 }
  0x2a   : > { %438 = sbr.rel (%p852_p2) target bundleno = 201 (0xc9), region = 40  ;;  %s447_s23 = sadd.s32 (!%p852_p2), 2, %s1130_s25 }
  0x2b   : > { %s429_s10 = scalar_lea.vmem [#allocation2], %s428_s30  ;;  %s449_s16 = ssub.s32 (!%p852_p2), 0, %s447_s23 }
  0x2c   : > { %431 = vst.msk [vmem:[%s429_s10] sm:$0xff] %vm430_vm0, %v425_v0  ;;  %s854_s17 = smin.u32 (!%p852_p2), %s449_s16, %s447_s23  ;;  %s439_s1 = sadd.s32 (!%p852_p2), 1, %s1130_s25 }
  0x2d   : > { %432 = vst.msk [vmem:[%s429_s10 + $0x8] sm:$0xff] %vm430_vm0, %v426_v1  ;;  %940 = sdivrem.u32 (!%p852_p2), %s854_s17, 3  ;;  %s441_s19 = ssub.s32 (!%p852_p2), 0, %s439_s1 }
  0x2e   : > { %434 = vst.msk [vmem:[%s429_s10 + $0x10] sm:$0x3] %vm433_vm1, %v427_v2  ;;  %s853_s20 = smin.u32 (!%p852_p2), %s441_s19, %s439_s1  ;;  %p448_p3 = scmp.lt.s32.totalorder (!%p852_p2), %s447_s23, 0 }
  0x2f   : > { %943 = sdivrem.u32 %s853_s20, 3  ;;  %p440_p4 = scmp.lt.s32.totalorder %s439_s1, 0  ;;  %vm495_vm2 = vcmask 1045504   ;;  %v511_v13 = vmul.f32 0.5, %v426_v1  ;;  %v512_v14 = vmul.f32 0.5, %v427_v2  ;;  %v510_v21 = vmul.f32 0.5, %v425_v0 }
  0x30   : > { %s1070_s23 = smov 126   ;;  %vm522_vm3 = vcmask 1046528   ;;  %v468_v40 = vld [vmem:[%s1181_s8 + $0x8] sm:$0xff]  ;;  %vm564_vm4 = vcmask 130048   ;;  %v469_v44 = vld [vmem:[%s1186_s13] sm:$0xff] }
  0x31   : > { %v467_v53 = vld [vmem:[%s1181_s8] sm:$0xff]  ;;  %v466_v1 = vld [vmem:[%s1176_s28 + $0x8] sm:$0xff] }
  0x32   : > { %v465_v0 = vld [vmem:[%s1176_s28] sm:$0xff] }
  0x36   : > { %s941_s29 = spop.drf %940 }
  0x37   : > { %s942_s30 = spop.drf %940 }
  0x38   : > { %s453_s10 = ssub.s32 0, %s942_s30  ;;  %s944_s12 = spop.drf %943 }
  0x39   : > { %s1349_s10 = smov (!%p448_p3, %s453_s10), %s942_s30  ;;  %s945_s2 = spop.drf %943 }
  0x3a   : > { %s460_s0 = smul.u32 24, %s1349_s10  ;;  %s445_s3 = ssub.s32 0, %s945_s2 }
  0x3b   : > { %s1351_s3 = smov (!%p440_p4, %s445_s3), %s945_s2  ;;  %s1071_s2 = smov 127  }
  0x3c   : > { %s461_s27 = scalar_lea.vmem [#allocation2], %s460_s0  ;;  %s455_s16 = smul.u32 24, %s1351_s3 }
  0x3d   : > { %v462_v3 = vld [vmem:[%s461_s27] sm:$0xff]  ;;  %v464_v4 = vld [vmem:[%s461_s27 + $0x10] sm:$0x3]  ;;  %v463_v5 = vld [vmem:[%s461_s27 + $0x8] sm:$0xff] }
  0x3e   : > { %v474_v6 = vmul.f32 0.5, %v462_v3  ;;  %v476_v7 = vmul.f32 0.5, %v464_v4  ;;  %v475_v8 = vmul.f32 0.5, %v463_v5  ;;  %v471_v12 = vmul.f32 -0.5, %v462_v3  ;;  %s456_s0 = scalar_lea.vmem [#allocation2], %s455_s16  ;;  %v470_v3 = vld [vmem:[%s1186_s13 + $0x8] sm:$0xff] }
  0x3f   : > { %v472_v15 = vmul.f32 -0.5, %v463_v5  ;;  %v458_v17 = vld [vmem:[%s456_s0 + $0x8] sm:$0xff]  ;;  %v459_v18 = vld [vmem:[%s456_s0 + $0x10] sm:$0x3]  ;;  %v457_v20 = vld [vmem:[%s456_s0] sm:$0xff]  ;;  %v473_v50 = vmul.f32 -0.5, %v464_v4 }
  0x40   : > { %480 = vrot.lane.b32.xlu0 %v474_v6, %s1070_s23  ;;  %v496_v9 = vrot.slane %v474_v6, 2  ;;  %484 = vrot.lane.b32.xlu1 %v476_v7, %s1070_s23  ;;  %v499_v10 = vrot.slane %v476_v7, 2  ;;  %v497_v11 = vrot.slane %v475_v8, 2  ;;  %v508_v23 = vmul.f32 -0.5, %v458_v17 }
  0x41   : > { %v509_v24 = vmul.f32 -0.5, %v459_v18  ;;  %v507_v26 = vmul.f32 -0.5, %v457_v20 }
  0x42   : > { %v498_v16 = vsel %vm495_vm2, %v496_v9, %v497_v11  ;;  %v500_v19 = vsel %vm495_vm2, %v497_v11, %v499_v10  ;;  %v514_v28 = vadd.f32 %v511_v13, %v508_v23 }
  0x43   : > { %v503_v22 = vadd.f32 %v498_v16, %v471_v12  ;;  %v504_v25 = vadd.f32 %v500_v19, %v472_v15  ;;  %v515_v29 = vadd.f32 %v512_v14, %v509_v24  ;;  %v513_v31 = vadd.f32 %v510_v21, %v507_v26 }
  0x44   : > { %v517_v32 = vmul.f32 0.5, %v514_v28 }
  0x45   : > { %v505_v27 = vmul.f32 0.5, %v503_v22  ;;  %v506_v30 = vmul.f32 0.5, %v504_v25  ;;  %v518_v33 = vmul.f32 0.5, %v515_v29  ;;  %v516_v34 = vmul.f32 0.5, %v513_v31 }
  0x46   : > { %v550_v35 = vrot.slane %v517_v32, 1 }
  0x47   : > { %538 = vrot.lane.b32.xlu2 %v506_v30, %s1071_s2  ;;  %v552_v36 = vrot.slane %v518_v33, 1  ;;  %v549_v37 = vrot.slane %v516_v34, 1 }
  0x48   : > { %482 = vrot.lane.b32.xlu0 %v475_v8, %s1070_s23  ;;  %536 = vrot.lane.b32.xlu1 %v505_v27, %s1071_s2 }
  0x49   : > { %v551_v38 = vsel %vm522_vm3, %v549_v37, %v550_v35  ;;  %v553_v39 = vsel %vm522_vm3, %v550_v35, %v552_v36 }
  0x4f   : > { %554 = vrot.lane.b32.xlu2 %v551_v38, %s1071_s2 }
  0x50   : > { %556 = vrot.lane.b32.xlu0 %v553_v39, %s1071_s2 }
  0xa1   : > { %v539_v41 = vpop.permute.xlu2 %538 }
  0xa2   : > { %v543_v42 = vsub.f32 %v468_v40, %v539_v41 }
  0xa4   : > { %v545_v43 = vmul.f32 0.9756098, %v543_v42 }
  0xa6   : > { %568 = vst.msk [vmem:[%s1197_s18 + $0x8] sm:$0xff] %vm564_vm4, %v545_v43 }
  0xa9   : > { %v555_v45 = vpop.permute.xlu2 %554 }
  0xaa   : > { %v560_v46 = vsub.f32 %v469_v44, %v555_v45 }
  0xac   : > { %v562_v47 = vmul.f32 0.9756098, %v560_v46 }
  0xae   : > { %569 = vst.msk [vmem:[%s1200_s15] sm:$0xff] %vm564_vm4, %v562_v47 }
  0xb2   : > { %v481_v48 = vpop.permute.xlu0 %480  ;;  %v485_v49 = vpop.permute.xlu1 %484 }
  0xb3   : > { %v489_v51 = vadd.f32 %v481_v48, %v471_v12  ;;  %v491_v52 = vadd.f32 %v485_v49, %v473_v50 }
  0xb5   : > { %v492_v56 = vmul.f32 0.5, %v489_v51  ;;  %v494_v57 = vmul.f32 0.5, %v491_v52 }
  0xb7   : > { %v523_v62 = vrot.slane %v492_v56, 1  ;;  %v526_v63 = vrot.slane %v494_v57, 1 }
  0xba   : > { %v483_v54 = vpop.permute.xlu0 %482  ;;  %v537_v55 = vpop.permute.xlu1 %536 }
  0xbb   : > { %v490_v58 = vadd.f32 %v483_v54, %v472_v15  ;;  %v542_v59 = vsub.f32 %v467_v53, %v537_v55 }
  0xbd   : > { %v493_v60 = vmul.f32 0.5, %v490_v58  ;;  %v544_v61 = vmul.f32 0.9756098, %v542_v59 }
  0xbf   : > { %v524_v2 = vrot.slane %v493_v60, 1  ;;  %567 = vst.msk [vmem:[%s1197_s18] sm:$0xff] %vm564_vm4, %v544_v61 }
  0xc1   : > { %v525_v4 = vsel %vm522_vm3, %v523_v62, %v524_v2  ;;  %v527_v5 = vsel %vm522_vm3, %v524_v2, %v526_v63 }
  0xc2   : > { %v530_v6 = vsub.f32 %v465_v0, %v525_v4  ;;  %v531_v7 = vsub.f32 %v466_v1, %v527_v5  ;;  %v557_v8 = vpop.permute.xlu0 %556 }
  0xc3   : > { %v561_v9 = vsub.f32 %v470_v3, %v557_v8 }
  0xc4   : > { %v532_v10 = vmul.f32 0.9756098, %v530_v6  ;;  %v533_v11 = vmul.f32 0.9756098, %v531_v7 }
  0xc5   : > { %v563_v12 = vmul.f32 0.9756098, %v561_v9 }
  0xc6   : > { %565 = vst.msk [vmem:[%s1194_s11] sm:$0xff] %vm564_vm4, %v532_v10 }
  0xc7   : > { %566 = vst.msk [vmem:[%s1194_s11 + $0x8] sm:$0xff] %vm564_vm4, %v533_v11 }
  0xc8   : > { %570 = vst.msk [vmem:[%s1200_s15 + $0x8] sm:$0xff] %vm564_vm4, %v563_v12 }
  0xc9 PF: > { %s576_s3 = sand.u32 1, %s1130_s25   ;;  %s1234_s27 = sshll.u32 %s1167_s14, 4 }
  0xca   : > { %s616_s13 = scalar_lea.hbm %s1319_s5, %s1234_s27  ;;  %s617_s17 = sshll.u32 %s1197_s18, 4  ;;  %s618_s17 = int_to_ptr.vmem [resolvable:$true] %s617_s17 }
  0xcb   : > { %s619_s1 = sshll.u32 %s616_s13, 4  ;;  %s1241_s19 = scalar_lea.sflag [#allocation6], %s576_s3  ;;  %s620_s1 = int_to_ptr.hbm [resolvable:$true] %s619_s1 }
  0xcc   : > { %s960_s20 = sshra.s32 %s620_s1, 4  ;;  %s966_s30 = scalar_lea.hbm %s1319_s5, 128  ;;  %s961_s20 = int_to_ptr.hbm [resolvable:$true] %s960_s20 }
  0xcd   : > { %s962_s29 = scalar_lea.hbm %s961_s20, 16  ;;  %p967_p10 = scmp.lt.s32.totalorder %s961_s20, %s1319_s5 }
  0xce   : > { %p963_p6 = scmp.ne.s32.totalorder %s961_s20, %s962_s29  ;;  %p968_p11 = scmp.lt.s32.totalorder %s966_s30, %s962_s29 }
  0xd0   : > { %p964_p7 = pnand %p963_p6, %p1147_p5  ;;  %p969_p12 = por %p968_p11, %p967_p10 }
  0xd2   : > { %p965_p8 = pneg %p964_p7 }
  0xd4   : > { %p970_p13 = pnand %p969_p12, %p965_p8 }
  0xd6   : > { %973 = shalt.err (!%p970_p13)
}
  0xd7   : > { %s1072_s18 = smov 128   ;;  %s1073_s16 = smov 8  }
  0xd8   : > { %883 = dma.vmem_to_hbm [thread:$0]  (%p1147_p5), %s618_s17, 256, %s620_s1, %s1241_s19, %s1072_s18, %s1072_s18, %s1073_s16  }
  0xd9   : > { %s596_s2 = scalar_lea.hbm %s1318_s4, %s1234_s27  ;;  %s597_s3 = sshll.u32 %s1194_s11, 4  ;;  %s598_s3 = int_to_ptr.vmem [resolvable:$true] %s597_s3 }
  0xda   : > { %s599_s28 = sshll.u32 %s596_s2, 4  ;;  %s1338_s8 = sand.u32 1, %s1060_s22   ;;  %s600_s28 = int_to_ptr.hbm [resolvable:$true] %s599_s28 }
  0xdb   : > { %s572_s13 = scalar_lea.sflag [#allocation4], %s1338_s8  ;;  %s988_s20 = sshra.s32 %s600_s28, 4  ;;  %s989_s20 = int_to_ptr.hbm [resolvable:$true] %s988_s20 }
  0xdc   : > { %s990_s29 = scalar_lea.hbm %s989_s20, 16  ;;  %s994_s17 = scalar_lea.hbm %s1318_s4, 128 }
  0xdd   : > { %p991_p0 = scmp.ne.s32.totalorder %s989_s20, %s990_s29  ;;  %p995_p3 = scmp.lt.s32.totalorder %s989_s20, %s1318_s4 }
  0xde   : > { %p996_p4 = scmp.lt.s32.totalorder %s994_s17, %s990_s29 }
  0xdf   : > { %p992_p1 = pnand %p991_p0, %p1147_p5 }
  0xe0   : > { %p997_p6 = por %p996_p4, %p995_p3 }
  0xe1   : > { %p993_p2 = pneg %p992_p1 }
  0xe3   : > { %p998_p7 = pnand %p997_p6, %p993_p2 }
  0xe5   : > { %1001 = shalt.err (!%p998_p7)
}
  0xe6   : > { %882 = dma.vmem_to_hbm [thread:$0]  (%p1147_p5), %s598_s3, 256, %s600_s28, %s572_s13, %s1072_s18, %s1072_s18, %s1073_s16  }
  0xe7   : > { %s636_s12 = scalar_lea.hbm %s1320_s6, %s1234_s27  ;;  %s637_s23 = sshll.u32 %s1200_s15, 4  ;;  %s638_s23 = int_to_ptr.vmem [resolvable:$true] %s637_s23 }
  0xe8   : > { %s639_s0 = sshll.u32 %s636_s12, 4  ;;  %s1022_s25 = scalar_lea.hbm %s1320_s6, 128  ;;  %s640_s0 = int_to_ptr.hbm [resolvable:$true] %s639_s0 }
  0xe9   : > { %s1016_s2 = sshra.s32 %s640_s0, 4  ;;  %s1017_s2 = int_to_ptr.hbm [resolvable:$true] %s1016_s2 }
  0xea   : > { %s1018_s8 = scalar_lea.hbm %s1017_s2, 16  ;;  %p1023_p12 = scmp.lt.s32.totalorder %s1017_s2, %s1320_s6 }
  0xeb   : > { %p1019_p8 = scmp.ne.s32.totalorder %s1017_s2, %s1018_s8  ;;  %p1024_p13 = scmp.lt.s32.totalorder %s1022_s25, %s1018_s8 }
  0xed   : > { %p1020_p10 = pnand %p1019_p8, %p1147_p5  ;;  %p1025_p0 = por %p1024_p13, %p1023_p12 }
  0xef   : > { %p1021_p11 = pneg %p1020_p10 }
  0xf1   : > { %p1026_p1 = pnand %p1025_p0, %p1021_p11 }
  0xf3   : > { %1029 = shalt.err (!%p1026_p1)
}
  0xf4   : > { %884 = dma.vmem_to_hbm [thread:$0]  (%p1147_p5), %s638_s23, 256, %s640_s0, %s1241_s19, %s1072_s18, %s1072_s18, %s1073_s16  }
  0xf5 PF: > { %p898_p2 = scmp.ge.s32.totalorder %s1068_s24, 2  ;;  %s654_s15 = sand.u32 1, %s1056_s21  }
  0xf6   : > { %s655_s27 = scalar_lea.sflag [#allocation4], %s654_s15 }
  0xf7   : > { %p889_p3 = pnand %p898_p2, %p1153_p9 }
  0xf9   : > { %p890_p4 = pneg %p889_p3 }
  0xfb   : > { %1047 = dma.done.wait (%p890_p4), %s655_s27, 256  }
  0xfc   : > { %1049 = vsyncadd (%p890_p4), %s655_s27, 4294967040  ;;  %s664_s13 = sand.u32 1, %s1133_s26  }
  0xfd   : > { %s665_s7 = scalar_lea.sflag [#allocation6], %s664_s13 }
  0xfe   : > { %1051 = dma.done.wait (%p890_p4), %s665_s7, 512  }
  0xff   : > { %1053 = vsyncadd (%p890_p4), %s665_s7, 4294966784  ;;  %s1339_s24 = sld [smem:[#allocation11_spill]]  ;;  %s1342_s21 = smov %s1060_s22 }
 0x100   : > { %s1340_s19 = sld [smem:[#allocation10_spill]] }
 0x101   : > { %s1341_s23 = sld [smem:[#allocation12_spill]] }
 0x105   : > { %p20_p5 = scmp.ge.s32.totalorder %s1339_s24, 12  }
 0x106   : > { %s1343_s22 = smov %s1340_s19 }
 0x107   :  { %22 = sbr.rel (!%p20_p5) target bundleno = 10 (0xa), region = 119 }
 0x10c   :  { %681 = vsyncpa [#allocation4], 1 }
 0x10d   :  { %683 = vsyncpa [#allocation4 + $0x1], 1 }
 0x10e   :  { %684 = vsyncpa [#allocation6], 1 }
 0x10f   :  { %686 = vsyncpa [#allocation6 + $0x1], 1 }

</bundles_post_ra>
